<compile_context>
chip_gen: v7x
topology: tpu7x:2x2x1
jax: 0.10.0
libtpu: 0.0.40
codegen_flags: <defaults>
</compile_context>

<pallas_src>
import functools

import jax
import jax.numpy as jnp
from jax.experimental import pallas as pl
from jax.experimental.pallas import tpu as pltpu


# ----------------------------------------------------------------------------
# Fused CGC kernel: one batch element per grid step.
# ----------------------------------------------------------------------------
def _cgc_kernel(h_ref, x_ref, wr_ref, wz_ref, wh_ref, b_ref, o_ref,
                pwr_ref, pwz_ref, pwh_ref, *, H, W, HID, INP):
    bf16 = jnp.bfloat16
    f32 = jnp.float32
    cin_r = HID + INP
    cin_zh = 2 * HID

    # Zero the shifted-input scratch buffers.  Their zero row-0 / row-(H+1) and
    # the columns left untouched by the dx-shifted writes implement the conv's
    # SAME (zero) padding.  Interiors are fully overwritten below.
    pwr_ref[...] = jnp.zeros_like(pwr_ref)
    pwz_ref[...] = jnp.zeros_like(pwz_ref)
    pwh_ref[...] = jnp.zeros_like(pwh_ref)

    def place(dst_ref, val, cin_total, chan_off):
        # Write the three horizontally (dx) shifted copies of `val` (H, W, C)
        # into dst_ref rows 1..H at lane blocks dx*cin_total + chan_off, i.e.
        #   dst_ref[r, j, dx*cin_total + chan_off + c] == zero-padded input at
        #   spatial position (r, j + dx), channel c.
        C = val.shape[-1]
        o0 = 0 * cin_total + chan_off
        o1 = 1 * cin_total + chan_off
        o2 = 2 * cin_total + chan_off
        # dx = 1: centered, no shift.
        dst_ref[1:H + 1, :, o1:o1 + C] = val
        # dx = 0: shifted right by one column; column 0 stays zero (padding).
        dst_ref[1:H + 1, 1:W, o0:o0 + C] = val[:, :W - 1, :]
        # dx = 2: shifted left by one column; column W-1 stays zero (padding).
        dst_ref[1:H + 1, 0:W - 1, o2:o2 + C] = val[:, 1:, :]

    def conv(pw_ref, w_ref, bias, cin_total):
        # 3x3 SAME conv == 3 matmuls, one per vertical tap dy:
        #   (H*W, 3*cin_total) @ (3*cin_total, HID), bf16 in / f32 accumulate.
        # The LHS is a leading-dim slice + layout-preserving reshape (W and
        # 3*cin_total are multiples of the bf16 tile), so no per-tap copy.
        acc = jnp.zeros((H * W, HID), f32)
        for dy in range(3):
            lhs = pw_ref[dy:dy + H, :, :].reshape(H * W, 3 * cin_total)
            acc = acc + jnp.dot(lhs, w_ref[dy], preferred_element_type=f32)
        return acc + bias  # bias: (1, HID) f32, broadcasts over rows.

    h_in = h_ref[0].astype(bf16)   # (H, W, HID)
    x_in = x_ref[0].astype(bf16)   # (H, W, INP)

    # r-gate conv input: cat([h, x], channel) -> lane blocks [h | x] per dx.
    place(pwr_ref, h_in, cin_r, 0)
    place(pwr_ref, x_in, cin_r, HID)
    # h-part of the z-gate input (independent of ch) can be placed right away.
    place(pwz_ref, h_in, cin_zh, HID)

    ch = jax.nn.sigmoid(conv(pwr_ref, wr_ref, b_ref[0], cin_r))   # (H*W, HID) f32
    ch3 = ch.astype(bf16).reshape(H, W, HID)
    place(pwz_ref, ch3, cin_zh, 0)      # z-gate input: cat([ch, h])
    place(pwh_ref, ch3, cin_zh, HID)    # h-cand input: cat([z, ch])

    z = jax.nn.sigmoid(conv(pwz_ref, wz_ref, b_ref[1], cin_zh))
    z3 = z.astype(bf16).reshape(H, W, HID)
    place(pwh_ref, z3, cin_zh, 0)

    hn = jnp.tanh(conv(pwh_ref, wh_ref, b_ref[2], cin_zh))        # (H*W, HID) f32
    o_ref[...] = hn.reshape(1, H, W, HID).astype(o_ref.dtype)


# ----------------------------------------------------------------------------
# Wrapper: NCHW in / NCHW out, matching the PyTorch module interface.
# ----------------------------------------------------------------------------
def cgc_forward(h, x, params):
    B, HID, H, W = h.shape
    INP = x.shape[1]
    cin_r = HID + INP
    cin_zh = 2 * HID

    h_ = jnp.transpose(h, (0, 2, 3, 1)).astype(jnp.bfloat16)   # NHWC, bf16
    x_ = jnp.transpose(x, (0, 2, 3, 1)).astype(jnp.bfloat16)

    def prep_w(w):  # HWIO (3, 3, Cin, Cout) -> (3, 3*Cin, Cout), bf16
        return w.reshape(3, 3 * w.shape[2], w.shape[3]).astype(jnp.bfloat16)

    wr = prep_w(params["wr"])
    wz = prep_w(params["wz"])
    wh = prep_w(params["wh"])
    bias = jnp.stack([params["br"], params["bz"], params["bh"]])[:, None, :]
    bias = bias.astype(jnp.float32)                            # (3, 1, HID)

    out = pl.pallas_call(
        functools.partial(_cgc_kernel, H=H, W=W, HID=HID, INP=INP),
        out_shape=jax.ShapeDtypeStruct((B, H, W, HID), jnp.float32),
        grid=(B,),
        in_specs=[
            pl.BlockSpec((1, H, W, HID), lambda b: (b, 0, 0, 0)),
            pl.BlockSpec((1, H, W, INP), lambda b: (b, 0, 0, 0)),
            pl.BlockSpec((3, 3 * cin_r, HID), lambda b: (0, 0, 0)),
            pl.BlockSpec((3, 3 * cin_zh, HID), lambda b: (0, 0, 0)),
            pl.BlockSpec((3, 3 * cin_zh, HID), lambda b: (0, 0, 0)),
            pl.BlockSpec((3, 1, HID), lambda b: (0, 0, 0)),
        ],
        out_specs=pl.BlockSpec((1, H, W, HID), lambda b: (b, 0, 0, 0)),
        scratch_shapes=[
            pltpu.VMEM((H + 2, W, 3 * cin_r), jnp.bfloat16),   # r-gate input
            pltpu.VMEM((H + 2, W, 3 * cin_zh), jnp.bfloat16),  # z-gate input
            pltpu.VMEM((H + 2, W, 3 * cin_zh), jnp.bfloat16),  # h-cand input
        ],
        compiler_params=pltpu.CompilerParams(
            dimension_semantics=("parallel",)),
    )(h_, x_, wr, wz, wh, bias)

    return jnp.transpose(out, (0, 3, 1, 2))  # -> NCHW


# ----------------------------------------------------------------------------
# Pure-JAX reference with matching bf16 matmul inputs (f32 accumulation),
# for an apples-to-apples correctness check.
# ----------------------------------------------------------------------------
def _conv_ref(x_nhwc, w_hwio, bias):
    y = jax.lax.conv_general_dilated(
        x_nhwc.astype(jnp.bfloat16), w_hwio.astype(jnp.bfloat16),
        window_strides=(1, 1), padding="SAME",
        dimension_numbers=("NHWC", "HWIO", "NHWC"),
        preferred_element_type=jnp.float32)
    return y + bias[None, None, None, :]


def cgc_ref(h, x, params):
    h_ = jnp.transpose(h, (0, 2, 3, 1))
    x_ = jnp.transpose(x, (0, 2, 3, 1))
    hx = jnp.concatenate([h_, x_], axis=-1)
    ch = jax.nn.sigmoid(_conv_ref(hx, params["wr"], params["br"]))
    q = jnp.concatenate([ch, h_], axis=-1)
    z = jax.nn.sigmoid(_conv_ref(q, params["wz"], params["bz"]))
    zc = jnp.concatenate([z, ch], axis=-1)
    hn = jnp.tanh(_conv_ref(zc, params["wh"], params["bh"]))
    return jnp.transpose(hn, (0, 3, 1, 2))


if __name__ == "__main__":
    # Small shapes consistent with the module: hidden_dim=64, input_dim=64,
    # batch=2, spatial 16x16 (W is a multiple of the bf16 sublane tile so the
    # in-kernel matmul-operand reshapes stay layout-preserving).
    B, HID, INP, H, W = 2, 64, 64, 16, 16

    key = jax.random.PRNGKey(0)
    k = jax.random.split(key, 8)

    h = jax.random.normal(k[0], (B, HID, H, W), jnp.float32)
    x = jax.random.normal(k[1], (B, INP, H, W), jnp.float32)

    def winit(key_, cin, cout):
        return 0.05 * jax.random.normal(key_, (3, 3, cin, cout), jnp.float32)

    params = {
        "wr": winit(k[2], HID + INP, HID),
        "br": 0.05 * jax.random.normal(k[3], (HID,), jnp.float32),
        "wz": winit(k[4], HID + HID, HID),
        "bz": 0.05 * jax.random.normal(k[5], (HID,), jnp.float32),
        "wh": winit(k[6], HID + HID, HID),
        "bh": 0.05 * jax.random.normal(k[7], (HID,), jnp.float32),
    }

    out = jax.jit(cgc_forward)(h, x, params)
    out = jax.block_until_ready(out)

    ref = jax.block_until_ready(cgc_ref(h, x, params))
    assert out.shape == (B, HID, H, W), out.shape
    # bf16 MXU inputs -> compare against the bf16-matched reference.
    assert jnp.allclose(out, ref, rtol=2e-2, atol=2e-2), (
        float(jnp.max(jnp.abs(out - ref))))

    print("KERNEL_OK")
</pallas_src>

<mosaic_0001>
module attributes {stable_mosaic.version = 11 : i64} {
  func.func @_cgc_kernel(%arg0: i32, %arg1: memref<1x16x16x64xbf16, #tpu.memory_space<vmem>>, %arg2: memref<1x16x16x64xbf16, #tpu.memory_space<vmem>>, %arg3: memref<3x384x64xbf16, #tpu.memory_space<vmem>>, %arg4: memref<3x384x64xbf16, #tpu.memory_space<vmem>>, %arg5: memref<3x384x64xbf16, #tpu.memory_space<vmem>>, %arg6: memref<3x1x64xf32, #tpu.memory_space<vmem>>, %arg7: memref<1x16x16x64xf32, #tpu.memory_space<vmem>>, %arg8: memref<18x16x384xbf16, #tpu.memory_space<vmem>>, %arg9: memref<18x16x384xbf16, #tpu.memory_space<vmem>>, %arg10: memref<18x16x384xbf16, #tpu.memory_space<vmem>>) attributes {dimension_semantics = [#tpu.dimension_semantics<parallel>], iteration_bounds = array<i64: 2>, scalar_prefetch = 0 : i64, scratch_operands = 3 : i64, tpu.core_type = #tpu.core_type<tc>, window_params = [{transform_indices = @transform_0, window_bounds = array<i64: 1, 16, 16, 64>}, {transform_indices = @transform_1, window_bounds = array<i64: 1, 16, 16, 64>}, {pipeline_mode = #tpu.pipeline_mode<synchronous>, transform_indices = @transform_2, window_bounds = array<i64: 3, 384, 64>}, {pipeline_mode = #tpu.pipeline_mode<synchronous>, transform_indices = @transform_3, window_bounds = array<i64: 3, 384, 64>}, {pipeline_mode = #tpu.pipeline_mode<synchronous>, transform_indices = @transform_4, window_bounds = array<i64: 3, 384, 64>}, {pipeline_mode = #tpu.pipeline_mode<synchronous>, transform_indices = @transform_5, window_bounds = array<i64: 3, 1, 64>}, {transform_indices = @transform_6, window_bounds = array<i64: 1, 16, 16, 64>}]} {
    %cst = arith.constant 0.000000e+00 : bf16
    %0 = vector.broadcast %cst : bf16 to vector<18x16x384xbf16>
    %c0 = arith.constant 0 : index
    %c0_0 = arith.constant 0 : index
    %c0_1 = arith.constant 0 : index
    %1 = vector.load %arg8[%c0, %c0_0, %c0_1] : memref<18x16x384xbf16, #tpu.memory_space<vmem>>, vector<18x16x384xbf16>
    tpu.vector_store %arg8[%c0, %c0_0, %c0_1], %0 {strides = array<i32>} : memref<18x16x384xbf16, #tpu.memory_space<vmem>>, vector<18x16x384xbf16>,
    %cst_2 = arith.constant 0.000000e+00 : bf16
    %2 = vector.broadcast %cst_2 : bf16 to vector<18x16x384xbf16>
    %c0_3 = arith.constant 0 : index
    %c0_4 = arith.constant 0 : index
    %c0_5 = arith.constant 0 : index
    %3 = vector.load %arg9[%c0_3, %c0_4, %c0_5] : memref<18x16x384xbf16, #tpu.memory_space<vmem>>, vector<18x16x384xbf16>
    tpu.vector_store %arg9[%c0_3, %c0_4, %c0_5], %2 {strides = array<i32>} : memref<18x16x384xbf16, #tpu.memory_space<vmem>>, vector<18x16x384xbf16>,
    %cst_6 = arith.constant 0.000000e+00 : bf16
    %4 = vector.broadcast %cst_6 : bf16 to vector<18x16x384xbf16>
    %c0_7 = arith.constant 0 : index
    %c0_8 = arith.constant 0 : index
    %c0_9 = arith.constant 0 : index
    %5 = vector.load %arg10[%c0_7, %c0_8, %c0_9] : memref<18x16x384xbf16, #tpu.memory_space<vmem>>, vector<18x16x384xbf16>
    tpu.vector_store %arg10[%c0_7, %c0_8, %c0_9], %4 {strides = array<i32>} : memref<18x16x384xbf16, #tpu.memory_space<vmem>>, vector<18x16x384xbf16>,
    %c0_10 = arith.constant 0 : index
    %c0_11 = arith.constant 0 : index
    %c0_12 = arith.constant 0 : index
    %c0_13 = arith.constant 0 : index
    %6 = vector.load %arg1[%c0_10, %c0_11, %c0_12, %c0_13] : memref<1x16x16x64xbf16, #tpu.memory_space<vmem>>, vector<1x16x16x64xbf16>
    %7 = vector.shape_cast %6 : vector<1x16x16x64xbf16> to vector<16x16x64xbf16>
    %c0_14 = arith.constant 0 : index
    %c0_15 = arith.constant 0 : index
    %c0_16 = arith.constant 0 : index
    %c0_17 = arith.constant 0 : index
    %8 = vector.load %arg2[%c0_14, %c0_15, %c0_16, %c0_17] : memref<1x16x16x64xbf16, #tpu.memory_space<vmem>>, vector<1x16x16x64xbf16>
    %9 = vector.shape_cast %8 : vector<1x16x16x64xbf16> to vector<16x16x64xbf16>
    %c1 = arith.constant 1 : index
    %c0_18 = arith.constant 0 : index
    %c128 = arith.constant 128 : index
    %10 = vector.load %arg8[%c1, %c0_18, %c128] : memref<18x16x384xbf16, #tpu.memory_space<vmem>>, vector<16x16x64xbf16>
    tpu.vector_store %arg8[%c1, %c0_18, %c128], %7 {strides = array<i32>} : memref<18x16x384xbf16, #tpu.memory_space<vmem>>, vector<16x16x64xbf16>,
    %11 = vector.extract_strided_slice %7 {offsets = [0, 0, 0], sizes = [16, 15, 64], strides = [1, 1, 1]} : vector<16x16x64xbf16> to vector<16x15x64xbf16>
    %c1_19 = arith.constant 1 : index
    %c1_20 = arith.constant 1 : index
    %c0_21 = arith.constant 0 : index
    %12 = vector.load %arg8[%c1_19, %c1_20, %c0_21] : memref<18x16x384xbf16, #tpu.memory_space<vmem>>, vector<16x15x64xbf16>
    tpu.vector_store %arg8[%c1_19, %c1_20, %c0_21], %11 {strides = array<i32>} : memref<18x16x384xbf16, #tpu.memory_space<vmem>>, vector<16x15x64xbf16>,
    %13 = vector.extract_strided_slice %7 {offsets = [0, 1, 0], sizes = [16, 15, 64], strides = [1, 1, 1]} : vector<16x16x64xbf16> to vector<16x15x64xbf16>
    %c1_22 = arith.constant 1 : index
    %c0_23 = arith.constant 0 : index
    %c256 = arith.constant 256 : index
    %14 = vector.load %arg8[%c1_22, %c0_23, %c256] : memref<18x16x384xbf16, #tpu.memory_space<vmem>>, vector<16x15x64xbf16>
    tpu.vector_store %arg8[%c1_22, %c0_23, %c256], %13 {strides = array<i32>} : memref<18x16x384xbf16, #tpu.memory_space<vmem>>, vector<16x15x64xbf16>,
    %c1_24 = arith.constant 1 : index
    %c0_25 = arith.constant 0 : index
    %c192 = arith.constant 192 : index
    %15 = vector.load %arg8[%c1_24, %c0_25, %c192] : memref<18x16x384xbf16, #tpu.memory_space<vmem>>, vector<16x16x64xbf16>
    tpu.vector_store %arg8[%c1_24, %c0_25, %c192], %9 {strides = array<i32>} : memref<18x16x384xbf16, #tpu.memory_space<vmem>>, vector<16x16x64xbf16>,
    %16 = vector.extract_strided_slice %9 {offsets = [0, 0, 0], sizes = [16, 15, 64], strides = [1, 1, 1]} : vector<16x16x64xbf16> to vector<16x15x64xbf16>
    %c1_26 = arith.constant 1 : index
    %c1_27 = arith.constant 1 : index
    %c64 = arith.constant 64 : index
    %17 = vector.load %arg8[%c1_26, %c1_27, %c64] : memref<18x16x384xbf16, #tpu.memory_space<vmem>>, vector<16x15x64xbf16>
    tpu.vector_store %arg8[%c1_26, %c1_27, %c64], %16 {strides = array<i32>} : memref<18x16x384xbf16, #tpu.memory_space<vmem>>, vector<16x15x64xbf16>,
    %18 = vector.extract_strided_slice %9 {offsets = [0, 1, 0], sizes = [16, 15, 64], strides = [1, 1, 1]} : vector<16x16x64xbf16> to vector<16x15x64xbf16>
    %c1_28 = arith.constant 1 : index
    %c0_29 = arith.constant 0 : index
    %c320 = arith.constant 320 : index
    %19 = vector.load %arg8[%c1_28, %c0_29, %c320] : memref<18x16x384xbf16, #tpu.memory_space<vmem>>, vector<16x15x64xbf16>
    tpu.vector_store %arg8[%c1_28, %c0_29, %c320], %18 {strides = array<i32>} : memref<18x16x384xbf16, #tpu.memory_space<vmem>>, vector<16x15x64xbf16>,
    %c1_30 = arith.constant 1 : index
    %c0_31 = arith.constant 0 : index
    %c192_32 = arith.constant 192 : index
    %20 = vector.load %arg9[%c1_30, %c0_31, %c192_32] : memref<18x16x384xbf16, #tpu.memory_space<vmem>>, vector<16x16x64xbf16>
    tpu.vector_store %arg9[%c1_30, %c0_31, %c192_32], %7 {strides = array<i32>} : memref<18x16x384xbf16, #tpu.memory_space<vmem>>, vector<16x16x64xbf16>,
    %21 = vector.extract_strided_slice %7 {offsets = [0, 0, 0], sizes = [16, 15, 64], strides = [1, 1, 1]} : vector<16x16x64xbf16> to vector<16x15x64xbf16>
    %c1_33 = arith.constant 1 : index
    %c1_34 = arith.constant 1 : index
    %c64_35 = arith.constant 64 : index
    %22 = vector.load %arg9[%c1_33, %c1_34, %c64_35] : memref<18x16x384xbf16, #tpu.memory_space<vmem>>, vector<16x15x64xbf16>
    tpu.vector_store %arg9[%c1_33, %c1_34, %c64_35], %21 {strides = array<i32>} : memref<18x16x384xbf16, #tpu.memory_space<vmem>>, vector<16x15x64xbf16>,
    %23 = vector.extract_strided_slice %7 {offsets = [0, 1, 0], sizes = [16, 15, 64], strides = [1, 1, 1]} : vector<16x16x64xbf16> to vector<16x15x64xbf16>
    %c1_36 = arith.constant 1 : index
    %c0_37 = arith.constant 0 : index
    %c320_38 = arith.constant 320 : index
    %24 = vector.load %arg9[%c1_36, %c0_37, %c320_38] : memref<18x16x384xbf16, #tpu.memory_space<vmem>>, vector<16x15x64xbf16>
    tpu.vector_store %arg9[%c1_36, %c0_37, %c320_38], %23 {strides = array<i32>} : memref<18x16x384xbf16, #tpu.memory_space<vmem>>, vector<16x15x64xbf16>,
    %c0_39 = arith.constant 0 : index
    %c0_40 = arith.constant 0 : index
    %c0_41 = arith.constant 0 : index
    %25 = vector.load %arg6[%c0_39, %c0_40, %c0_41] : memref<3x1x64xf32, #tpu.memory_space<vmem>>, vector<1x1x64xf32>
    %26 = vector.shape_cast %25 : vector<1x1x64xf32> to vector<1x64xf32>
    %cst_42 = arith.constant 0.000000e+00 : f32
    %27 = vector.broadcast %cst_42 : f32 to vector<256x64xf32>
    %c0_43 = arith.constant 0 : index
    %c0_44 = arith.constant 0 : index
    %c0_45 = arith.constant 0 : index
    %28 = vector.load %arg8[%c0_43, %c0_44, %c0_45] : memref<18x16x384xbf16, #tpu.memory_space<vmem>>, vector<16x16x384xbf16>
    %29 = vector.shape_cast %28 : vector<16x16x384xbf16> to vector<256x384xbf16>
    %c0_46 = arith.constant 0 : index
    %c0_47 = arith.constant 0 : index
    %c0_48 = arith.constant 0 : index
    %30 = vector.load %arg3[%c0_46, %c0_47, %c0_48] : memref<3x384x64xbf16, #tpu.memory_space<vmem>>, vector<1x384x64xbf16>
    %31 = vector.shape_cast %30 : vector<1x384x64xbf16> to vector<384x64xbf16>
    %cst_49 = arith.constant dense<0.000000e+00> : vector<256x64xf32>
    %32 = tpu.matmul %29, %31, %cst_49 {dimension_numbers = #tpu.dot_dimension_numbers<[1], [0], [0], [1], [0, 0, 1, 1], [], []>} : vector<256x384xbf16>, vector<384x64xbf16>, vector<256x64xf32> -> vector<256x64xf32>
    %33 = arith.addf %27, %32 : vector<256x64xf32>
    %c1_50 = arith.constant 1 : index
    %c0_51 = arith.constant 0 : index
    %c0_52 = arith.constant 0 : index
    %34 = vector.load %arg8[%c1_50, %c0_51, %c0_52] : memref<18x16x384xbf16, #tpu.memory_space<vmem>>, vector<16x16x384xbf16>
    %35 = vector.shape_cast %34 : vector<16x16x384xbf16> to vector<256x384xbf16>
    %c1_53 = arith.constant 1 : index
    %c0_54 = arith.constant 0 : index
    %c0_55 = arith.constant 0 : index
    %36 = vector.load %arg3[%c1_53, %c0_54, %c0_55] : memref<3x384x64xbf16, #tpu.memory_space<vmem>>, vector<1x384x64xbf16>
    %37 = vector.shape_cast %36 : vector<1x384x64xbf16> to vector<384x64xbf16>
    %cst_56 = arith.constant dense<0.000000e+00> : vector<256x64xf32>
    %38 = tpu.matmul %35, %37, %cst_56 {dimension_numbers = #tpu.dot_dimension_numbers<[1], [0], [0], [1], [0, 0, 1, 1], [], []>} : vector<256x384xbf16>, vector<384x64xbf16>, vector<256x64xf32> -> vector<256x64xf32>
    %39 = arith.addf %33, %38 : vector<256x64xf32>
    %c2 = arith.constant 2 : index
    %c0_57 = arith.constant 0 : index
    %c0_58 = arith.constant 0 : index
    %40 = vector.load %arg8[%c2, %c0_57, %c0_58] : memref<18x16x384xbf16, #tpu.memory_space<vmem>>, vector<16x16x384xbf16>
    %41 = vector.shape_cast %40 : vector<16x16x384xbf16> to vector<256x384xbf16>
    %c2_59 = arith.constant 2 : index
    %c0_60 = arith.constant 0 : index
    %c0_61 = arith.constant 0 : index
    %42 = vector.load %arg3[%c2_59, %c0_60, %c0_61] : memref<3x384x64xbf16, #tpu.memory_space<vmem>>, vector<1x384x64xbf16>
    %43 = vector.shape_cast %42 : vector<1x384x64xbf16> to vector<384x64xbf16>
    %cst_62 = arith.constant dense<0.000000e+00> : vector<256x64xf32>
    %44 = tpu.matmul %41, %43, %cst_62 {dimension_numbers = #tpu.dot_dimension_numbers<[1], [0], [0], [1], [0, 0, 1, 1], [], []>} : vector<256x384xbf16>, vector<384x64xbf16>, vector<256x64xf32> -> vector<256x64xf32>
    %45 = arith.addf %39, %44 : vector<256x64xf32>
    %46 = vector.broadcast %26 : vector<1x64xf32> to vector<256x64xf32>
    %47 = arith.addf %45, %46 : vector<256x64xf32>
    %48 = arith.negf %47 : vector<256x64xf32>
    %49 = math.exp %48 : vector<256x64xf32>
    %cst_63 = arith.constant 1.000000e+00 : f32
    %50 = vector.broadcast %cst_63 : f32 to vector<256x64xf32>
    %51 = arith.addf %50, %49 : vector<256x64xf32>
    %52 = arith.divf %50, %51 : vector<256x64xf32>
    %53 = arith.truncf %52 : vector<256x64xf32> to vector<256x64xbf16>
    %54 = vector.shape_cast %53 : vector<256x64xbf16> to vector<16x16x64xbf16>
    %c1_64 = arith.constant 1 : index
    %c0_65 = arith.constant 0 : index
    %c128_66 = arith.constant 128 : index
    %55 = vector.load %arg9[%c1_64, %c0_65, %c128_66] : memref<18x16x384xbf16, #tpu.memory_space<vmem>>, vector<16x16x64xbf16>
    tpu.vector_store %arg9[%c1_64, %c0_65, %c128_66], %54 {strides = array<i32>} : memref<18x16x384xbf16, #tpu.memory_space<vmem>>, vector<16x16x64xbf16>,
    %56 = vector.extract_strided_slice %54 {offsets = [0, 0, 0], sizes = [16, 15, 64], strides = [1, 1, 1]} : vector<16x16x64xbf16> to vector<16x15x64xbf16>
    %c1_67 = arith.constant 1 : index
    %c1_68 = arith.constant 1 : index
    %c0_69 = arith.constant 0 : index
    %57 = vector.load %arg9[%c1_67, %c1_68, %c0_69] : memref<18x16x384xbf16, #tpu.memory_space<vmem>>, vector<16x15x64xbf16>
    tpu.vector_store %arg9[%c1_67, %c1_68, %c0_69], %56 {strides = array<i32>} : memref<18x16x384xbf16, #tpu.memory_space<vmem>>, vector<16x15x64xbf16>,
    %58 = vector.extract_strided_slice %54 {offsets = [0, 1, 0], sizes = [16, 15, 64], strides = [1, 1, 1]} : vector<16x16x64xbf16> to vector<16x15x64xbf16>
    %c1_70 = arith.constant 1 : index
    %c0_71 = arith.constant 0 : index
    %c256_72 = arith.constant 256 : index
    %59 = vector.load %arg9[%c1_70, %c0_71, %c256_72] : memref<18x16x384xbf16, #tpu.memory_space<vmem>>, vector<16x15x64xbf16>
    tpu.vector_store %arg9[%c1_70, %c0_71, %c256_72], %58 {strides = array<i32>} : memref<18x16x384xbf16, #tpu.memory_space<vmem>>, vector<16x15x64xbf16>,
    %c1_73 = arith.constant 1 : index
    %c0_74 = arith.constant 0 : index
    %c192_75 = arith.constant 192 : index
    %60 = vector.load %arg10[%c1_73, %c0_74, %c192_75] : memref<18x16x384xbf16, #tpu.memory_space<vmem>>, vector<16x16x64xbf16>
    tpu.vector_store %arg10[%c1_73, %c0_74, %c192_75], %54 {strides = array<i32>} : memref<18x16x384xbf16, #tpu.memory_space<vmem>>, vector<16x16x64xbf16>,
    %61 = vector.extract_strided_slice %54 {offsets = [0, 0, 0], sizes = [16, 15, 64], strides = [1, 1, 1]} : vector<16x16x64xbf16> to vector<16x15x64xbf16>
    %c1_76 = arith.constant 1 : index
    %c1_77 = arith.constant 1 : index
    %c64_78 = arith.constant 64 : index
    %62 = vector.load %arg10[%c1_76, %c1_77, %c64_78] : memref<18x16x384xbf16, #tpu.memory_space<vmem>>, vector<16x15x64xbf16>
    tpu.vector_store %arg10[%c1_76, %c1_77, %c64_78], %61 {strides = array<i32>} : memref<18x16x384xbf16, #tpu.memory_space<vmem>>, vector<16x15x64xbf16>,
    %63 = vector.extract_strided_slice %54 {offsets = [0, 1, 0], sizes = [16, 15, 64], strides = [1, 1, 1]} : vector<16x16x64xbf16> to vector<16x15x64xbf16>
    %c1_79 = arith.constant 1 : index
    %c0_80 = arith.constant 0 : index
    %c320_81 = arith.constant 320 : index
    %64 = vector.load %arg10[%c1_79, %c0_80, %c320_81] : memref<18x16x384xbf16, #tpu.memory_space<vmem>>, vector<16x15x64xbf16>
    tpu.vector_store %arg10[%c1_79, %c0_80, %c320_81], %63 {strides = array<i32>} : memref<18x16x384xbf16, #tpu.memory_space<vmem>>, vector<16x15x64xbf16>,
    %c1_82 = arith.constant 1 : index
    %c0_83 = arith.constant 0 : index
    %c0_84 = arith.constant 0 : index
    %65 = vector.load %arg6[%c1_82, %c0_83, %c0_84] : memref<3x1x64xf32, #tpu.memory_space<vmem>>, vector<1x1x64xf32>
    %66 = vector.shape_cast %65 : vector<1x1x64xf32> to vector<1x64xf32>
    %cst_85 = arith.constant 0.000000e+00 : f32
    %67 = vector.broadcast %cst_85 : f32 to vector<256x64xf32>
    %c0_86 = arith.constant 0 : index
    %c0_87 = arith.constant 0 : index
    %c0_88 = arith.constant 0 : index
    %68 = vector.load %arg9[%c0_86, %c0_87, %c0_88] : memref<18x16x384xbf16, #tpu.memory_space<vmem>>, vector<16x16x384xbf16>
    %69 = vector.shape_cast %68 : vector<16x16x384xbf16> to vector<256x384xbf16>
    %c0_89 = arith.constant 0 : index
    %c0_90 = arith.constant 0 : index
    %c0_91 = arith.constant 0 : index
    %70 = vector.load %arg4[%c0_89, %c0_90, %c0_91] : memref<3x384x64xbf16, #tpu.memory_space<vmem>>, vector<1x384x64xbf16>
    %71 = vector.shape_cast %70 : vector<1x384x64xbf16> to vector<384x64xbf16>
    %cst_92 = arith.constant dense<0.000000e+00> : vector<256x64xf32>
    %72 = tpu.matmul %69, %71, %cst_92 {dimension_numbers = #tpu.dot_dimension_numbers<[1], [0], [0], [1], [0, 0, 1, 1], [], []>} : vector<256x384xbf16>, vector<384x64xbf16>, vector<256x64xf32> -> vector<256x64xf32>
    %73 = arith.addf %67, %72 : vector<256x64xf32>
    %c1_93 = arith.constant 1 : index
    %c0_94 = arith.constant 0 : index
    %c0_95 = arith.constant 0 : index
    %74 = vector.load %arg9[%c1_93, %c0_94, %c0_95] : memref<18x16x384xbf16, #tpu.memory_space<vmem>>, vector<16x16x384xbf16>
    %75 = vector.shape_cast %74 : vector<16x16x384xbf16> to vector<256x384xbf16>
    %c1_96 = arith.constant 1 : index
    %c0_97 = arith.constant 0 : index
    %c0_98 = arith.constant 0 : index
    %76 = vector.load %arg4[%c1_96, %c0_97, %c0_98] : memref<3x384x64xbf16, #tpu.memory_space<vmem>>, vector<1x384x64xbf16>
    %77 = vector.shape_cast %76 : vector<1x384x64xbf16> to vector<384x64xbf16>
    %cst_99 = arith.constant dense<0.000000e+00> : vector<256x64xf32>
    %78 = tpu.matmul %75, %77, %cst_99 {dimension_numbers = #tpu.dot_dimension_numbers<[1], [0], [0], [1], [0, 0, 1, 1], [], []>} : vector<256x384xbf16>, vector<384x64xbf16>, vector<256x64xf32> -> vector<256x64xf32>
    %79 = arith.addf %73, %78 : vector<256x64xf32>
    %c2_100 = arith.constant 2 : index
    %c0_101 = arith.constant 0 : index
    %c0_102 = arith.constant 0 : index
    %80 = vector.load %arg9[%c2_100, %c0_101, %c0_102] : memref<18x16x384xbf16, #tpu.memory_space<vmem>>, vector<16x16x384xbf16>
    %81 = vector.shape_cast %80 : vector<16x16x384xbf16> to vector<256x384xbf16>
    %c2_103 = arith.constant 2 : index
    %c0_104 = arith.constant 0 : index
    %c0_105 = arith.constant 0 : index
    %82 = vector.load %arg4[%c2_103, %c0_104, %c0_105] : memref<3x384x64xbf16, #tpu.memory_space<vmem>>, vector<1x384x64xbf16>
    %83 = vector.shape_cast %82 : vector<1x384x64xbf16> to vector<384x64xbf16>
    %cst_106 = arith.constant dense<0.000000e+00> : vector<256x64xf32>
    %84 = tpu.matmul %81, %83, %cst_106 {dimension_numbers = #tpu.dot_dimension_numbers<[1], [0], [0], [1], [0, 0, 1, 1], [], []>} : vector<256x384xbf16>, vector<384x64xbf16>, vector<256x64xf32> -> vector<256x64xf32>
    %85 = arith.addf %79, %84 : vector<256x64xf32>
    %86 = vector.broadcast %66 : vector<1x64xf32> to vector<256x64xf32>
    %87 = arith.addf %85, %86 : vector<256x64xf32>
    %88 = arith.negf %87 : vector<256x64xf32>
    %89 = math.exp %88 : vector<256x64xf32>
    %cst_107 = arith.constant 1.000000e+00 : f32
    %90 = vector.broadcast %cst_107 : f32 to vector<256x64xf32>
    %91 = arith.addf %90, %89 : vector<256x64xf32>
    %92 = arith.divf %90, %91 : vector<256x64xf32>
    %93 = arith.truncf %92 : vector<256x64xf32> to vector<256x64xbf16>
    %94 = vector.shape_cast %93 : vector<256x64xbf16> to vector<16x16x64xbf16>
    %c1_108 = arith.constant 1 : index
    %c0_109 = arith.constant 0 : index
    %c128_110 = arith.constant 128 : index
    %95 = vector.load %arg10[%c1_108, %c0_109, %c128_110] : memref<18x16x384xbf16, #tpu.memory_space<vmem>>, vector<16x16x64xbf16>
    tpu.vector_store %arg10[%c1_108, %c0_109, %c128_110], %94 {strides = array<i32>} : memref<18x16x384xbf16, #tpu.memory_space<vmem>>, vector<16x16x64xbf16>,
    %96 = vector.extract_strided_slice %94 {offsets = [0, 0, 0], sizes = [16, 15, 64], strides = [1, 1, 1]} : vector<16x16x64xbf16> to vector<16x15x64xbf16>
    %c1_111 = arith.constant 1 : index
    %c1_112 = arith.constant 1 : index
    %c0_113 = arith.constant 0 : index
    %97 = vector.load %arg10[%c1_111, %c1_112, %c0_113] : memref<18x16x384xbf16, #tpu.memory_space<vmem>>, vector<16x15x64xbf16>
    tpu.vector_store %arg10[%c1_111, %c1_112, %c0_113], %96 {strides = array<i32>} : memref<18x16x384xbf16, #tpu.memory_space<vmem>>, vector<16x15x64xbf16>,
    %98 = vector.extract_strided_slice %94 {offsets = [0, 1, 0], sizes = [16, 15, 64], strides = [1, 1, 1]} : vector<16x16x64xbf16> to vector<16x15x64xbf16>
    %c1_114 = arith.constant 1 : index
    %c0_115 = arith.constant 0 : index
    %c256_116 = arith.constant 256 : index
    %99 = vector.load %arg10[%c1_114, %c0_115, %c256_116] : memref<18x16x384xbf16, #tpu.memory_space<vmem>>, vector<16x15x64xbf16>
    tpu.vector_store %arg10[%c1_114, %c0_115, %c256_116], %98 {strides = array<i32>} : memref<18x16x384xbf16, #tpu.memory_space<vmem>>, vector<16x15x64xbf16>,
    %c2_117 = arith.constant 2 : index
    %c0_118 = arith.constant 0 : index
    %c0_119 = arith.constant 0 : index
    %100 = vector.load %arg6[%c2_117, %c0_118, %c0_119] : memref<3x1x64xf32, #tpu.memory_space<vmem>>, vector<1x1x64xf32>
    %101 = vector.shape_cast %100 : vector<1x1x64xf32> to vector<1x64xf32>
    %cst_120 = arith.constant 0.000000e+00 : f32
    %102 = vector.broadcast %cst_120 : f32 to vector<256x64xf32>
    %c0_121 = arith.constant 0 : index
    %c0_122 = arith.constant 0 : index
    %c0_123 = arith.constant 0 : index
    %103 = vector.load %arg10[%c0_121, %c0_122, %c0_123] : memref<18x16x384xbf16, #tpu.memory_space<vmem>>, vector<16x16x384xbf16>
    %104 = vector.shape_cast %103 : vector<16x16x384xbf16> to vector<256x384xbf16>
    %c0_124 = arith.constant 0 : index
    %c0_125 = arith.constant 0 : index
    %c0_126 = arith.constant 0 : index
    %105 = vector.load %arg5[%c0_124, %c0_125, %c0_126] : memref<3x384x64xbf16, #tpu.memory_space<vmem>>, vector<1x384x64xbf16>
    %106 = vector.shape_cast %105 : vector<1x384x64xbf16> to vector<384x64xbf16>
    %cst_127 = arith.constant dense<0.000000e+00> : vector<256x64xf32>
    %107 = tpu.matmul %104, %106, %cst_127 {dimension_numbers = #tpu.dot_dimension_numbers<[1], [0], [0], [1], [0, 0, 1, 1], [], []>} : vector<256x384xbf16>, vector<384x64xbf16>, vector<256x64xf32> -> vector<256x64xf32>
    %108 = arith.addf %102, %107 : vector<256x64xf32>
    %c1_128 = arith.constant 1 : index
    %c0_129 = arith.constant 0 : index
    %c0_130 = arith.constant 0 : index
    %109 = vector.load %arg10[%c1_128, %c0_129, %c0_130] : memref<18x16x384xbf16, #tpu.memory_space<vmem>>, vector<16x16x384xbf16>
    %110 = vector.shape_cast %109 : vector<16x16x384xbf16> to vector<256x384xbf16>
    %c1_131 = arith.constant 1 : index
    %c0_132 = arith.constant 0 : index
    %c0_133 = arith.constant 0 : index
    %111 = vector.load %arg5[%c1_131, %c0_132, %c0_133] : memref<3x384x64xbf16, #tpu.memory_space<vmem>>, vector<1x384x64xbf16>
    %112 = vector.shape_cast %111 : vector<1x384x64xbf16> to vector<384x64xbf16>
    %cst_134 = arith.constant dense<0.000000e+00> : vector<256x64xf32>
    %113 = tpu.matmul %110, %112, %cst_134 {dimension_numbers = #tpu.dot_dimension_numbers<[1], [0], [0], [1], [0, 0, 1, 1], [], []>} : vector<256x384xbf16>, vector<384x64xbf16>, vector<256x64xf32> -> vector<256x64xf32>
    %114 = arith.addf %108, %113 : vector<256x64xf32>
    %c2_135 = arith.constant 2 : index
    %c0_136 = arith.constant 0 : index
    %c0_137 = arith.constant 0 : index
    %115 = vector.load %arg10[%c2_135, %c0_136, %c0_137] : memref<18x16x384xbf16, #tpu.memory_space<vmem>>, vector<16x16x384xbf16>
    %116 = vector.shape_cast %115 : vector<16x16x384xbf16> to vector<256x384xbf16>
    %c2_138 = arith.constant 2 : index
    %c0_139 = arith.constant 0 : index
    %c0_140 = arith.constant 0 : index
    %117 = vector.load %arg5[%c2_138, %c0_139, %c0_140] : memref<3x384x64xbf16, #tpu.memory_space<vmem>>, vector<1x384x64xbf16>
    %118 = vector.shape_cast %117 : vector<1x384x64xbf16> to vector<384x64xbf16>
    %cst_141 = arith.constant dense<0.000000e+00> : vector<256x64xf32>
    %119 = tpu.matmul %116, %118, %cst_141 {dimension_numbers = #tpu.dot_dimension_numbers<[1], [0], [0], [1], [0, 0, 1, 1], [], []>} : vector<256x384xbf16>, vector<384x64xbf16>, vector<256x64xf32> -> vector<256x64xf32>
    %120 = arith.addf %114, %119 : vector<256x64xf32>
    %121 = vector.broadcast %101 : vector<1x64xf32> to vector<256x64xf32>
    %122 = arith.addf %120, %121 : vector<256x64xf32>
    %123 = math.tanh %122 : vector<256x64xf32>
    %124 = vector.shape_cast %123 : vector<256x64xf32> to vector<1x16x16x64xf32>
    %c0_142 = arith.constant 0 : index
    %c0_143 = arith.constant 0 : index
    %c0_144 = arith.constant 0 : index
    %c0_145 = arith.constant 0 : index
    %125 = vector.load %arg7[%c0_142, %c0_143, %c0_144, %c0_145] : memref<1x16x16x64xf32, #tpu.memory_space<vmem>>, vector<1x16x16x64xf32>
    tpu.vector_store %arg7[%c0_142, %c0_143, %c0_144, %c0_145], %124 {strides = array<i32>} : memref<1x16x16x64xf32, #tpu.memory_space<vmem>>, vector<1x16x16x64xf32>,
    return
  }
  func.func @transform_0(%arg0: i32) -> (i32, i32, i32, i32) {
    %c0_i32 = arith.constant 0 : i32
    %c0_i32_0 = arith.constant 0 : i32
    %c0_i32_1 = arith.constant 0 : i32
    %c0_i32_2 = arith.constant 0 : i32
    return %arg0, %c0_i32, %c0_i32_0, %c0_i32_1 : i32, i32, i32, i32
  }
  func.func @transform_1(%arg0: i32) -> (i32, i32, i32, i32) {
    %c0_i32 = arith.constant 0 : i32
    %c0_i32_0 = arith.constant 0 : i32
    %c0_i32_1 = arith.constant 0 : i32
    %c0_i32_2 = arith.constant 0 : i32
    return %arg0, %c0_i32, %c0_i32_0, %c0_i32_1 : i32, i32, i32, i32
  }
  func.func @transform_2(%arg0: i32) -> (i32, i32, i32) {
    %c0_i32 = arith.constant 0 : i32
    %c0_i32_0 = arith.constant 0 : i32
    %c0_i32_1 = arith.constant 0 : i32
    %c0_i32_2 = arith.constant 0 : i32
    return %c0_i32, %c0_i32_0, %c0_i32_1 : i32, i32, i32
  }
  func.func @transform_3(%arg0: i32) -> (i32, i32, i32) {
    %c0_i32 = arith.constant 0 : i32
    %c0_i32_0 = arith.constant 0 : i32
    %c0_i32_1 = arith.constant 0 : i32
    %c0_i32_2 = arith.constant 0 : i32
    return %c0_i32, %c0_i32_0, %c0_i32_1 : i32, i32, i32
  }
  func.func @transform_4(%arg0: i32) -> (i32, i32, i32) {
    %c0_i32 = arith.constant 0 : i32
    %c0_i32_0 = arith.constant 0 : i32
    %c0_i32_1 = arith.constant 0 : i32
    %c0_i32_2 = arith.constant 0 : i32
    return %c0_i32, %c0_i32_0, %c0_i32_1 : i32, i32, i32
  }
  func.func @transform_5(%arg0: i32) -> (i32, i32, i32) {
    %c0_i32 = arith.constant 0 : i32
    %c0_i32_0 = arith.constant 0 : i32
    %c0_i32_1 = arith.constant 0 : i32
    %c0_i32_2 = arith.constant 0 : i32
    return %c0_i32, %c0_i32_0, %c0_i32_1 : i32, i32, i32
  }
  func.func @transform_6(%arg0: i32) -> (i32, i32, i32, i32) {
    %c0_i32 = arith.constant 0 : i32
    %c0_i32_0 = arith.constant 0 : i32
    %c0_i32_1 = arith.constant 0 : i32
    %c0_i32_2 = arith.constant 0 : i32
    return %arg0, %c0_i32, %c0_i32_0, %c0_i32_1 : i32, i32, i32, i32
  }
}

</mosaic_0001>

<bundles_post_ra>
// kernel: cgc_forward.1
= control target key start
LH: loop header
LB: loop body
LE: loop exit
PB: predicated region body
PF: predicated region fallthrough
CT: control target
= control target key end

     0   :  { %11 = vsyncpa [#allocation6], 0  ;;  %s15924_s0 = inlined_call_operand.vmem [shape: bf16[2,16,16,64], index: 0, kind: input, shape index: {}]   ;;  %s15925_s1 = inlined_call_operand.vmem [shape: bf16[2,16,16,64], index: 1, kind: input, shape index: {}]   ;;  %s15926_s2 = inlined_call_operand.vmem [shape: bf16[3,384,64], index: 2, kind: input, shape index: {}]   ;;  %s15927_s3 = inlined_call_operand.vmem [shape: bf16[3,384,64], index: 3, kind: input, shape index: {}]   ;;  %s15928_s4 = inlined_call_operand.vmem [shape: bf16[3,384,64], index: 4, kind: input, shape index: {}]   ;;  %s15929_s5 = inlined_call_operand.vmem [shape: f32[3,1,64], index: 5, kind: input, shape index: {}]   ;;  %s15930_s6 = inlined_call_operand.hbm [shape: f32[2,16,16,64], index: 6, kind: output, shape index: {}]  }
   0x1   :  { %13 = vsyncpa [#allocation6 + $0x1], 0  ;;  %s11826_s21 = smov 0   ;;  %s11828_s22 = smov 0  }
   0x2   :  { %s11830_s23 = smov 0   ;;  %s11832_s24 = smov 0  }
   0x3 LB: > { %s11847_s25 = sadd.s32 4294967295, %s11784_s24   ;;  %s8328_s26 = sadd.s32 4294967294, %s11784_s24   ;;  %s11784_s24 = sphi %s11832_s24, %s16024_s24   ;;  %s11780_s23 = sphi %s11830_s23, %s16023_s23   ;;  %s11776_s22 = sphi %s11828_s22, %s16022_s22   ;;  %s11772_s21 = sphi %s11826_s21, %s16021_s21  }
   0x4   : > { %s11851_s27 = sadd.s32 1, %s11784_s24   ;;  %s162_s28 = sadd.s32 1, %s11780_s23 }
   0x5   : > { %s159_s29 = ssub.s32 %s11784_s24, %s11851_s27  ;;  %p172_p0 = scmp.ne.s32.totalorder %s11780_s23, %s11776_s22 }
   0x6   : > { %p160_p1 = scmp.eq.s32.totalorder %s159_s29, 0  ;;  %p173_p2 = scmp.eq.s32.totalorder %s11847_s25, 1 }
   0x7   : > { %p178_p3 = scmp.ne.s32.totalorder %s11776_s22, %s11772_s21  ;;  %p179_p4 = scmp.eq.s32.totalorder %s8328_s26, 1 }
   0x8   : > { %s11862_s30 = scalar_select %p160_p1, %s11780_s23, %s162_s28  }
   0x9   : > { %p11864_p5 = por %p173_p2, %p172_p0  ;;  %p11868_p6 = por %p179_p4, %p178_p3 }
   0xa   : > { %p8331_p7 = scmp.ge.s32.totalorder %s11784_s24, 1  ;;  %p225_p8 = scmp.lt.s32.totalorder %s11784_s24, 3 }
   0xc   : > { %p226_p9 = pnand %p8331_p7, %p225_p8 }
   0xe   : > { %229 = sbr.rel (%p226_p9) target bundleno = 1977 (0x7b9), region = 44 }
  0x15   : > { %p260_p10 = scmp.lt.s32.totalorder %s11847_s25, 1  ;;  %v11161_v0 = vld [vmem:[%s15926_s2 + $0x100] sm:$0xff]   ;;  %v11786_v2 = vmov 0   ;;  %v11163_v3 = vld [vmem:[%s15926_s2 + $0x108] sm:$0xff]   ;;  %v11165_v5 = vld [vmem:[%s15926_s2 + $0x110] sm:$0xff]   ;;  %s11787_s9 = smov 64  }
  0x16   : > { %v11162_v1 = vld [vmem:[%s15926_s2 + $0xc0] sm:$0xff]   ;;  %290 = vst [vmem:[#allocation2 + $0x98] sm:$0xff] %v11786_v2  ;;  %271 = vst [vmem:[#allocation2] sm:$0xff] %v11786_v2  ;;  %10606 = vmatprep.subr.bf16.mxu1 %v11161_v0  ;;  %8950 = vmatprep.subr.bf16.mxu0 %v11161_v0  ;;  %v11164_v4 = vld [vmem:[%s15926_s2 + $0xc8] sm:$0xff]   ;;  %vm594_vm0 = vcmask 523264   ;;  %vm1016_vm2 = vcmask 1048064  }
  0x17   : > { %s11879_s11 = scalar_select %p260_p10, %s11847_s25, 1  ;;  %275 = vst [vmem:[#allocation2 + $0x20] sm:$0xff] %v11786_v2  ;;  %278 = vst [vmem:[#allocation2 + $0x38] sm:$0xff] %v11786_v2  ;;  %10614 = vmatpush3.bf16.msra.mxu1 %v11162_v1  ;;  %8951 = vmatpush3.bf16.msra.mxu0 %v11162_v1  ;;  %v11166_v42 = vld [vmem:[%s15926_s2 + $0xd0] sm:$0xff]   ;;  %v11167_v43 = vld [vmem:[%s15926_s2 + $0x118] sm:$0xff]  }
  0x18   : > { %281 = vst [vmem:[#allocation2 + $0x50] sm:$0xff] %v11786_v2  ;;  %284 = vst [vmem:[#allocation2 + $0x68] sm:$0xff] %v11786_v2  ;;  %10607 = vmatprep.subr.bf16.mxu1 %v11163_v3  ;;  %8952 = vmatprep.subr.bf16.mxu0 %v11163_v3  ;;  %v11168_v45 = vld [vmem:[%s15926_s2 + $0xd8] sm:$0xff]   ;;  %v11169_v50 = vld [vmem:[%s15926_s2 + $0x120] sm:$0xff]   ;;  %vm740_vm1 = vsmask.f32 7938 }
  0x19   : > { %287 = vst [vmem:[#allocation2 + $0x80] sm:$0xff] %v11786_v2  ;;  %293 = vst [vmem:[#allocation2 + $0xb0] sm:$0xff] %v11786_v2  ;;  %s8947_s16 = sshll.u32 %s11879_s11, 7  ;;  %v11170_v52 = vld [vmem:[%s15926_s2 + $0xe0] sm:$0xff]   ;;  %v11173_v60 = vld [vmem:[%s15926_s2 + $0x128] sm:$0xff]   ;;  %s11788_s28 = smov [#allocation5]  }
  0x1a   : > { %296 = vst [vmem:[#allocation2 + $0xc8] sm:$0xff] %v11786_v2  ;;  %299 = vst [vmem:[#allocation2 + $0xe0] sm:$0xff] %v11786_v2  ;;  %s11896_s26 = scalar_lea.vmem %s15925_s1, %s8947_s16  ;;  %s12008_s29 = scalar_lea.vmem %s15924_s0, %s8947_s16  ;;  %v11174_v62 = vld [vmem:[%s15926_s2 + $0xe8] sm:$0xff]   ;;  %v11175_v3 = vld [vmem:[%s15926_s2 + $0x130] sm:$0xff]   ;;  %vm838_vm5 = vsmask.f32 7424 }
  0x1b   : > { %302 = vst [vmem:[#allocation2 + $0xf8] sm:$0xff] %v11786_v2  ;;  %305 = vst [vmem:[#allocation2 + $0x110] sm:$0xff] %v11786_v2  ;;  %v11902_v6 = vld [vmem:[%s11896_s26 + $0x28] sm:$0xff]   ;;  %v11905_v7 = vld [vmem:[%s11896_s26 + $0x20] sm:$0xff]   ;;  %10615 = vmatpush3.bf16.msra.mxu1 %v11164_v4  ;;  %8953 = vmatpush3.bf16.msra.mxu0 %v11164_v4  ;;  %s11726_s10 = sshll.u32 %s11788_s28, 4  ;;  %s11727_s10 = int_to_ptr.vmem [resolvable:$false] %s11726_s10 }
  0x1c   : > { %308 = vst [vmem:[#allocation2 + $0x128] sm:$0xff] %v11786_v2  ;;  %311 = vst [vmem:[#allocation2 + $0x140] sm:$0xff] %v11786_v2  ;;  %978 = vrot.lane.b32.xlu1 %v11902_v6, %s11787_s9  ;;  %v1069_v8 = vshrl.u32 %v11902_v6, 16  ;;  %v1072_v9 = vshll.u32 %v11902_v6, 16  ;;  %976 = vrot.lane.b32.xlu0 %v11905_v7, %s11787_s9  ;;  %v1062_v10 = vshrl.u32 %v11905_v7, 16  ;;  %v1065_v11 = vshll.u32 %v11905_v7, 16 }
  0x1d   : > { %314 = vst [vmem:[#allocation2 + $0x158] sm:$0xff] %v11786_v2  ;;  %317 = vst [vmem:[#allocation2 + $0x170] sm:$0xff] %v11786_v2  ;;  %v11916_v12 = vld [vmem:[%s11896_s26 + $0x30] sm:$0xff]   ;;  %v11919_v13 = vld [vmem:[%s11896_s26 + $0x38] sm:$0xff]   ;;  %10608 = vmatprep.subr.bf16.mxu1 %v11165_v5  ;;  %8954 = vmatprep.subr.bf16.mxu0 %v11165_v5  ;;  %s11728_s12 = scalar_lea.vmem %s11727_s10, 8192 }
  0x1e   : > { %320 = vst [vmem:[#allocation2 + $0x188] sm:$0xff] %v11786_v2  ;;  %329 = vst [vmem:[#allocation3 + $0x20] sm:$0xff] %v11786_v2  ;;  %v1071_v14 = vrot.slane %v1069_v8, 7  ;;  %v1064_v15 = vrot.slane %v1062_v10, 7  ;;  %v1076_v16 = vshrl.u32 %v11916_v12, 16  ;;  %v1079_v17 = vshll.u32 %v11916_v12, 16 }
  0x1f   : > { %332 = vst [vmem:[#allocation3 + $0x38] sm:$0xff] %v11786_v2  ;;  %335 = vst [vmem:[#allocation3 + $0x50] sm:$0xff] %v11786_v2  ;;  %v1083_v18 = vshrl.u32 %v11919_v13, 16  ;;  %v11931_v20 = vld [vmem:[%s11896_s26 + $0x40] sm:$0xff]   ;;  %v1086_v24 = vshll.u32 %v11919_v13, 16  ;;  %v11946_v27 = vld [vmem:[%s11896_s26 + $0x48] sm:$0xff]   ;;  %10616 = vmatpush3.bf16.msra.mxu1 %v11166_v42  ;;  %8955 = vmatpush3.bf16.msra.mxu0 %v11166_v42 }
  0x20   : > { %338 = vst [vmem:[#allocation3 + $0x68] sm:$0xff] %v11786_v2  ;;  %341 = vst [vmem:[#allocation3 + $0x80] sm:$0xff] %v11786_v2  ;;  %v1074_v19 = vor.u32 %v1072_v9, %v1071_v14  ;;  %v1067_v21 = vor.u32 %v1065_v11, %v1064_v15  ;;  %v1078_v22 = vrot.slane %v1076_v16, 7  ;;  %v1090_v25 = vshrl.u32 %v11931_v20, 16  ;;  %v11958_v32 = vld [vmem:[%s11896_s26 + $0x50] sm:$0xff]   ;;  %v11970_v37 = vld [vmem:[%s11896_s26 + $0x58] sm:$0xff]   ;;  %10609 = vmatprep.subr.bf16.mxu1 %v11167_v43 }
  0x21   : > { %344 = vst [vmem:[#allocation3 + $0x98] sm:$0xff] %v11786_v2  ;;  %347 = vst [vmem:[#allocation3 + $0xb0] sm:$0xff] %v11786_v2  ;;  %v1085_v23 = vrot.slane %v1083_v18, 7  ;;  %v1093_v30 = vshll.u32 %v11931_v20, 16  ;;  %v1097_v31 = vshrl.u32 %v11946_v27, 16  ;;  %v1100_v35 = vshll.u32 %v11946_v27, 16  ;;  %8956 = vmatprep.subr.bf16.mxu0 %v11167_v43 }
  0x22   : > { %350 = vst [vmem:[#allocation3 + $0xc8] sm:$0xff] %v11786_v2  ;;  %353 = vst [vmem:[#allocation3 + $0xe0] sm:$0xff] %v11786_v2  ;;  %1155 = vrot.lane.b32.xlu1 %v1074_v19, %s11787_s9  ;;  %1153 = vrot.lane.b32.xlu0 %v1067_v21, %s11787_s9  ;;  %v1081_v26 = vor.u32 %v1079_v17, %v1078_v22  ;;  %v1092_v29 = vrot.slane %v1090_v25, 7  ;;  %v1104_v36 = vshrl.u32 %v11958_v32, 16  ;;  %v1107_v40 = vshll.u32 %v11958_v32, 16  ;;  %v11988_v44 = vld [vmem:[%s11896_s26 + $0x60] sm:$0xff]  }
  0x23   : > { %356 = vst [vmem:[#allocation3 + $0xf8] sm:$0xff] %v11786_v2  ;;  %359 = vst [vmem:[#allocation3 + $0x110] sm:$0xff] %v11786_v2  ;;  %v1088_v28 = vor.u32 %v1086_v24, %v1085_v23  ;;  %v1099_v34 = vrot.slane %v1097_v31, 7  ;;  %v1111_v41 = vshrl.u32 %v11970_v37, 16  ;;  %v1114_v48 = vshll.u32 %v11970_v37, 16  ;;  %v12013_v51 = vld [vmem:[%s11896_s26 + $0x68] sm:$0xff]   ;;  %10617 = vmatpush3.bf16.msra.mxu1 %v11168_v45  ;;  %8957 = vmatpush3.bf16.msra.mxu0 %v11168_v45 }
  0x24   : > { %362 = vst [vmem:[#allocation3 + $0x128] sm:$0xff] %v11786_v2  ;;  %365 = vst [vmem:[#allocation3 + $0x140] sm:$0xff] %v11786_v2  ;;  %v1095_v33 = vor.u32 %v1093_v30, %v1092_v29  ;;  %v1106_v39 = vrot.slane %v1104_v36, 7  ;;  %v1118_v49 = vshrl.u32 %v11988_v44, 16  ;;  %v12019_v53 = vld [vmem:[%s12008_s29 + $0x28] sm:$0xff]   ;;  %v1121_v56 = vshll.u32 %v11988_v44, 16  ;;  %10610 = vmatprep.subr.bf16.mxu1 %v11169_v50  ;;  %8958 = vmatprep.subr.bf16.mxu0 %v11169_v50 }
  0x25   : > { %368 = vst [vmem:[#allocation3 + $0x158] sm:$0xff] %v11786_v2  ;;  %371 = vst [vmem:[#allocation3 + $0x170] sm:$0xff] %v11786_v2  ;;  %v1102_v38 = vor.u32 %v1100_v35, %v1099_v34  ;;  %v1113_v47 = vrot.slane %v1111_v41, 7  ;;  %v1125_v57 = vshrl.u32 %v12013_v51, 16  ;;  %v12029_v58 = vld [vmem:[%s12008_s29 + $0x20] sm:$0xff]   ;;  %v12034_v59 = vld [vmem:[%s11896_s26 + $0x70] sm:$0xff]  }
  0x26   : > { %374 = vst [vmem:[#allocation3 + $0x188] sm:$0xff] %v11786_v2  ;;  %383 = vst [vmem:[#allocation4 + $0x20] sm:$0xff] %v11786_v2  ;;  %1157 = vrot.lane.b32.xlu1 %v1081_v26, %s11787_s9  ;;  %980 = vrot.lane.b32.xlu0 %v11916_v12, %s11787_s9  ;;  %v1109_v46 = vor.u32 %v1107_v40, %v1106_v39  ;;  %v1120_v55 = vrot.slane %v1118_v49, 7  ;;  %v1128_v61 = vshll.u32 %v12013_v51, 16  ;;  %v15934_v1 = vshrl.u32 %v12034_v59, 16  ;;  %v12062_v4 = vld [vmem:[%s11896_s26 + $0x8] sm:$0xff]  }
  0x27   : > { %386 = vst [vmem:[#allocation4 + $0x38] sm:$0xff] %v11786_v2  ;;  %389 = vst [vmem:[#allocation4 + $0x50] sm:$0xff] %v11786_v2  ;;  %v1116_v54 = vor.u32 %v1114_v48, %v1113_v47  ;;  %10618 = vmatpush3.bf16.msra.mxu1 %v11170_v52  ;;  %v1127_v0 = vrot.slane %v1125_v57, 7  ;;  %8959 = vmatpush3.bf16.msra.mxu0 %v11170_v52  ;;  %v1135_v5 = vshll.u32 %v12034_v59, 16  ;;  %v11176_v14 = vld [vmem:[%s15926_s2 + $0xf0] sm:$0xff]   ;;  %v11178_v23 = vld [vmem:[%s15926_s2 + $0x138] sm:$0xff]  }
  0x28   : > { %392 = vst [vmem:[#allocation4 + $0x68] sm:$0xff] %v11786_v2  ;;  %395 = vst [vmem:[#allocation4 + $0x80] sm:$0xff] %v11786_v2  ;;  %v1123_v63 = vor.u32 %v1121_v56, %v1120_v55  ;;  %10611 = vmatprep.subr.bf16.mxu1 %v11173_v60  ;;  %8960 = vmatprep.subr.bf16.mxu0 %v11173_v60  ;;  %v12070_v19 = vld [vmem:[%s12008_s29 + $0x30] sm:$0xff]   ;;  %v1134_v22 = vrot.slane %v15934_v1, 7  ;;  %v12083_v26 = vld [vmem:[%s11896_s26] sm:$0xff]   ;;  %v15931_v34 = vshll.u32 %v12062_v4, 16 }
  0x29   : > { %398 = vst [vmem:[#allocation4 + $0x98] sm:$0xff] %v11786_v2  ;;  %401 = vst [vmem:[#allocation4 + $0xb0] sm:$0xff] %v11786_v2  ;;  %v1130_v21 = vor.u32 %v1128_v61, %v1127_v0  ;;  %v12091_v29 = vld [vmem:[%s11896_s26 + $0x18] sm:$0xff]   ;;  %v12106_v42 = vld [vmem:[%s15926_s2 + $0x140] sm:$0xff]   ;;  %v15932_v47 = vshll.u32 %v12083_v26, 16  ;;  %v1041_v52 = vshrl.u32 %v12062_v4, 16 }
  0x2a   : > { %404 = vst [vmem:[#allocation4 + $0xc8] sm:$0xff] %v11786_v2  ;;  %407 = vst [vmem:[#allocation4 + $0xe0] sm:$0xff] %v11786_v2  ;;  %1159 = vrot.lane.b32.xlu1 %v1088_v28, %s11787_s9  ;;  %982 = vrot.lane.b32.xlu0 %v11919_v13, %s11787_s9  ;;  %v12088_v28 = vld [vmem:[%s12008_s29 + $0x38] sm:$0xff]   ;;  %v1137_v43 = vor.u32 %v1135_v5, %v1134_v22  ;;  %v12120_v50 = vld [vmem:[%s12008_s29 + $0x48] sm:$0xff]   ;;  %v1034_v0 = vshrl.u32 %v12083_v26, 16  ;;  %v1253_v1 = vrot.slane %v1072_v9, 1 }
  0x2b   : > { %410 = vst [vmem:[#allocation4 + $0xf8] sm:$0xff] %v11786_v2  ;;  %413 = vst [vmem:[#allocation4 + $0x110] sm:$0xff] %v11786_v2  ;;  %10619 = vmatpush3.bf16.msra.mxu1 %v11174_v62  ;;  %8961 = vmatpush3.bf16.msra.mxu0 %v11174_v62  ;;  %v11179_v39 = vld [vmem:[%s15926_s2 + $0xf8] sm:$0xff]   ;;  %v12130_v55 = vld [vmem:[%s12008_s29 + $0x50] sm:$0xff]   ;;  %v15933_v62 = vshll.u32 %v12091_v29, 16  ;;  %v1263_v13 = vrot.slane %v1107_v40, 1 }
  0x2c   : > { %416 = vst [vmem:[#allocation4 + $0x128] sm:$0xff] %v11786_v2  ;;  %419 = vst [vmem:[#allocation4 + $0x140] sm:$0xff] %v11786_v2  ;;  %10612 = vmatprep.subr.bf16.mxu1 %v11175_v3  ;;  %8962 = vmatprep.subr.bf16.mxu0 %v11175_v3  ;;  %v1243_v3 = vrot.slane %v15932_v47, 1  ;;  %v12156_v22 = vld [vmem:[%s12008_s29 + $0x68] sm:$0xff]   ;;  %v1254_v9 = vor.u32 %v1253_v1, %v1069_v8  ;;  %v1261_v8 = vrot.slane %v1100_v35, 1  ;;  %v1036_v40 = vrot.slane %v1034_v0, 7 }
  0x2d   : > { %422 = vst [vmem:[#allocation4 + $0x158] sm:$0xff] %v11786_v2  ;;  %425 = vst [vmem:[#allocation4 + $0x170] sm:$0xff] %v11786_v2  ;;  %v650_v1 = vshll.u32 %v12019_v53, 16 }
  0x2e   : > { %428 = vst [vmem:[#allocation4 + $0x188] sm:$0xff] %v11786_v2  ;;  %1161 = vrot.lane.b32.xlu1 %v1095_v33, %s11787_s9  ;;  %984 = vrot.lane.b32.xlu0 %v11931_v20, %s11787_s9  ;;  %600 = vst.msk [vmem:[#allocation2 + $0x98] sm:$0xff] %vm594_vm0, %v12019_v53  ;;  %v12054_v2 = vld [vmem:[%s11896_s26 + $0x78] sm:$0xff]   ;;  %v1262_v12 = vor.u32 %v1261_v8, %v1097_v31  ;;  %v647_v31 = vshrl.u32 %v12019_v53, 16  ;;  %v1264_v20 = vor.u32 %v1263_v13, %v1104_v36 }
  0x2f   : > { %599 = vst.msk [vmem:[#allocation2 + $0x80] sm:$0xff] %vm594_vm0, %v12029_v58  ;;  %v15936_v15 = vshrl.u32 %v12054_v2, 16  ;;  %601 = vst.msk [vmem:[#allocation2 + $0xb0] sm:$0xff] %vm594_vm0, %v12070_v19  ;;  %v1142_v33 = vshll.u32 %v12054_v2, 16  ;;  %10620 = vmatpush3.bf16.msra.mxu1 %v11176_v14  ;;  %8963 = vmatpush3.bf16.msra.mxu0 %v11176_v14  ;;  %v682_v13 = vshrl.u32 %v12130_v55, 16 }
  0x30   : > { %602 = vst.msk [vmem:[#allocation2 + $0xc8] sm:$0xff] %vm594_vm0, %v12088_v28  ;;  %10613 = vmatprep.subr.bf16.mxu1 %v11178_v23  ;;  %8964 = vmatprep.subr.bf16.mxu0 %v11178_v23  ;;  %604 = vst.msk [vmem:[#allocation2 + $0xf8] sm:$0xff] %vm594_vm0, %v12120_v50 }
  0x31   : > { %v1141_v45 = vrot.slane %v15936_v15, 7  ;;  %605 = vst.msk [vmem:[#allocation2 + $0x110] sm:$0xff] %vm594_vm0, %v12130_v55  ;;  %608 = vst.msk [vmem:[#allocation2 + $0x158] sm:$0xff] %vm594_vm0, %v12156_v22  ;;  %v12188_v15 = vld [vmem:[%s12008_s29 + $0x8] sm:$0xff]  }
  0x32   : > { %1163 = vrot.lane.b32.xlu1 %v1102_v38, %s11787_s9  ;;  %986 = vrot.lane.b32.xlu0 %v11946_v27, %s11787_s9  ;;  %v12096_v38 = vld [vmem:[%s11896_s26 + $0x10] sm:$0xff]   ;;  %596 = vst.msk [vmem:[#allocation2 + $0x38] sm:$0xff] %vm594_vm0, %v12188_v15  ;;  %vm12406_vm3 = vmand %vm594_vm0, %vm740_vm1 }
  0x33   : > { %10621 = vmatpush3.bf16.msra.mxu1 %v11179_v39  ;;  %v1144_v60 = vor.u32 %v1142_v33, %v1141_v45  ;;  %v15935_v14 = vshll.u32 %v12096_v38, 16  ;;  %8965 = vmatpush3.bf16.msra.mxu0 %v11179_v39  ;;  %v1249_v45 = vrot.slane %v15933_v62, 1  ;;  %v1244_v39 = vor.u32 %v1243_v3, %v1034_v0  ;;  %vm12471_vm4 = vmand %vm1016_vm2, %vm740_vm1 }
  0x34   : > { %10174 = vmatprep.subr.bf16.mxu1 %v12106_v42  ;;  %vm12740_vm6 = vmand %vm594_vm0, %vm838_vm5 }
  0x35   : > { %v1247_v47 = vrot.slane %v15935_v14, 1  ;;  %v1251_v14 = vrot.slane %v1065_v11, 1  ;;  %vm12761_vm7 = vmand %vm1016_vm2, %vm838_vm5 }
  0x36   : > { %1165 = vrot.lane.b32.xlu1 %v1109_v46, %s11787_s9  ;;  %988 = vrot.lane.b32.xlu0 %v11958_v32, %s11787_s9  ;;  %v12114_v46 = vld [vmem:[%s12008_s29 + $0x40] sm:$0xff]   ;;  %v15957_v32 = vshrl.u32 %v12054_v2, 16 }
  0x37   : > { %603 = vst.msk [vmem:[#allocation2 + $0xe0] sm:$0xff] %vm594_vm0, %v12114_v46  ;;  %v1252_v11 = vor.u32 %v1251_v14, %v1062_v10  ;;  %v1259_v10 = vrot.slane %v1093_v30, 1  ;;  %v1271_v30 = vrot.slane %v1135_v5, 1  ;;  %v12260_v5 = vrot.slane %v647_v31, 7 }
  0x38   : > { %v657_v14 = vshll.u32 %v12070_v19, 16 }
  0x39   : > { %v1260_v35 = vor.u32 %v1259_v10, %v1090_v25  ;;  %v15961_v10 = vshll.u32 %v12096_v38, 16 }
  0x3a   : > { %1167 = vrot.lane.b32.xlu1 %v1116_v54, %s11787_s9  ;;  %990 = vrot.lane.b32.xlu0 %v11970_v37, %s11787_s9  ;;  %v1245_v54 = vrot.slane %v15931_v34, 1  ;;  %v1048_v34 = vshrl.u32 %v12096_v38, 16  ;;  %v640_v37 = vshrl.u32 %v12029_v58, 16 }
  0x3c   : > { %v1246_v23 = vor.u32 %v1245_v54, %v1041_v52  ;;  %v12172_v54 = vld [vmem:[%s12008_s29 + $0x70] sm:$0xff]   ;;  %v1248_v3 = vor.u32 %v1247_v47, %v1048_v34  ;;  %v1257_v47 = vrot.slane %v1086_v24, 1  ;;  %v1267_v24 = vrot.slane %v1121_v56, 1 }
  0x3d   : > { %609 = vst.msk [vmem:[#allocation2 + $0x170] sm:$0xff] %vm594_vm0, %v12172_v54  ;;  %v1050_v56 = vrot.slane %v1048_v34, 7  ;;  %v12283_v0 = vrot.slane %v640_v37, 7 }
  0x3e   : > { %1169 = vrot.lane.b32.xlu1 %v1123_v63, %s11787_s9  ;;  %992 = vrot.lane.b32.xlu0 %v11988_v44, %s11787_s9  ;;  %v12138_v63 = vld [vmem:[%s12008_s29 + $0x58] sm:$0xff]   ;;  %v1258_v6 = vor.u32 %v1257_v47, %v1083_v18  ;;  %v1269_v18 = vrot.slane %v1128_v61, 1  ;;  %v11200_v44 = vld [vmem:[%s15926_s2 + $0x1c0] sm:$0xff]   ;;  %v15960_v47 = vshll.u32 %v12062_v4, 16 }
  0x3f   : > { %606 = vst.msk [vmem:[#allocation2 + $0x128] sm:$0xff] %vm594_vm0, %v12138_v63  ;;  %9222 = vmatprep.subr.bf16.mxu0 %v11200_v44 }
  0x40   : > { %v1270_v25 = vor.u32 %v1269_v18, %v1125_v57  ;;  %v15958_v57 = vshrl.u32 %v12034_v59, 16  ;;  %v15947_v18 = vshll.u32 %v12130_v55, 16 }
  0x42   : > { %1171 = vrot.lane.b32.xlu1 %v1130_v21, %s11787_s9  ;;  %994 = vrot.lane.b32.xlu0 %v12013_v51, %s11787_s9  ;;  %v12149_v21 = vld [vmem:[%s12008_s29 + $0x60] sm:$0xff]   ;;  %v654_v51 = vshrl.u32 %v12070_v19, 16  ;;  %v1272_v34 = vor.u32 %v1271_v30, %v15958_v57  ;;  %v15962_v30 = vshll.u32 %v12091_v29, 16 }
  0x43   : > { %607 = vst.msk [vmem:[#allocation2 + $0x140] sm:$0xff] %vm594_vm0, %v12149_v21 }
  0x46   : > { %1173 = vrot.lane.b32.xlu1 %v1137_v43, %s11787_s9  ;;  %996 = vrot.lane.b32.xlu0 %v12034_v59, %s11787_s9  ;;  %v1055_v43 = vshrl.u32 %v12091_v29, 16  ;;  %v12289_v59 = vrot.slane %v654_v51, 7 }
  0x48   : > { %v1250_v62 = vor.u32 %v1249_v45, %v1055_v43  ;;  %v1255_v45 = vrot.slane %v1079_v17, 1  ;;  %v1265_v17 = vrot.slane %v1114_v48, 1  ;;  %v1043_v48 = vrot.slane %v1041_v52, 7 }
  0x49   : > { %v1057_v61 = vrot.slane %v1055_v43, 7  ;;  %v661_v52 = vshrl.u32 %v12088_v28, 16  ;;  %v664_v43 = vshll.u32 %v12088_v28, 16 }
  0x4a   : > { %1175 = vrot.lane.b32.xlu1 %v1144_v60, %s11787_s9  ;;  %998 = vrot.lane.b32.xlu0 %v12054_v2, %s11787_s9  ;;  %v12175_v60 = vld [vmem:[%s12008_s29 + $0x78] sm:$0xff]   ;;  %v1256_v7 = vor.u32 %v1255_v45, %v1076_v16  ;;  %v1273_v16 = vrot.slane %v1142_v33, 1  ;;  %v1266_v27 = vor.u32 %v1265_v17, %v1111_v41  ;;  %v1268_v41 = vor.u32 %v1267_v24, %v1118_v49 }
  0x4b   : > { %610 = vst.msk [vmem:[#allocation2 + $0x188] sm:$0xff] %vm594_vm0, %v12175_v60  ;;  %v643_v33 = vshll.u32 %v12029_v58, 16  ;;  %v15959_v49 = vshll.u32 %v12083_v26, 16  ;;  %v671_v45 = vshll.u32 %v12114_v46, 16  ;;  %v1053_v17 = vor.u32 %v15961_v10, %v1050_v56 }
  0x4c   : > { %v1274_v36 = vor.u32 %v1273_v16, %v15957_v32  ;;  %v15940_v24 = vshll.u32 %v12138_v63, 16 }
  0x4d   : > { %v1039_v2 = vor.u32 %v15959_v49, %v1036_v40  ;;  %v798_v49 = vrot.slane %v643_v33, 1 }
  0x4e   : > { %1277 = vrot.lane.b32.xlu1 %v1246_v23, %s11787_s9  ;;  %1275 = vrot.lane.b32.xlu0 %v1244_v39, %s11787_s9  ;;  %v12191_v23 = vld [vmem:[%s12008_s29] sm:$0xff]   ;;  %v12208_v39 = vld [vmem:[%s12008_s29 + $0x18] sm:$0xff]  }
  0x4f   : > { %595 = vst.msk [vmem:[#allocation2 + $0x20] sm:$0xff] %vm594_vm0, %v12191_v23  ;;  %598 = vst.msk [vmem:[#allocation2 + $0x68] sm:$0xff] %vm594_vm0, %v12208_v39  ;;  %v615_v16 = vshll.u32 %v12191_v23, 16 }
  0x51   : > { %v790_v56 = vrot.slane %v615_v16, 1 }
  0x52   : > { %1281 = vrot.lane.b32.xlu1 %v1250_v62, %s11787_s9  ;;  %1279 = vrot.lane.b32.xlu0 %v1248_v3, %s11787_s9  ;;  %v12211_v62 = vld [vmem:[%s12008_s29 + $0x10] sm:$0xff]   ;;  %v12294_v3 = vrot.slane %v661_v52, 7  ;;  %s257_s29 = sand.u32 1, %s11776_s22  }
  0x53   : > { %597 = vst.msk [vmem:[#allocation2 + $0x50] sm:$0xff] %vm594_vm0, %v12211_v62  ;;  %s8332_s13 = sshll.u32 %s257_s29, 8 }
  0x54   : > { %s15758_s14 = scalar_lea.vmem [#allocation5], %s8332_s13 }
  0x55   : > { %s8254_s15 = sshll.u32 %s15758_s14, 4  ;;  %s15873_s15 = int_to_ptr.vmem [resolvable:$true] %s8254_s15 }
  0x56   : > { %1285 = vrot.lane.b32.xlu1 %v1254_v9, %s11787_s9  ;;  %1283 = vrot.lane.b32.xlu0 %v1252_v11, %s11787_s9  ;;  %v668_v9 = vshrl.u32 %v12114_v46, 16  ;;  %v1046_v11 = vor.u32 %v15960_v47, %v1043_v48  ;;  %v619_v48 = vshrl.u32 %v12188_v15, 16  ;;  %v15938_v47 = vshll.u32 %v12156_v22, 16  ;;  %s11722_s20 = scalar_lea.vmem %s15873_s15, 4096  ;;  %p11729_p0 = scmp.lt.s32.totalorder %s15873_s15, %s11727_s10 }
  0x57   : > { %p11723_p11 = scmp.ne.s32.totalorder %s15873_s15, %s11722_s20  ;;  %p11730_p1 = scmp.lt.s32.totalorder %s11728_s12, %s11722_s20 }
  0x58   : > { %v12306_v8 = vrot.slane %v668_v9, 7 }
  0x59   : > { %p11724_p12 = pnand %p11723_p11, %p11864_p5  ;;  %p11731_p2 = por %p11730_p1, %p11729_p0 }
  0x5a   : > { %1289 = vrot.lane.b32.xlu1 %v1258_v6, %s11787_s9  ;;  %1287 = vrot.lane.b32.xlu0 %v1256_v7, %s11787_s9  ;;  %v675_v6 = vshrl.u32 %v12120_v50, 16  ;;  %v678_v7 = vshll.u32 %v12120_v50, 16 }
  0x5b   : > { %p11725_p13 = pneg %p11724_p12 }
  0x5d   : > { %p11732_p3 = pnand %p11731_p2, %p11725_p13 }
  0x5e   : > { %1293 = vrot.lane.b32.xlu1 %v1262_v12, %s11787_s9  ;;  %1291 = vrot.lane.b32.xlu0 %v1260_v35, %s11787_s9  ;;  %v622_v12 = vshll.u32 %v12188_v15, 16  ;;  %v1060_v35 = vor.u32 %v15962_v30, %v1057_v61  ;;  %v15941_v61 = vshrl.u32 %v12208_v39, 16  ;;  %v802_v30 = vrot.slane %v657_v14, 1 }
  0x60   : > { %v792_v40 = vrot.slane %v622_v12, 1 }
  0x62   : > { %1297 = vrot.lane.b32.xlu1 %v1266_v27, %s11787_s9  ;;  %1295 = vrot.lane.b32.xlu0 %v1264_v20, %s11787_s9  ;;  %v612_v27 = vshrl.u32 %v12191_v23, 16  ;;  %v15943_v20 = vshll.u32 %v12211_v62, 16 }
  0x64   : > { %v12347_v32 = vor.u32 %v790_v56, %v612_v27  ;;  %v806_v56 = vrot.slane %v671_v45, 1 }
  0x66   : > { %1301 = vrot.lane.b32.xlu1 %v1270_v25, %s11787_s9  ;;  %1299 = vrot.lane.b32.xlu0 %v1268_v41, %s11787_s9  ;;  %v800_v41 = vrot.slane %v650_v1, 1 }
  0x68   : > { %v12376_v10 = vor.u32 %v800_v41, %v647_v31  ;;  %v812_v41 = vrot.slane %v15940_v24, 1 }
  0x6a   : > { %1305 = vrot.lane.b32.xlu1 %v1274_v36, %s11787_s9  ;;  %1303 = vrot.lane.b32.xlu0 %v1272_v34, %s11787_s9  ;;  %v15948_v36 = vshrl.u32 %v12211_v62, 16  ;;  %v15939_v34 = vshll.u32 %v12149_v21, 16 }
  0x6e   : > { %1145 = vrot.lane.b32.xlu1 %v1039_v2, %s11787_s9  ;;  %968 = vrot.lane.b32.xlu0 %v12083_v26, %s11787_s9  ;;  %v689_v26 = vshrl.u32 %v12138_v63, 16  ;;  %v15944_v2 = vshrl.u32 %v12156_v22, 16 }
  0x72   : > { %1147 = vrot.lane.b32.xlu1 %v1046_v11, %s11787_s9  ;;  %970 = vrot.lane.b32.xlu0 %v12062_v4, %s11787_s9  ;;  %v15937_v4 = vshll.u32 %v12208_v39, 16  ;;  %v15942_v11 = vshll.u32 %v12172_v54, 16 }
  0x74   : > { %v796_v25 = vrot.slane %v15937_v4, 1  ;;  %v12431_v4 = vor.u32 %v650_v1, %v12260_v5  ;;  %v12446_v1 = vor.u32 %v812_v41, %v689_v26  ;;  %v12451_v5 = vor.u32 %v657_v14, %v12289_v59 }
  0x75   : > { %v15966_v14 = vmov 0  ;;  %v677_v59 = vrot.slane %v675_v6, 7  ;;  %v15945_v41 = vshrl.u32 %v12149_v21, 16 }
  0x76   : > { %1149 = vrot.lane.b32.xlu1 %v1053_v17, %s11787_s9  ;;  %972 = vrot.lane.b32.xlu0 %v12096_v38, %s11787_s9  ;;  %v12338_v38 = vor.u32 %v792_v40, %v619_v48  ;;  %v12358_v57 = vor.u32 %v796_v25, %v15941_v61  ;;  %v804_v17 = vrot.slane %v664_v43, 1  ;;  %v808_v40 = vrot.slane %v678_v7, 1 }
  0x77   : > { %v15963_v25 = vmov 0  ;;  %v15967_v14 = vsel %vm12471_vm4, 4294967295, %v15966_v14 }
  0x78   : > { %v12396_v31 = vor.u32 %v804_v17, %v661_v52  ;;  %v15964_v25 = vsel %vm12406_vm3, 4294967295, %v15963_v25  ;;  %v810_v52 = vrot.slane %v15947_v18, 1  ;;  %v12426_v17 = vor.u32 %v806_v56, %v668_v9  ;;  %15968 = vst [vmem:[#allocation9_spill] sm:$0xff] %v15967_v14 }
  0x79   : > { %15965 = vst [vmem:[#allocation8_spill] sm:$0xff] %v15964_v25 }
  0x7a   : > { %1151 = vrot.lane.b32.xlu1 %v1060_v35, %s11787_s9  ;;  %974 = vrot.lane.b32.xlu0 %v12091_v29, %s11787_s9  ;;  %v794_v29 = vrot.slane %v15943_v20, 1  ;;  %v12384_v35 = vor.u32 %v798_v49, %v640_v37  ;;  %v12400_v37 = vor.u32 %v802_v30, %v654_v51  ;;  %v814_v51 = vrot.slane %v15939_v34, 1 }
  0x7b   : > { %v12422_v49 = vor.u32 %v808_v40, %v675_v6 }
  0x7c   : > { %v12363_v44 = vor.u32 %v794_v29, %v15948_v36  ;;  %v816_v29 = vrot.slane %v15938_v47, 1  ;;  %v12436_v47 = vor.u32 %v643_v33, %v12283_v0  ;;  %v12455_v33 = vor.u32 %v810_v52, %v682_v13  ;;  %v12457_v0 = vld [vmem:[#allocation2] sm:$0xff]  ;;  %v11189_v36 = vld [vmem:[%s15926_s2 + $0x150] sm:$0xff]  }
  0x7d   : > { %v758_v9 = vsel %vm12406_vm3, %v12431_v4, %v12457_v0  ;;  %v15946_v52 = vshll.u32 %v12175_v60, 16  ;;  %v761_v6 = vsel %vm12406_vm3, %v12451_v5, %v12457_v0  ;;  %v12500_v20 = vor.u32 %v814_v51, %v15945_v41 }
  0x7e   : > { %1535 = vrot.lane.b32.xlu1 %v12338_v38, %s11787_s9  ;;  %1533 = vrot.lane.b32.xlu0 %v12347_v32, %s11787_s9  ;;  %v755_v56 = vsel %vm12406_vm3, %v12436_v47, %v12457_v0  ;;  %v12485_v34 = vor.u32 %v816_v29, %v15944_v2  ;;  %v717_v2 = vshrl.u32 %v12175_v60, 16 }
  0x82   : > { %1539 = vrot.lane.b32.xlu1 %v12358_v57, %s11787_s9  ;;  %1537 = vrot.lane.b32.xlu0 %v12363_v44, %s11787_s9 }
  0x86   : > { %1543 = vrot.lane.b32.xlu1 %v12376_v10, %s11787_s9  ;;  %1541 = vrot.lane.b32.xlu0 %v12384_v35, %s11787_s9 }
  0x8a   : > { %1547 = vrot.lane.b32.xlu1 %v12396_v31, %s11787_s9  ;;  %1545 = vrot.lane.b32.xlu0 %v12400_v37, %s11787_s9 }
  0x8e   : > { %v979_v30 = vpop.permute.xlu1 %978  ;;  %1551 = vrot.lane.b32.xlu1 %v12422_v49, %s11787_s9  ;;  %v977_v40 = vpop.permute.xlu0 %976  ;;  %1549 = vrot.lane.b32.xlu0 %v12426_v17, %s11787_s9 }
  0x8f   : > { %1022 = vst.msk [vmem:[#allocation2 + $0x98] sm:$0xff] %vm1016_vm2, %v979_v30  ;;  %1021 = vst.msk [vmem:[#allocation2 + $0x80] sm:$0xff] %vm1016_vm2, %v977_v40  ;;  %v818_v30 = vrot.slane %v15942_v11, 1  ;;  %v12496_v11 = vor.u32 %v664_v43, %v12294_v3  ;;  %v820_v43 = vrot.slane %v15946_v52, 1 }
  0x92   : > { %1555 = vrot.lane.b32.xlu1 %v12446_v1, %s11787_s9  ;;  %1553 = vrot.lane.b32.xlu0 %v12455_v33, %s11787_s9 }
  0x94   : > { %v1156_v40 = vpop.permute.xlu1 %1155  ;;  %v1154_v61 = vpop.permute.xlu0 %1153 }
  0x95   : > { %v1211_v24 = vsel %vm12471_vm4, %v1156_v40, %v758_v9  ;;  %v1208_v29 = vsel %vm12471_vm4, %v1154_v61, %v755_v56  ;;  %v11185_v9 = vld [vmem:[%s15926_s2 + $0x148] sm:$0xff]   ;;  %v710_v40 = vshrl.u32 %v12172_v54, 16  ;;  %v614_v61 = vrot.slane %v612_v27, 7 }
  0x96   : > { %1212 = vst [vmem:[#allocation2 + $0x90] sm:$0xff] %v1211_v24  ;;  %1559 = vrot.lane.b32.xlu1 %v12485_v34, %s11787_s9  ;;  %1209 = vst [vmem:[#allocation2 + $0x78] sm:$0xff] %v1208_v29  ;;  %v1739_v3 = vld [vmem:[#allocation2 + $0x80] sm:$0xff]  ;;  %v1742_v51 = vld [vmem:[#allocation2 + $0x98] sm:$0xff]  ;;  %v621_v56 = vrot.slane %v619_v48, 7  ;;  %1557 = vrot.lane.b32.xlu0 %v12500_v20, %s11787_s9  ;;  %v764_v48 = vsel %vm12406_vm3, %v12496_v11, %v12457_v0 }
  0x97   : > { %2031 = vmatprep.mubr.bf16.mxu1 %v1739_v3  ;;  %v12528_v27 = vor.u32 %v818_v30, %v710_v40  ;;  %v12544_v30 = vor.u32 %v820_v43, %v717_v2  ;;  %v684_v43 = vrot.slane %v682_v13, 7 }
  0x98   : > { %v1158_v41 = vpop.permute.xlu1 %1157  ;;  %v981_v18 = vpop.permute.xlu0 %980  ;;  %2032 = vmatmul.mubr.bf16.vlgmr.msra.gmra.mrb[0].mxu1 %v1208_v29  ;;  %v12566_v29 = vor.u32 %v678_v7, %v677_v59  ;;  %v12575_v3 = vor.u32 %v622_v12, %v621_v56  ;;  %v691_v59 = vrot.slane %v689_v26, 7  ;;  %v11197_v12 = vld [vmem:[%s15926_s2 + $0x160] sm:$0xff]  }
  0x99   : > { %v12521_v52 = vsel %vm12471_vm4, %v1158_v41, %v761_v6  ;;  %1023 = vst.msk [vmem:[#allocation2 + $0xb0] sm:$0xff] %vm1016_vm2, %v981_v18  ;;  %10175 = vmatpush3.bf16.msra.mxu1 %v12106_v42  ;;  %v12540_v41 = vor.u32 %v671_v45, %v12306_v8  ;;  %2039 = vmatprep.mubr.bf16.mxu1 %v1742_v51 }
  0x9a   : > { %1215 = vst [vmem:[#allocation2 + $0xa8] sm:$0xff] %v12521_v52  ;;  %10176 = vmatprep.subr.bf16.mxu1 %v11185_v9  ;;  %1561 = vrot.lane.b32.xlu0 %v12528_v27, %s11787_s9  ;;  %v12556_v45 = vor.u32 %v615_v16, %v614_v61  ;;  %v11194_v16 = vld [vmem:[%s15926_s2 + $0x158] sm:$0xff]   ;;  %v15969_v61 = vshrl.u32 %v12211_v62, 16 }
  0x9b   : > { %1563 = vrot.lane.b32.xlu1 %v12544_v30, %s11787_s9  ;;  %v767_v8 = vsel %vm12406_vm3, %v12540_v41, %v12457_v0 }
  0x9c   : > { %v1160_v18 = vpop.permute.xlu1 %1159  ;;  %v983_v6 = vpop.permute.xlu0 %982  ;;  %v628_v56 = vrot.slane %v15969_v61, 7  ;;  %v15973_v61 = vshrl.u32 %v12208_v39, 16 }
  0x9d   : > { %v12552_v42 = vsel %vm12471_vm4, %v1160_v18, %v764_v48  ;;  %1024 = vst.msk [vmem:[#allocation2 + $0xc8] sm:$0xff] %vm1016_vm2, %v983_v6  ;;  %10177 = vmatpush3.bf16.msra.mxu1 %v11185_v9  ;;  %v15970_v48 = vshll.u32 %v12130_v55, 16 }
  0x9e   : > { %1218 = vst [vmem:[#allocation2 + $0xc0] sm:$0xff] %v12552_v42  ;;  %10178 = vmatprep.subr.bf16.mxu1 %v11189_v36  ;;  %1437 = vrot.lane.b32.xlu0 %v12556_v45, %s11787_s9 }
  0x9f   : > { %1439 = vrot.lane.b32.xlu1 %v12575_v3, %s11787_s9  ;;  %v12600_v26 = vor.u32 %v15970_v48, %v684_v43  ;;  %v15974_v48 = vshll.u32 %v12138_v63, 16 }
  0xa0   : > { %v1162_v51 = vpop.permute.xlu1 %1161  ;;  %v985_v13 = vpop.permute.xlu0 %984  ;;  %2040 = vmatmul.mubr.bf16.gmra.mrb[4].mxu1 %v1211_v24  ;;  %v1745_v9 = vld [vmem:[#allocation2 + $0xb0] sm:$0xff]  ;;  %v770_v24 = vsel %vm12406_vm3, %v12566_v29, %v12457_v0 }
  0xa1   : > { %v12583_v7 = vsel %vm12471_vm4, %v1162_v51, %v767_v8  ;;  %1025 = vst.msk [vmem:[#allocation2 + $0xe0] sm:$0xff] %vm1016_vm2, %v985_v13  ;;  %2047 = vmatprep.mubr.bf16.mxu1 %v1745_v9  ;;  %10179 = vmatpush3.bf16.msra.mxu1 %v11189_v36  ;;  %v15971_v51 = vshrl.u32 %v12149_v21, 16  ;;  %v11198_v36 = vld [vmem:[%s15926_s2 + $0x168] sm:$0xff]   ;;  %v15972_v9 = vshll.u32 %v12211_v62, 16 }
  0xa2   : > { %1221 = vst [vmem:[#allocation2 + $0xd8] sm:$0xff] %v12583_v7  ;;  %10180 = vmatprep.subr.bf16.mxu1 %v11194_v16  ;;  %1372 = vrot.lane.b32.xlu0 %v12191_v23, %s11787_s9 }
  0xa3   : > { %1374 = vrot.lane.b32.xlu1 %v12188_v15, %s11787_s9  ;;  %v698_v13 = vrot.slane %v15971_v51, 7  ;;  %v12617_v23 = vor.u32 %v15972_v9, %v628_v56  ;;  %v635_v15 = vrot.slane %v15973_v61, 7  ;;  %v15975_v9 = vshrl.u32 %v12156_v22, 16 }
  0xa4   : > { %v1164_v18 = vpop.permute.xlu1 %1163  ;;  %v987_v8 = vpop.permute.xlu0 %986  ;;  %v1748_v43 = vld [vmem:[#allocation2 + $0xc8] sm:$0xff]  ;;  %v15976_v61 = vshll.u32 %v12208_v39, 16 }
  0xa5   : > { %v12608_v6 = vsel %vm12471_vm4, %v1164_v18, %v770_v24  ;;  %1026 = vst.msk [vmem:[#allocation2 + $0xf8] sm:$0xff] %vm1016_vm2, %v987_v8  ;;  %v773_v24 = vsel %vm12406_vm3, %v12600_v26, %v12457_v0  ;;  %v12629_v18 = vor.u32 %v15974_v48, %v691_v59  ;;  %10181 = vmatpush3.bf16.msra.mxu1 %v11194_v16  ;;  %v705_v59 = vrot.slane %v15975_v9, 7  ;;  %v11199_v16 = vld [vmem:[%s15926_s2 + $0x170] sm:$0xff]  }
  0xa6   : > { %1224 = vst [vmem:[#allocation2 + $0xf0] sm:$0xff] %v12608_v6  ;;  %10182 = vmatprep.subr.bf16.mxu1 %v11197_v12  ;;  %1441 = vrot.lane.b32.xlu0 %v12617_v23, %s11787_s9  ;;  %v12647_v48 = vor.u32 %v15976_v61, %v635_v15  ;;  %v712_v9 = vrot.slane %v710_v40, 7 }
  0xa7   : > { %1376 = vrot.lane.b32.xlu1 %v12211_v62, %s11787_s9  ;;  %v776_v62 = vsel %vm12406_vm3, %v12629_v18, %v12457_v0 }
  0xa8   : > { %v1166_v56 = vpop.permute.xlu1 %1165  ;;  %v989_v51 = vpop.permute.xlu0 %988  ;;  %2048 = vmatmul.mubr.bf16.gmra.mrb[8].mxu1 %v12521_v52  ;;  %v15977_v52 = vshll.u32 %v12149_v21, 16 }
  0xa9   : > { %v12637_v8 = vsel %vm12471_vm4, %v1166_v56, %v773_v24  ;;  %1027 = vst.msk [vmem:[#allocation2 + $0x110] sm:$0xff] %vm1016_vm2, %v989_v51  ;;  %2055 = vmatprep.mubr.bf16.mxu1 %v1748_v43  ;;  %10183 = vmatpush3.bf16.msra.mxu1 %v11197_v12  ;;  %v11204_v12 = vld [vmem:[%s15926_s2 + $0x178] sm:$0xff]   ;;  %v15978_v43 = vshll.u32 %v12156_v22, 16 }
  0xaa   : > { %1227 = vst [vmem:[#allocation2 + $0x108] sm:$0xff] %v12637_v8  ;;  %v12657_v24 = vor.u32 %v15977_v52, %v698_v13  ;;  %10184 = vmatprep.subr.bf16.mxu1 %v11198_v36  ;;  %1443 = vrot.lane.b32.xlu0 %v12647_v48, %s11787_s9  ;;  %v12669_v13 = vld [vmem:[#allocation2 + $0xe0] sm:$0xff] }
  0xab   : > { %1378 = vrot.lane.b32.xlu1 %v12208_v39, %s11787_s9  ;;  %v12682_v61 = vor.u32 %v15978_v43, %v705_v59  ;;  %v719_v59 = vrot.slane %v717_v2, 7  ;;  %v11211_v2 = vld [vmem:[%s15926_s2 + $0x40] sm:$0xff]  }
  0xac   : > { %v1168_v15 = vpop.permute.xlu1 %1167  ;;  %v991_v51 = vpop.permute.xlu0 %990  ;;  %v779_v39 = vsel %vm12406_vm3, %v12657_v24, %v12457_v0 }
  0xad   : > { %v12665_v56 = vsel %vm12471_vm4, %v1168_v15, %v776_v62  ;;  %1028 = vst.msk [vmem:[#allocation2 + $0x128] sm:$0xff] %vm1016_vm2, %v991_v51  ;;  %10185 = vmatpush3.bf16.msra.mxu1 %v11198_v36 }
  0xae   : > { %1230 = vst [vmem:[#allocation2 + $0x120] sm:$0xff] %v12665_v56  ;;  %10186 = vmatprep.subr.bf16.mxu1 %v11199_v16  ;;  %1445 = vrot.lane.b32.xlu0 %v12436_v47, %s11787_s9  ;;  %v782_v47 = vsel %vm12406_vm3, %v12682_v61, %v12457_v0 }
  0xaf   : > { %1380 = vrot.lane.b32.xlu1 %v12029_v58, %s11787_s9  ;;  %v15979_v58 = vshll.u32 %v12172_v54, 16 }
  0xb0   : > { %v1170_v40 = vpop.permute.xlu1 %1169  ;;  %v993_v52 = vpop.permute.xlu0 %992  ;;  %2056 = vmatmul.mubr.bf16.gmra.mrb[12].mxu1 %v12552_v42 }
  0xb1   : > { %v12690_v62 = vsel %vm12471_vm4, %v1170_v40, %v779_v39  ;;  %1029 = vst.msk [vmem:[#allocation2 + $0x140] sm:$0xff] %vm1016_vm2, %v993_v52  ;;  %v12703_v36 = vor.u32 %v15979_v58, %v712_v9  ;;  %2063 = vmatprep.mubr.bf16.mxu1 %v12669_v13  ;;  %10187 = vmatpush3.bf16.msra.mxu1 %v11199_v16  ;;  %v12717_v9 = vld [vmem:[#allocation2 + $0xf8] sm:$0xff]  ;;  %v15980_v16 = vshll.u32 %v12175_v60, 16  ;;  %v15981_v52 = vmov 0 }
  0xb2   : > { %1233 = vst [vmem:[#allocation2 + $0x138] sm:$0xff] %v12690_v62  ;;  %10188 = vmatprep.subr.bf16.mxu1 %v11204_v12  ;;  %1447 = vrot.lane.b32.xlu0 %v12431_v4, %s11787_s9  ;;  %v15982_v52 = vsel %vm12740_vm6, 4294967295, %v15981_v52 }
  0xb3   : > { %1382 = vrot.lane.b32.xlu1 %v12019_v53, %s11787_s9  ;;  %v785_v4 = vsel %vm12406_vm3, %v12703_v36, %v12457_v0  ;;  %v12727_v53 = vor.u32 %v15980_v16, %v719_v59  ;;  %15983 = vst [vmem:[#allocation10_spill] sm:$0xff] %v15982_v52 }
  0xb4   : > { %v1172_v42 = vpop.permute.xlu1 %1171  ;;  %v995_v51 = vpop.permute.xlu0 %994 }
  0xb5   : > { %v12715_v15 = vsel %vm12471_vm4, %v1172_v42, %v782_v47  ;;  %1030 = vst.msk [vmem:[#allocation2 + $0x158] sm:$0xff] %vm1016_vm2, %v995_v51  ;;  %10189 = vmatpush3.bf16.msra.mxu1 %v11204_v12  ;;  %v12765_v47 = vld [vmem:[#allocation2 + $0x110] sm:$0xff]  ;;  %v12809_v51 = vld [vmem:[#allocation2 + $0x128] sm:$0xff] }
  0xb6   : > { %1236 = vst [vmem:[#allocation2 + $0x150] sm:$0xff] %v12715_v15  ;;  %9086 = vmatprep.subr.bf16.mxu1 %v11211_v2  ;;  %1449 = vrot.lane.b32.xlu0 %v12451_v5, %s11787_s9 }
  0xb7   : > { %1384 = vrot.lane.b32.xlu1 %v12070_v19, %s11787_s9  ;;  %v788_v19 = vsel %vm12406_vm3, %v12727_v53, %v12457_v0 }
  0xb8   : > { %v1174_v39 = vpop.permute.xlu1 %1173  ;;  %v997_v40 = vpop.permute.xlu0 %996  ;;  %2064 = vmatmul.mubr.bf16.gmra.mrb[16].mxu1 %v12583_v7 }
  0xb9   : > { %v12735_v43 = vsel %vm12471_vm4, %v1174_v39, %v785_v4  ;;  %1031 = vst.msk [vmem:[#allocation2 + $0x170] sm:$0xff] %vm1016_vm2, %v997_v40  ;;  %2071 = vmatprep.mubr.bf16.mxu1 %v12717_v9 }
  0xba   : > { %1239 = vst [vmem:[#allocation2 + $0x168] sm:$0xff] %v12735_v43  ;;  %1451 = vrot.lane.b32.xlu0 %v12496_v11, %s11787_s9  ;;  %v841_v11 = vsel %vm12740_vm6, %v12347_v32, %v12457_v0  ;;  %v850_v32 = vsel %vm12740_vm6, %v12358_v57, %v12457_v0 }
  0xbb   : > { %1386 = vrot.lane.b32.xlu1 %v12088_v28, %s11787_s9  ;;  %v844_v28 = vsel %vm12740_vm6, %v12338_v38, %v12457_v0 }
  0xbc   : > { %v1176_v5 = vpop.permute.xlu1 %1175  ;;  %v999_v12 = vpop.permute.xlu0 %998 }
  0xbd   : > { %v12757_v7 = vsel %vm12471_vm4, %v1176_v5, %v788_v19  ;;  %1032 = vst.msk [vmem:[#allocation2 + $0x188] sm:$0xff] %vm1016_vm2, %v999_v12 }
  0xbe   : > { %1242 = vst [vmem:[#allocation2 + $0x180] sm:$0xff] %v12757_v7  ;;  %1453 = vrot.lane.b32.xlu0 %v12540_v41, %s11787_s9 }
  0xbf   : > { %1388 = vrot.lane.b32.xlu1 %v12114_v46, %s11787_s9  ;;  %v847_v46 = vsel %vm12740_vm6, %v12363_v44, %v12457_v0  ;;  %v856_v44 = vsel %vm12740_vm6, %v12376_v10, %v12457_v0 }
  0xc0   : > { %v1278_v58 = vpop.permute.xlu1 %1277  ;;  %v1276_v42 = vpop.permute.xlu0 %1275  ;;  %2072 = vmatmul.mubr.bf16.gmra.mrb[20].mxu1 %v12608_v6 }
  0xc1   : > { %v12783_v2 = vsel %vm12761_vm7, %v1278_v58, %v844_v28  ;;  %v12789_v38 = vsel %vm12761_vm7, %v1276_v42, %v841_v11  ;;  %2079 = vmatprep.mubr.bf16.mxu1 %v12765_v47 }
  0xc2   : > { %1329 = vst [vmem:[#allocation2 + $0x40] sm:$0xff] %v12783_v2  ;;  %1326 = vst [vmem:[#allocation2 + $0x28] sm:$0xff] %v12789_v38  ;;  %1455 = vrot.lane.b32.xlu0 %v12566_v29, %s11787_s9 }
  0xc3   : > { %1390 = vrot.lane.b32.xlu1 %v12120_v50, %s11787_s9  ;;  %v853_v50 = vsel %vm12740_vm6, %v12384_v35, %v12457_v0  ;;  %v862_v35 = vsel %vm12740_vm6, %v12396_v31, %v12457_v0 }
  0xc4   : > { %v1282_v41 = vpop.permute.xlu1 %1281  ;;  %v1280_v57 = vpop.permute.xlu0 %1279 }
  0xc5   : > { %v12807_v6 = vsel %vm12761_vm7, %v1282_v41, %v850_v32  ;;  %v12814_v4 = vsel %vm12761_vm7, %v1280_v57, %v847_v46  ;;  %v746_v57 = vsel %vm12406_vm3, %v12575_v3, %v12457_v0  ;;  %v12988_v3 = vld [vmem:[#allocation2 + $0x188] sm:$0xff] }
  0xc6   : > { %1335 = vst [vmem:[#allocation2 + $0x70] sm:$0xff] %v12807_v6  ;;  %1332 = vst [vmem:[#allocation2 + $0x58] sm:$0xff] %v12814_v4  ;;  %1457 = vrot.lane.b32.xlu0 %v12600_v26, %s11787_s9 }
  0xc7   : > { %1392 = vrot.lane.b32.xlu1 %v12130_v55, %s11787_s9  ;;  %v859_v55 = vsel %vm12740_vm6, %v12400_v37, %v12457_v0  ;;  %v868_v37 = vsel %vm12740_vm6, %v12422_v49, %v12457_v0 }
  0xc8   : > { %v1286_v29 = vpop.permute.xlu1 %1285  ;;  %v1284_v39 = vpop.permute.xlu0 %1283  ;;  %2080 = vmatmul.mubr.bf16.gmra.mrb[24].mxu1 %v12637_v8 }
  0xc9   : > { %v12831_v16 = vsel %vm12761_vm7, %v1286_v29, %v856_v44  ;;  %v12837_v10 = vsel %vm12761_vm7, %v1284_v39, %v853_v50  ;;  %2087 = vmatprep.mubr.bf16.mxu1 %v12809_v51  ;;  %v749_v29 = vsel %vm12406_vm3, %v12617_v23, %v12457_v0  ;;  %v11202_v39 = vld [vmem:[%s15926_s2 + $0x1c8] sm:$0xff]  }
  0xca   : > { %1341 = vst [vmem:[#allocation2 + $0xa0] sm:$0xff] %v12831_v16  ;;  %1338 = vst [vmem:[#allocation2 + $0x88] sm:$0xff] %v12837_v10  ;;  %1459 = vrot.lane.b32.xlu0 %v12629_v18, %s11787_s9  ;;  %v12866_v18 = vld [vmem:[#allocation2 + $0x140] sm:$0xff]  ;;  %v11203_v23 = vld [vmem:[%s15926_s2 + $0x188] sm:$0xff]  }
  0xcb   : > { %1394 = vrot.lane.b32.xlu1 %v12138_v63, %s11787_s9  ;;  %v865_v63 = vsel %vm12740_vm6, %v12426_v17, %v12457_v0  ;;  %v874_v17 = vsel %vm12740_vm6, %v12446_v1, %v12457_v0 }
  0xcc   : > { %v1290_v26 = vpop.permute.xlu1 %1289  ;;  %v1288_v31 = vpop.permute.xlu0 %1287 }
  0xcd   : > { %v12855_v8 = vsel %vm12761_vm7, %v1290_v26, %v862_v35  ;;  %v12860_v40 = vsel %vm12761_vm7, %v1288_v31, %v859_v55 }
  0xce   : > { %1347 = vst [vmem:[#allocation2 + $0xd0] sm:$0xff] %v12855_v8  ;;  %1344 = vst [vmem:[#allocation2 + $0xb8] sm:$0xff] %v12860_v40  ;;  %1461 = vrot.lane.b32.xlu0 %v12657_v24, %s11787_s9 }
  0xcf   : > { %1396 = vrot.lane.b32.xlu1 %v12149_v21, %s11787_s9  ;;  %v871_v21 = vsel %vm12740_vm6, %v12455_v33, %v12457_v0  ;;  %v880_v33 = vsel %vm12740_vm6, %v12485_v34, %v12457_v0 }
  0xd0   : > { %v1294_v19 = vpop.permute.xlu1 %1293  ;;  %v1292_v49 = vpop.permute.xlu0 %1291  ;;  %2088 = vmatmul.mubr.bf16.gmra.mrb[28].mxu1 %v12665_v56 }
  0xd1   : > { %v12879_v5 = vsel %vm12761_vm7, %v1294_v19, %v868_v37  ;;  %v12885_v12 = vsel %vm12761_vm7, %v1292_v49, %v865_v63  ;;  %2095 = vmatprep.mubr.bf16.mxu1 %v12866_v18  ;;  %v11205_v37 = vld [vmem:[%s15926_s2 + $0x1d0] sm:$0xff]  }
  0xd2   : > { %1353 = vst [vmem:[#allocation2 + $0x100] sm:$0xff] %v12879_v5  ;;  %1350 = vst [vmem:[#allocation2 + $0xe8] sm:$0xff] %v12885_v12  ;;  %1463 = vrot.lane.b32.xlu0 %v12682_v61, %s11787_s9  ;;  %v12914_v61 = vld [vmem:[#allocation2 + $0x158] sm:$0xff] }
  0xd3   : > { %1398 = vrot.lane.b32.xlu1 %v12156_v22, %s11787_s9  ;;  %v877_v22 = vsel %vm12740_vm6, %v12500_v20, %v12457_v0  ;;  %v886_v20 = vsel %vm12740_vm6, %v12544_v30, %v12457_v0 }
  0xd4   : > { %v1298_v24 = vpop.permute.xlu1 %1297  ;;  %v1296_v1 = vpop.permute.xlu0 %1295 }
  0xd5   : > { %v12903_v56 = vsel %vm12761_vm7, %v1298_v24, %v874_v17  ;;  %v12908_v28 = vsel %vm12761_vm7, %v1296_v1, %v871_v21  ;;  %v11208_v24 = vld [vmem:[%s15926_s2 + $0x198] sm:$0xff]   ;;  %v11209_v1 = vld [vmem:[%s15926_s2 + $0x1e0] sm:$0xff]  }
  0xd6   : > { %1359 = vst [vmem:[#allocation2 + $0x130] sm:$0xff] %v12903_v56  ;;  %1356 = vst [vmem:[#allocation2 + $0x118] sm:$0xff] %v12908_v28  ;;  %1465 = vrot.lane.b32.xlu0 %v12703_v36, %s11787_s9 }
  0xd7   : > { %1400 = vrot.lane.b32.xlu1 %v12172_v54, %s11787_s9  ;;  %v883_v54 = vsel %vm12740_vm6, %v12528_v27, %v12457_v0  ;;  %v743_v27 = vsel %vm12406_vm3, %v12556_v45, %v12457_v0 }
  0xd8   : > { %v1302_v11 = vpop.permute.xlu1 %1301  ;;  %v1300_v34 = vpop.permute.xlu0 %1299  ;;  %2096 = vmatmul.mubr.bf16.gmra.mrb[32].mxu1 %v12690_v62 }
  0xd9   : > { %v12927_v58 = vsel %vm12761_vm7, %v1302_v11, %v880_v33  ;;  %v12933_v42 = vsel %vm12761_vm7, %v1300_v34, %v877_v22  ;;  %2103 = vmatprep.mubr.bf16.mxu1 %v12914_v61  ;;  %v11217_v33 = vld [vmem:[%s15926_s2 + $0x48] sm:$0xff]  }
  0xda   : > { %1365 = vst [vmem:[#allocation2 + $0x160] sm:$0xff] %v12927_v58  ;;  %1362 = vst [vmem:[#allocation2 + $0x148] sm:$0xff] %v12933_v42  ;;  %1467 = vrot.lane.b32.xlu0 %v12727_v53, %s11787_s9  ;;  %v12962_v53 = vld [vmem:[#allocation2 + $0x170] sm:$0xff]  ;;  %v11213_v22 = vld [vmem:[%s15926_s2 + $0x1e8] sm:$0xff]  }
  0xdb   : > { %1402 = vrot.lane.b32.xlu1 %v12175_v60, %s11787_s9  ;;  %v11218_v34 = vld [vmem:[%s15926_s2 + $0x8] sm:$0xff]  }
  0xdc   : > { %v1306_v62 = vpop.permute.xlu1 %1305  ;;  %v1304_v30 = vpop.permute.xlu0 %1303 }
  0xdd   : > { %v12951_v36 = vsel %vm12761_vm7, %v1306_v62, %v886_v20  ;;  %v12956_v32 = vsel %vm12761_vm7, %v1304_v30, %v883_v54  ;;  %v11214_v20 = vld [vmem:[%s15926_s2 + $0x1a8] sm:$0xff]   ;;  %v11222_v54 = vld [vmem:[%s15926_s2 + $0x10] sm:$0xff]   ;;  %v11223_v62 = vld [vmem:[%s15926_s2 + $0x58] sm:$0xff]  }
  0xde   : > { %1371 = vst [vmem:[#allocation2 + $0x190] sm:$0xff] %v12951_v36  ;;  %1368 = vst [vmem:[#allocation2 + $0x178] sm:$0xff] %v12956_v32  ;;  %v11216_v30 = vld [vmem:[%s15926_s2 + $0x1b0] sm:$0xff]  }
  0xe0   : > { %v1146_v60 = vpop.permute.xlu1 %1145  ;;  %v969_v46 = vpop.permute.xlu0 %968  ;;  %2104 = vmatmul.mubr.bf16.gmra.mrb[36].mxu1 %v12715_v15  ;;  %v11201_v15 = vld [vmem:[%s15926_s2 + $0x180] sm:$0xff]  }
  0xe1   : > { %v12967_v41 = vsel %vm12471_vm4, %v1146_v60, %v743_v27  ;;  %1017 = vst.msk [vmem:[#allocation2 + $0x20] sm:$0xff] %vm1016_vm2, %v969_v46  ;;  %2111 = vmatprep.mubr.bf16.mxu1 %v12962_v53  ;;  %v11219_v27 = vld [vmem:[%s15926_s2 + $0x1f8] sm:$0xff]   ;;  %v11225_v46 = vld [vmem:[%s15926_s2 + $0x60] sm:$0xff]  }
  0xe2   : > { %v11224_v60 = vld [vmem:[%s15926_s2 + $0x18] sm:$0xff]  }
  0xe4   : > { %v1148_v45 = vpop.permute.xlu1 %1147  ;;  %v971_v44 = vpop.permute.xlu0 %970 }
  0xe5   : > { %v12978_v50 = vsel %vm12471_vm4, %v1148_v45, %v746_v57  ;;  %1018 = vst.msk [vmem:[#allocation2 + $0x38] sm:$0xff] %vm1016_vm2, %v971_v44  ;;  %v11227_v57 = vld [vmem:[%s15926_s2 + $0x68] sm:$0xff]   ;;  %v11229_v44 = vld [vmem:[%s15926_s2 + $0x70] sm:$0xff]  }
  0xe6   : > { %v11228_v45 = vld [vmem:[%s15926_s2 + $0x28] sm:$0xff]  }
  0xe8   : > { %v1150_v35 = vpop.permute.xlu1 %1149  ;;  %v12993_v55 = vld [vmem:[#allocation2 + $0x20] sm:$0xff]  ;;  %2112 = vmatmul.mubr.bf16.gmra.mrb[40].mxu1 %v12735_v43  ;;  %v973_v26 = vpop.permute.xlu0 %972  ;;  %v752_v43 = vsel %vm12406_vm3, %v12647_v48, %v12457_v0  ;;  %v11206_v0 = vld [vmem:[%s15926_s2 + $0x190] sm:$0xff]   ;;  %v11207_v48 = vld [vmem:[%s15926_s2 + $0x1d8] sm:$0xff]  }
  0xe9   : > { %v12998_v31 = vsel %vm12471_vm4, %v1150_v35, %v749_v29  ;;  %1999 = vmatprep.mubr.bf16.mxu0 %v12993_v55  ;;  %1019 = vst.msk [vmem:[#allocation2 + $0x50] sm:$0xff] %vm1016_vm2, %v973_v26  ;;  %2119 = vmatprep.mubr.bf16.mxu1 %v12988_v3  ;;  %v11233_v29 = vld [vmem:[%s15926_s2 + $0x80] sm:$0xff]   ;;  %v11236_v26 = vld [vmem:[%s15926_s2 + $0x98] sm:$0xff]  }
  0xea   : > { %2000 = vmatmul.mubr.bf16.vlgmr.msra.gmra.mrb[0].mxu0 %v12967_v41  ;;  %v13163_v35 = vld [vmem:[#allocation2 + $0xc0] sm:$0xff] }
  0xeb   : > { %9223 = vmatpush3.bf16.msra.mxu0 %v11201_v15  ;;  %v11232_v15 = vld [vmem:[%s15926_s2 + $0x38] sm:$0xff]  }
  0xec   : > { %v1152_v63 = vpop.permute.xlu1 %1151  ;;  %9224 = vmatprep.subr.bf16.mxu0 %v11202_v39  ;;  %v13014_v19 = vld [vmem:[#allocation2 + $0x38] sm:$0xff]  ;;  %v975_v49 = vpop.permute.xlu0 %974 }
  0xed   : > { %v13018_v17 = vsel %vm12471_vm4, %v1152_v63, %v752_v43  ;;  %2007 = vmatprep.mubr.bf16.mxu0 %v13014_v19  ;;  %1020 = vst.msk [vmem:[#allocation2 + $0x68] sm:$0xff] %vm1016_vm2, %v975_v49  ;;  %v13138_v39 = vld [vmem:[#allocation2 + $0x98] sm:$0xff]  ;;  %v13199_v43 = vld [vmem:[#allocation2 + $0x108] sm:$0xff] }
  0xee   : > { %v13217_v63 = vld [vmem:[#allocation2 + $0x138] sm:$0xff] }
  0xef   : > { %9225 = vmatpush3.bf16.msra.mxu0 %v11203_v23  ;;  %v13175_v23 = vld [vmem:[#allocation2 + $0xd8] sm:$0xff] }
  0xf0   : > { %9226 = vmatprep.subr.bf16.mxu0 %v11205_v37  ;;  %2120 = vmatmul.mubr.bf16.gmra.mrb[44].mxu1 %v12757_v7  ;;  %v13029_v21 = vld [vmem:[#allocation2 + $0x50] sm:$0xff]  ;;  %v11212_v7 = vld [vmem:[%s15926_s2] sm:$0xff]  }
  0xf1   : > { %10190 = vmatprep.mubr.bf16.mxu1 %v12789_v38  ;;  %v11210_v38 = vld [vmem:[%s15926_s2 + $0x1a0] sm:$0xff]  }
  0xf2   : > { %2008 = vmatmul.mubr.bf16.gmra.mrb[4].mxu0 %v12978_v50  ;;  %v13206_v37 = vld [vmem:[%s15926_s2 + $0x200] sm:$0xff]  }
  0xf3   : > { %9227 = vmatpush3.bf16.msra.mxu0 %v11206_v0  ;;  %2015 = vmatprep.mubr.bf16.mxu0 %v13029_v21 }
  0xf4   : > { %9228 = vmatprep.subr.bf16.mxu0 %v11207_v48  ;;  %v13053_v11 = vld [vmem:[#allocation2 + $0x68] sm:$0xff] }
  0xf7   : > { %9229 = vmatpush3.bf16.msra.mxu0 %v11208_v24 }
  0xf8   : > { %9230 = vmatprep.subr.bf16.mxu0 %v11209_v1  ;;  %10191 = vmatmul.mubr.bf16.vlgmr.msra.gmra.mrb[48].mxu1 %v12783_v2  ;;  %v11221_v2 = vld [vmem:[%s15926_s2 + $0x50] sm:$0xff]   ;;  %v13233_v1 = vld [vmem:[#allocation2 + $0x168] sm:$0xff] }
  0xf9   : > { %9087 = vmatpush3.bf16.msra.mxu1 %v11212_v7  ;;  %10194 = vmatprep.mubr.bf16.mxu1 %v12814_v4  ;;  %v11215_v4 = vld [vmem:[%s15926_s2 + $0x1f0] sm:$0xff]  }
  0xfa   : > { %2016 = vmatmul.mubr.bf16.gmra.mrb[8].mxu0 %v12998_v31  ;;  %9088 = vmatprep.subr.bf16.mxu1 %v11217_v33 }
  0xfb   : > { %9231 = vmatpush3.bf16.msra.mxu0 %v11210_v38  ;;  %2023 = vmatprep.mubr.bf16.mxu0 %v13053_v11 }
  0xfc   : > { %9232 = vmatprep.subr.bf16.mxu0 %v11213_v22 }
  0xfd   : > { %9089 = vmatpush3.bf16.msra.mxu1 %v11218_v34 }
  0xfe   : > { %9090 = vmatprep.subr.bf16.mxu1 %v11221_v2  ;;  %v1658_v2 = vld [vmem:[#allocation2 + $0xe0] sm:$0xff] }
  0xff   : > { %9233 = vmatpush3.bf16.msra.mxu0 %v11214_v20  ;;  %v2798_v20 = vld [vmem:[#allocation2 + $0x180] sm:$0xff] }
 0x100   : > { %9234 = vmatprep.subr.bf16.mxu0 %v11215_v4  ;;  %10195 = vmatmul.mubr.bf16.gmra.mrb[52].mxu1 %v12807_v6  ;;  %v11220_v6 = vld [vmem:[%s15926_s2 + $0x1b8] sm:$0xff]  }
 0x101   : > { %10198 = vmatprep.mubr.bf16.mxu1 %v12837_v10  ;;  %9091 = vmatpush3.bf16.msra.mxu1 %v11222_v54  ;;  %v11226_v10 = vld [vmem:[%s15926_s2 + $0x20] sm:$0xff]  }
 0x102   : > { %2024 = vmatmul.mubr.bf16.gmra.mrb[12].mxu0 %v13018_v17  ;;  %9092 = vmatprep.subr.bf16.mxu1 %v11223_v62 }
 0x103   : > { %9235 = vmatpush3.bf16.msra.mxu0 %v11216_v30  ;;  %3029 = vmatprep.mubr.bf16.mxu0 %v13014_v19 }
 0x104   : > { %9236 = vmatprep.subr.bf16.mxu0 %v11219_v27 }
 0x105   : > { %9093 = vmatpush3.bf16.msra.mxu1 %v11224_v60  ;;  %v1661_v60 = vld [vmem:[#allocation2 + $0xf8] sm:$0xff] }
 0x106   : > { %9094 = vmatprep.subr.bf16.mxu1 %v11225_v46 }
 0x107   : > { %9237 = vmatpush3.bf16.msra.mxu0 %v11220_v6 }
 0x108   : > { %10199 = vmatmul.mubr.bf16.gmra.mrb[56].mxu1 %v12831_v16  ;;  %v11230_v16 = vld [vmem:[%s15926_s2 + $0x30] sm:$0xff]  }
 0x109   : > { %10202 = vmatprep.mubr.bf16.mxu1 %v12860_v40  ;;  %9095 = vmatpush3.bf16.msra.mxu1 %v11226_v10  ;;  %v11231_v40 = vld [vmem:[%s15926_s2 + $0x78] sm:$0xff]  }
 0x10a   : > { %3030 = vmatmul.mubr.bf16.vlgmr.msra.gmra.mrb[16].mxu0 %v12978_v50  ;;  %9096 = vmatprep.subr.bf16.mxu1 %v11227_v57 }
 0x10b   : > { %3037 = vmatprep.mubr.bf16.mxu0 %v13029_v21 }
 0x10d   : > { %9097 = vmatpush3.bf16.msra.mxu1 %v11228_v45 }
 0x10e   : > { %9098 = vmatprep.subr.bf16.mxu1 %v11229_v44 }
 0x110   : > { %10203 = vmatmul.mubr.bf16.gmra.mrb[60].mxu1 %v12855_v8  ;;  %v13130_v8 = vld [vmem:[#allocation2 + $0x80] sm:$0xff] }
 0x111   : > { %10206 = vmatprep.mubr.bf16.mxu1 %v12885_v12  ;;  %9099 = vmatpush3.bf16.msra.mxu1 %v11230_v16  ;;  %v13134_v12 = vld [vmem:[#allocation2 + $0x78] sm:$0xff] }
 0x112   : > { %3038 = vmatmul.mubr.bf16.gmra.mrb[20].mxu0 %v12998_v31  ;;  %9100 = vmatprep.subr.bf16.mxu1 %v11231_v40 }
 0x113   : > { %3045 = vmatprep.mubr.bf16.mxu0 %v13053_v11 }
 0x115   : > { %9101 = vmatpush3.bf16.msra.mxu1 %v11232_v15 }
 0x116   : > { %10222 = vmatprep.subr.bf16.mxu1 %v11233_v29 }
 0x118   : > { %10207 = vmatmul.mubr.bf16.gmra.mrb[64].mxu1 %v12879_v5  ;;  %v13142_v5 = vld [vmem:[#allocation2 + $0x90] sm:$0xff] }
 0x119   : > { %10210 = vmatprep.mubr.bf16.mxu1 %v12908_v28  ;;  %v13146_v28 = vld [vmem:[#allocation2 + $0xb0] sm:$0xff] }
 0x11a   : > { %3046 = vmatmul.mubr.bf16.gmra.mrb[24].mxu0 %v13018_v17 }
 0x11b   : > { %3053 = vmatprep.mubr.bf16.mxu0 %v13130_v8 }
 0x120   : > { %10211 = vmatmul.mubr.bf16.gmra.mrb[68].mxu1 %v12903_v56  ;;  %v13150_v56 = vld [vmem:[#allocation2 + $0xa8] sm:$0xff] }
 0x121   : > { %10214 = vmatprep.mubr.bf16.mxu1 %v12933_v42  ;;  %v13152_v42 = vld [vmem:[#allocation2] sm:$0xff] }
 0x122   : > { %3054 = vmatmul.mubr.bf16.gmra.mrb[28].mxu0 %v13134_v12 }
 0x123   : > { %3061 = vmatprep.mubr.bf16.mxu0 %v13138_v39 }
 0x128   : > { %10215 = vmatmul.mubr.bf16.gmra.mrb[72].mxu1 %v12927_v58  ;;  %v13156_v58 = vld [vmem:[#allocation2 + $0xc8] sm:$0xff] }
 0x129   : > { %10218 = vmatprep.mubr.bf16.mxu1 %v12956_v32  ;;  %v11234_v32 = vld [vmem:[%s15926_s2 + $0x88] sm:$0xff]  }
 0x12a   : > { %3062 = vmatmul.mubr.bf16.gmra.mrb[32].mxu0 %v13142_v5 }
 0x12b   : > { %3069 = vmatprep.mubr.bf16.mxu0 %v13146_v28 }
 0x130   : > { %10219 = vmatmul.mubr.bf16.gmra.mrb[76].mxu1 %v12951_v36  ;;  %v11235_v36 = vld [vmem:[%s15926_s2 + $0x90] sm:$0xff]  }
 0x131   : > { %2465 = vmatprep.mubr.bf16.mxu1 %v13152_v42 }
 0x132   : > { %3070 = vmatmul.mubr.bf16.gmra.mrb[36].mxu0 %v13150_v56 }
 0x133   : > { %3077 = vmatprep.mubr.bf16.mxu0 %v13156_v58 }
 0x138   : > { %2466 = vmatmul.mubr.bf16.vlgmr.msra.gmra.mrb[80].mxu1 %v13152_v42 }
 0x139   : > { %10223 = vmatpush3.bf16.msra.mxu1 %v11233_v29  ;;  %2473 = vmatprep.mubr.bf16.mxu1 %v12993_v55  ;;  %v13187_v55 = vld [vmem:[#allocation2 + $0xf0] sm:$0xff] }
 0x13a   : > { %3078 = vmatmul.mubr.bf16.gmra.mrb[40].mxu0 %v13163_v35  ;;  %10224 = vmatprep.subr.bf16.mxu1 %v11234_v32 }
 0x13b   : > { %3085 = vmatprep.mubr.bf16.mxu0 %v12669_v13  ;;  %v11237_v13 = vld [vmem:[%s15926_s2 + $0xa0] sm:$0xff]  }
 0x13d   : > { %10225 = vmatpush3.bf16.msra.mxu1 %v11234_v32 }
 0x13e   : > { %10226 = vmatprep.subr.bf16.mxu1 %v11235_v36 }
 0x140   : > { %2474 = vmatmul.mubr.bf16.gmra.mrb[84].mxu1 %v12967_v41  ;;  %v11238_v41 = vld [vmem:[%s15926_s2 + $0xa8] sm:$0xff]  }
 0x141   : > { %2481 = vmatprep.mubr.bf16.mxu1 %v13014_v19  ;;  %10227 = vmatpush3.bf16.msra.mxu1 %v11235_v36  ;;  %v13223_v19 = vld [vmem:[#allocation2 + $0x150] sm:$0xff] }
 0x142   : > { %3086 = vmatmul.mubr.bf16.gmra.mrb[44].mxu0 %v13175_v23  ;;  %10228 = vmatprep.subr.bf16.mxu1 %v11236_v26 }
 0x143   : > { %3093 = vmatprep.mubr.bf16.mxu0 %v12717_v9  ;;  %v11239_v9 = vld [vmem:[%s15926_s2 + $0xb0] sm:$0xff]  }
 0x145   : > { %10229 = vmatpush3.bf16.msra.mxu1 %v11236_v26 }
 0x146   : > { %10230 = vmatprep.subr.bf16.mxu1 %v11237_v13 }
 0x148   : > { %2482 = vmatmul.mubr.bf16.gmra.mrb[88].mxu1 %v12978_v50  ;;  %v11240_v50 = vld [vmem:[%s15926_s2 + $0xb8] sm:$0xff]  }
 0x149   : > { %2489 = vmatprep.mubr.bf16.mxu1 %v13029_v21  ;;  %10231 = vmatpush3.bf16.msra.mxu1 %v11237_v13 }
 0x14a   : > { %3094 = vmatmul.mubr.bf16.gmra.mrb[48].mxu0 %v13187_v55  ;;  %10232 = vmatprep.subr.bf16.mxu1 %v11238_v41 }
 0x14b   : > { %3101 = vmatprep.mubr.bf16.mxu0 %v12765_v47 }
 0x14d   : > { %10233 = vmatpush3.bf16.msra.mxu1 %v11238_v41 }
 0x14e   : > { %10234 = vmatprep.subr.bf16.mxu1 %v11239_v9 }
 0x150   : > { %2490 = vmatmul.mubr.bf16.gmra.mrb[92].mxu1 %v12998_v31  ;;  %v13211_v31 = vld [vmem:[#allocation2 + $0x120] sm:$0xff] }
 0x151   : > { %2497 = vmatprep.mubr.bf16.mxu1 %v13053_v11  ;;  %10235 = vmatpush3.bf16.msra.mxu1 %v11239_v9 }
 0x152   : > { %3102 = vmatmul.mubr.bf16.gmra.mrb[52].mxu0 %v13199_v43  ;;  %10236 = vmatprep.subr.bf16.mxu1 %v11240_v50 }
 0x153   : > { %3109 = vmatprep.mubr.bf16.mxu0 %v12809_v51 }
 0x155   : > { %10237 = vmatpush3.bf16.msra.mxu1 %v11240_v50 }
 0x156   : > { %10270 = vmatprep.subr.bf16.mxu1 %v13206_v37 }
 0x158   : > { %2498 = vmatmul.mubr.bf16.gmra.mrb[96].mxu1 %v13018_v17 }
 0x159   : > { %2505 = vmatprep.mubr.bf16.mxu1 %v13130_v8 }
 0x15a   : > { %3110 = vmatmul.mubr.bf16.gmra.mrb[56].mxu0 %v13211_v31 }
 0x15b   : > { %3117 = vmatprep.mubr.bf16.mxu0 %v12866_v18 }
 0x160   : > { %2506 = vmatmul.mubr.bf16.gmra.mrb[100].mxu1 %v13134_v12 }
 0x161   : > { %2513 = vmatprep.mubr.bf16.mxu1 %v13138_v39 }
 0x162   : > { %3118 = vmatmul.mubr.bf16.gmra.mrb[60].mxu0 %v13217_v63 }
 0x163   : > { %3125 = vmatprep.mubr.bf16.mxu0 %v12914_v61 }
 0x168   : > { %2514 = vmatmul.mubr.bf16.gmra.mrb[104].mxu1 %v13142_v5 }
 0x169   : > { %2521 = vmatprep.mubr.bf16.mxu1 %v13146_v28 }
 0x16a   : > { %3126 = vmatmul.mubr.bf16.gmra.mrb[64].mxu0 %v13223_v19 }
 0x16b   : > { %3133 = vmatprep.mubr.bf16.mxu0 %v12962_v53  ;;  %v8990_v49 = vpop.f32.mrb[0].mxu1 }
 0x16c   : > { %v8991_v17 = vpop.f32.mrb[1].mxu1 }
 0x16d   : > { %v13228_v0 = vadd.f32 %v8991_v17, %v8990_v49  ;;  %v8993_v48 = vpop.f32.mrb[2].mxu1 }
 0x16e   : > { %v8994_v21 = vpop.f32.mrb[3].mxu1 }
 0x16f   : > { %v13230_v24 = vadd.f32 %v8994_v21, %v8993_v48 }
 0x170   : > { %2522 = vmatmul.mubr.bf16.gmra.mrb[108].mxu1 %v13150_v56 }
 0x171   : > { %2529 = vmatprep.mubr.bf16.mxu1 %v13156_v58 }
 0x172   : > { %3134 = vmatmul.mubr.bf16.gmra.mrb[68].mxu0 %v13233_v1 }
 0x173   : > { %3141 = vmatprep.mubr.bf16.mxu0 %v12988_v3  ;;  %v8996_v7 = vpop.f32.mrb[4].mxu1 }
 0x174   : > { %v8997_v33 = vpop.f32.mrb[5].mxu1 }
 0x175   : > { %v13238_v38 = vadd.f32 %v8997_v33, %v8996_v7  ;;  %v8999_v22 = vpop.f32.mrb[6].mxu1 }
 0x176   : > { %v9000_v11 = vpop.f32.mrb[7].mxu1 }
 0x177   : > { %v13240_v34 = vadd.f32 %v9000_v11, %v8999_v22  ;;  %v1635_v11 = vld [vmem:[#allocation2 + $0x28] sm:$0xff] }
 0x178   : > { %2530 = vmatmul.mubr.bf16.gmra.mrb[112].mxu1 %v13163_v35 }
 0x179   : > { %2537 = vmatprep.mubr.bf16.mxu1 %v1658_v2  ;;  %v13293_v2 = vld [vmem:[#allocation2 + $0x40] sm:$0xff] }
 0x17a   : > { %3142 = vmatmul.mubr.bf16.gmra.mrb[72].mxu0 %v2798_v20 }
 0x17b   : > { %v9002_v4 = vpop.f32.mrb[8].mxu1  ;;  %3149 = vmatprep.mubr.bf16.mxu0 %v13152_v42 }
 0x17c   : > { %v9003_v54 = vpop.f32.mrb[9].mxu1 }
 0x17d   : > { %v13244_v62 = vadd.f32 %v9003_v54, %v9002_v4  ;;  %v9005_v3 = vpop.f32.mrb[10].mxu1 }
 0x17e   : > { %v9006_v30 = vpop.f32.mrb[11].mxu1 }
 0x17f   : > { %v13246_v27 = vadd.f32 %v9006_v30, %v9005_v3 }
 0x180   : > { %2538 = vmatmul.mubr.bf16.gmra.mrb[116].mxu1 %v13175_v23 }
 0x181   : > { %2545 = vmatprep.mubr.bf16.mxu1 %v1661_v60 }
 0x182   : > { %3150 = vmatmul.mubr.bf16.gmra.mrb[76].mxu0 %v13152_v42 }
 0x183   : > { %v9008_v46 = vpop.f32.mrb[12].mxu1 }
 0x184   : > { %v9009_v6 = vpop.f32.mrb[13].mxu1 }
 0x185   : > { %v13250_v10 = vadd.f32 %v9009_v6, %v9008_v46  ;;  %v9011_v57 = vpop.f32.mrb[14].mxu1 }
 0x186   : > { %v9012_v45 = vpop.f32.mrb[15].mxu1 }
 0x187   : > { %v13252_v44 = vadd.f32 %v9012_v45, %v9011_v57  ;;  %v13307_v57 = vld [vmem:[#allocation2 + $0x58] sm:$0xff] }
 0x188   : > { %2546 = vmatmul.mubr.bf16.gmra.mrb[120].mxu1 %v13187_v55 }
 0x189   : > { %2553 = vmatprep.mubr.bf16.mxu1 %v12765_v47 }
 0x18b   : > { %v9014_v16 = vpop.f32.mrb[16].mxu1 }
 0x18c   : > { %v9015_v40 = vpop.f32.mrb[17].mxu1 }
 0x18d   : > { %v13256_v15 = vadd.f32 %v9015_v40, %v9014_v16  ;;  %v9017_v29 = vpop.f32.mrb[18].mxu1  ;;  %v13312_v40 = vld [vmem:[#allocation2 + $0x70] sm:$0xff] }
 0x18e   : > { %v9018_v8 = vpop.f32.mrb[19].mxu1 }
 0x18f   : > { %v13258_v12 = vadd.f32 %v9018_v8, %v9017_v29 }
 0x190   : > { %2554 = vmatmul.mubr.bf16.gmra.mrb[124].mxu1 %v13199_v43 }
 0x191   : > { %2561 = vmatprep.mubr.bf16.mxu1 %v12809_v51 }
 0x193   : > { %v9020_v39 = vpop.f32.mrb[20].mxu1 }
 0x194   : > { %v9021_v5 = vpop.f32.mrb[21].mxu1 }
 0x195   : > { %v13262_v28 = vadd.f32 %v9021_v5, %v9020_v39  ;;  %v9023_v56 = vpop.f32.mrb[22].mxu1  ;;  %v11245_v39 = vld [vmem:[%s15926_s2 + $0x220] sm:$0xff]  }
 0x196   : > { %v9024_v58 = vpop.f32.mrb[23].mxu1 }
 0x197   : > { %v13264_v32 = vadd.f32 %v9024_v58, %v9023_v56 }
 0x198   : > { %2562 = vmatmul.mubr.bf16.gmra.mrb[128].mxu1 %v13211_v31 }
 0x199   : > { %2569 = vmatprep.mubr.bf16.mxu1 %v12866_v18 }
 0x19b   : > { %v9026_v47 = vpop.f32.mrb[24].mxu1 }
 0x19c   : > { %v9027_v35 = vpop.f32.mrb[25].mxu1 }
 0x19d   : > { %v13268_v36 = vadd.f32 %v9027_v35, %v9026_v47  ;;  %v9029_v26 = vpop.f32.mrb[26].mxu1 }
 0x19e   : > { %v9030_v23 = vpop.f32.mrb[27].mxu1 }
 0x19f   : > { %v13270_v13 = vadd.f32 %v9030_v23, %v9029_v26 }
 0x1a0   : > { %2570 = vmatmul.mubr.bf16.gmra.mrb[132].mxu1 %v13217_v63 }
 0x1a1   : > { %2577 = vmatprep.mubr.bf16.mxu1 %v12914_v61 }
 0x1a3   : > { %v9032_v51 = vpop.f32.mrb[28].mxu1 }
 0x1a4   : > { %v9033_v41 = vpop.f32.mrb[29].mxu1 }
 0x1a5   : > { %v13274_v55 = vadd.f32 %v9033_v41, %v9032_v51  ;;  %v9035_v9 = vpop.f32.mrb[30].mxu1  ;;  %v11246_v51 = vld [vmem:[%s15926_s2 + $0x228] sm:$0xff]  }
 0x1a6   : > { %v9036_v50 = vpop.f32.mrb[31].mxu1 }
 0x1a7   : > { %v13276_v43 = vadd.f32 %v9036_v50, %v9035_v9  ;;  %v13327_v9 = vld [vmem:[#allocation2 + $0x88] sm:$0xff] }
 0x1a8   : > { %2578 = vmatmul.mubr.bf16.gmra.mrb[136].mxu1 %v13223_v19 }
 0x1a9   : > { %2585 = vmatprep.mubr.bf16.mxu1 %v12962_v53  ;;  %v11242_v53 = vld [vmem:[%s15926_s2 + $0x208] sm:$0xff]  }
 0x1ab   : > { %v9038_v18 = vpop.f32.mrb[32].mxu1 }
 0x1ac   : > { %v9039_v31 = vpop.f32.mrb[33].mxu1 }
 0x1ad   : > { %v13280_v49 = vadd.f32 %v9039_v31, %v9038_v18  ;;  %v9041_v17 = vpop.f32.mrb[34].mxu1  ;;  %v13332_v31 = vld [vmem:[#allocation2 + $0xa0] sm:$0xff] }
 0x1ae   : > { %v9042_v63 = vpop.f32.mrb[35].mxu1 }
 0x1af   : > { %v13282_v48 = vadd.f32 %v9042_v63, %v9041_v17 }
 0x1b0   : > { %2586 = vmatmul.mubr.bf16.gmra.mrb[140].mxu1 %v13233_v1  ;;  %v11243_v1 = vld [vmem:[%s15926_s2 + $0x210] sm:$0xff]  }
 0x1b1   : > { %10238 = vmatprep.mubr.bf16.mxu1 %v13152_v42 }
 0x1b3   : > { %v9044_v61 = vpop.f32.mrb[36].mxu1 }
 0x1b4   : > { %v9045_v21 = vpop.f32.mrb[37].mxu1 }
 0x1b5   : > { %v13286_v7 = vadd.f32 %v9045_v21, %v9044_v61  ;;  %v9047_v33 = vpop.f32.mrb[38].mxu1  ;;  %v11247_v61 = vld [vmem:[%s15926_s2 + $0x230] sm:$0xff]  }
 0x1b6   : > { %v9048_v19 = vpop.f32.mrb[39].mxu1 }
 0x1b7   : > { %v13291_v22 = vadd.f32 %v9048_v19, %v9047_v33  ;;  %v11248_v19 = vld [vmem:[%s15926_s2 + $0x238] sm:$0xff]  }
 0x1b8   : > { %10239 = vmatmul.mubr.bf16.vlgmr.msra.gmra.mrb[48].mxu1 %v1635_v11 }
 0x1b9   : > { %15986 = vst [vmem:[#allocation11_spill] sm:$0xff] %v13291_v22  ;;  %10271 = vmatpush3.bf16.msra.mxu1 %v13206_v37  ;;  %10242 = vmatprep.mubr.bf16.mxu1 %v13293_v2  ;;  %v11244_v37 = vld [vmem:[%s15926_s2 + $0x218] sm:$0xff]  }
 0x1ba   : > { %10272 = vmatprep.subr.bf16.mxu1 %v11242_v53 }
 0x1bb   : > { %v9050_v20 = vpop.f32.mrb[40].mxu1 }
 0x1bc   : > { %v9051_v4 = vpop.f32.mrb[41].mxu1 }
 0x1bd   : > { %v13300_v54 = vadd.f32 %v9051_v4, %v9050_v20  ;;  %v9053_v3 = vpop.f32.mrb[42].mxu1  ;;  %10273 = vmatpush3.bf16.msra.mxu1 %v11242_v53  ;;  %v8966_v30 = vpop.f32.mrb[0].mxu0  ;;  %v13343_v53 = vld [vmem:[#allocation2 + $0xb8] sm:$0xff]  ;;  %v13348_v20 = vld [vmem:[#allocation2 + $0xd0] sm:$0xff] }
 0x1be   : > { %v9054_v60 = vpop.f32.mrb[43].mxu1  ;;  %10274 = vmatprep.subr.bf16.mxu1 %v11243_v1  ;;  %v8967_v46 = vpop.f32.mrb[1].mxu0 }
 0x1bf   : > { %15987 = vst [vmem:[#allocation12_spill] sm:$0xff] %v13300_v54  ;;  %v13305_v6 = vadd.f32 %v9054_v60, %v9053_v3  ;;  %v13309_v45 = vadd.f32 %v8967_v46, %v8966_v30  ;;  %v8969_v16 = vpop.f32.mrb[2].mxu0 }
 0x1c0   : > { %10243 = vmatmul.mubr.bf16.gmra.mrb[52].mxu1 %v13307_v57  ;;  %v8970_v29 = vpop.f32.mrb[3].mxu0 }
 0x1c1   : > { %15988 = vst [vmem:[#allocation13_spill] sm:$0xff] %v13305_v6  ;;  %10246 = vmatprep.mubr.bf16.mxu1 %v13312_v40  ;;  %10275 = vmatpush3.bf16.msra.mxu1 %v11243_v1  ;;  %v13315_v8 = vadd.f32 %v8970_v29, %v8969_v16  ;;  %v13358_v29 = vld [vmem:[#allocation2 + $0x100] sm:$0xff] }
 0x1c2   : > { %10276 = vmatprep.subr.bf16.mxu1 %v11244_v37 }
 0x1c3   : > { %v9056_v5 = vpop.f32.mrb[44].mxu1 }
 0x1c4   : > { %v9057_v56 = vpop.f32.mrb[45].mxu1 }
 0x1c5   : > { %v13320_v58 = vadd.f32 %v9057_v56, %v9056_v5  ;;  %v9059_v47 = vpop.f32.mrb[46].mxu1  ;;  %10277 = vmatpush3.bf16.msra.mxu1 %v11244_v37  ;;  %v8972_v35 = vpop.f32.mrb[4].mxu0  ;;  %v13353_v37 = vld [vmem:[#allocation2 + $0xe8] sm:$0xff] }
 0x1c6   : > { %v9060_v26 = vpop.f32.mrb[47].mxu1  ;;  %10278 = vmatprep.subr.bf16.mxu1 %v11245_v39  ;;  %v8973_v23 = vpop.f32.mrb[5].mxu0 }
 0x1c7   : > { %15989 = vst [vmem:[#allocation14_spill] sm:$0xff] %v13320_v58  ;;  %v13325_v41 = vadd.f32 %v9060_v26, %v9059_v47  ;;  %v13329_v50 = vadd.f32 %v8973_v23, %v8972_v35  ;;  %v8975_v18 = vpop.f32.mrb[6].mxu0  ;;  %v13363_v35 = vld [vmem:[#allocation2 + $0x118] sm:$0xff] }
 0x1c8   : > { %10247 = vmatmul.mubr.bf16.gmra.mrb[56].mxu1 %v13327_v9  ;;  %v8976_v17 = vpop.f32.mrb[7].mxu0 }
 0x1c9   : > { %15990 = vst [vmem:[#allocation15_spill] sm:$0xff] %v13325_v41  ;;  %10250 = vmatprep.mubr.bf16.mxu1 %v13332_v31  ;;  %10279 = vmatpush3.bf16.msra.mxu1 %v11245_v39  ;;  %v13335_v63 = vadd.f32 %v8976_v17, %v8975_v18 }
 0x1ca   : > { %10280 = vmatprep.subr.bf16.mxu1 %v11246_v51 }
 0x1cd   : > { %v8978_v21 = vpop.f32.mrb[8].mxu0  ;;  %10281 = vmatpush3.bf16.msra.mxu1 %v11246_v51  ;;  %v13368_v51 = vld [vmem:[#allocation2 + $0x130] sm:$0xff] }
 0x1ce   : > { %v8979_v33 = vpop.f32.mrb[9].mxu0  ;;  %10282 = vmatprep.subr.bf16.mxu1 %v11247_v61 }
 0x1cf   : > { %v13345_v11 = vadd.f32 %v8979_v33, %v8978_v21  ;;  %v8981_v1 = vpop.f32.mrb[10].mxu0  ;;  %v13373_v33 = vld [vmem:[#allocation2 + $0x148] sm:$0xff] }
 0x1d0   : > { %10251 = vmatmul.mubr.bf16.gmra.mrb[60].mxu1 %v13343_v53  ;;  %v8982_v4 = vpop.f32.mrb[11].mxu0 }
 0x1d1   : > { %10254 = vmatprep.mubr.bf16.mxu1 %v13348_v20  ;;  %v13351_v3 = vadd.f32 %v8982_v4, %v8981_v1  ;;  %10283 = vmatpush3.bf16.msra.mxu1 %v11247_v61  ;;  %v13378_v4 = vld [vmem:[#allocation2 + $0x160] sm:$0xff] }
 0x1d2   : > { %10284 = vmatprep.subr.bf16.mxu1 %v11248_v19 }
 0x1d5   : > { %v8984_v30 = vpop.f32.mrb[12].mxu0  ;;  %10285 = vmatpush3.bf16.msra.mxu1 %v11248_v19 }
 0x1d6   : > { %v8985_v60 = vpop.f32.mrb[13].mxu0 }
 0x1d7   : > { %v13355_v46 = vadd.f32 %v8985_v60, %v8984_v30  ;;  %v8987_v16 = vpop.f32.mrb[14].mxu0 }
 0x1d8   : > { %10255 = vmatmul.mubr.bf16.gmra.mrb[64].mxu1 %v13353_v37  ;;  %v8988_v39 = vpop.f32.mrb[15].mxu0 }
 0x1d9   : > { %10258 = vmatprep.mubr.bf16.mxu1 %v13358_v29  ;;  %v13361_v5 = vadd.f32 %v8988_v39, %v8987_v16 }
 0x1dd   : > { %v9238_v56 = vpop.f32.mrb[16].mxu0 }
 0x1de   : > { %v9239_v47 = vpop.f32.mrb[17].mxu0 }
 0x1df   : > { %v9241_v26 = vpop.f32.mrb[18].mxu0  ;;  %v13365_v23 = vadd.f32 %v9239_v47, %v9238_v56  ;;  %v13383_v47 = vld [vmem:[#allocation2 + $0x178] sm:$0xff] }
 0x1e0   : > { %10259 = vmatmul.mubr.bf16.gmra.mrb[68].mxu1 %v13363_v35  ;;  %v9242_v18 = vpop.f32.mrb[19].mxu0 }
 0x1e1   : > { %10262 = vmatprep.mubr.bf16.mxu1 %v13368_v51  ;;  %v13371_v17 = vadd.f32 %v9242_v18, %v9241_v26 }
 0x1e5   : > { %v9244_v61 = vpop.f32.mrb[20].mxu0 }
 0x1e6   : > { %v9245_v21 = vpop.f32.mrb[21].mxu0 }
 0x1e7   : > { %v9247_v19 = vpop.f32.mrb[22].mxu0  ;;  %v13375_v1 = vadd.f32 %v9245_v21, %v9244_v61 }
 0x1e8   : > { %10263 = vmatmul.mubr.bf16.gmra.mrb[72].mxu1 %v13373_v33  ;;  %v9248_v30 = vpop.f32.mrb[23].mxu0 }
 0x1e9   : > { %10266 = vmatprep.mubr.bf16.mxu1 %v13378_v4  ;;  %v13381_v60 = vadd.f32 %v9248_v30, %v9247_v19 }
 0x1ed   : > { %v9250_v16 = vpop.f32.mrb[24].mxu0 }
 0x1ee   : > { %v9251_v39 = vpop.f32.mrb[25].mxu0 }
 0x1ef   : > { %v9253_v56 = vpop.f32.mrb[26].mxu0  ;;  %v13385_v26 = vadd.f32 %v9251_v39, %v9250_v16 }
 0x1f0   : > { %v9254_v18 = vpop.f32.mrb[27].mxu0  ;;  %10267 = vmatmul.mubr.bf16.gmra.mrb[76].mxu1 %v13383_v47 }
 0x1f1   : > { %10286 = vmatprep.mubr.bf16.mxu1 %v13293_v2  ;;  %v13389_v61 = vadd.f32 %v9254_v18, %v9253_v56 }
 0x1f5   : > { %v9256_v21 = vpop.f32.mrb[28].mxu0 }
 0x1f6   : > { %v9257_v52 = vpop.f32.mrb[29].mxu0 }
 0x1f7   : > { %v9259_v25 = vpop.f32.mrb[30].mxu0  ;;  %v13391_v14 = vadd.f32 %v9257_v52, %v9256_v21 }
 0x1f8   : > { %v9260_v19 = vpop.f32.mrb[31].mxu0  ;;  %10287 = vmatmul.mubr.bf16.vlgmr.msra.gmra.mrb[48].mxu1 %v13307_v57 }
 0x1f9   : > { %10290 = vmatprep.mubr.bf16.mxu1 %v13312_v40  ;;  %v13395_v30 = vadd.f32 %v9260_v19, %v9259_v25  ;;  %v11249_v25 = vld [vmem:[%s15927_s3 + $0x140] sm:$0xff]  }
 0x1fa   : > { %10318 = vmatprep.subr.bf16.mxu1 %v11249_v25 }
 0x1fb   : > { %10319 = vmatpush3.bf16.msra.mxu1 %v11249_v25 }
 0x1fd   : > { %v9262_v16 = vpop.f32.mrb[32].mxu0 }
 0x1fe   : > { %v9263_v39 = vpop.f32.mrb[33].mxu0 }
 0x1ff   : > { %v9265_v41 = vpop.f32.mrb[34].mxu0  ;;  %v13397_v58 = vadd.f32 %v9263_v39, %v9262_v16 }
 0x200   : > { %v9266_v2 = vpop.f32.mrb[35].mxu0  ;;  %10291 = vmatmul.mubr.bf16.gmra.mrb[52].mxu1 %v13327_v9  ;;  %v11250_v9 = vld [vmem:[%s15927_s3 + $0x148] sm:$0xff]  }
 0x201   : > { %10294 = vmatprep.mubr.bf16.mxu1 %v13332_v31  ;;  %v13401_v56 = vadd.f32 %v9266_v2, %v9265_v41  ;;  %10320 = vmatprep.subr.bf16.mxu1 %v11250_v9 }
 0x202   : > { %10321 = vmatpush3.bf16.msra.mxu1 %v11250_v9 }
 0x205   : > { %v9268_v52 = vpop.f32.mrb[36].mxu0 }
 0x206   : > { %v9269_v18 = vpop.f32.mrb[37].mxu0 }
 0x207   : > { %v9271_v21 = vpop.f32.mrb[38].mxu0  ;;  %v13403_v57 = vadd.f32 %v9269_v18, %v9268_v52 }
 0x208   : > { %v9272_v40 = vpop.f32.mrb[39].mxu0  ;;  %10295 = vmatmul.mubr.bf16.gmra.mrb[56].mxu1 %v13343_v53 }
 0x209   : > { %10298 = vmatprep.mubr.bf16.mxu1 %v13348_v20  ;;  %v13413_v41 = vadd.f32 %v9272_v40, %v9271_v21 }
 0x20b   : > { %v9102_v31 = vpop.f32.mrb[80].mxu1 }
 0x20c   : > { %v9103_v19 = vpop.f32.mrb[81].mxu1 }
 0x20d   : > { %v9274_v16 = vpop.f32.mrb[40].mxu0  ;;  %v9104_v39 = vadd.f32 %v9103_v19, %v9102_v31  ;;  %v9105_v2 = vpop.f32.mrb[82].mxu1 }
 0x20e   : > { %v9275_v53 = vpop.f32.mrb[41].mxu0  ;;  %v9106_v20 = vpop.f32.mrb[83].mxu1 }
 0x20f   : > { %v9277_v52 = vpop.f32.mrb[42].mxu0  ;;  %v10625_v18 = vadd.f32 %v9104_v39, %v13309_v45  ;;  %v9107_v6 = vadd.f32 %v9106_v20, %v9105_v2  ;;  %v13416_v54 = vadd.f32 %v9275_v53, %v9274_v16 }
 0x210   : > { %v9278_v22 = vpop.f32.mrb[43].mxu0  ;;  %10299 = vmatmul.mubr.bf16.gmra.mrb[60].mxu1 %v13353_v37 }
 0x211   : > { %v10631_v21 = vadd.f32 %v9107_v6, %v13315_v8  ;;  %10302 = vmatprep.mubr.bf16.mxu1 %v13358_v29  ;;  %v13422_v40 = vadd.f32 %v10625_v18, %v13365_v23  ;;  %v13424_v25 = vadd.f32 %v9278_v22, %v9277_v52 }
 0x213   : > { %v9108_v31 = vpop.f32.mrb[84].mxu1  ;;  %v13427_v19 = vadd.f32 %v10631_v21, %v13371_v17 }
 0x214   : > { %v9109_v45 = vpop.f32.mrb[85].mxu1 }
 0x215   : > { %v9280_v16 = vpop.f32.mrb[44].mxu0  ;;  %v9110_v39 = vadd.f32 %v9109_v45, %v9108_v31  ;;  %v9111_v2 = vpop.f32.mrb[86].mxu1 }
 0x216   : > { %v9281_v53 = vpop.f32.mrb[45].mxu0  ;;  %v9112_v37 = vpop.f32.mrb[87].mxu1 }
 0x217   : > { %v9283_v20 = vpop.f32.mrb[46].mxu0  ;;  %v10622_v6 = vadd.f32 %v9110_v39, %v13329_v50  ;;  %v9113_v8 = vadd.f32 %v9112_v37, %v9111_v2  ;;  %v13430_v29 = vadd.f32 %v9281_v53, %v9280_v16 }
 0x218   : > { %v9284_v23 = vpop.f32.mrb[47].mxu0  ;;  %10303 = vmatmul.mubr.bf16.gmra.mrb[64].mxu1 %v13363_v35 }
 0x219   : > { %v10628_v22 = vadd.f32 %v9113_v8, %v13335_v63  ;;  %10306 = vmatprep.mubr.bf16.mxu1 %v13368_v51  ;;  %v13436_v17 = vadd.f32 %v10622_v6, %v13375_v1  ;;  %v13438_v9 = vadd.f32 %v9284_v23, %v9283_v20 }
 0x21b   : > { %v9114_v52 = vpop.f32.mrb[88].mxu1  ;;  %v13441_v18 = vadd.f32 %v10628_v22, %v13381_v60 }
 0x21c   : > { %v9115_v50 = vpop.f32.mrb[89].mxu1 }
 0x21d   : > { %v9286_v21 = vpop.f32.mrb[48].mxu0  ;;  %v9116_v31 = vadd.f32 %v9115_v50, %v9114_v52  ;;  %v9117_v45 = vpop.f32.mrb[90].mxu1 }
 0x21e   : > { %v9287_v16 = vpop.f32.mrb[49].mxu0  ;;  %v9118_v39 = vpop.f32.mrb[91].mxu1 }
 0x21f   : > { %v13443_v35 = vadd.f32 %v9287_v16, %v9286_v21  ;;  %v9289_v63 = vpop.f32.mrb[50].mxu0  ;;  %v10637_v51 = vadd.f32 %v9116_v31, %v13345_v11  ;;  %v9119_v2 = vadd.f32 %v9118_v39, %v9117_v45 }
 0x220   : > { %v9290_v1 = vpop.f32.mrb[51].mxu0  ;;  %10307 = vmatmul.mubr.bf16.gmra.mrb[68].mxu1 %v13373_v33 }
 0x221   : > { %v13447_v53 = vadd.f32 %v9290_v1, %v9289_v63  ;;  %v10643_v60 = vadd.f32 %v9119_v2, %v13351_v3  ;;  %10310 = vmatprep.mubr.bf16.mxu1 %v13378_v4  ;;  %v13452_v37 = vadd.f32 %v10637_v51, %v13385_v26  ;;  %v2800_v26 = vld [vmem:[#allocation2 + $0x190] sm:$0xff] }
 0x223   : > { %v9120_v20 = vpop.f32.mrb[92].mxu1  ;;  %v13455_v6 = vadd.f32 %v10643_v60, %v13389_v61 }
 0x224   : > { %v9121_v8 = vpop.f32.mrb[93].mxu1 }
 0x225   : > { %v9292_v23 = vpop.f32.mrb[52].mxu0  ;;  %v9122_v11 = vadd.f32 %v9121_v8, %v9120_v20  ;;  %v9123_v22 = vpop.f32.mrb[94].mxu1 }
 0x226   : > { %v9293_v52 = vpop.f32.mrb[53].mxu0  ;;  %v9124_v50 = vpop.f32.mrb[95].mxu1 }
 0x227   : > { %v13457_v33 = vadd.f32 %v9293_v52, %v9292_v23  ;;  %v9295_v21 = vpop.f32.mrb[54].mxu0  ;;  %v10634_v3 = vadd.f32 %v9122_v11, %v13355_v46  ;;  %v9125_v31 = vadd.f32 %v9124_v50, %v9123_v22 }
 0x228   : > { %v9296_v4 = vpop.f32.mrb[55].mxu0  ;;  %10311 = vmatmul.mubr.bf16.gmra.mrb[72].mxu1 %v13383_v47 }
 0x229   : > { %v13461_v45 = vadd.f32 %v9296_v4, %v9295_v21  ;;  %v10640_v61 = vadd.f32 %v9125_v31, %v13361_v5  ;;  %10314 = vmatprep.mubr.bf16.mxu1 %v2800_v26  ;;  %v13465_v16 = vadd.f32 %v10634_v3, %v13391_v14 }
 0x22b   : > { %v9126_v39 = vpop.f32.mrb[96].mxu1  ;;  %v13468_v63 = vadd.f32 %v10640_v61, %v13395_v30 }
 0x22c   : > { %v9127_v51 = vpop.f32.mrb[97].mxu1 }
 0x22d   : > { %v9298_v2 = vpop.f32.mrb[56].mxu0  ;;  %v9128_v46 = vadd.f32 %v9127_v51, %v9126_v39  ;;  %v9129_v1 = vpop.f32.mrb[98].mxu1 }
 0x22e   : > { %v9299_v60 = vpop.f32.mrb[57].mxu0  ;;  %v9130_v20 = vpop.f32.mrb[99].mxu1 }
 0x22f   : > { %v13470_v47 = vadd.f32 %v9299_v60, %v9298_v2  ;;  %v9301_v8 = vpop.f32.mrb[58].mxu0  ;;  %v10649_v23 = vadd.f32 %v9128_v46, %v13228_v0  ;;  %v9131_v5 = vadd.f32 %v9130_v20, %v9129_v1 }
 0x230   : > { %v9302_v11 = vpop.f32.mrb[59].mxu0  ;;  %10315 = vmatmul.mubr.bf16.gmra.mrb[76].mxu1 %v13152_v42 }
 0x231   : > { %v13474_v14 = vadd.f32 %v9302_v11, %v9301_v8  ;;  %v10655_v30 = vadd.f32 %v9131_v5, %v13230_v24  ;;  %v13478_v22 = vadd.f32 %v10649_v23, %v13397_v58 }
 0x233   : > { %v9132_v52 = vpop.f32.mrb[100].mxu1  ;;  %v13481_v50 = vadd.f32 %v10655_v30, %v13401_v56 }
 0x234   : > { %v9133_v21 = vpop.f32.mrb[101].mxu1 }
 0x235   : > { %v9304_v3 = vpop.f32.mrb[60].mxu0  ;;  %v9134_v31 = vadd.f32 %v9133_v21, %v9132_v52  ;;  %v9135_v4 = vpop.f32.mrb[102].mxu1 }
 0x236   : > { %v9305_v0 = vpop.f32.mrb[61].mxu0  ;;  %v9136_v26 = vpop.f32.mrb[103].mxu1 }
 0x237   : > { %v13483_v61 = vadd.f32 %v9305_v0, %v9304_v3  ;;  %v9307_v42 = vpop.f32.mrb[62].mxu0  ;;  %v10646_v39 = vadd.f32 %v9134_v31, %v13238_v38  ;;  %v9137_v51 = vadd.f32 %v9136_v26, %v9135_v4  ;;  %v13504_v4 = vpop.permute.xlu0 %1533 }
 0x238   : > { %v9308_v24 = vpop.f32.mrb[63].mxu0 }
 0x239   : > { %v13486_v2 = vadd.f32 %v9308_v24, %v9307_v42  ;;  %v10652_v58 = vadd.f32 %v9137_v51, %v13240_v34  ;;  %v13490_v56 = vadd.f32 %v10646_v39, %v13403_v57  ;;  %v13509_v42 = vpop.permute.xlu1 %1535 }
 0x23b   : > { %v9138_v46 = vpop.f32.mrb[104].mxu1  ;;  %v13493_v1 = vadd.f32 %v10652_v58, %v13413_v41 }
 0x23c   : > { %v9139_v60 = vpop.f32.mrb[105].mxu1 }
 0x23d   : > { %v9310_v20 = vpop.f32.mrb[64].mxu0  ;;  %v9140_v8 = vadd.f32 %v9139_v60, %v9138_v46  ;;  %v9141_v23 = vpop.f32.mrb[106].mxu1 }
 0x23e   : > { %v9311_v5 = vpop.f32.mrb[65].mxu0  ;;  %v9142_v11 = vpop.f32.mrb[107].mxu1 }
 0x23f   : > { %v13495_v38 = vadd.f32 %v9311_v5, %v9310_v20  ;;  %v9313_v30 = vpop.f32.mrb[66].mxu0  ;;  %v10661_v52 = vadd.f32 %v9140_v8, %v13244_v62  ;;  %v9143_v21 = vadd.f32 %v9142_v11, %v9141_v23  ;;  %v13520_v11 = vpop.permute.xlu0 %1537 }
 0x240   : > { %v9314_v34 = vpop.f32.mrb[67].mxu0 }
 0x241   : > { %v13498_v3 = vadd.f32 %v9314_v34, %v9313_v30  ;;  %v10667_v57 = vadd.f32 %v9143_v21, %v13246_v27  ;;  %v13502_v41 = vadd.f32 %v10661_v52, %v13416_v54  ;;  %v13525_v21 = vpop.permute.xlu1 %1539 }
 0x243   : > { %v9144_v31 = vpop.f32.mrb[108].mxu1  ;;  %v13507_v0 = vadd.f32 %v10667_v57, %v13424_v25 }
 0x244   : > { %v9145_v26 = vpop.f32.mrb[109].mxu1 }
 0x245   : > { %v9316_v39 = vpop.f32.mrb[68].mxu0  ;;  %v9146_v62 = vadd.f32 %v9145_v26, %v9144_v31  ;;  %v9147_v51 = vpop.f32.mrb[110].mxu1 }
 0x246   : > { %v9317_v24 = vpop.f32.mrb[69].mxu0  ;;  %v9148_v58 = vpop.f32.mrb[111].mxu1 }
 0x247   : > { %v13511_v46 = vadd.f32 %v9317_v24, %v9316_v39  ;;  %v9319_v27 = vpop.f32.mrb[70].mxu0  ;;  %v10658_v54 = vadd.f32 %v9146_v62, %v13250_v10  ;;  %v9149_v60 = vadd.f32 %v9148_v58, %v9147_v51  ;;  %v13530_v24 = vpop.permute.xlu1 %1543 }
 0x248   : > { %v9320_v20 = vpop.f32.mrb[71].mxu0 }
 0x249   : > { %v13514_v8 = vadd.f32 %v9320_v20, %v9319_v27  ;;  %v10664_v25 = vadd.f32 %v9149_v60, %v13252_v44  ;;  %v13518_v23 = vadd.f32 %v10658_v54, %v13430_v29  ;;  %v13535_v27 = vpop.permute.xlu0 %1541 }
 0x24b   : > { %v9150_v5 = vpop.f32.mrb[112].mxu1  ;;  %v13523_v30 = vadd.f32 %v10664_v25, %v13438_v9 }
 0x24c   : > { %v9151_v52 = vpop.f32.mrb[113].mxu1 }
 0x24d   : > { %v9322_v34 = vpop.f32.mrb[72].mxu0  ;;  %v9152_v10 = vadd.f32 %v9151_v52, %v9150_v5  ;;  %v9153_v57 = vpop.f32.mrb[114].mxu1 }
 0x24e   : > { %v9323_v31 = vpop.f32.mrb[73].mxu0  ;;  %v9154_v26 = vpop.f32.mrb[115].mxu1 }
 0x24f   : > { %v13527_v39 = vadd.f32 %v9323_v31, %v9322_v34  ;;  %v9325_v44 = vpop.f32.mrb[74].mxu0  ;;  %v10673_v29 = vadd.f32 %v9152_v10, %v13256_v15  ;;  %v9155_v62 = vadd.f32 %v9154_v26, %v9153_v57  ;;  %v13543_v5 = vpop.permute.xlu1 %1547 }
 0x250   : > { %v9326_v51 = vpop.f32.mrb[75].mxu0 }
 0x251   : > { %v13532_v58 = vadd.f32 %v9326_v51, %v9325_v44  ;;  %v10679_v9 = vadd.f32 %v9155_v62, %v13258_v12  ;;  %v13538_v54 = vadd.f32 %v10673_v29, %v13443_v35  ;;  %v13548_v35 = vpop.permute.xlu0 %1545  ;;  %v11255_v51 = vld [vmem:[%s15927_s3 + $0xc0] sm:$0xff]  }
 0x253   : > { %v9156_v60 = vpop.f32.mrb[116].mxu1  ;;  %v13541_v20 = vadd.f32 %v10679_v9, %v13447_v53  ;;  %v11253_v53 = vld [vmem:[%s15927_s3 + $0x100] sm:$0xff]   ;;  %v13553_v62 = vpop.permute.xlu1 %1551 }
 0x254   : > { %v9157_v25 = vpop.f32.mrb[117].mxu1  ;;  %9358 = vmatprep.subr.bf16.mxu0 %v11253_v53 }
 0x255   : > { %v9158_v15 = vadd.f32 %v9157_v25, %v9156_v60  ;;  %v9159_v52 = vpop.f32.mrb[118].mxu1  ;;  %v9328_v34 = vpop.f32.mrb[76].mxu0  ;;  %9359 = vmatpush3.bf16.msra.mxu0 %v11255_v51  ;;  %v11258_v51 = vld [vmem:[%s15927_s3 + $0x110] sm:$0xff]  }
 0x256   : > { %v9160_v10 = vpop.f32.mrb[119].mxu1  ;;  %v9329_v57 = vpop.f32.mrb[77].mxu0 }
 0x257   : > { %v10670_v31 = vadd.f32 %v9158_v15, %v13262_v28  ;;  %v9161_v12 = vadd.f32 %v9160_v10, %v9159_v52  ;;  %v13546_v26 = vadd.f32 %v9329_v57, %v9328_v34  ;;  %v9331_v44 = vpop.f32.mrb[78].mxu0  ;;  %v13564_v15 = vpop.permute.xlu0 %1549  ;;  %v11256_v52 = vld [vmem:[%s15927_s3 + $0x108] sm:$0xff]  }
 0x258   : > { %v9332_v29 = vpop.f32.mrb[79].mxu0  ;;  %15991 = vst [vmem:[#allocation16_spill] sm:$0xff] %v13564_v15  ;;  %9360 = vmatprep.subr.bf16.mxu0 %v11256_v52  ;;  %v11252_v52 = vld [vmem:[%s15927_s3 + $0x158] sm:$0xff]  }
 0x259   : > { %v10676_v9 = vadd.f32 %v9161_v12, %v13264_v32  ;;  %v13559_v28 = vadd.f32 %v9332_v29, %v9331_v44  ;;  %v13562_v60 = vadd.f32 %v10670_v31, %v13457_v33  ;;  %v11257_v32 = vld [vmem:[%s15927_s3 + $0xc8] sm:$0xff]   ;;  %v11251_v33 = vld [vmem:[%s15927_s3 + $0x150] sm:$0xff]   ;;  %v13578_v31 = vpop.permute.xlu1 %1555 }
 0x25a   : > { %9361 = vmatpush3.bf16.msra.mxu0 %v11257_v32  ;;  %10322 = vmatprep.subr.bf16.mxu1 %v11251_v33 }
 0x25b   : > { %v9162_v25 = vpop.f32.mrb[120].mxu1  ;;  %v13570_v34 = vadd.f32 %v10676_v9, %v13461_v45  ;;  %v13581_v29 = vpop.permute.xlu0 %1553  ;;  %10323 = vmatpush3.bf16.msra.mxu1 %v11251_v33  ;;  %v11260_v9 = vld [vmem:[%s15927_s3 + $0xd0] sm:$0xff]   ;;  %9362 = vmatprep.subr.bf16.mxu0 %v11258_v51 }
 0x25c   : > { %v9163_v10 = vpop.f32.mrb[121].mxu1  ;;  %10324 = vmatprep.subr.bf16.mxu1 %v11252_v52 }
 0x25d   : > { %v9164_v57 = vadd.f32 %v9163_v10, %v9162_v25  ;;  %v9165_v12 = vpop.f32.mrb[122].mxu1 }
 0x25e   : > { %v9166_v44 = vpop.f32.mrb[123].mxu1  ;;  %9363 = vmatpush3.bf16.msra.mxu0 %v11260_v9  ;;  %v11254_v9 = vld [vmem:[%s15927_s3 + $0x160] sm:$0xff]  }
 0x25f   : > { %v10685_v53 = vadd.f32 %v9164_v57, %v13268_v36  ;;  %v9167_v45 = vadd.f32 %v9166_v44, %v9165_v12  ;;  %v13593_v36 = vpop.permute.xlu1 %1559  ;;  %v13598_v57 = vpop.permute.xlu0 %1557  ;;  %v11261_v12 = vld [vmem:[%s15927_s3 + $0x118] sm:$0xff]   ;;  %10325 = vmatpush3.bf16.msra.mxu1 %v11252_v52 }
 0x260   : > { %9364 = vmatprep.subr.bf16.mxu0 %v11261_v12  ;;  %10326 = vmatprep.subr.bf16.mxu1 %v11254_v9 }
 0x261   : > { %v10691_v25 = vadd.f32 %v9167_v45, %v13270_v13  ;;  %v13596_v10 = vadd.f32 %v10685_v53, %v13470_v47  ;;  %v11262_v47 = vld [vmem:[%s15927_s3 + $0xd8] sm:$0xff]  }
 0x262   : > { %9365 = vmatpush3.bf16.msra.mxu0 %v11262_v47 }
 0x263   : > { %15992 = vst [vmem:[#allocation17_spill] sm:$0xff] %v13596_v10  ;;  %v9168_v32 = vpop.f32.mrb[124].mxu1  ;;  %v13604_v13 = vadd.f32 %v10691_v25, %v13474_v14  ;;  %v13606_v51 = vpop.permute.xlu1 %1563  ;;  %10327 = vmatpush3.bf16.msra.mxu1 %v11254_v9 }
 0x264   : > { %v9169_v33 = vpop.f32.mrb[125].mxu1  ;;  %v13615_v25 = vpop.permute.xlu0 %1561 }
 0x265   : > { %15993 = vst [vmem:[#allocation18_spill] sm:$0xff] %v13604_v13  ;;  %v9170_v44 = vadd.f32 %v9169_v33, %v9168_v32  ;;  %v9171_v45 = vpop.f32.mrb[126].mxu1  ;;  %v11259_v33 = vld [vmem:[%s15927_s3 + $0x168] sm:$0xff]  }
 0x266   : > { %v9172_v53 = vpop.f32.mrb[127].mxu1  ;;  %10328 = vmatprep.subr.bf16.mxu1 %v11259_v33 }
 0x267   : > { %v10682_v15 = vadd.f32 %v9170_v44, %v13274_v55  ;;  %v9173_v14 = vadd.f32 %v9172_v53, %v9171_v45  ;;  %v13618_v32 = vpop.permute.xlu1 %1439  ;;  %10329 = vmatpush3.bf16.msra.mxu1 %v11259_v33  ;;  %v11265_v53 = vld [vmem:[%s15927_s3 + $0xe0] sm:$0xff]  }
 0x268   : > { %v13626_v10 = vpop.permute.xlu0 %1437 }
 0x269   : > { %v10688_v52 = vadd.f32 %v9173_v14, %v13276_v43  ;;  %v13621_v12 = vadd.f32 %v10682_v15, %v13483_v61  ;;  %v11263_v61 = vld [vmem:[%s15927_s3 + $0x120] sm:$0xff]  }
 0x26a   : > { %9366 = vmatprep.subr.bf16.mxu0 %v11263_v61 }
 0x26b   : > { %v9174_v13 = vpop.f32.mrb[128].mxu1  ;;  %v13629_v55 = vadd.f32 %v10688_v52, %v13486_v2  ;;  %v1375_v47 = vpop.permute.xlu1 %1374  ;;  %9367 = vmatpush3.bf16.msra.mxu0 %v11265_v53  ;;  %v11266_v52 = vld [vmem:[%s15927_s3 + $0x128] sm:$0xff]  }
 0x26c   : > { %v9175_v44 = vpop.f32.mrb[129].mxu1  ;;  %v1373_v2 = vpop.permute.xlu0 %1372  ;;  %1422 = vst.msk [vmem:[#allocation3 + $0x38] sm:$0xff] %vm1016_vm2, %v1375_v47  ;;  %9368 = vmatprep.subr.bf16.mxu0 %v11266_v52  ;;  %v13656_v47 = vld [vmem:[#allocation2] sm:$0xff] }
 0x26d   : > { %v9176_v45 = vadd.f32 %v9175_v44, %v9174_v13  ;;  %v9177_v43 = vpop.f32.mrb[130].mxu1  ;;  %1421 = vst.msk [vmem:[#allocation3 + $0x20] sm:$0xff] %vm1016_vm2, %v1373_v2  ;;  %v1615_v53 = vsel %vm12761_vm7, %v13578_v31, %v13656_v47 }
 0x26e   : > { %v9178_v15 = vpop.f32.mrb[131].mxu1  ;;  %1616 = vst [vmem:[#allocation3 + $0x130] sm:$0xff] %v1615_v53  ;;  %v15995_v53 = vld [vmem:[#allocation12_spill] sm:$0xff] }
 0x26f   : > { %v10697_v9 = vadd.f32 %v9176_v45, %v13280_v49  ;;  %v9179_v14 = vadd.f32 %v9178_v15, %v9177_v43  ;;  %v11267_v49 = vld [vmem:[%s15927_s3 + $0xe8] sm:$0xff]  }
 0x270   : > { %9369 = vmatpush3.bf16.msra.mxu0 %v11267_v49 }
 0x271   : > { %v10703_v13 = vadd.f32 %v9179_v14, %v13282_v48  ;;  %v13645_v33 = vadd.f32 %v10697_v9, %v13495_v38  ;;  %v11264_v48 = vld [vmem:[%s15927_s3 + $0x170] sm:$0xff]   ;;  %v1609_v38 = vsel %vm12761_vm7, %v13553_v62, %v13656_v47  ;;  %v1377_v62 = vpop.permute.xlu1 %1376 }
 0x272   : > { %1610 = vst [vmem:[#allocation3 + $0x100] sm:$0xff] %v1609_v38  ;;  %10330 = vmatprep.subr.bf16.mxu1 %v11264_v48  ;;  %1423 = vst.msk [vmem:[#allocation3 + $0x50] sm:$0xff] %vm1016_vm2, %v1377_v62  ;;  %v1621_v38 = vsel %vm12761_vm7, %v13593_v36, %v13656_v47  ;;  %v11269_v36 = vld [vmem:[%s15927_s3 + $0x178] sm:$0xff]  }
 0x273   : > { %v9180_v44 = vpop.f32.mrb[132].mxu1  ;;  %v13651_v45 = vadd.f32 %v10703_v13, %v13498_v3  ;;  %v1612_v3 = vsel %vm12761_vm7, %v13581_v29, %v13656_v47  ;;  %10331 = vmatpush3.bf16.msra.mxu1 %v11264_v48  ;;  %v15994_v13 = vld [vmem:[#allocation11_spill] sm:$0xff]  ;;  %1622 = vst [vmem:[#allocation3 + $0x160] sm:$0xff] %v1621_v38 }
 0x274   : > { %v9181_v43 = vpop.f32.mrb[133].mxu1  ;;  %1613 = vst [vmem:[#allocation3 + $0x118] sm:$0xff] %v1612_v3  ;;  %v1624_v3 = vsel %vm12761_vm7, %v13615_v25, %v13656_v47  ;;  %v11271_v25 = vld [vmem:[%s15927_s3 + $0x138] sm:$0xff]   ;;  %10332 = vmatprep.subr.bf16.mxu1 %v11269_v36  ;;  %v15998_v38 = vld [vmem:[#allocation15_spill] sm:$0xff] }
 0x275   : > { %v9182_v61 = vadd.f32 %v9181_v43, %v9180_v44  ;;  %v9183_v15 = vpop.f32.mrb[134].mxu1  ;;  %v1379_v44 = vpop.permute.xlu1 %1378  ;;  %1625 = vst [vmem:[#allocation3 + $0x178] sm:$0xff] %v1624_v3 }
 0x276   : > { %v9184_v9 = vpop.f32.mrb[135].mxu1  ;;  %1424 = vst.msk [vmem:[#allocation3 + $0x68] sm:$0xff] %vm1016_vm2, %v1379_v44 }
 0x277   : > { %v10694_v14 = vadd.f32 %v9182_v61, %v13286_v7  ;;  %v9185_v2 = vadd.f32 %v9184_v9, %v9183_v15  ;;  %v11268_v7 = vld [vmem:[%s15927_s3 + $0x130] sm:$0xff]   ;;  %10333 = vmatpush3.bf16.msra.mxu1 %v11269_v36 }
 0x278   : > { %v11270_v15 = vld [vmem:[%s15927_s3 + $0xf0] sm:$0xff]   ;;  %9370 = vmatprep.subr.bf16.mxu0 %v11268_v7 }
 0x279   : > { %v10700_v52 = vadd.f32 %v9185_v2, %v15994_v13  ;;  %v13674_v29 = vadd.f32 %v10694_v14, %v13511_v46  ;;  %v1618_v46 = vsel %vm12761_vm7, %v13598_v57, %v13656_v47  ;;  %v1627_v57 = vsel %vm12761_vm7, %v13606_v51, %v13656_v47  ;;  %9371 = vmatpush3.bf16.msra.mxu0 %v11270_v15  ;;  %v15996_v2 = vld [vmem:[#allocation13_spill] sm:$0xff] }
 0x27a   : > { %1619 = vst [vmem:[#allocation3 + $0x148] sm:$0xff] %v1618_v46  ;;  %1628 = vst [vmem:[#allocation3 + $0x190] sm:$0xff] %v1627_v57  ;;  %v11272_v51 = vld [vmem:[%s15927_s3 + $0xf8] sm:$0xff]   ;;  %9372 = vmatprep.subr.bf16.mxu0 %v11271_v25  ;;  %v15997_v46 = vld [vmem:[#allocation14_spill] sm:$0xff] }
 0x27b   : > { %v9186_v49 = vpop.f32.mrb[136].mxu1  ;;  %v13677_v31 = vadd.f32 %v10700_v52, %v13514_v8 }
 0x27c   : > { %v9187_v43 = vpop.f32.mrb[137].mxu1 }
 0x27d   : > { %v9188_v48 = vadd.f32 %v9187_v43, %v9186_v49  ;;  %v9189_v61 = vpop.f32.mrb[138].mxu1  ;;  %9373 = vmatpush3.bf16.msra.mxu0 %v11272_v51 }
 0x27e   : > { %v9190_v8 = vpop.f32.mrb[139].mxu1 }
 0x27f   : > { %v10709_v9 = vadd.f32 %v9188_v48, %v15995_v53  ;;  %v9191_v14 = vadd.f32 %v9190_v8, %v9189_v61  ;;  %v1381_v61 = vpop.permute.xlu1 %1380 }
 0x280   : > { %1425 = vst.msk [vmem:[#allocation3 + $0x80] sm:$0xff] %vm1016_vm2, %v1381_v61 }
 0x281   : > { %v10715_v62 = vadd.f32 %v9191_v14, %v15996_v2  ;;  %v13714_v13 = vadd.f32 %v10709_v9, %v13527_v39 }
 0x283   : > { %v9192_v52 = vpop.f32.mrb[140].mxu1  ;;  %v13717_v49 = vadd.f32 %v10715_v62, %v13532_v58  ;;  %v1383_v57 = vpop.permute.xlu1 %1382 }
 0x284   : > { %v9193_v44 = vpop.f32.mrb[141].mxu1  ;;  %1426 = vst.msk [vmem:[#allocation3 + $0x98] sm:$0xff] %vm1016_vm2, %v1383_v57 }
 0x285   : > { %v9194_v43 = vadd.f32 %v9193_v44, %v9192_v52  ;;  %v9195_v7 = vpop.f32.mrb[142].mxu1  ;;  %v13748_v44 = vld [vmem:[%s15929_s5] ss:$0 sm:$0xff] }
 0x286   : > { %v9196_v48 = vpop.f32.mrb[143].mxu1 }
 0x287   : > { %v10706_v15 = vadd.f32 %v9194_v43, %v15997_v46  ;;  %v9197_v8 = vadd.f32 %v9196_v48, %v9195_v7  ;;  %v1385_v53 = vpop.permute.xlu1 %1384 }
 0x288   : > { %1427 = vst.msk [vmem:[#allocation3 + $0xb0] sm:$0xff] %vm1016_vm2, %v1385_v53 }
 0x289   : > { %v10712_v39 = vadd.f32 %v9197_v8, %v15998_v38  ;;  %v13723_v3 = vadd.f32 %v10706_v15, %v13546_v26 }
 0x28b   : > { %v13727_v58 = vadd.f32 %v10712_v39, %v13559_v28  ;;  %v1387_v9 = vpop.permute.xlu1 %1386  ;;  %v13737_v28 = vld [vmem:[%s15927_s3 + $0x80] sm:$0xff]  }
 0x28c   : > { %1428 = vst.msk [vmem:[#allocation3 + $0xc8] sm:$0xff] %vm1016_vm2, %v1387_v9  ;;  %10366 = vmatprep.subr.bf16.mxu1 %v13737_v28 }
 0x28f   : > { %v1389_v14 = vpop.permute.xlu1 %1388 }
 0x290   : > { %1429 = vst.msk [vmem:[#allocation3 + $0xe0] sm:$0xff] %vm1016_vm2, %v1389_v14 }
 0x293   : > { %v1391_v36 = vpop.permute.xlu1 %1390 }
 0x294   : > { %1430 = vst.msk [vmem:[#allocation3 + $0xf8] sm:$0xff] %vm1016_vm2, %v1391_v36 }
 0x297   : > { %v1393_v26 = vpop.permute.xlu1 %1392 }
 0x298   : > { %1431 = vst.msk [vmem:[#allocation3 + $0x110] sm:$0xff] %vm1016_vm2, %v1393_v26 }
 0x29b   : > { %v1395_v25 = vpop.permute.xlu1 %1394 }
 0x29c   : > { %1432 = vst.msk [vmem:[#allocation3 + $0x128] sm:$0xff] %vm1016_vm2, %v1395_v25 }
 0x29f   : > { %v1397_v2 = vpop.permute.xlu1 %1396 }
 0x2a0   : > { %1433 = vst.msk [vmem:[#allocation3 + $0x140] sm:$0xff] %vm1016_vm2, %v1397_v2  ;;  %v13759_v2 = vpop.permute.xlu0 %1441 }
 0x2a3   : > { %v1399_v62 = vpop.permute.xlu1 %1398 }
 0x2a4   : > { %1434 = vst.msk [vmem:[#allocation3 + $0x158] sm:$0xff] %vm1016_vm2, %v1399_v62 }
 0x2a7   : > { %v1401_v51 = vpop.permute.xlu1 %1400 }
 0x2a8   : > { %1435 = vst.msk [vmem:[#allocation3 + $0x170] sm:$0xff] %vm1016_vm2, %v1401_v51 }
 0x2ab   : > { %v1403_v52 = vpop.permute.xlu1 %1402 }
 0x2ac   : > { %1436 = vst.msk [vmem:[#allocation3 + $0x188] sm:$0xff] %vm1016_vm2, %v1403_v52 }
 0x2cb   : > { %v10288_v43 = vpop.f32.mrb[48].mxu1 }
 0x2cc   : > { %v10624_v7 = vadd.f32 %v13436_v17, %v10288_v43  ;;  %v3192_v48 = vpop.f32.mrb[49].mxu1 }
 0x2cd   : > { %v10627_v61 = vadd.f32 %v13422_v40, %v3192_v48  ;;  %v10289_v46 = vpop.f32.mrb[50].mxu1 }
 0x2ce   : > { %v3359_v15 = vadd.f32 %v10624_v7, %v13748_v44  ;;  %v10630_v8 = vadd.f32 %v13441_v18, %v10289_v46  ;;  %v3195_v38 = vpop.f32.mrb[51].mxu1 }
 0x2cf   : > { %v3357_v39 = vadd.f32 %v10627_v61, %v13748_v44  ;;  %v10633_v57 = vadd.f32 %v13427_v19, %v3195_v38  ;;  %v13768_v38 = vpop.permute.xlu0 %1443 }
 0x2d0   : > { %v8540_v53 = vmul.f32 -1.442695, %v3359_v15  ;;  %v3360_v9 = vadd.f32 %v10630_v8, %v13748_v44 }
 0x2d1   : > { %v8538_v14 = vmul.f32 -1.442695, %v3357_v39  ;;  %v3358_v36 = vadd.f32 %v10633_v57, %v13748_v44 }
 0x2d2   : > { %11393 = vpow2.f32 %v8540_v53  ;;  %v8541_v17 = vmul.f32 -1.442695, %v3360_v9 }
 0x2d3   : > { %11395 = vpow2.f32 %v8538_v14  ;;  %v8539_v40 = vmul.f32 -1.442695, %v3358_v36  ;;  %v10292_v26 = vpop.f32.mrb[52].mxu1 }
 0x2d4   : > { %11397 = vpow2.f32 %v8541_v17  ;;  %v10636_v25 = vadd.f32 %v13465_v16, %v10292_v26  ;;  %v3208_v18 = vpop.f32.mrb[53].mxu1 }
 0x2d5   : > { %11399 = vpow2.f32 %v8539_v40  ;;  %v10639_v19 = vadd.f32 %v13452_v37, %v3208_v18  ;;  %v10293_v62 = vpop.f32.mrb[54].mxu1 }
 0x2d6   : > { %v3363_v51 = vadd.f32 %v10636_v25, %v13748_v44  ;;  %v10642_v52 = vadd.f32 %v13468_v63, %v10293_v62  ;;  %v3211_v43 = vpop.f32.mrb[55].mxu1 }
 0x2d7   : > { %v3361_v7 = vadd.f32 %v10639_v19, %v13748_v44  ;;  %v10645_v48 = vadd.f32 %v13455_v6, %v3211_v43 }
 0x2d8   : > { %v8544_v61 = vmul.f32 -1.442695, %v3363_v51  ;;  %v3364_v46 = vadd.f32 %v10642_v52, %v13748_v44 }
 0x2d9   : > { %v8542_v16 = vmul.f32 -1.442695, %v3361_v7  ;;  %v3362_v15 = vadd.f32 %v10645_v48, %v13748_v44  ;;  %v13777_v7 = vpop.permute.xlu0 %1445 }
 0x2da   : > { %11401 = vpow2.f32 %v8544_v61  ;;  %v8545_v8 = vmul.f32 -1.442695, %v3364_v46  ;;  %v1588_v46 = vsel %vm12761_vm7, %v13520_v11, %v13656_v47  ;;  %v16003_v11 = vsel %vm12761_vm7, %v13525_v21, %v13656_v47 }
 0x2db   : > { %11403 = vpow2.f32 %v8542_v16  ;;  %v8543_v37 = vmul.f32 -1.442695, %v3362_v15  ;;  %v10296_v39 = vpop.f32.mrb[56].mxu1 }
 0x2dc   : > { %v11394_v57 = vpop.eup %11393  ;;  %11405 = vpow2.f32 %v8545_v8  ;;  %v10648_v63 = vadd.f32 %v13490_v56, %v10296_v39  ;;  %v3224_v53 = vpop.f32.mrb[57].mxu1 }
 0x2dd   : > { %v11396_v9 = vpop.eup %11395  ;;  %v3487_v6 = vadd.f32 1.0, %v11394_v57  ;;  %11407 = vpow2.f32 %v8543_v37  ;;  %v10651_v14 = vadd.f32 %v13478_v22, %v3224_v53  ;;  %v10297_v36 = vpop.f32.mrb[58].mxu1  ;;  %v11289_v57 = vld [vmem:[%s15927_s3 + $0x40] sm:$0xff]  }
 0x2de   : > { %v11398_v17 = vpop.eup %11397  ;;  %v3485_v40 = vadd.f32 1.0, %v11396_v9  ;;  %v3367_v26 = vadd.f32 %v10648_v63, %v13748_v44  ;;  %v10654_v25 = vadd.f32 %v13493_v1, %v10297_v36  ;;  %v3227_v18 = vpop.f32.mrb[59].mxu1  ;;  %9494 = vmatprep.subr.bf16.mxu0 %v11289_v57 }
 0x2df   : > { %v11400_v19 = vpop.eup %11399  ;;  %11409 = vrcp.f32 %v3487_v6  ;;  %v3488_v62 = vadd.f32 1.0, %v11398_v17  ;;  %v3365_v51 = vadd.f32 %v10651_v14, %v13748_v44  ;;  %v10657_v56 = vadd.f32 %v13481_v50, %v3227_v18 }
 0x2e0   : > { %11411 = vrcp.f32 %v3485_v40  ;;  %v3486_v52 = vadd.f32 1.0, %v11400_v19  ;;  %v8548_v43 = vmul.f32 -1.442695, %v3367_v26  ;;  %v3368_v22 = vadd.f32 %v10654_v25, %v13748_v44 }
 0x2e1   : > { %11413 = vrcp.f32 %v3488_v62  ;;  %v8546_v48 = vmul.f32 -1.442695, %v3365_v51  ;;  %v3366_v61 = vadd.f32 %v10657_v56, %v13748_v44  ;;  %v1585_v50 = vsel %vm12761_vm7, %v13509_v42, %v13656_v47  ;;  %v13819_v56 = vpop.permute.xlu0 %1447 }
 0x2e2   : > { %11415 = vrcp.f32 %v3486_v52  ;;  %v8549_v16 = vmul.f32 -1.442695, %v3368_v22 }
 0x2e3   : > { %11417 = vpow2.f32 %v8548_v43  ;;  %v8547_v37 = vmul.f32 -1.442695, %v3366_v61  ;;  %v10300_v39 = vpop.f32.mrb[60].mxu1 }
 0x2e4   : > { %v11402_v63 = vpop.eup %11401  ;;  %11419 = vpow2.f32 %v8546_v48  ;;  %v10660_v6 = vadd.f32 %v13518_v23, %v10300_v39  ;;  %v3240_v14 = vpop.f32.mrb[61].mxu1 }
 0x2e5   : > { %v11404_v36 = vpop.eup %11403  ;;  %v3491_v17 = vadd.f32 1.0, %v11402_v63  ;;  %11421 = vpow2.f32 %v8549_v16  ;;  %v10663_v26 = vadd.f32 %v13502_v41, %v3240_v14  ;;  %v10301_v25 = vpop.f32.mrb[62].mxu1  ;;  %v1489_v63 = vsel %vm12471_vm4, %v13618_v32, %v13656_v47 }
 0x2e6   : > { %v11406_v18 = vpop.eup %11405  ;;  %v3489_v19 = vadd.f32 1.0, %v11404_v36  ;;  %11423 = vpow2.f32 %v8547_v37  ;;  %v3371_v62 = vadd.f32 %v10660_v6, %v13748_v44  ;;  %v10666_v23 = vadd.f32 %v13523_v30, %v10301_v25  ;;  %v3243_v51 = vpop.f32.mrb[63].mxu1 }
 0x2e7   : > { %v11408_v52 = vpop.eup %11407  ;;  %11425 = vrcp.f32 %v3491_v17  ;;  %v3492_v43 = vadd.f32 1.0, %v11406_v18  ;;  %v3369_v22 = vadd.f32 %v10663_v26, %v13748_v44  ;;  %v10669_v48 = vadd.f32 %v13507_v0, %v3243_v51 }
 0x2e8   : > { %11427 = vrcp.f32 %v3489_v19  ;;  %v3490_v41 = vadd.f32 1.0, %v11408_v52  ;;  %v8552_v61 = vmul.f32 -1.442695, %v3371_v62  ;;  %v3372_v16 = vadd.f32 %v10666_v23, %v13748_v44 }
 0x2e9   : > { %v11410_v37 = vpop.eup %11409  ;;  %11429 = vrcp.f32 %v3492_v43  ;;  %v8550_v39 = vmul.f32 -1.442695, %v3369_v22  ;;  %v3370_v30 = vadd.f32 %v10669_v48, %v13748_v44  ;;  %v1492_v36 = vsel %vm12471_vm4, %v13759_v2, %v13656_v47  ;;  %v13850_v22 = vpop.permute.xlu0 %1449 }
 0x2ea   : > { %v11412_v6 = vpop.eup %11411  ;;  %11431 = vrcp.f32 %v3490_v41  ;;  %v8553_v14 = vmul.f32 -1.442695, %v3372_v16  ;;  %v1495_v18 = vsel %vm12471_vm4, %v13768_v38, %v13656_v47 }
 0x2eb   : > { %v11414_v17 = vpop.eup %11413  ;;  %11433 = vpow2.f32 %v8552_v61  ;;  %v8551_v26 = vmul.f32 -1.442695, %v3370_v30  ;;  %v10304_v25 = vpop.f32.mrb[64].mxu1 }
 0x2ec   : > { %v11416_v62 = vpop.eup %11415  ;;  %v3582_v23 = vpack.c.bf16 %v11414_v17, %v11410_v37  ;;  %11435 = vpow2.f32 %v8550_v39  ;;  %v10672_v51 = vadd.f32 %v13562_v60, %v10304_v25  ;;  %v3256_v52 = vpop.f32.mrb[65].mxu1 }
 0x2ed   : > { %v11418_v48 = vpop.eup %11417  ;;  %11437 = vpow2.f32 %v8553_v14  ;;  %v13852_v41 = vpack.c.bf16 %v11416_v62, %v11412_v6  ;;  %v10675_v61 = vadd.f32 %v13538_v54, %v3256_v52  ;;  %v10305_v16 = vpop.f32.mrb[66].mxu1 }
 0x2ee   : > { %v11420_v37 = vpop.eup %11419  ;;  %v3495_v39 = vadd.f32 1.0, %v11418_v48  ;;  %11439 = vpow2.f32 %v8551_v26  ;;  %v3621_v30 = vshrl.u32 %v3582_v23, 16  ;;  %v3624_v17 = vshll.u32 %v3582_v23, 16  ;;  %3598 = vst.msk [vmem:[#allocation3 + $0x38] sm:$0xff] %vm594_vm0, %v3582_v23  ;;  %v3259_v25 = vpop.f32.mrb[67].mxu1 }
 0x2ef   : > { %v11422_v40 = vpop.eup %11421  ;;  %v3493_v14 = vadd.f32 1.0, %v11420_v37  ;;  %3597 = vst.msk [vmem:[#allocation3 + $0x20] sm:$0xff] %vm594_vm0, %v13852_v41  ;;  %v3375_v54 = vadd.f32 %v10672_v51, %v13748_v44  ;;  %v3373_v6 = vadd.f32 %v10675_v61, %v13748_v44  ;;  %v10678_v62 = vadd.f32 %v13570_v34, %v10305_v16  ;;  %3901 = vrot.lane.b32.xlu1 %v13852_v41, %s11787_s9 }
 0x2f0   : > { %v11424_v26 = vpop.eup %11423  ;;  %11441 = vrcp.f32 %v3495_v39  ;;  %v3496_v52 = vadd.f32 1.0, %v11422_v40  ;;  %v3623_v48 = vrot.slane %v3621_v30, 7  ;;  %v3791_v9 = vrot.slane %v3624_v17, 1 }
 0x2f1   : > { %v11426_v60 = vpop.eup %11425  ;;  %11443 = vrcp.f32 %v3493_v14  ;;  %v3494_v37 = vadd.f32 1.0, %v11424_v26  ;;  %v8556_v53 = vmul.f32 -1.442695, %v3375_v54  ;;  %v8554_v19 = vmul.f32 -1.442695, %v3373_v6 }
 0x2f2   : > { %v11428_v8 = vpop.eup %11427  ;;  %11445 = vrcp.f32 %v3496_v52  ;;  %v13867_v51 = vor.u32 %v3624_v17, %v3623_v48  ;;  %v13869_v61 = vor.u32 %v3791_v9, %v3621_v30  ;;  %v3376_v34 = vadd.f32 %v10678_v62, %v13748_v44 }
 0x2f3   : > { %v11430_v16 = vpop.eup %11429  ;;  %11447 = vrcp.f32 %v3494_v37  ;;  %v10681_v39 = vadd.f32 %v13541_v20, %v3259_v25  ;;  %v10308_v40 = vpop.f32.mrb[68].mxu1  ;;  %3903 = vrot.lane.b32.xlu1 %v3582_v23, %s11787_s9 }
 0x2f4   : > { %v11432_v6 = vpop.eup %11431  ;;  %v3584_v26 = vpack.c.bf16 %v11430_v16, %v11426_v60  ;;  %v13884_v30 = vsel %vm12406_vm3, %v13867_v51, %v1489_v63  ;;  %v13894_v23 = vsel %vm12740_vm6, %v13869_v61, %v1585_v50  ;;  %11449 = vpow2.f32 %v8556_v53  ;;  %v3272_v60 = vpop.f32.mrb[69].mxu1 }
 0x2f5   : > { %v11434_v17 = vpop.eup %11433  ;;  %v3583_v25 = vpack.c.bf16 %v11432_v6, %v11428_v8  ;;  %3746 = vst [vmem:[#allocation3 + $0x30] sm:$0xff] %v13884_v30  ;;  %3842 = vst [vmem:[#allocation3 + $0x40] sm:$0xff] %v13894_v23  ;;  %11451 = vpow2.f32 %v8554_v19  ;;  %v8557_v32 = vmul.f32 -1.442695, %v3376_v34  ;;  %v3374_v63 = vadd.f32 %v10681_v39, %v13748_v44  ;;  %v13899_v62 = vpop.f32.mrb[70].mxu1 }
 0x2f6   : > { %v11436_v42 = vpop.eup %11435  ;;  %v3499_v52 = vadd.f32 1.0, %v11434_v17  ;;  %v3635_v48 = vshrl.u32 %v3584_v26, 16  ;;  %v3638_v37 = vshll.u32 %v3584_v26, 16  ;;  %v10684_v50 = vadd.f32 %v13621_v12, %v10308_v40  ;;  %3600 = vst.msk [vmem:[#allocation3 + $0x68] sm:$0xff] %vm594_vm0, %v3584_v26  ;;  %v13903_v53 = vpop.f32.mrb[71].mxu1  ;;  %v4257_v8 = vld [vmem:[#allocation3 + $0x20] sm:$0xff] }
 0x2f7   : > { %v11438_v16 = vpop.eup %11437  ;;  %v3497_v6 = vadd.f32 1.0, %v11436_v42  ;;  %11453 = vpow2.f32 %v8557_v32  ;;  %v3628_v19 = vshrl.u32 %v3583_v25, 16  ;;  %v3631_v34 = vshll.u32 %v3583_v25, 16  ;;  %3599 = vst.msk [vmem:[#allocation3 + $0x50] sm:$0xff] %vm594_vm0, %v3583_v25  ;;  %4529 = vmatprep.mubr.bf16.mxu0 %v4257_v8  ;;  %3905 = vrot.lane.b32.xlu1 %v3583_v25, %s11787_s9 }
 0x2f8   : > { %v11440_v39 = vpop.eup %11439  ;;  %11455 = vrcp.f32 %v3499_v52  ;;  %v3500_v17 = vadd.f32 1.0, %v11438_v16  ;;  %v8555_v43 = vmul.f32 -1.442695, %v3374_v63  ;;  %v3637_v12 = vrot.slane %v3635_v48, 7  ;;  %v16002_v52 = vld [vmem:[#allocation17_spill] sm:$0xff] }
 0x2f9   : > { %11457 = vrcp.f32 %v3497_v6  ;;  %v3498_v40 = vadd.f32 1.0, %v11440_v39  ;;  %v3630_v1 = vrot.slane %v3628_v19, 7  ;;  %v3793_v0 = vrot.slane %v3631_v34, 1 }
 0x2fa   : > { %v11442_v54 = vpop.eup %11441  ;;  %11459 = vrcp.f32 %v3500_v17  ;;  %v13907_v42 = vor.u32 %v3638_v37, %v3637_v12  ;;  %v3795_v32 = vrot.slane %v3638_v37, 1  ;;  %v3379_v14 = vadd.f32 %v10684_v50, %v13748_v44 }
 0x2fb   : > { %v11444_v15 = vpop.eup %11443  ;;  %11461 = vrcp.f32 %v3498_v40  ;;  %v13910_v8 = vor.u32 %v3631_v34, %v3630_v1  ;;  %v13912_v25 = vor.u32 %v3793_v0, %v3628_v19  ;;  %v10687_v63 = vadd.f32 %v16002_v52, %v3272_v60  ;;  %v13915_v16 = vpop.f32.mrb[72].mxu1  ;;  %3907 = vrot.lane.b32.xlu1 %v3584_v26, %s11787_s9 }
 0x2fc   : > { %v11446_v6 = vpop.eup %11445  ;;  %11463 = vpow2.f32 %v8555_v43  ;;  %v13926_v1 = vsel %vm12406_vm3, %v13907_v42, %v1495_v18  ;;  %v13928_v0 = vor.u32 %v3795_v32, %v3635_v48  ;;  %v8560_v37 = vmul.f32 -1.442695, %v3379_v14  ;;  %v13930_v60 = vpop.f32.mrb[73].mxu1 }
 0x2fd   : > { %v11448_v50 = vpop.eup %11447  ;;  %v13932_v19 = vpack.c.bf16 %v11446_v6, %v11442_v54  ;;  %v13942_v38 = vsel %vm12406_vm3, %v13910_v8, %v1492_v36  ;;  %v13952_v18 = vsel %vm12740_vm6, %v13912_v25, %v1588_v46  ;;  %3752 = vst [vmem:[#allocation3 + $0x60] sm:$0xff] %v13926_v1  ;;  %v3377_v43 = vadd.f32 %v10687_v63, %v13748_v44  ;;  %v13956_v2 = vpop.f32.mrb[74].mxu1 }
 0x2fe   : > { %v11450_v14 = vpop.eup %11449  ;;  %v3585_v54 = vpack.c.bf16 %v11448_v50, %v11444_v15  ;;  %3749 = vst [vmem:[#allocation3 + $0x48] sm:$0xff] %v13942_v38  ;;  %3845 = vst [vmem:[#allocation3 + $0x58] sm:$0xff] %v13952_v18  ;;  %v13968_v46 = vsel %vm12740_vm6, %v13928_v0, %v16003_v11  ;;  %11465 = vpow2.f32 %v8560_v37  ;;  %v16004_v36 = vshrl.u32 %v13852_v41, 16  ;;  %v13972_v48 = vpop.f32.mrb[75].mxu1 }
 0x2ff   : > { %v11452_v15 = vpop.eup %11451  ;;  %v3503_v34 = vadd.f32 1.0, %v11450_v14  ;;  %3848 = vst [vmem:[#allocation3 + $0x70] sm:$0xff] %v13968_v46  ;;  %v8558_v39 = vmul.f32 -1.442695, %v3377_v43  ;;  %v16005_v17 = vshll.u32 %v13852_v41, 16  ;;  %v10690_v21 = vadd.f32 %v13629_v55, %v13899_v62  ;;  %3602 = vst.msk [vmem:[#allocation3 + $0x98] sm:$0xff] %vm594_vm0, %v13932_v19 }
 0x300   : > { %v3616_v26 = vrot.slane %v16004_v36, 7  ;;  %v3501_v40 = vadd.f32 1.0, %v11452_v15  ;;  %v3642_v63 = vshrl.u32 %v3585_v54, 16  ;;  %v3645_v6 = vshll.u32 %v3585_v54, 16  ;;  %3601 = vst.msk [vmem:[#allocation3 + $0x80] sm:$0xff] %vm594_vm0, %v3585_v54  ;;  %3909 = vrot.lane.b32.xlu1 %v3585_v54, %s11787_s9  ;;  %v16008_v62 = vld [vmem:[#allocation18_spill] sm:$0xff] }
 0x301   : > { %v3789_v12 = vrot.slane %v16005_v17, 1  ;;  %v16006_v32 = vmov %v16005_v17  ;;  %v11454_v37 = vpop.eup %11453  ;;  %11467 = vrcp.f32 %v3503_v34  ;;  %v16007_v50 = vmov %v16004_v36 }
 0x302   : > { %v3619_v52 = vor.u32 %v16006_v32, %v3616_v26  ;;  %v3380_v55 = vadd.f32 %v10690_v21, %v13748_v44  ;;  %v10693_v14 = vadd.f32 %v16008_v62, %v13903_v53  ;;  %v11456_v11 = vpop.eup %11455  ;;  %11469 = vrcp.f32 %v3501_v40 }
 0x303   : > { %v13987_v43 = vor.u32 %v3789_v12, %v16007_v50  ;;  %v3504_v36 = vadd.f32 1.0, %v11454_v37  ;;  %v16009_v54 = vsel %vm12471_vm4, %v13626_v10, %v13656_v47  ;;  %v3644_v26 = vrot.slane %v3642_v63, 7  ;;  %v11458_v15 = vpop.eup %11457  ;;  %v4260_v10 = vld [vmem:[#allocation3 + $0x38] sm:$0xff]  ;;  %v14010_v21 = vpop.f32.mrb[76].mxu1  ;;  %v11291_v50 = vld [vmem:[%s15927_s3] sm:$0xff]  }
 0x304   : > { %3966 = vrot.lane.b32.xlu0 %v3619_v52, %s11787_s9  ;;  %v3742_v41 = vsel %vm12406_vm3, %v3619_v52, %v16009_v54  ;;  %11471 = vpow2.f32 %v8558_v39  ;;  %v16010_v53 = vsel %vm12761_vm7, %v13504_v4, %v13656_v47  ;;  %v8561_v17 = vmul.f32 -1.442695, %v3380_v55  ;;  %v11274_v39 = vld [vmem:[%s15927_s3 + $0x88] sm:$0xff]   ;;  %v11460_v40 = vpop.eup %11459  ;;  %v14020_v37 = vpop.f32.mrb[77].mxu1  ;;  %3911 = vrot.lane.b32.xlu1 %v13932_v19, %s11787_s9 }
 0x305   : > { %v14008_v34 = vsel %vm12740_vm6, %v13987_v43, %v16010_v53  ;;  %3743 = vst [vmem:[#allocation3 + $0x18] sm:$0xff] %v3742_v41  ;;  %v3797_v12 = vrot.slane %v3645_v6, 1  ;;  %4530 = vmatmul.mubr.bf16.vlgmr.msra.gmra.mrb[80].mxu0 %v3742_v41  ;;  %11473 = vrcp.f32 %v3504_v36  ;;  %v14015_v32 = vor.u32 %v3645_v6, %v3644_v26  ;;  %v11462_v55 = vpop.eup %11461  ;;  %v14035_v54 = vpop.f32.mrb[78].mxu1  ;;  %v11293_v41 = vld [vmem:[%s15927_s3 + $0x48] sm:$0xff]  }
 0x306   : > { %v3378_v4 = vadd.f32 %v10693_v14, %v13748_v44  ;;  %v3649_v52 = vshrl.u32 %v13932_v19, 16  ;;  %10334 = vmatprep.mubr.bf16.mxu1 %v14008_v34  ;;  %4537 = vmatprep.mubr.bf16.mxu0 %v4260_v10  ;;  %v14025_v62 = vpack.c.bf16 %v11460_v40, %v11456_v11  ;;  %11475 = vpow2.f32 %v8561_v17  ;;  %v14031_v14 = vpop.permute.xlu0 %1451  ;;  %v11464_v11 = vpop.eup %11463 }
 0x307   : > { %v14027_v36 = vor.u32 %v3797_v12, %v3642_v63  ;;  %v3652_v6 = vshll.u32 %v13932_v19, 16  ;;  %10335 = vmatmul.mubr.bf16.vlgmr.msra.gmra.mrb[144].mxu1 %v13894_v23  ;;  %v14040_v26 = vpack.c.bf16 %v11462_v55, %v11458_v15  ;;  %v16011_v63 = vsel %vm12471_vm4, %v13777_v7, %v13656_v47  ;;  %v14055_v17 = vpop.f32.mrb[79].mxu1  ;;  %9495 = vmatpush3.bf16.msra.mxu0 %v11291_v50 }
 0x308   : > { %v14050_v23 = vsel %vm12406_vm3, %v14015_v32, %v16011_v63  ;;  %v8559_v19 = vmul.f32 -1.442695, %v3378_v4  ;;  %3968 = vrot.lane.b32.xlu0 %v13867_v51, %s11787_s9  ;;  %v3651_v53 = vrot.slane %v3649_v52, 7  ;;  %10367 = vmatpush3.bf16.msra.mxu1 %v13737_v28  ;;  %v3502_v15 = vadd.f32 1.0, %v11464_v11  ;;  %3604 = vst.msk [vmem:[#allocation3 + $0xc8] sm:$0xff] %vm594_vm0, %v14025_v62  ;;  %v11275_v28 = vld [vmem:[%s15927_s3 + $0x90] sm:$0xff]  }
 0x309   : > { %3755 = vst [vmem:[#allocation3 + $0x78] sm:$0xff] %v14050_v23  ;;  %v16012_v7 = vsel %vm12761_vm7, %v13535_v27, %v13656_v47  ;;  %v3799_v10 = vrot.slane %v3652_v6, 1  ;;  %v10696_v51 = vadd.f32 %v13674_v29, %v13915_v16  ;;  %10338 = vmatprep.mubr.bf16.mxu1 %v13952_v18  ;;  %10368 = vmatprep.subr.bf16.mxu1 %v11274_v39  ;;  %v11466_v27 = vpop.eup %11465  ;;  %3603 = vst.msk [vmem:[#allocation3 + $0xb0] sm:$0xff] %vm594_vm0, %v14040_v26  ;;  %v11294_v16 = vld [vmem:[%s15927_s3 + $0x8] sm:$0xff]  }
 0x30a   : > { %v14066_v12 = vsel %vm12740_vm6, %v14027_v36, %v16012_v7  ;;  %11477 = vpow2.f32 %v8559_v19  ;;  %v14077_v40 = vor.u32 %v3652_v6, %v3651_v53  ;;  %v10699_v4 = vadd.f32 %v13645_v33, %v13930_v60  ;;  %3913 = vrot.lane.b32.xlu1 %v14040_v26, %s11787_s9  ;;  %9496 = vmatprep.subr.bf16.mxu0 %v11293_v41  ;;  %v14120_v63 = vpop.permute.xlu0 %1453  ;;  %v11276_v19 = vld [vmem:[%s15927_s3 + $0x98] sm:$0xff]  }
 0x30b   : > { %3851 = vst [vmem:[#allocation3 + $0x88] sm:$0xff] %v14066_v12  ;;  %v10702_v29 = vadd.f32 %v13677_v31, %v13956_v2  ;;  %11479 = vrcp.f32 %v3502_v15  ;;  %v3507_v18 = vadd.f32 1.0, %v11466_v27  ;;  %v14088_v55 = vor.u32 %v3799_v10, %v3649_v52  ;;  %v11468_v50 = vpop.eup %11467  ;;  %9497 = vmatpush3.bf16.msra.mxu0 %v11294_v16  ;;  %v11297_v10 = vld [vmem:[%s15927_s3 + $0x10] sm:$0xff]  }
 0x30c   : > { %v3383_v6 = vadd.f32 %v10696_v51, %v13748_v44  ;;  %v16013_v33 = vsel %vm12471_vm4, %v13819_v56, %v13656_v47  ;;  %v3381_v60 = vadd.f32 %v10699_v4, %v13748_v44  ;;  %3970 = vrot.lane.b32.xlu0 %v13910_v8, %s11787_s9  ;;  %v3656_v52 = vshrl.u32 %v14040_v26, 16  ;;  %10369 = vmatpush3.bf16.msra.mxu1 %v11274_v39  ;;  %v14123_v39 = vld [vmem:[#allocation3 + $0x50] sm:$0xff]  ;;  %v11470_v53 = vpop.eup %11469 }
 0x30d   : > { %v14101_v31 = vsel %vm12406_vm3, %v14077_v40, %v16013_v33  ;;  %v3384_v2 = vadd.f32 %v10702_v29, %v13748_v44  ;;  %11481 = vrcp.f32 %v3507_v18  ;;  %v16014_v56 = vsel %vm12761_vm7, %v13530_v24, %v13656_v47  ;;  %4538 = vmatmul.mubr.bf16.gmra.mrb[84].mxu0 %v13884_v30  ;;  %10370 = vmatprep.subr.bf16.mxu1 %v11275_v28  ;;  %v11295_v24 = vld [vmem:[%s15927_s3 + $0x50] sm:$0xff]  }
 0x30e   : > { %3758 = vst [vmem:[#allocation3 + $0x90] sm:$0xff] %v14101_v31  ;;  %v14117_v41 = vsel %vm12740_vm6, %v14088_v55, %v16014_v56  ;;  %v8564_v11 = vmul.f32 -1.442695, %v3383_v6  ;;  %v3659_v8 = vshll.u32 %v14040_v26, 16  ;;  %v8562_v15 = vmul.f32 -1.442695, %v3381_v60  ;;  %4545 = vmatprep.mubr.bf16.mxu0 %v14123_v39  ;;  %v11472_v51 = vpop.eup %11471  ;;  %3915 = vrot.lane.b32.xlu1 %v14025_v62, %s11787_s9 }
 0x30f   : > { %3854 = vst [vmem:[#allocation3 + $0xa0] sm:$0xff] %v14117_v41  ;;  %v8565_v26 = vmul.f32 -1.442695, %v3384_v2  ;;  %v3658_v7 = vrot.slane %v3656_v52, 7  ;;  %v10705_v30 = vadd.f32 %v13651_v45, %v13972_v48  ;;  %v3663_v4 = vshrl.u32 %v14025_v62, 16  ;;  %10339 = vmatmul.mubr.bf16.gmra.mrb[148].mxu1 %v13968_v46  ;;  %v11299_v45 = vld [vmem:[%s15927_s3 + $0x58] sm:$0xff]   ;;  %v11474_v48 = vpop.eup %11473  ;;  %9498 = vmatprep.subr.bf16.mxu0 %v11295_v24  ;;  %v14185_v24 = vpop.permute.xlu0 %1455 }
 0x310   : > { %11483 = vpow2.f32 %v8564_v11  ;;  %v3801_v27 = vrot.slane %v3659_v8, 1  ;;  %v3666_v29 = vshll.u32 %v14025_v62, 16  ;;  %3972 = vrot.lane.b32.xlu0 %v13907_v42, %s11787_s9  ;;  %v1507_v46 = vsel %vm12471_vm4, %v14031_v14, %v13656_v47  ;;  %10342 = vmatprep.mubr.bf16.mxu1 %v14066_v12  ;;  %v11476_v62 = vpop.eup %11475 }
 0x311   : > { %11485 = vpow2.f32 %v8562_v15  ;;  %v14146_v16 = vor.u32 %v3659_v8, %v3658_v7  ;;  %v3382_v18 = vadd.f32 %v10705_v30, %v13748_v44  ;;  %v14156_v6 = vpack.c.bf16 %v11474_v48, %v11468_v50  ;;  %10371 = vmatpush3.bf16.msra.mxu1 %v11275_v28  ;;  %9499 = vmatpush3.bf16.msra.mxu0 %v11297_v10 }
 0x312   : > { %11487 = vpow2.f32 %v8565_v26  ;;  %v14158_v33 = vor.u32 %v3801_v27, %v3656_v52  ;;  %v3665_v60 = vrot.slane %v3663_v4, 7  ;;  %v3505_v2 = vadd.f32 1.0, %v11472_v51  ;;  %10372 = vmatprep.subr.bf16.mxu1 %v11276_v19  ;;  %9500 = vmatprep.subr.bf16.mxu0 %v11299_v45 }
 0x313   : > { %v3508_v56 = vadd.f32 1.0, %v11476_v62  ;;  %v16015_v42 = vsel %vm12471_vm4, %v13850_v22, %v13656_v47  ;;  %v8563_v50 = vmul.f32 -1.442695, %v3382_v18  ;;  %v16016_v28 = vsel %vm12761_vm7, %v13548_v35, %v13656_v47  ;;  %3606 = vst.msk [vmem:[#allocation3 + $0xf8] sm:$0xff] %vm594_vm0, %v14156_v6  ;;  %v11277_v35 = vld [vmem:[%s15927_s3 + $0xa0] sm:$0xff]  }
 0x314   : > { %v14168_v14 = vsel %vm12406_vm3, %v14146_v16, %v16015_v42  ;;  %v14179_v52 = vsel %vm12740_vm6, %v14158_v33, %v16016_v28  ;;  %v14181_v22 = vor.u32 %v3666_v29, %v3665_v60  ;;  %v3803_v11 = vrot.slane %v3666_v29, 1  ;;  %v11478_v15 = vpop.eup %11477  ;;  %3974 = vrot.lane.b32.xlu0 %v14015_v32, %s11787_s9 }
 0x315   : > { %3761 = vst [vmem:[#allocation3 + $0xa8] sm:$0xff] %v14168_v14  ;;  %v10708_v8 = vadd.f32 %v13723_v3, %v14010_v21  ;;  %11489 = vrcp.f32 %v3508_v56  ;;  %3857 = vst [vmem:[#allocation3 + $0xb8] sm:$0xff] %v14179_v52  ;;  %v10711_v26 = vadd.f32 %v13714_v13, %v14020_v37  ;;  %v10714_v3 = vadd.f32 %v13727_v58, %v14035_v54  ;;  %v11480_v7 = vpop.eup %11479  ;;  %v14209_v13 = vld [vmem:[#allocation3 + $0x68] sm:$0xff]  ;;  %v11278_v37 = vld [vmem:[%s15927_s3 + $0xa8] sm:$0xff]  }
 0x316   : > { %v10717_v21 = vadd.f32 %v13717_v49, %v14055_v17  ;;  %v3506_v30 = vadd.f32 1.0, %v11478_v15  ;;  %11491 = vpow2.f32 %v8563_v50  ;;  %v14204_v10 = vsel %vm12406_vm3, %v14181_v22, %v1507_v46  ;;  %4546 = vmatmul.mubr.bf16.gmra.mrb[88].mxu0 %v13942_v38  ;;  %10373 = vmatpush3.bf16.msra.mxu1 %v11276_v19  ;;  %v11300_v38 = vld [vmem:[%s15927_s3 + $0x18] sm:$0xff]   ;;  %v14245_v46 = vld [vmem:[#allocation2] sm:$0xff]  ;;  %v11279_v50 = vld [vmem:[%s15927_s3 + $0xb0] sm:$0xff]  }
 0x317   : > { %v14206_v51 = vor.u32 %v3803_v11, %v3663_v4  ;;  %v3589_v58 = vpack.c.bf16 %v11480_v7, %v11470_v53  ;;  %11493 = vrcp.f32 %v3505_v2  ;;  %3764 = vst [vmem:[#allocation3 + $0xc0] sm:$0xff] %v14204_v10  ;;  %v3387_v49 = vadd.f32 %v10708_v8, %v13748_v44  ;;  %4553 = vmatprep.mubr.bf16.mxu0 %v14209_v13  ;;  %v14221_v54 = vpop.eup %11481  ;;  %v11301_v4 = vld [vmem:[%s15927_s3 + $0x60] sm:$0xff]   ;;  %v14251_v2 = vpop.permute.xlu0 %1457 }
 0x318   : > { %v3385_v32 = vadd.f32 %v10711_v26, %v13748_v44  ;;  %11495 = vrcp.f32 %v3506_v30  ;;  %v16017_v17 = vsel %vm12761_vm7, %v13543_v5, %v13656_v47  ;;  %v3388_v53 = vadd.f32 %v10714_v3, %v13748_v44  ;;  %10343 = vmatmul.mubr.bf16.gmra.mrb[152].mxu1 %v14117_v41  ;;  %10374 = vmatprep.subr.bf16.mxu1 %v11277_v35 }
 0x319   : > { %v14231_v19 = vsel %vm12740_vm6, %v14206_v51, %v16017_v17  ;;  %v3677_v27 = vshrl.u32 %v14156_v6, 16  ;;  %v8568_v29 = vmul.f32 -1.442695, %v3387_v49  ;;  %v3386_v47 = vadd.f32 %v10717_v21, %v13748_v44  ;;  %3605 = vst.msk [vmem:[#allocation3 + $0xe0] sm:$0xff] %vm594_vm0, %v3589_v58  ;;  %3976 = vrot.lane.b32.xlu0 %v14077_v40, %s11787_s9  ;;  %3917 = vrot.lane.b32.xlu1 %v3589_v58, %s11787_s9  ;;  %v14274_v49 = vld [vmem:[#allocation3 + $0x80] sm:$0xff] }
 0x31a   : > { %3860 = vst [vmem:[#allocation3 + $0xd0] sm:$0xff] %v14231_v19  ;;  %v8566_v5 = vmul.f32 -1.442695, %v3385_v32  ;;  %v11484_v45 = vpop.eup %11483  ;;  %v3670_v48 = vshrl.u32 %v3589_v58, 16  ;;  %v3673_v18 = vshll.u32 %v3589_v58, 16  ;;  %v1513_v62 = vsel %vm12471_vm4, %v14185_v24, %v14245_v46  ;;  %10346 = vmatprep.mubr.bf16.mxu1 %v14179_v52  ;;  %10375 = vmatpush3.bf16.msra.mxu1 %v11277_v35  ;;  %v11303_v35 = vld [vmem:[%s15927_s3 + $0x20] sm:$0xff]  }
 0x31b   : > { %v3679_v60 = vrot.slane %v3677_v27, 7  ;;  %v11486_v44 = vpop.eup %11485  ;;  %v3511_v40 = vadd.f32 1.0, %v11484_v45  ;;  %11497 = vpow2.f32 %v8568_v29  ;;  %v1510_v56 = vsel %vm12471_vm4, %v14120_v63, %v14245_v46  ;;  %10376 = vmatprep.subr.bf16.mxu1 %v11278_v37  ;;  %9501 = vmatpush3.bf16.msra.mxu0 %v11300_v38  ;;  %v3864_v58 = vld [vmem:[#allocation3 + $0x100] sm:$0xff]  ;;  %v11305_v32 = vld [vmem:[%s15927_s3 + $0x68] sm:$0xff]  }
 0x31c   : > { %v3680_v42 = vshll.u32 %v14156_v6, 16  ;;  %v11488_v28 = vpop.eup %11487  ;;  %11499 = vpow2.f32 %v8566_v5  ;;  %v8569_v11 = vmul.f32 -1.442695, %v3388_v53  ;;  %v3672_v8 = vrot.slane %v3670_v48, 7  ;;  %9502 = vmatprep.subr.bf16.mxu0 %v11301_v4  ;;  %v1460_v5 = vpop.permute.xlu0 %1459 }
 0x31d   : > { %v3805_v24 = vrot.slane %v3673_v18, 1  ;;  %v3512_v15 = vadd.f32 1.0, %v11488_v28  ;;  %v8567_v63 = vmul.f32 -1.442695, %v3386_v47  ;;  %3978 = vrot.lane.b32.xlu0 %v14146_v16, %s11787_s9  ;;  %3919 = vrot.lane.b32.xlu1 %v14156_v6, %s11787_s9  ;;  %11501 = vrcp.f32 %v3511_v40  ;;  %v16018_v16 = vld [vmem:[#allocation16_spill] sm:$0xff] }
 0x31e   : > { %v14265_v26 = vor.u32 %v3680_v42, %v3679_v60  ;;  %v3807_v3 = vrot.slane %v3680_v42, 1  ;;  %v3509_v21 = vadd.f32 1.0, %v11486_v44  ;;  %v3675_v7 = vor.u32 %v3673_v18, %v3672_v8  ;;  %4554 = vmatmul.mubr.bf16.gmra.mrb[92].mxu0 %v13926_v1  ;;  %10377 = vmatpush3.bf16.msra.mxu1 %v11278_v37  ;;  %v11280_v37 = vld [vmem:[%s15927_s3 + $0xb8] sm:$0xff]   ;;  %v11307_v42 = vld [vmem:[%s15927_s3 + $0x70] sm:$0xff]  }
 0x31f   : > { %v14271_v30 = vor.u32 %v3805_v24, %v3670_v48  ;;  %v11490_v38 = vpop.eup %11489  ;;  %v1606_v6 = vsel %vm12761_vm7, %v16018_v16, %v14245_v46  ;;  %11503 = vrcp.f32 %v3512_v15  ;;  %4561 = vmatprep.mubr.bf16.mxu0 %v14274_v49  ;;  %10378 = vmatprep.subr.bf16.mxu1 %v11279_v50  ;;  %v1519_v24 = vsel %vm12471_vm4, %v1460_v5, %v14245_v46  ;;  %v11311_v16 = vld [vmem:[%s15927_s3 + $0x78] sm:$0xff]  }
 0x320   : > { %v14286_v17 = vsel %vm12406_vm3, %v14265_v26, %v1513_v62  ;;  %v14288_v1 = vor.u32 %v3807_v3, %v3677_v27  ;;  %v11492_v53 = vpop.eup %11491  ;;  %v14295_v4 = vpack.c.bf16 %v11490_v38, %v14221_v54  ;;  %11505 = vpow2.f32 %v8569_v11  ;;  %10347 = vmatmul.mubr.bf16.gmra.mrb[156].mxu1 %v14231_v19  ;;  %9503 = vmatpush3.bf16.msra.mxu0 %v11303_v35  ;;  %v11306_v54 = vld [vmem:[%s15927_s3 + $0x28] sm:$0xff]   ;;  %v14342_v3 = vpop.permute.xlu0 %1461 }
 0x321   : > { %v14299_v29 = vsel %vm12406_vm3, %v3675_v7, %v1510_v56  ;;  %v14304_v27 = vsel %vm12740_vm6, %v14271_v30, %v1606_v6  ;;  %3770 = vst [vmem:[#allocation3 + $0xf0] sm:$0xff] %v14286_v17  ;;  %v11494_v47 = vpop.eup %11493  ;;  %v3510_v45 = vadd.f32 1.0, %v11492_v53  ;;  %11507 = vpow2.f32 %v8567_v63  ;;  %3980 = vrot.lane.b32.xlu0 %v14181_v22, %s11787_s9  ;;  %9504 = vmatprep.subr.bf16.mxu0 %v11305_v32  ;;  %v11281_v22 = vld [vmem:[%s15927_s3 + $0x1c0] sm:$0xff]  }
 0x322   : > { %3767 = vst [vmem:[#allocation3 + $0xd8] sm:$0xff] %v14299_v29  ;;  %3863 = vst [vmem:[#allocation3 + $0xe8] sm:$0xff] %v14304_v27  ;;  %v14316_v48 = vsel %vm12740_vm6, %v14288_v1, %v3864_v58  ;;  %10350 = vmatprep.mubr.bf16.mxu1 %v14304_v27  ;;  %v11496_v18 = vpop.eup %11495  ;;  %11509 = vrcp.f32 %v3509_v21  ;;  %v3691_v62 = vshrl.u32 %v14295_v4, 16  ;;  %v3694_v60 = vshll.u32 %v14295_v4, 16  ;;  %10379 = vmatpush3.bf16.msra.mxu1 %v11279_v50  ;;  %v3870_v50 = vld [vmem:[#allocation3 + $0x130] sm:$0xff]  ;;  %v14345_v21 = vld [vmem:[#allocation3 + $0x98] sm:$0xff] }
 0x323   : > { %3866 = vst [vmem:[#allocation3 + $0x100] sm:$0xff] %v14316_v48  ;;  %3608 = vst.msk [vmem:[#allocation3 + $0x128] sm:$0xff] %vm594_vm0, %v14295_v4  ;;  %v3591_v44 = vpack.c.bf16 %v11496_v18, %v11494_v47  ;;  %11511 = vrcp.f32 %v3510_v45  ;;  %10380 = vmatprep.subr.bf16.mxu1 %v11280_v37  ;;  %v11309_v58 = vld [vmem:[%s15927_s3 + $0x30] sm:$0xff]  }
 0x324   : > { %v3693_v40 = vrot.slane %v3691_v62, 7  ;;  %v3811_v56 = vrot.slane %v3694_v60, 1  ;;  %9505 = vmatpush3.bf16.msra.mxu0 %v11306_v54 }
 0x325   : > { %v11498_v28 = vpop.eup %11497  ;;  %v3684_v11 = vshrl.u32 %v3591_v44, 16  ;;  %v3687_v8 = vshll.u32 %v3591_v44, 16  ;;  %3607 = vst.msk [vmem:[#allocation3 + $0x110] sm:$0xff] %vm594_vm0, %v3591_v44  ;;  %3982 = vrot.lane.b32.xlu0 %v3675_v7, %s11787_s9  ;;  %3921 = vrot.lane.b32.xlu1 %v3591_v44, %s11787_s9 }
 0x326   : > { %v11500_v35 = vpop.eup %11499  ;;  %v14338_v15 = vor.u32 %v3694_v60, %v3693_v40  ;;  %v14340_v63 = vor.u32 %v3811_v56, %v3691_v62  ;;  %4562 = vmatmul.mubr.bf16.gmra.mrb[96].mxu0 %v14050_v23  ;;  %10381 = vmatpush3.bf16.msra.mxu1 %v11280_v37  ;;  %v3515_v32 = vadd.f32 1.0, %v11498_v28  ;;  %v3867_v23 = vld [vmem:[#allocation3 + $0x118] sm:$0xff]  ;;  %v1516_v37 = vsel %vm12471_vm4, %v14251_v2, %v14245_v46 }
 0x327   : > { %v3686_v7 = vrot.slane %v3684_v11, 7  ;;  %v3809_v38 = vrot.slane %v3687_v8, 1  ;;  %4569 = vmatprep.mubr.bf16.mxu0 %v14345_v21  ;;  %9630 = vmatprep.subr.bf16.mxu1 %v11281_v22  ;;  %v11502_v6 = vpop.eup %11501  ;;  %v3513_v53 = vadd.f32 1.0, %v11500_v35 }
 0x328   : > { %v14361_v5 = vsel %vm12406_vm3, %v14338_v15, %v1519_v24  ;;  %v14366_v54 = vsel %vm12740_vm6, %v14340_v63, %v3870_v50  ;;  %10351 = vmatmul.mubr.bf16.gmra.mrb[160].mxu1 %v14316_v48  ;;  %9506 = vmatprep.subr.bf16.mxu0 %v11307_v42  ;;  %11513 = vrcp.f32 %v3515_v32  ;;  %v1464_v42 = vpop.permute.xlu0 %1463  ;;  %v3876_v32 = vld [vmem:[#allocation3 + $0x160] sm:$0xff] }
 0x329   : > { %v11504_v47 = vpop.eup %11503  ;;  %v3689_v45 = vor.u32 %v3687_v8, %v3686_v7  ;;  %v14369_v18 = vor.u32 %v3809_v38, %v3684_v11  ;;  %3776 = vst [vmem:[#allocation3 + $0x120] sm:$0xff] %v14361_v5  ;;  %3872 = vst [vmem:[#allocation3 + $0x130] sm:$0xff] %v14366_v54  ;;  %3984 = vrot.lane.b32.xlu0 %v14265_v26, %s11787_s9  ;;  %3923 = vrot.lane.b32.xlu1 %v14295_v4, %s11787_s9  ;;  %v11312_v26 = vld [vmem:[%s15927_s3 + $0x38] sm:$0xff]   ;;  %11515 = vrcp.f32 %v3513_v53 }
 0x32a   : > { %v11506_v2 = vpop.eup %11505  ;;  %v3594_v62 = vpack.c.bf16 %v11504_v47, %v11502_v6  ;;  %9507 = vmatpush3.bf16.msra.mxu0 %v11309_v58  ;;  %v14395_v58 = vld [vmem:[#allocation3 + $0xb0] sm:$0xff]  ;;  %v1525_v7 = vsel %vm12471_vm4, %v1464_v42, %v14245_v46  ;;  %v14437_v42 = vld [vmem:[#allocation3 + $0xc8] sm:$0xff] }
 0x32b   : > { %v11508_v60 = vpop.eup %11507  ;;  %v3516_v44 = vadd.f32 1.0, %v11506_v2  ;;  %v14379_v22 = vsel %vm12406_vm3, %v3689_v45, %v1516_v37  ;;  %v14384_v40 = vsel %vm12740_vm6, %v14369_v18, %v3867_v23  ;;  %9508 = vmatprep.subr.bf16.mxu0 %v11311_v16  ;;  %v1522_v2 = vsel %vm12471_vm4, %v14342_v3, %v14245_v46 }
 0x32c   : > { %v11510_v4 = vpop.eup %11509  ;;  %v3514_v56 = vadd.f32 1.0, %v11508_v60  ;;  %3773 = vst [vmem:[#allocation3 + $0x108] sm:$0xff] %v14379_v22  ;;  %3869 = vst [vmem:[#allocation3 + $0x118] sm:$0xff] %v14384_v40  ;;  %v3705_v28 = vshrl.u32 %v3594_v62, 16  ;;  %v3708_v11 = vshll.u32 %v3594_v62, 16  ;;  %10354 = vmatprep.mubr.bf16.mxu1 %v14384_v40 }
 0x32d   : > { %3610 = vst.msk [vmem:[#allocation3 + $0x158] sm:$0xff] %vm594_vm0, %v3594_v62  ;;  %v11512_v8 = vpop.eup %11511  ;;  %11517 = vrcp.f32 %v3516_v44  ;;  %3986 = vrot.lane.b32.xlu0 %v3689_v45, %s11787_s9  ;;  %v3873_v45 = vld [vmem:[#allocation3 + $0x148] sm:$0xff]  ;;  %v1466_v44 = vpop.permute.xlu0 %1465 }
 0x32e   : > { %v3593_v50 = vpack.c.bf16 %v11512_v8, %v11510_v4  ;;  %11519 = vrcp.f32 %v3514_v56  ;;  %v3707_v24 = vrot.slane %v3705_v28, 7  ;;  %v3815_v35 = vrot.slane %v3708_v11, 1  ;;  %4570 = vmatmul.mubr.bf16.gmra.mrb[100].mxu0 %v14101_v31 }
 0x32f   : > { %4577 = vmatprep.mubr.bf16.mxu0 %v14395_v58  ;;  %9509 = vmatpush3.bf16.msra.mxu0 %v11312_v26 }
 0x330   : > { %v3698_v38 = vshrl.u32 %v3593_v50, 16  ;;  %v3701_v16 = vshll.u32 %v3593_v50, 16  ;;  %3609 = vst.msk [vmem:[#allocation3 + $0x140] sm:$0xff] %vm594_vm0, %v3593_v50  ;;  %v3710_v6 = vor.u32 %v3708_v11, %v3707_v24  ;;  %v14402_v53 = vor.u32 %v3815_v35, %v3705_v28  ;;  %3925 = vrot.lane.b32.xlu1 %v3593_v50, %s11787_s9  ;;  %10355 = vmatmul.mubr.bf16.gmra.mrb[164].mxu1 %v14366_v54 }
 0x331   : > { %3988 = vrot.lane.b32.xlu0 %v14338_v15, %s11787_s9  ;;  %v1468_v50 = vpop.permute.xlu0 %1467 }
 0x332   : > { %v3700_v31 = vrot.slane %v3698_v38, 7  ;;  %v3813_v23 = vrot.slane %v3701_v16, 1  ;;  %v14410_v37 = vsel %vm12406_vm3, %v3710_v6, %v1525_v7  ;;  %v14415_v47 = vsel %vm12740_vm6, %v14402_v53, %v3876_v32  ;;  %v11514_v26 = vpop.eup %11513 }
 0x333   : > { %3782 = vst [vmem:[#allocation3 + $0x150] sm:$0xff] %v14410_v37  ;;  %3878 = vst [vmem:[#allocation3 + $0x160] sm:$0xff] %v14415_v47  ;;  %v11516_v4 = vpop.eup %11515 }
 0x334   : > { %v3703_v15 = vor.u32 %v3701_v16, %v3700_v31  ;;  %v14423_v60 = vor.u32 %v3813_v23, %v3698_v38  ;;  %3927 = vrot.lane.b32.xlu1 %v3594_v62, %s11787_s9  ;;  %v3882_v23 = vld [vmem:[#allocation3 + $0x190] sm:$0xff] }
 0x336   : > { %v14428_v56 = vsel %vm12406_vm3, %v3703_v15, %v1522_v2  ;;  %v14433_v3 = vsel %vm12740_vm6, %v14423_v60, %v3873_v45  ;;  %3990 = vrot.lane.b32.xlu0 %v3703_v15, %s11787_s9  ;;  %4578 = vmatmul.mubr.bf16.gmra.mrb[104].mxu0 %v14168_v14  ;;  %v1531_v45 = vsel %vm12471_vm4, %v1468_v50, %v14245_v46  ;;  %v3879_v2 = vld [vmem:[#allocation3 + $0x178] sm:$0xff] }
 0x337   : > { %v11518_v28 = vpop.eup %11517  ;;  %3779 = vst [vmem:[#allocation3 + $0x138] sm:$0xff] %v14428_v56  ;;  %3875 = vst [vmem:[#allocation3 + $0x148] sm:$0xff] %v14433_v3  ;;  %10358 = vmatprep.mubr.bf16.mxu1 %v14433_v3  ;;  %4585 = vmatprep.mubr.bf16.mxu0 %v14437_v42 }
 0x338   : > { %v11520_v62 = vpop.eup %11519  ;;  %v3596_v11 = vpack.c.bf16 %v11518_v28, %v11514_v26  ;;  %10359 = vmatmul.mubr.bf16.gmra.mrb[168].mxu1 %v14415_v47 }
 0x339   : > { %v3595_v8 = vpack.c.bf16 %v11520_v62, %v11516_v4  ;;  %v14457_v4 = vld [vmem:[#allocation3 + $0xe0] sm:$0xff] }
 0x33a   : > { %v3719_v24 = vshrl.u32 %v3596_v11, 16  ;;  %v3722_v35 = vshll.u32 %v3596_v11, 16  ;;  %3612 = vst.msk [vmem:[#allocation3 + $0x188] sm:$0xff] %vm594_vm0, %v3596_v11  ;;  %3992 = vrot.lane.b32.xlu0 %v3710_v6, %s11787_s9  ;;  %v1528_v6 = vsel %vm12471_vm4, %v1466_v44, %v14245_v46 }
 0x33b   : > { %v3712_v14 = vshrl.u32 %v3595_v8, 16  ;;  %v3715_v32 = vshll.u32 %v3595_v8, 16  ;;  %3611 = vst.msk [vmem:[#allocation3 + $0x170] sm:$0xff] %vm594_vm0, %v3595_v8  ;;  %3929 = vrot.lane.b32.xlu1 %v3595_v8, %s11787_s9 }
 0x33c   : > { %v3721_v7 = vrot.slane %v3719_v24, 7  ;;  %v3819_v38 = vrot.slane %v3722_v35, 1 }
 0x33d   : > { %v3714_v16 = vrot.slane %v3712_v14, 7  ;;  %v3817_v31 = vrot.slane %v3715_v32, 1 }
 0x33e   : > { %v3724_v15 = vor.u32 %v3722_v35, %v3721_v7  ;;  %v14454_v26 = vor.u32 %v3819_v38, %v3719_v24  ;;  %4586 = vmatmul.mubr.bf16.gmra.mrb[108].mxu0 %v14204_v10  ;;  %v11282_v24 = vld [vmem:[%s15927_s3 + $0x180] sm:$0xff]   ;;  %v11288_v35 = vld [vmem:[%s15927_s3 + $0x198] sm:$0xff]  }
 0x33f   : > { %v3717_v28 = vor.u32 %v3715_v32, %v3714_v16  ;;  %v14459_v62 = vor.u32 %v3817_v31, %v3712_v14  ;;  %4062 = vrot.lane.b32.xlu1 %v13987_v43, %s11787_s9  ;;  %4593 = vmatprep.mubr.bf16.mxu0 %v14457_v4  ;;  %v14490_v43 = vld [vmem:[#allocation3 + $0xf8] sm:$0xff]  ;;  %v14538_v14 = vld [vmem:[#allocation3 + $0x128] sm:$0xff] }
 0x340   : > { %v14466_v8 = vsel %vm12406_vm3, %v3724_v15, %v1531_v45  ;;  %v3883_v44 = vsel %vm12740_vm6, %v14454_v26, %v3882_v23 }
 0x341   : > { %v14473_v10 = vsel %vm12406_vm3, %v3717_v28, %v1528_v6  ;;  %v14478_v50 = vsel %vm12740_vm6, %v14459_v62, %v3879_v2  ;;  %3788 = vst [vmem:[#allocation3 + $0x180] sm:$0xff] %v14466_v8  ;;  %3884 = vst [vmem:[#allocation3 + $0x190] sm:$0xff] %v3883_v44  ;;  %3994 = vrot.lane.b32.xlu0 %v3717_v28, %s11787_s9  ;;  %v5287_v2 = vld [vmem:[#allocation3 + $0x38] sm:$0xff]  ;;  %v4164_v6 = vld [vmem:[#allocation3 + $0x20] sm:$0xff] }
 0x342   : > { %3785 = vst [vmem:[#allocation3 + $0x168] sm:$0xff] %v14473_v10  ;;  %3881 = vst [vmem:[#allocation3 + $0x178] sm:$0xff] %v14478_v50  ;;  %10362 = vmatprep.mubr.bf16.mxu1 %v14478_v50  ;;  %v14597_v32 = vld [vmem:[#allocation3 + $0x170] sm:$0xff]  ;;  %v11314_v28 = vld [vmem:[%s15927_s3 + $0x208] sm:$0xff]  }
 0x343   : > { %4064 = vrot.lane.b32.xlu1 %v13869_v61, %s11787_s9  ;;  %10363 = vmatmul.mubr.bf16.gmra.mrb[172].mxu1 %v3883_v44  ;;  %v11283_v61 = vld [vmem:[%s15927_s3 + $0x1c8] sm:$0xff]  }
 0x344   : > { %10382 = vmatprep.mubr.bf16.mxu1 %v14245_v46 }
 0x345   : > { %3996 = vrot.lane.b32.xlu0 %v3724_v15, %s11787_s9 }
 0x346   : > { %4594 = vmatmul.mubr.bf16.gmra.mrb[112].mxu0 %v14299_v29  ;;  %v4168_v29 = vld [vmem:[#allocation3 + $0x40] sm:$0xff] }
 0x347   : > { %4068 = vrot.lane.b32.xlu1 %v13928_v0, %s11787_s9  ;;  %4601 = vmatprep.mubr.bf16.mxu0 %v14490_v43  ;;  %v11284_v0 = vld [vmem:[%s15927_s3 + $0x188] sm:$0xff]  }
 0x349   : > { %3931 = vrot.lane.b32.xlu0 %v3596_v11, %s11787_s9  ;;  %v11285_v11 = vld [vmem:[%s15927_s3 + $0x1d0] sm:$0xff]  }
 0x34b   : > { %4072 = vrot.lane.b32.xlu1 %v14088_v55, %s11787_s9  ;;  %10383 = vmatmul.mubr.bf16.vlgmr.msra.gmra.mrb[144].mxu1 %v14008_v34  ;;  %v14514_v55 = vld [vmem:[#allocation3 + $0x110] sm:$0xff]  ;;  %v11286_v34 = vld [vmem:[%s15927_s3 + $0x190] sm:$0xff]  }
 0x34c   : > { %9631 = vmatpush3.bf16.msra.mxu1 %v11282_v24  ;;  %10386 = vmatprep.mubr.bf16.mxu1 %v4168_v29  ;;  %v11315_v24 = vld [vmem:[%s15927_s3 + $0x210] sm:$0xff]  }
 0x34d   : > { %4066 = vrot.lane.b32.xlu0 %v13912_v25, %s11787_s9  ;;  %9632 = vmatprep.subr.bf16.mxu1 %v11283_v61  ;;  %v11287_v25 = vld [vmem:[%s15927_s3 + $0x1d8] sm:$0xff]  }
 0x34e   : > { %4602 = vmatmul.mubr.bf16.gmra.mrb[116].mxu0 %v14286_v17  ;;  %v4171_v17 = vld [vmem:[#allocation3 + $0x58] sm:$0xff] }
 0x34f   : > { %4076 = vrot.lane.b32.xlu1 %v14206_v51, %s11787_s9  ;;  %4609 = vmatprep.mubr.bf16.mxu0 %v14514_v55  ;;  %v4174_v51 = vld [vmem:[#allocation3 + $0x70] sm:$0xff] }
 0x350   : > { %9633 = vmatpush3.bf16.msra.mxu1 %v11284_v0 }
 0x351   : > { %4070 = vrot.lane.b32.xlu0 %v14027_v36, %s11787_s9  ;;  %9634 = vmatprep.subr.bf16.mxu1 %v11285_v11  ;;  %v11290_v36 = vld [vmem:[%s15927_s3 + $0x1e0] sm:$0xff]   ;;  %v5289_v11 = vld [vmem:[#allocation3 + $0x48] sm:$0xff] }
 0x353   : > { %4080 = vrot.lane.b32.xlu1 %v14288_v1, %s11787_s9  ;;  %10387 = vmatmul.mubr.bf16.gmra.mrb[148].mxu1 %v4171_v17  ;;  %v11292_v1 = vld [vmem:[%s15927_s3 + $0x1a0] sm:$0xff]  }
 0x354   : > { %10390 = vmatprep.mubr.bf16.mxu1 %v4174_v51  ;;  %9635 = vmatpush3.bf16.msra.mxu1 %v11286_v34  ;;  %v11317_v17 = vld [vmem:[%s15927_s3 + $0x220] sm:$0xff]  }
 0x355   : > { %4074 = vrot.lane.b32.xlu0 %v14158_v33, %s11787_s9  ;;  %9636 = vmatprep.subr.bf16.mxu1 %v11287_v25  ;;  %v11296_v33 = vld [vmem:[%s15927_s3 + $0x1e8] sm:$0xff]   ;;  %v4170_v51 = vld [vmem:[#allocation3 + $0x50] sm:$0xff] }
 0x356   : > { %4610 = vmatmul.mubr.bf16.gmra.mrb[120].mxu0 %v14379_v22  ;;  %v14564_v22 = vld [vmem:[#allocation3 + $0x140] sm:$0xff] }
 0x357   : > { %4084 = vrot.lane.b32.xlu1 %v14340_v63, %s11787_s9  ;;  %4617 = vmatprep.mubr.bf16.mxu0 %v14538_v14  ;;  %v11298_v63 = vld [vmem:[%s15927_s3 + $0x1a8] sm:$0xff]  }
 0x358   : > { %9637 = vmatpush3.bf16.msra.mxu1 %v11288_v35 }
 0x359   : > { %4078 = vrot.lane.b32.xlu0 %v14271_v30, %s11787_s9  ;;  %9638 = vmatprep.subr.bf16.mxu1 %v11290_v36  ;;  %v11302_v30 = vld [vmem:[%s15927_s3 + $0x1f0] sm:$0xff]  }
 0x35b   : > { %4088 = vrot.lane.b32.xlu1 %v14402_v53, %s11787_s9  ;;  %10391 = vmatmul.mubr.bf16.gmra.mrb[152].mxu1 %v14066_v12  ;;  %v11304_v12 = vld [vmem:[%s15927_s3 + $0x1b0] sm:$0xff]   ;;  %v11313_v53 = vld [vmem:[%s15927_s3 + $0x200] sm:$0xff]  }
 0x35c   : > { %10394 = vmatprep.mubr.bf16.mxu1 %v14117_v41  ;;  %9639 = vmatpush3.bf16.msra.mxu1 %v11292_v1  ;;  %v11308_v41 = vld [vmem:[%s15927_s3 + $0x1f8] sm:$0xff]  }
 0x35d   : > { %4082 = vrot.lane.b32.xlu0 %v14369_v18, %s11787_s9  ;;  %9640 = vmatprep.subr.bf16.mxu1 %v11296_v33  ;;  %v11310_v18 = vld [vmem:[%s15927_s3 + $0x1b8] sm:$0xff]   ;;  %v11318_v33 = vld [vmem:[%s15927_s3 + $0x228] sm:$0xff]  }
 0x35e   : > { %4618 = vmatmul.mubr.bf16.gmra.mrb[124].mxu0 %v14361_v5 }
 0x35f   : > { %4092 = vrot.lane.b32.xlu1 %v14454_v26, %s11787_s9  ;;  %4625 = vmatprep.mubr.bf16.mxu0 %v14564_v22 }
 0x360   : > { %9641 = vmatpush3.bf16.msra.mxu1 %v11298_v63  ;;  %v5292_v63 = vld [vmem:[#allocation3 + $0x60] sm:$0xff] }
 0x361   : > { %4086 = vrot.lane.b32.xlu0 %v14423_v60, %s11787_s9  ;;  %9642 = vmatprep.subr.bf16.mxu1 %v11302_v30  ;;  %v3902_v5 = vpop.permute.xlu1 %3901 }
 0x362   : > { %3950 = vst.msk [vmem:[#allocation4 + $0x20] sm:$0xff] %vm1016_vm2, %v3902_v5  ;;  %v11319_v5 = vld [vmem:[%s15927_s3 + $0x230] sm:$0xff]  }
 0x363   : > { %10395 = vmatmul.mubr.bf16.gmra.mrb[156].mxu1 %v14179_v52  ;;  %v14589_v52 = vld [vmem:[#allocation3 + $0x158] sm:$0xff] }
 0x364   : > { %10398 = vmatprep.mubr.bf16.mxu1 %v14231_v19  ;;  %9643 = vmatpush3.bf16.msra.mxu1 %v11304_v12 }
 0x365   : > { %4090 = vrot.lane.b32.xlu0 %v14459_v62, %s11787_s9  ;;  %9644 = vmatprep.subr.bf16.mxu1 %v11308_v41  ;;  %v3904_v19 = vpop.permute.xlu1 %3903  ;;  %v5286_v62 = vld [vmem:[#allocation3 + $0x30] sm:$0xff]  ;;  %s8949_s9 = sshll.u32 %s11847_s25, 12  ;;  %s15883_s25 = scalar_lea.sflag [#allocation6], %s257_s29 }
 0x366   : > { %4626 = vmatmul.mubr.bf16.gmra.mrb[128].mxu0 %v14428_v56  ;;  %3951 = vst.msk [vmem:[#allocation4 + $0x38] sm:$0xff] %vm1016_vm2, %v3904_v19  ;;  %v11320_v19 = vld [vmem:[%s15927_s3 + $0x238] sm:$0xff]   ;;  %s15871_s19 = scalar_lea.hbm %s15930_s6, %s8949_s9 }
 0x367   : > { %4633 = vmatprep.mubr.bf16.mxu0 %v14589_v52 }
 0x368   : > { %9645 = vmatpush3.bf16.msra.mxu1 %v11310_v18 }
 0x369   : > { %10414 = vmatprep.subr.bf16.mxu1 %v11313_v53  ;;  %v3906_v60 = vpop.permute.xlu1 %3905 }
 0x36a   : > { %3952 = vst.msk [vmem:[#allocation4 + $0x50] sm:$0xff] %vm1016_vm2, %v3906_v60 }
 0x36b   : > { %10399 = vmatmul.mubr.bf16.gmra.mrb[160].mxu1 %v14304_v27  ;;  %v14604_v27 = vld [vmem:[#allocation3 + $0x188] sm:$0xff] }
 0x36c   : > { %10402 = vmatprep.mubr.bf16.mxu1 %v14316_v48 }
 0x36d   : > { %v3908_v56 = vpop.permute.xlu1 %3907 }
 0x36e   : > { %4634 = vmatmul.mubr.bf16.gmra.mrb[132].mxu0 %v14410_v37  ;;  %3953 = vst.msk [vmem:[#allocation4 + $0x68] sm:$0xff] %vm1016_vm2, %v3908_v56  ;;  %v5295_v56 = vld [vmem:[#allocation3 + $0x78] sm:$0xff] }
 0x36f   : > { %4641 = vmatprep.mubr.bf16.mxu0 %v14597_v32 }
 0x372   : > { %v3910_v7 = vpop.permute.xlu1 %3909 }
 0x373   : > { %10403 = vmatmul.mubr.bf16.gmra.mrb[164].mxu1 %v14384_v40  ;;  %3954 = vst.msk [vmem:[#allocation4 + $0x80] sm:$0xff] %vm1016_vm2, %v3910_v7 }
 0x374   : > { %10406 = vmatprep.mubr.bf16.mxu1 %v14366_v54 }
 0x376   : > { %4642 = vmatmul.mubr.bf16.gmra.mrb[136].mxu0 %v14473_v10  ;;  %v3967_v48 = vpop.permute.xlu0 %3966  ;;  %v3912_v38 = vpop.permute.xlu1 %3911 }
 0x377   : > { %4649 = vmatprep.mubr.bf16.mxu0 %v14604_v27  ;;  %v4015_v37 = vsel %vm12471_vm4, %v3967_v48, %v14245_v46  ;;  %3955 = vst.msk [vmem:[#allocation4 + $0x98] sm:$0xff] %vm1016_vm2, %v3912_v38 }
 0x378   : > { %4016 = vst [vmem:[#allocation4 + $0x18] sm:$0xff] %v4015_v37 }
 0x37a   : > { %v3969_v16 = vpop.permute.xlu0 %3968 }
 0x37b   : > { %10407 = vmatmul.mubr.bf16.gmra.mrb[168].mxu1 %v14433_v3  ;;  %v4018_v54 = vsel %vm12471_vm4, %v3969_v16, %v14245_v46  ;;  %v5298_v16 = vld [vmem:[#allocation3 + $0x90] sm:$0xff] }
 0x37c   : > { %10410 = vmatprep.mubr.bf16.mxu1 %v14415_v47  ;;  %4019 = vst [vmem:[#allocation4 + $0x30] sm:$0xff] %v4018_v54  ;;  %v3914_v40 = vpop.permute.xlu1 %3913 }
 0x37d   : > { %3956 = vst.msk [vmem:[#allocation4 + $0xb0] sm:$0xff] %vm1016_vm2, %v3914_v40 }
 0x37e   : > { %4650 = vmatmul.mubr.bf16.gmra.mrb[140].mxu0 %v14466_v8  ;;  %v3971_v31 = vpop.permute.xlu0 %3970 }
 0x37f   : > { %4995 = vmatprep.mubr.bf16.mxu0 %v14245_v46  ;;  %v4021_v3 = vsel %vm12471_vm4, %v3971_v31, %v14245_v46 }
 0x380   : > { %4022 = vst [vmem:[#allocation4 + $0x48] sm:$0xff] %v4021_v3  ;;  %v3916_v23 = vpop.permute.xlu1 %3915 }
 0x381   : > { %3957 = vst.msk [vmem:[#allocation4 + $0xc8] sm:$0xff] %vm1016_vm2, %v3916_v23  ;;  %v5301_v23 = vld [vmem:[#allocation3 + $0xa8] sm:$0xff] }
 0x382   : > { %v3973_v45 = vpop.permute.xlu0 %3972 }
 0x383   : > { %10411 = vmatmul.mubr.bf16.gmra.mrb[172].mxu1 %v14478_v50  ;;  %v4024_v47 = vsel %vm12471_vm4, %v3973_v45, %v14245_v46  ;;  %v4163_v50 = vld [vmem:[#allocation3 + $0x18] sm:$0xff] }
 0x384   : > { %5559 = vmatprep.mubr.bf16.mxu1 %v5287_v2  ;;  %4025 = vst [vmem:[#allocation4 + $0x60] sm:$0xff] %v4024_v47 }
 0x386   : > { %4996 = vmatmul.mubr.bf16.vlgmr.msra.gmra.mrb[144].mxu0 %v14245_v46  ;;  %v3975_v15 = vpop.permute.xlu0 %3974 }
 0x387   : > { %5003 = vmatprep.mubr.bf16.mxu0 %v4164_v6  ;;  %v4027_v26 = vsel %vm12471_vm4, %v3975_v15, %v14245_v46 }
 0x388   : > { %4028 = vst [vmem:[#allocation4 + $0x78] sm:$0xff] %v4027_v26 }
 0x38b   : > { %v3977_v8 = vpop.permute.xlu0 %3976  ;;  %5560 = vmatmul.mubr.bf16.vlgmr.msra.gmra.mrb[176].mxu1 %v5286_v62  ;;  %v3918_v44 = vpop.permute.xlu1 %3917 }
 0x38c   : > { %v4030_v10 = vsel %vm12471_vm4, %v3977_v8, %v14245_v46  ;;  %10415 = vmatpush3.bf16.msra.mxu1 %v11313_v53  ;;  %5567 = vmatprep.mubr.bf16.mxu1 %v14123_v39  ;;  %3958 = vst.msk [vmem:[#allocation4 + $0xe0] sm:$0xff] %vm1016_vm2, %v3918_v44  ;;  %v11316_v39 = vld [vmem:[%s15927_s3 + $0x218] sm:$0xff]  }
 0x38d   : > { %4031 = vst [vmem:[#allocation4 + $0x90] sm:$0xff] %v4030_v10  ;;  %10416 = vmatprep.subr.bf16.mxu1 %v11314_v28 }
 0x38e   : > { %5004 = vmatmul.mubr.bf16.gmra.mrb[148].mxu0 %v4163_v50 }
 0x38f   : > { %v3979_v61 = vpop.permute.xlu0 %3978  ;;  %v3920_v29 = vpop.permute.xlu1 %3919  ;;  %5011 = vmatprep.mubr.bf16.mxu0 %v5287_v2 }
 0x390   : > { %v4033_v0 = vsel %vm12471_vm4, %v3979_v61, %v14245_v46  ;;  %3959 = vst.msk [vmem:[#allocation4 + $0xf8] sm:$0xff] %vm1016_vm2, %v3920_v29  ;;  %10417 = vmatpush3.bf16.msra.mxu1 %v11314_v28  ;;  %v5307_v61 = vld [vmem:[#allocation3 + $0xd8] sm:$0xff] }
 0x391   : > { %4034 = vst [vmem:[#allocation4 + $0xa8] sm:$0xff] %v4033_v0  ;;  %10418 = vmatprep.subr.bf16.mxu1 %v11315_v24 }
 0x393   : > { %v3981_v34 = vpop.permute.xlu0 %3980  ;;  %5568 = vmatmul.mubr.bf16.gmra.mrb[180].mxu1 %v5289_v11 }
 0x394   : > { %v4036_v25 = vsel %vm12471_vm4, %v3981_v34, %v14245_v46  ;;  %5575 = vmatprep.mubr.bf16.mxu1 %v14209_v13  ;;  %10419 = vmatpush3.bf16.msra.mxu1 %v11315_v24 }
 0x395   : > { %4037 = vst [vmem:[#allocation4 + $0xc0] sm:$0xff] %v4036_v25  ;;  %10420 = vmatprep.subr.bf16.mxu1 %v11316_v39 }
 0x396   : > { %5012 = vmatmul.mubr.bf16.gmra.mrb[152].mxu0 %v5286_v62  ;;  %v5304_v62 = vld [vmem:[#allocation3 + $0xc0] sm:$0xff] }
 0x397   : > { %v3983_v35 = vpop.permute.xlu0 %3982  ;;  %v3922_v36 = vpop.permute.xlu1 %3921  ;;  %5019 = vmatprep.mubr.bf16.mxu0 %v4170_v51  ;;  %v5310_v51 = vld [vmem:[#allocation3 + $0xf0] sm:$0xff] }
 0x398   : > { %v4039_v1 = vsel %vm12471_vm4, %v3983_v35, %v14245_v46  ;;  %3960 = vst.msk [vmem:[#allocation4 + $0x110] sm:$0xff] %vm1016_vm2, %v3922_v36  ;;  %10421 = vmatpush3.bf16.msra.mxu1 %v11316_v39 }
 0x399   : > { %4040 = vst [vmem:[#allocation4 + $0xd8] sm:$0xff] %v4039_v1  ;;  %10422 = vmatprep.subr.bf16.mxu1 %v11317_v17 }
 0x39b   : > { %v3985_v30 = vpop.permute.xlu0 %3984  ;;  %v3924_v12 = vpop.permute.xlu1 %3923  ;;  %5576 = vmatmul.mubr.bf16.gmra.mrb[184].mxu1 %v5292_v63 }
 0x39c   : > { %v4042_v41 = vsel %vm12471_vm4, %v3985_v30, %v14245_v46  ;;  %3961 = vst.msk [vmem:[#allocation4 + $0x128] sm:$0xff] %vm1016_vm2, %v3924_v12  ;;  %5583 = vmatprep.mubr.bf16.mxu1 %v14274_v49  ;;  %10423 = vmatpush3.bf16.msra.mxu1 %v11317_v17 }
 0x39d   : > { %4043 = vst [vmem:[#allocation4 + $0xf0] sm:$0xff] %v4042_v41  ;;  %10424 = vmatprep.subr.bf16.mxu1 %v11318_v33  ;;  %v5313_v41 = vld [vmem:[#allocation3 + $0x108] sm:$0xff] }
 0x39e   : > { %5020 = vmatmul.mubr.bf16.gmra.mrb[156].mxu0 %v5289_v11 }
 0x39f   : > { %v3987_v18 = vpop.permute.xlu0 %3986  ;;  %5027 = vmatprep.mubr.bf16.mxu0 %v14209_v13 }
 0x3a0   : > { %v4045_v53 = vsel %vm12471_vm4, %v3987_v18, %v14245_v46  ;;  %10425 = vmatpush3.bf16.msra.mxu1 %v11318_v33 }
 0x3a1   : > { %4046 = vst [vmem:[#allocation4 + $0x108] sm:$0xff] %v4045_v53  ;;  %10426 = vmatprep.subr.bf16.mxu1 %v11319_v5  ;;  %v14757_v53 = vld [vmem:[#allocation2] sm:$0xff] }
 0x3a2   : > { %v3926_v60 = vpop.permute.xlu1 %3925 }
 0x3a3   : > { %3962 = vst.msk [vmem:[#allocation4 + $0x140] sm:$0xff] %vm1016_vm2, %v3926_v60  ;;  %v3989_v7 = vpop.permute.xlu0 %3988  ;;  %5584 = vmatmul.mubr.bf16.gmra.mrb[188].mxu1 %v5295_v56 }
 0x3a4   : > { %v4048_v13 = vsel %vm12471_vm4, %v3989_v7, %v14245_v46  ;;  %5591 = vmatprep.mubr.bf16.mxu1 %v14345_v21  ;;  %10427 = vmatpush3.bf16.msra.mxu1 %v11319_v5 }
 0x3a5   : > { %4049 = vst [vmem:[#allocation4 + $0x120] sm:$0xff] %v4048_v13  ;;  %10428 = vmatprep.subr.bf16.mxu1 %v11320_v19 }
 0x3a6   : > { %v3928_v48 = vpop.permute.xlu1 %3927  ;;  %5028 = vmatmul.mubr.bf16.gmra.mrb[160].mxu0 %v5292_v63 }
 0x3a7   : > { %3963 = vst.msk [vmem:[#allocation4 + $0x158] sm:$0xff] %vm1016_vm2, %v3928_v48  ;;  %5035 = vmatprep.mubr.bf16.mxu0 %v14274_v49 }
 0x3a8   : > { %v3991_v37 = vpop.permute.xlu0 %3990  ;;  %10429 = vmatpush3.bf16.msra.mxu1 %v11320_v19 }
 0x3a9   : > { %v4051_v38 = vsel %vm12471_vm4, %v3991_v37, %v14245_v46 }
 0x3aa   : > { %4052 = vst [vmem:[#allocation4 + $0x138] sm:$0xff] %v4051_v38  ;;  %v5319_v38 = vld [vmem:[#allocation3 + $0x138] sm:$0xff] }
 0x3ab   : > { %5592 = vmatmul.mubr.bf16.gmra.mrb[192].mxu1 %v5298_v16 }
 0x3ac   : > { %v3993_v54 = vpop.permute.xlu0 %3992  ;;  %5599 = vmatprep.mubr.bf16.mxu1 %v14395_v58 }
 0x3ad   : > { %v3930_v40 = vpop.permute.xlu1 %3929  ;;  %v4054_v31 = vsel %vm12471_vm4, %v3993_v54, %v14245_v46 }
 0x3ae   : > { %3964 = vst.msk [vmem:[#allocation4 + $0x170] sm:$0xff] %vm1016_vm2, %v3930_v40  ;;  %4055 = vst [vmem:[#allocation4 + $0x150] sm:$0xff] %v4054_v31  ;;  %5036 = vmatmul.mubr.bf16.gmra.mrb[164].mxu0 %v5295_v56  ;;  %v5316_v56 = vld [vmem:[#allocation3 + $0x120] sm:$0xff] }
 0x3af   : > { %5043 = vmatprep.mubr.bf16.mxu0 %v14345_v21 }
 0x3b1   : > { %v4063_v49 = vpop.permute.xlu1 %4062 }
 0x3b2   : > { %v4111_v3 = vsel %vm12761_vm7, %v4063_v49, %v14245_v46 }
 0x3b3   : > { %4112 = vst [vmem:[#allocation4 + $0x28] sm:$0xff] %v4111_v3  ;;  %v3995_v45 = vpop.permute.xlu0 %3994  ;;  %5600 = vmatmul.mubr.bf16.gmra.mrb[196].mxu1 %v5301_v23  ;;  %v5322_v3 = vld [vmem:[#allocation3 + $0x150] sm:$0xff] }
 0x3b4   : > { %v4057_v2 = vsel %vm12471_vm4, %v3995_v45, %v14245_v46  ;;  %5607 = vmatprep.mubr.bf16.mxu1 %v14437_v42 }
 0x3b5   : > { %4058 = vst [vmem:[#allocation4 + $0x168] sm:$0xff] %v4057_v2  ;;  %v4065_v47 = vpop.permute.xlu1 %4064 }
 0x3b6   : > { %v4114_v21 = vsel %vm12761_vm7, %v4065_v47, %v14245_v46  ;;  %5044 = vmatmul.mubr.bf16.gmra.mrb[168].mxu0 %v5298_v16 }
 0x3b7   : > { %4115 = vst [vmem:[#allocation4 + $0x40] sm:$0xff] %v4114_v21  ;;  %v3997_v6 = vpop.permute.xlu0 %3996  ;;  %5051 = vmatprep.mubr.bf16.mxu0 %v14395_v58 }
 0x3b8   : > { %v4060_v15 = vsel %vm12471_vm4, %v3997_v6, %v14245_v46  ;;  %v5325_v6 = vld [vmem:[#allocation3 + $0x168] sm:$0xff] }
 0x3b9   : > { %4061 = vst [vmem:[#allocation4 + $0x180] sm:$0xff] %v4060_v15  ;;  %v4069_v26 = vpop.permute.xlu1 %4068 }
 0x3ba   : > { %v4120_v28 = vsel %vm12761_vm7, %v4069_v26, %v14245_v46 }
 0x3bb   : > { %4121 = vst [vmem:[#allocation4 + $0x70] sm:$0xff] %v4120_v28  ;;  %v3932_v8 = vpop.permute.xlu0 %3931  ;;  %5608 = vmatmul.mubr.bf16.gmra.mrb[200].mxu1 %v5304_v62 }
 0x3bc   : > { %3965 = vst.msk [vmem:[#allocation4 + $0x188] sm:$0xff] %vm1016_vm2, %v3932_v8  ;;  %5615 = vmatprep.mubr.bf16.mxu1 %v14457_v4 }
 0x3bd   : > { %v4073_v44 = vpop.permute.xlu1 %4072 }
 0x3be   : > { %v4126_v57 = vsel %vm12761_vm7, %v4073_v44, %v14245_v46  ;;  %5052 = vmatmul.mubr.bf16.gmra.mrb[172].mxu0 %v5301_v23  ;;  %v5328_v44 = vld [vmem:[#allocation3 + $0x180] sm:$0xff] }
 0x3bf   : > { %4127 = vst [vmem:[#allocation4 + $0xa0] sm:$0xff] %v4126_v57  ;;  %v4067_v58 = vpop.permute.xlu0 %4066  ;;  %5059 = vmatprep.mubr.bf16.mxu0 %v14437_v42 }
 0x3c0   : > { %v4117_v10 = vsel %vm12761_vm7, %v4067_v58, %v14245_v46 }
 0x3c1   : > { %4118 = vst [vmem:[#allocation4 + $0x58] sm:$0xff] %v4117_v10  ;;  %v4077_v50 = vpop.permute.xlu1 %4076 }
 0x3c2   : > { %v4132_v24 = vsel %vm12761_vm7, %v4077_v50, %v14245_v46 }
 0x3c3   : > { %4133 = vst [vmem:[#allocation4 + $0xd0] sm:$0xff] %v4132_v24  ;;  %v4071_v29 = vpop.permute.xlu0 %4070  ;;  %5616 = vmatmul.mubr.bf16.gmra.mrb[204].mxu1 %v5307_v61 }
 0x3c4   : > { %v4123_v0 = vsel %vm12761_vm7, %v4071_v29, %v14245_v46  ;;  %5623 = vmatprep.mubr.bf16.mxu1 %v14490_v43 }
 0x3c5   : > { %4124 = vst [vmem:[#allocation4 + $0x88] sm:$0xff] %v4123_v0  ;;  %v4081_v42 = vpop.permute.xlu1 %4080 }
 0x3c6   : > { %v4138_v39 = vsel %vm12761_vm7, %v4081_v42, %v14245_v46  ;;  %5060 = vmatmul.mubr.bf16.gmra.mrb[176].mxu0 %v5304_v62 }
 0x3c7   : > { %4139 = vst [vmem:[#allocation4 + $0x100] sm:$0xff] %v4138_v39  ;;  %v4075_v11 = vpop.permute.xlu0 %4074  ;;  %5067 = vmatprep.mubr.bf16.mxu0 %v14457_v4 }
 0x3c8   : > { %v4129_v34 = vsel %vm12761_vm7, %v4075_v11, %v14245_v46  ;;  %v5291_v11 = vld [vmem:[#allocation3 + $0x58] sm:$0xff] }
 0x3c9   : > { %4130 = vst [vmem:[#allocation4 + $0xb8] sm:$0xff] %v4129_v34  ;;  %v4085_v25 = vpop.permute.xlu1 %4084 }
 0x3ca   : > { %v4144_v17 = vsel %vm12761_vm7, %v4085_v25, %v14245_v46  ;;  %v5294_v25 = vld [vmem:[#allocation3 + $0x70] sm:$0xff] }
 0x3cb   : > { %4145 = vst [vmem:[#allocation4 + $0x130] sm:$0xff] %v4144_v17  ;;  %v4079_v35 = vpop.permute.xlu0 %4078  ;;  %5624 = vmatmul.mubr.bf16.gmra.mrb[208].mxu1 %v5310_v51 }
 0x3cc   : > { %v4135_v36 = vsel %vm12761_vm7, %v4079_v35, %v14245_v46  ;;  %5631 = vmatprep.mubr.bf16.mxu1 %v14514_v55 }
 0x3cd   : > { %4136 = vst [vmem:[#allocation4 + $0xe8] sm:$0xff] %v4135_v36  ;;  %v4089_v4 = vpop.permute.xlu1 %4088 }
 0x3ce   : > { %v4150_v1 = vsel %vm12761_vm7, %v4089_v4, %v14245_v46  ;;  %5068 = vmatmul.mubr.bf16.gmra.mrb[180].mxu0 %v5307_v61  ;;  %v5288_v61 = vld [vmem:[#allocation3 + $0x40] sm:$0xff]  ;;  %v11321_v4 = vld [vmem:[%s15928_s4 + $0x100] sm:$0xff]  }
 0x3cf   : > { %4151 = vst [vmem:[#allocation4 + $0x160] sm:$0xff] %v4150_v1  ;;  %v4083_v33 = vpop.permute.xlu0 %4082  ;;  %5075 = vmatprep.mubr.bf16.mxu0 %v14490_v43  ;;  %9766 = vmatprep.subr.bf16.mxu0 %v11321_v4  ;;  %v5327_v4 = vld [vmem:[#allocation3 + $0x178] sm:$0xff] }
 0x3d0   : > { %v4141_v63 = vsel %vm12761_vm7, %v4083_v33, %v14245_v46  ;;  %v5297_v33 = vld [vmem:[#allocation3 + $0x88] sm:$0xff] }
 0x3d1   : > { %4142 = vst [vmem:[#allocation4 + $0x118] sm:$0xff] %v4141_v63  ;;  %v4093_v30 = vpop.permute.xlu1 %4092 }
 0x3d2   : > { %v4156_v12 = vsel %vm12761_vm7, %v4093_v30, %v14245_v46  ;;  %v11322_v30 = vld [vmem:[%s15928_s4 + $0xc0] sm:$0xff]  }
 0x3d3   : > { %4157 = vst [vmem:[#allocation4 + $0x190] sm:$0xff] %v4156_v12  ;;  %v4087_v5 = vpop.permute.xlu0 %4086  ;;  %5632 = vmatmul.mubr.bf16.gmra.mrb[212].mxu1 %v5313_v41  ;;  %v5300_v12 = vld [vmem:[#allocation3 + $0xa0] sm:$0xff]  ;;  %9767 = vmatpush3.bf16.msra.mxu0 %v11322_v30 }
 0x3d4   : > { %v4147_v18 = vsel %vm12761_vm7, %v4087_v5, %v14245_v46  ;;  %5639 = vmatprep.mubr.bf16.mxu1 %v14538_v14 }
 0x3d5   : > { %4148 = vst [vmem:[#allocation4 + $0x148] sm:$0xff] %v4147_v18 }
 0x3d6   : > { %5076 = vmatmul.mubr.bf16.gmra.mrb[184].mxu0 %v5310_v51 }
 0x3d7   : > { %v4091_v43 = vpop.permute.xlu0 %4090  ;;  %5083 = vmatprep.mubr.bf16.mxu0 %v14514_v55 }
 0x3d8   : > { %v4153_v19 = vsel %vm12761_vm7, %v4091_v43, %v14757_v53  ;;  %v9374_v60 = vpop.f32.mrb[80].mxu0 }
 0x3d9   : > { %4154 = vst [vmem:[#allocation4 + $0x178] sm:$0xff] %v4153_v19  ;;  %v9375_v7 = vpop.f32.mrb[81].mxu0 }
 0x3da   : > { %v14762_v13 = vadd.f32 %v9375_v7, %v9374_v60  ;;  %v9377_v46 = vpop.f32.mrb[82].mxu0  ;;  %v5303_v60 = vld [vmem:[#allocation3 + $0xb8] sm:$0xff]  ;;  %v5306_v7 = vld [vmem:[#allocation3 + $0xd0] sm:$0xff] }
 0x3db   : > { %5640 = vmatmul.mubr.bf16.gmra.mrb[216].mxu1 %v5316_v56  ;;  %v9378_v48 = vpop.f32.mrb[83].mxu0 }
 0x3dc   : > { %5647 = vmatprep.mubr.bf16.mxu1 %v14564_v22  ;;  %v14765_v37 = vadd.f32 %v9378_v48, %v9377_v46 }
 0x3de   : > { %5084 = vmatmul.mubr.bf16.gmra.mrb[188].mxu0 %v5313_v41 }
 0x3df   : > { %5091 = vmatprep.mubr.bf16.mxu0 %v14538_v14 }
 0x3e0   : > { %v9380_v55 = vpop.f32.mrb[84].mxu0 }
 0x3e1   : > { %v9381_v59 = vpop.f32.mrb[85].mxu0 }
 0x3e2   : > { %v14768_v16 = vadd.f32 %v9381_v59, %v9380_v55  ;;  %v9383_v54 = vpop.f32.mrb[86].mxu0  ;;  %v11323_v59 = vld [vmem:[%s15928_s4 + $0x108] sm:$0xff]  }
 0x3e3   : > { %5648 = vmatmul.mubr.bf16.gmra.mrb[220].mxu1 %v5319_v38  ;;  %v9384_v40 = vpop.f32.mrb[87].mxu0  ;;  %9768 = vmatprep.subr.bf16.mxu0 %v11323_v59 }
 0x3e4   : > { %5655 = vmatprep.mubr.bf16.mxu1 %v14589_v52  ;;  %v14771_v31 = vadd.f32 %v9384_v40, %v9383_v54  ;;  %v5309_v40 = vld [vmem:[#allocation3 + $0xe8] sm:$0xff] }
 0x3e6   : > { %5092 = vmatmul.mubr.bf16.gmra.mrb[192].mxu0 %v5316_v56 }
 0x3e7   : > { %5099 = vmatprep.mubr.bf16.mxu0 %v14564_v22 }
 0x3e9   : > { %v9386_v49 = vpop.f32.mrb[88].mxu0 }
 0x3ea   : > { %v9387_v23 = vpop.f32.mrb[89].mxu0 }
 0x3eb   : > { %5656 = vmatmul.mubr.bf16.gmra.mrb[224].mxu1 %v5322_v3  ;;  %v14774_v14 = vadd.f32 %v9387_v23, %v9386_v49  ;;  %v9389_v45 = vpop.f32.mrb[90].mxu0  ;;  %v5312_v23 = vld [vmem:[#allocation3 + $0x100] sm:$0xff] }
 0x3ec   : > { %5663 = vmatprep.mubr.bf16.mxu1 %v14597_v32  ;;  %v9390_v2 = vpop.f32.mrb[91].mxu0 }
 0x3ed   : > { %v14777_v47 = vadd.f32 %v9390_v2, %v9389_v45 }
 0x3ee   : > { %5100 = vmatmul.mubr.bf16.gmra.mrb[196].mxu0 %v5319_v38 }
 0x3ef   : > { %5107 = vmatprep.mubr.bf16.mxu0 %v14589_v52 }
 0x3f1   : > { %v9392_v21 = vpop.f32.mrb[92].mxu0 }
 0x3f2   : > { %v9393_v15 = vpop.f32.mrb[93].mxu0 }
 0x3f3   : > { %5664 = vmatmul.mubr.bf16.gmra.mrb[228].mxu1 %v5325_v6  ;;  %v14780_v22 = vadd.f32 %v9393_v15, %v9392_v21  ;;  %v9395_v26 = vpop.f32.mrb[94].mxu0 }
 0x3f4   : > { %5671 = vmatprep.mubr.bf16.mxu1 %v14604_v27  ;;  %v9396_v28 = vpop.f32.mrb[95].mxu0 }
 0x3f5   : > { %v14783_v62 = vadd.f32 %v9396_v28, %v9395_v26  ;;  %v5315_v26 = vld [vmem:[#allocation3 + $0x118] sm:$0xff] }
 0x3f6   : > { %5108 = vmatmul.mubr.bf16.gmra.mrb[200].mxu0 %v5322_v3  ;;  %v11324_v3 = vld [vmem:[%s15928_s4 + $0xc8] sm:$0xff]  }
 0x3f7   : > { %5115 = vmatprep.mubr.bf16.mxu0 %v14597_v32  ;;  %9769 = vmatpush3.bf16.msra.mxu0 %v11324_v3 }
 0x3f9   : > { %v9398_v8 = vpop.f32.mrb[96].mxu0 }
 0x3fa   : > { %v9399_v57 = vpop.f32.mrb[97].mxu0 }
 0x3fb   : > { %5672 = vmatmul.mubr.bf16.gmra.mrb[232].mxu1 %v5328_v44  ;;  %v14786_v52 = vadd.f32 %v9399_v57, %v9398_v8  ;;  %v9401_v58 = vpop.f32.mrb[98].mxu0  ;;  %v5318_v8 = vld [vmem:[#allocation3 + $0x130] sm:$0xff] }
 0x3fc   : > { %v9402_v10 = vpop.f32.mrb[99].mxu0  ;;  %5679 = vmatprep.mubr.bf16.mxu1 %v14757_v53 }
 0x3fd   : > { %v14789_v50 = vadd.f32 %v9402_v10, %v9401_v58 }
 0x3fe   : > { %5116 = vmatmul.mubr.bf16.gmra.mrb[204].mxu0 %v5325_v6 }
 0x401   : > { %v9404_v27 = vpop.f32.mrb[100].mxu0 }
 0x402   : > { %v9405_v24 = vpop.f32.mrb[101].mxu0 }
 0x403   : > { %5680 = vmatmul.mubr.bf16.gmra.mrb[236].mxu1 %v14757_v53  ;;  %v14792_v29 = vadd.f32 %v9405_v24, %v9404_v27  ;;  %v9407_v32 = vpop.f32.mrb[102].mxu0  ;;  %v11325_v27 = vld [vmem:[%s15928_s4 + $0x110] sm:$0xff]  }
 0x404   : > { %10430 = vmatprep.mubr.bf16.mxu1 %v5288_v61  ;;  %v9408_v0 = vpop.f32.mrb[103].mxu0  ;;  %v5321_v61 = vld [vmem:[#allocation3 + $0x148] sm:$0xff]  ;;  %9770 = vmatprep.subr.bf16.mxu0 %v11325_v27 }
 0x405   : > { %v14794_v42 = vadd.f32 %v9408_v0, %v9407_v32  ;;  %v11326_v0 = vld [vmem:[%s15928_s4 + $0xd0] sm:$0xff]  }
 0x406   : > { %9771 = vmatpush3.bf16.msra.mxu0 %v11326_v0 }
 0x409   : > { %v9410_v39 = vpop.f32.mrb[104].mxu0 }
 0x40a   : > { %v9411_v34 = vpop.f32.mrb[105].mxu0 }
 0x40b   : > { %10431 = vmatmul.mubr.bf16.vlgmr.msra.gmra.mrb[144].mxu1 %v5291_v11  ;;  %v14796_v17 = vadd.f32 %v9411_v34, %v9410_v39  ;;  %v9413_v51 = vpop.f32.mrb[106].mxu0  ;;  %v5324_v39 = vld [vmem:[#allocation3 + $0x160] sm:$0xff] }
 0x40c   : > { %10434 = vmatprep.mubr.bf16.mxu1 %v5294_v25  ;;  %v9414_v35 = vpop.f32.mrb[107].mxu0 }
 0x40d   : > { %v14798_v36 = vadd.f32 %v9414_v35, %v9413_v51 }
 0x411   : > { %v9416_v1 = vpop.f32.mrb[108].mxu0 }
 0x412   : > { %v9417_v63 = vpop.f32.mrb[109].mxu0 }
 0x413   : > { %10435 = vmatmul.mubr.bf16.gmra.mrb[148].mxu1 %v5297_v33  ;;  %v14806_v41 = vadd.f32 %v9417_v63, %v9416_v1  ;;  %v9419_v5 = vpop.f32.mrb[110].mxu0  ;;  %v5330_v33 = vld [vmem:[#allocation3 + $0x190] sm:$0xff] }
 0x414   : > { %10438 = vmatprep.mubr.bf16.mxu1 %v5300_v12  ;;  %v9420_v18 = vpop.f32.mrb[111].mxu0 }
 0x415   : > { %v14808_v43 = vadd.f32 %v9420_v18, %v9419_v5  ;;  %v11327_v18 = vld [vmem:[%s15928_s4 + $0x118] sm:$0xff]  }
 0x416   : > { %9772 = vmatprep.subr.bf16.mxu0 %v11327_v18 }
 0x419   : > { %v9422_v19 = vpop.f32.mrb[112].mxu0 }
 0x41a   : > { %v9423_v56 = vpop.f32.mrb[113].mxu0 }
 0x41b   : > { %10439 = vmatmul.mubr.bf16.gmra.mrb[152].mxu1 %v5303_v60  ;;  %v14810_v46 = vadd.f32 %v9423_v56, %v9422_v19  ;;  %v9425_v48 = vpop.f32.mrb[114].mxu0  ;;  %v11328_v56 = vld [vmem:[%s15928_s4 + $0xd8] sm:$0xff]  }
 0x41c   : > { %10442 = vmatprep.mubr.bf16.mxu1 %v5306_v7  ;;  %v9426_v55 = vpop.f32.mrb[115].mxu0  ;;  %9773 = vmatpush3.bf16.msra.mxu0 %v11328_v56 }
 0x41d   : > { %v14812_v38 = vadd.f32 %v9426_v55, %v9425_v48 }
 0x421   : > { %v9428_v54 = vpop.f32.mrb[116].mxu0 }
 0x422   : > { %v9429_v49 = vpop.f32.mrb[117].mxu0 }
 0x423   : > { %10443 = vmatmul.mubr.bf16.gmra.mrb[156].mxu1 %v5309_v40  ;;  %v14820_v45 = vadd.f32 %v9429_v49, %v9428_v54  ;;  %v9431_v2 = vpop.f32.mrb[118].mxu0 }
 0x424   : > { %10446 = vmatprep.mubr.bf16.mxu1 %v5312_v23  ;;  %v9432_v21 = vpop.f32.mrb[119].mxu0 }
 0x425   : > { %v14822_v6 = vadd.f32 %v9432_v21, %v9431_v2  ;;  %v11329_v21 = vld [vmem:[%s15928_s4 + $0x120] sm:$0xff]  }
 0x426   : > { %9774 = vmatprep.subr.bf16.mxu0 %v11329_v21  ;;  %v11335_v21 = vld [vmem:[%s15928_s4 + $0x48] sm:$0xff]  }
 0x429   : > { %v9434_v15 = vpop.f32.mrb[120].mxu0 }
 0x42a   : > { %v9435_v28 = vpop.f32.mrb[121].mxu0 }
 0x42b   : > { %10447 = vmatmul.mubr.bf16.gmra.mrb[160].mxu1 %v5315_v26  ;;  %v14824_v44 = vadd.f32 %v9435_v28, %v9434_v15  ;;  %v9437_v57 = vpop.f32.mrb[122].mxu0  ;;  %v11330_v28 = vld [vmem:[%s15928_s4 + $0xe0] sm:$0xff]  }
 0x42c   : > { %10450 = vmatprep.mubr.bf16.mxu1 %v5318_v8  ;;  %v9438_v58 = vpop.f32.mrb[123].mxu0  ;;  %9775 = vmatpush3.bf16.msra.mxu0 %v11330_v28 }
 0x42d   : > { %v14826_v10 = vadd.f32 %v9438_v58, %v9437_v57 }
 0x431   : > { %v9440_v24 = vpop.f32.mrb[124].mxu0 }
 0x432   : > { %v9441_v32 = vpop.f32.mrb[125].mxu0 }
 0x433   : > { %10451 = vmatmul.mubr.bf16.gmra.mrb[164].mxu1 %v5321_v61  ;;  %v14834_v11 = vadd.f32 %v9441_v32, %v9440_v24  ;;  %v9443_v34 = vpop.f32.mrb[126].mxu0 }
 0x434   : > { %10454 = vmatprep.mubr.bf16.mxu1 %v5324_v39  ;;  %v9444_v25 = vpop.f32.mrb[127].mxu0 }
 0x435   : > { %v14836_v51 = vadd.f32 %v9444_v25, %v9443_v34 }
 0x439   : > { %v9446_v35 = vpop.f32.mrb[128].mxu0 }
 0x43a   : > { %v9447_v1 = vpop.f32.mrb[129].mxu0 }
 0x43b   : > { %10455 = vmatmul.mubr.bf16.gmra.mrb[168].mxu1 %v5327_v4  ;;  %v14838_v63 = vadd.f32 %v9447_v1, %v9446_v35  ;;  %v9449_v30 = vpop.f32.mrb[130].mxu0 }
 0x43c   : > { %10458 = vmatprep.mubr.bf16.mxu1 %v5330_v33  ;;  %v9450_v12 = vpop.f32.mrb[131].mxu0 }
 0x43d   : > { %v14840_v5 = vadd.f32 %v9450_v12, %v9449_v30 }
 0x441   : > { %v9452_v19 = vpop.f32.mrb[132].mxu0 }
 0x442   : > { %v9453_v60 = vpop.f32.mrb[133].mxu0 }
 0x443   : > { %10459 = vmatmul.mubr.bf16.gmra.mrb[172].mxu1 %v14757_v53  ;;  %v14849_v7 = vadd.f32 %v9453_v60, %v9452_v19  ;;  %v9455_v48 = vpop.f32.mrb[134].mxu0  ;;  %v11333_v19 = vld [vmem:[%s15928_s4 + $0x40] sm:$0xff]  }
 0x444   : > { %v9456_v55 = vpop.f32.mrb[135].mxu0  ;;  %7252 = vmatprep.mubr.bf16.mxu1 %v14757_v53  ;;  %9902 = vmatprep.subr.bf16.mxu1 %v11333_v19 }
 0x445   : > { %v14852_v59 = vadd.f32 %v9456_v55, %v9455_v48 }
 0x449   : > { %v9458_v54 = vpop.f32.mrb[136].mxu0 }
 0x44a   : > { %v9459_v40 = vpop.f32.mrb[137].mxu0 }
 0x44b   : > { %v14854_v49 = vadd.f32 %v9459_v40, %v9458_v54  ;;  %v9461_v3 = vpop.f32.mrb[138].mxu0 }
 0x44c   : > { %v9462_v23 = vpop.f32.mrb[139].mxu0 }
 0x44d   : > { %v14856_v2 = vadd.f32 %v9462_v23, %v9461_v3 }
 0x451   : > { %v9464_v15 = vpop.f32.mrb[140].mxu0 }
 0x452   : > { %v9465_v26 = vpop.f32.mrb[141].mxu0 }
 0x453   : > { %v14864_v8 = vadd.f32 %v9465_v26, %v9464_v15  ;;  %v9467_v57 = vpop.f32.mrb[142].mxu0 }
 0x454   : > { %v9468_v58 = vpop.f32.mrb[143].mxu0 }
 0x455   : > { %v14866_v27 = vadd.f32 %v9468_v58, %v9467_v57  ;;  %v11336_v57 = vld [vmem:[%s15928_s4 + $0x8] sm:$0xff]  }
 0x459   : > { %v9510_v24 = vpop.f32.mrb[144].mxu0 }
 0x45a   : > { %v9511_v61 = vpop.f32.mrb[145].mxu0 }
 0x45b   : > { %v9512_v32 = vadd.f32 %v9511_v61, %v9510_v24  ;;  %v9513_v0 = vpop.f32.mrb[146].mxu0 }
 0x45c   : > { %v9514_v39 = vpop.f32.mrb[147].mxu0 }
 0x45d   : > { %v10721_v34 = vadd.f32 %v9512_v32, %v14762_v13  ;;  %v9515_v25 = vadd.f32 %v9514_v39, %v9513_v0  ;;  %v11334_v13 = vld [vmem:[%s15928_s4] sm:$0xff]  }
 0x45e   : > { %v9646_v35 = vpop.f32.mrb[176].mxu1  ;;  %9903 = vmatpush3.bf16.msra.mxu1 %v11334_v13 }
 0x45f   : > { %v9647_v4 = vpop.f32.mrb[177].mxu1  ;;  %v10727_v1 = vadd.f32 %v9515_v25, %v14765_v37  ;;  %9904 = vmatprep.subr.bf16.mxu1 %v11335_v21  ;;  %v11343_v21 = vld [vmem:[%s15928_s4 + $0x60] sm:$0xff]  }
 0x460   : > { %v9648_v33 = vadd.f32 %v9647_v4, %v9646_v35  ;;  %v9649_v30 = vpop.f32.mrb[178].mxu1  ;;  %v11340_v35 = vld [vmem:[%s15928_s4 + $0x10] sm:$0xff]  }
 0x461   : > { %v9650_v12 = vpop.f32.mrb[179].mxu1  ;;  %v9516_v18 = vpop.f32.mrb[148].mxu0 }
 0x462   : > { %v9651_v60 = vadd.f32 %v9650_v12, %v9649_v30  ;;  %v9517_v56 = vpop.f32.mrb[149].mxu0  ;;  %v14873_v48 = vadd.f32 %v10721_v34, %v9648_v33  ;;  %9905 = vmatpush3.bf16.msra.mxu1 %v11336_v57  ;;  %v11339_v34 = vld [vmem:[%s15928_s4 + $0x50] sm:$0xff]  }
 0x463   : > { %v9518_v55 = vadd.f32 %v9517_v56, %v9516_v18  ;;  %v9519_v54 = vpop.f32.mrb[150].mxu0  ;;  %9906 = vmatprep.subr.bf16.mxu1 %v11339_v34  ;;  %v11341_v18 = vld [vmem:[%s15928_s4 + $0x58] sm:$0xff]  }
 0x464   : > { %v9520_v37 = vpop.f32.mrb[151].mxu0  ;;  %v14878_v40 = vadd.f32 %v10727_v1, %v9651_v60  ;;  %v11342_v56 = vld [vmem:[%s15928_s4 + $0x18] sm:$0xff]  }
 0x465   : > { %v10718_v3 = vadd.f32 %v9518_v55, %v14768_v16  ;;  %v9521_v23 = vadd.f32 %v9520_v37, %v9519_v54 }
 0x466   : > { %v9652_v15 = vpop.f32.mrb[180].mxu1  ;;  %9907 = vmatpush3.bf16.msra.mxu1 %v11340_v35 }
 0x467   : > { %v9653_v26 = vpop.f32.mrb[181].mxu1  ;;  %v10724_v28 = vadd.f32 %v9521_v23, %v14771_v31  ;;  %9908 = vmatprep.subr.bf16.mxu1 %v11341_v18 }
 0x468   : > { %v9654_v58 = vadd.f32 %v9653_v26, %v9652_v15  ;;  %v9655_v24 = vpop.f32.mrb[182].mxu1  ;;  %v11344_v26 = vld [vmem:[%s15928_s4 + $0x20] sm:$0xff]  }
 0x469   : > { %v9656_v61 = vpop.f32.mrb[183].mxu1  ;;  %v9522_v32 = vpop.f32.mrb[152].mxu0 }
 0x46a   : > { %v9657_v16 = vadd.f32 %v9656_v61, %v9655_v24  ;;  %v9523_v0 = vpop.f32.mrb[153].mxu0  ;;  %v14888_v39 = vadd.f32 %v10718_v3, %v9654_v58  ;;  %9909 = vmatpush3.bf16.msra.mxu1 %v11342_v56 }
 0x46b   : > { %v9524_v25 = vadd.f32 %v9523_v0, %v9522_v32  ;;  %v9525_v31 = vpop.f32.mrb[154].mxu0  ;;  %9910 = vmatprep.subr.bf16.mxu1 %v11343_v21  ;;  %v11345_v32 = vld [vmem:[%s15928_s4 + $0x68] sm:$0xff]  }
 0x46c   : > { %v9526_v4 = vpop.f32.mrb[155].mxu0  ;;  %v14896_v1 = vadd.f32 %v10724_v28, %v9657_v16 }
 0x46d   : > { %v10733_v33 = vadd.f32 %v9524_v25, %v14774_v14  ;;  %v9527_v30 = vadd.f32 %v9526_v4, %v9525_v31  ;;  %v11346_v31 = vld [vmem:[%s15928_s4 + $0x28] sm:$0xff]  }
 0x46e   : > { %v9658_v12 = vpop.f32.mrb[184].mxu1  ;;  %9911 = vmatpush3.bf16.msra.mxu1 %v11344_v26 }
 0x46f   : > { %v9659_v19 = vpop.f32.mrb[185].mxu1  ;;  %v10739_v60 = vadd.f32 %v9527_v30, %v14777_v47  ;;  %9912 = vmatprep.subr.bf16.mxu1 %v11345_v32 }
 0x470   : > { %v9660_v13 = vadd.f32 %v9659_v19, %v9658_v12  ;;  %v9661_v55 = vpop.f32.mrb[186].mxu1 }
 0x471   : > { %v9662_v54 = vpop.f32.mrb[187].mxu1  ;;  %v9528_v37 = vpop.f32.mrb[156].mxu0 }
 0x472   : > { %v9663_v14 = vadd.f32 %v9662_v54, %v9661_v55  ;;  %v9529_v3 = vpop.f32.mrb[157].mxu0  ;;  %v14906_v23 = vadd.f32 %v10733_v33, %v9660_v13  ;;  %9913 = vmatpush3.bf16.msra.mxu1 %v11346_v31  ;;  %v11331_v13 = vld [vmem:[%s15928_s4 + $0x128] sm:$0xff]   ;;  %v11349_v31 = vld [vmem:[%s15928_s4 + $0x70] sm:$0xff]  }
 0x473   : > { %v9530_v15 = vadd.f32 %v9529_v3, %v9528_v37  ;;  %v9531_v47 = vpop.f32.mrb[158].mxu0  ;;  %v11332_v54 = vld [vmem:[%s15928_s4 + $0xe8] sm:$0xff]   ;;  %9776 = vmatprep.subr.bf16.mxu0 %v11331_v13  ;;  %9914 = vmatprep.subr.bf16.mxu1 %v11349_v31  ;;  %v11351_v13 = vld [vmem:[%s15928_s4 + $0x78] sm:$0xff]  }
 0x474   : > { %v9532_v28 = vpop.f32.mrb[159].mxu0  ;;  %v14914_v57 = vadd.f32 %v10739_v60, %v9663_v14  ;;  %9777 = vmatpush3.bf16.msra.mxu0 %v11332_v54  ;;  %v11352_v54 = vld [vmem:[%s15928_s4 + $0x38] sm:$0xff]  }
 0x475   : > { %v10730_v58 = vadd.f32 %v9530_v15, %v14780_v22  ;;  %v9533_v24 = vadd.f32 %v9532_v28, %v9531_v47 }
 0x476   : > { %v9664_v61 = vpop.f32.mrb[188].mxu1 }
 0x477   : > { %v9665_v16 = vpop.f32.mrb[189].mxu1  ;;  %v10736_v0 = vadd.f32 %v9533_v24, %v14783_v62 }
 0x478   : > { %v9666_v34 = vadd.f32 %v9665_v16, %v9664_v61  ;;  %v9667_v25 = vpop.f32.mrb[190].mxu1 }
 0x479   : > { %v9668_v35 = vpop.f32.mrb[191].mxu1  ;;  %v9534_v4 = vpop.f32.mrb[160].mxu0 }
 0x47a   : > { %v9669_v22 = vadd.f32 %v9668_v35, %v9667_v25  ;;  %v9535_v33 = vpop.f32.mrb[161].mxu0  ;;  %v14924_v30 = vadd.f32 %v10730_v58, %v9666_v34  ;;  %v11337_v58 = vld [vmem:[%s15928_s4 + $0x130] sm:$0xff]  }
 0x47b   : > { %v9536_v12 = vadd.f32 %v9535_v33, %v9534_v4  ;;  %v9537_v18 = vpop.f32.mrb[162].mxu0  ;;  %9778 = vmatprep.subr.bf16.mxu0 %v11337_v58 }
 0x47c   : > { %v9538_v19 = vpop.f32.mrb[163].mxu0  ;;  %v14926_v60 = vadd.f32 %v10736_v0, %v9669_v22  ;;  %v11350_v22 = vld [vmem:[%s15928_s4 + $0x30] sm:$0xff]  }
 0x47d   : > { %v10745_v62 = vadd.f32 %v9536_v12, %v14786_v52  ;;  %v9539_v56 = vadd.f32 %v9538_v19, %v9537_v18  ;;  %9915 = vmatpush3.bf16.msra.mxu1 %v11350_v22 }
 0x47e   : > { %v9670_v55 = vpop.f32.mrb[192].mxu1  ;;  %9916 = vmatprep.subr.bf16.mxu1 %v11351_v13 }
 0x47f   : > { %v9671_v37 = vpop.f32.mrb[193].mxu1  ;;  %v10751_v14 = vadd.f32 %v9539_v56, %v14789_v50  ;;  %v11338_v50 = vld [vmem:[%s15928_s4 + $0xf0] sm:$0xff]  }
 0x480   : > { %v9672_v3 = vadd.f32 %v9671_v37, %v9670_v55  ;;  %v9673_v21 = vpop.f32.mrb[194].mxu1  ;;  %9779 = vmatpush3.bf16.msra.mxu0 %v11338_v50 }
 0x481   : > { %v9674_v15 = vpop.f32.mrb[195].mxu1  ;;  %v9540_v47 = vpop.f32.mrb[164].mxu0  ;;  %9917 = vmatpush3.bf16.msra.mxu1 %v11352_v54 }
 0x482   : > { %v9675_v52 = vadd.f32 %v9674_v15, %v9673_v21  ;;  %v9541_v26 = vpop.f32.mrb[165].mxu0  ;;  %v14936_v28 = vadd.f32 %v10745_v62, %v9672_v3 }
 0x483   : > { %v9542_v24 = vadd.f32 %v9541_v26, %v9540_v47  ;;  %v9543_v61 = vpop.f32.mrb[166].mxu0  ;;  %v11347_v26 = vld [vmem:[%s15928_s4 + $0x138] sm:$0xff]  }
 0x484   : > { %v9544_v32 = vpop.f32.mrb[167].mxu0  ;;  %v14944_v16 = vadd.f32 %v10751_v14, %v9675_v52  ;;  %7253 = vmatmul.mubr.bf16.vlgmr.msra.gmra.mrb[240].mxu1 %v14757_v53  ;;  %9780 = vmatprep.subr.bf16.mxu0 %v11347_v26 }
 0x485   : > { %v10742_v0 = vadd.f32 %v9542_v24, %v14792_v29  ;;  %v9545_v34 = vadd.f32 %v9544_v32, %v9543_v61 }
 0x486   : > { %v9676_v25 = vpop.f32.mrb[196].mxu1 }
 0x487   : > { %v9677_v35 = vpop.f32.mrb[197].mxu1  ;;  %v10748_v4 = vadd.f32 %v9545_v34, %v14794_v42 }
 0x488   : > { %v9678_v33 = vadd.f32 %v9677_v35, %v9676_v25  ;;  %v9679_v12 = vpop.f32.mrb[198].mxu1 }
 0x489   : > { %v9680_v18 = vpop.f32.mrb[199].mxu1  ;;  %v9546_v19 = vpop.f32.mrb[168].mxu0 }
 0x48a   : > { %v9681_v29 = vadd.f32 %v9680_v18, %v9679_v12  ;;  %v9547_v62 = vpop.f32.mrb[169].mxu0  ;;  %v14954_v56 = vadd.f32 %v10742_v0, %v9678_v33 }
 0x48b   : > { %v9548_v55 = vadd.f32 %v9547_v62, %v9546_v19  ;;  %v9549_v42 = vpop.f32.mrb[170].mxu0 }
 0x48c   : > { %v9550_v37 = vpop.f32.mrb[171].mxu0  ;;  %v14962_v14 = vadd.f32 %v10748_v4, %v9681_v29 }
 0x48d   : > { %v10757_v3 = vadd.f32 %v9548_v55, %v14796_v17  ;;  %v9551_v21 = vadd.f32 %v9550_v37, %v9549_v42 }
 0x48e   : > { %v9682_v15 = vpop.f32.mrb[200].mxu1 }
 0x48f   : > { %v9683_v47 = vpop.f32.mrb[201].mxu1  ;;  %v10763_v52 = vadd.f32 %v9551_v21, %v14798_v36  ;;  %v11348_v36 = vld [vmem:[%s15928_s4 + $0xf8] sm:$0xff]  }
 0x490   : > { %v9684_v58 = vadd.f32 %v9683_v47, %v9682_v15  ;;  %v9685_v24 = vpop.f32.mrb[202].mxu1  ;;  %9781 = vmatpush3.bf16.msra.mxu0 %v11348_v36 }
 0x491   : > { %v9686_v61 = vpop.f32.mrb[203].mxu1  ;;  %v9552_v50 = vpop.f32.mrb[172].mxu0 }
 0x492   : > { %v9687_v32 = vadd.f32 %v9686_v61, %v9685_v24  ;;  %v9553_v0 = vpop.f32.mrb[173].mxu0  ;;  %v14970_v17 = vadd.f32 %v10757_v3, %v9684_v58 }
 0x493   : > { %v9554_v34 = vadd.f32 %v9553_v0, %v9552_v50  ;;  %v9555_v25 = vpop.f32.mrb[174].mxu0 }
 0x494   : > { %v9556_v31 = vpop.f32.mrb[175].mxu0  ;;  %v14975_v35 = vadd.f32 %v10763_v52, %v9687_v32 }
 0x495   : > { %v10754_v4 = vadd.f32 %v9554_v34, %v14806_v41  ;;  %v9557_v22 = vadd.f32 %v9556_v31, %v9555_v25 }
 0x496   : > { %v9688_v53 = vpop.f32.mrb[204].mxu1 }
 0x497   : > { %v9689_v33 = vpop.f32.mrb[205].mxu1  ;;  %v10760_v12 = vadd.f32 %v9557_v22, %v14808_v43 }
 0x498   : > { %v9690_v18 = vadd.f32 %v9689_v33, %v9688_v53  ;;  %v9691_v19 = vpop.f32.mrb[206].mxu1 }
 0x499   : > { %v9692_v29 = vpop.f32.mrb[207].mxu1  ;;  %v9558_v62 = vpop.f32.mrb[176].mxu0 }
 0x49a   : > { %v9693_v13 = vadd.f32 %v9692_v29, %v9691_v19  ;;  %v9559_v55 = vpop.f32.mrb[177].mxu0  ;;  %v14979_v42 = vadd.f32 %v10754_v4, %v9690_v18 }
 0x49b   : > { %v9560_v54 = vadd.f32 %v9559_v55, %v9558_v62  ;;  %v9561_v37 = vpop.f32.mrb[178].mxu0 }
 0x49c   : > { %v9562_v3 = vpop.f32.mrb[179].mxu0  ;;  %v14981_v21 = vadd.f32 %v10760_v12, %v9693_v13 }
 0x49d   : > { %v10769_v41 = vadd.f32 %v9560_v54, %v14810_v46  ;;  %v9563_v15 = vadd.f32 %v9562_v3, %v9561_v37 }
 0x49e   : > { %v9694_v47 = vpop.f32.mrb[208].mxu1 }
 0x49f   : > { %v9695_v52 = vpop.f32.mrb[209].mxu1  ;;  %v10775_v43 = vadd.f32 %v9563_v15, %v14812_v38 }
 0x4a0   : > { %v9696_v26 = vadd.f32 %v9695_v52, %v9694_v47  ;;  %v9697_v58 = vpop.f32.mrb[210].mxu1 }
 0x4a1   : > { %v9698_v24 = vpop.f32.mrb[211].mxu1  ;;  %v9564_v61 = vpop.f32.mrb[180].mxu0 }
 0x4a2   : > { %v9699_v50 = vadd.f32 %v9698_v24, %v9697_v58  ;;  %v9565_v32 = vpop.f32.mrb[181].mxu0  ;;  %v14985_v0 = vadd.f32 %v10769_v41, %v9696_v26 }
 0x4a3   : > { %v9566_v34 = vadd.f32 %v9565_v32, %v9564_v61  ;;  %v9567_v25 = vpop.f32.mrb[182].mxu0 }
 0x4a4   : > { %v9568_v36 = vpop.f32.mrb[183].mxu0  ;;  %v14987_v31 = vadd.f32 %v10775_v43, %v9699_v50 }
 0x4a5   : > { %v10766_v46 = vadd.f32 %v9566_v34, %v14820_v45  ;;  %v9569_v4 = vadd.f32 %v9568_v36, %v9567_v25 }
 0x4a6   : > { %v9700_v22 = vpop.f32.mrb[212].mxu1 }
 0x4a7   : > { %v9701_v53 = vpop.f32.mrb[213].mxu1  ;;  %v10772_v38 = vadd.f32 %v9569_v4, %v14822_v6 }
 0x4a8   : > { %v9702_v33 = vadd.f32 %v9701_v53, %v9700_v22  ;;  %v9703_v12 = vpop.f32.mrb[214].mxu1 }
 0x4a9   : > { %v9704_v18 = vpop.f32.mrb[215].mxu1  ;;  %v9570_v19 = vpop.f32.mrb[184].mxu0 }
 0x4aa   : > { %v9705_v29 = vadd.f32 %v9704_v18, %v9703_v12  ;;  %v9571_v62 = vpop.f32.mrb[185].mxu0  ;;  %v14991_v13 = vadd.f32 %v10766_v46, %v9702_v33 }
 0x4ab   : > { %v9572_v55 = vadd.f32 %v9571_v62, %v9570_v19  ;;  %v9573_v54 = vpop.f32.mrb[186].mxu0 }
 0x4ac   : > { %v9574_v37 = vpop.f32.mrb[187].mxu0  ;;  %v14993_v3 = vadd.f32 %v10772_v38, %v9705_v29 }
 0x4ad   : > { %v10781_v45 = vadd.f32 %v9572_v55, %v14824_v44  ;;  %v9575_v41 = vadd.f32 %v9574_v37, %v9573_v54 }
 0x4ae   : > { %v9706_v15 = vpop.f32.mrb[216].mxu1 }
 0x4af   : > { %v9707_v47 = vpop.f32.mrb[217].mxu1  ;;  %v10787_v6 = vadd.f32 %v9575_v41, %v14826_v10 }
 0x4b0   : > { %v9708_v52 = vadd.f32 %v9707_v47, %v9706_v15  ;;  %v9709_v43 = vpop.f32.mrb[218].mxu1 }
 0x4b1   : > { %v9710_v26 = vpop.f32.mrb[219].mxu1  ;;  %v9576_v58 = vpop.f32.mrb[188].mxu0 }
 0x4b2   : > { %v9711_v24 = vadd.f32 %v9710_v26, %v9709_v43  ;;  %v9577_v61 = vpop.f32.mrb[189].mxu0  ;;  %v14997_v50 = vadd.f32 %v10781_v45, %v9708_v52 }
 0x4b3   : > { %v9578_v32 = vadd.f32 %v9577_v61, %v9576_v58  ;;  %v9579_v34 = vpop.f32.mrb[190].mxu0 }
 0x4b4   : > { %v9580_v25 = vpop.f32.mrb[191].mxu0  ;;  %v14999_v36 = vadd.f32 %v10787_v6, %v9711_v24 }
 0x4b5   : > { %v10778_v44 = vadd.f32 %v9578_v32, %v14834_v11  ;;  %v9581_v46 = vadd.f32 %v9580_v25, %v9579_v34 }
 0x4b6   : > { %v9712_v4 = vpop.f32.mrb[220].mxu1 }
 0x4b7   : > { %v9713_v22 = vpop.f32.mrb[221].mxu1  ;;  %v10784_v10 = vadd.f32 %v9581_v46, %v14836_v51 }
 0x4b8   : > { %v9714_v53 = vadd.f32 %v9713_v22, %v9712_v4  ;;  %v9715_v38 = vpop.f32.mrb[222].mxu1 }
 0x4b9   : > { %v9716_v33 = vpop.f32.mrb[223].mxu1  ;;  %v9582_v12 = vpop.f32.mrb[192].mxu0 }
 0x4ba   : > { %v9717_v18 = vadd.f32 %v9716_v33, %v9715_v38  ;;  %v9583_v19 = vpop.f32.mrb[193].mxu0  ;;  %v15003_v29 = vadd.f32 %v10778_v44, %v9714_v53 }
 0x4bb   : > { %v9584_v62 = vadd.f32 %v9583_v19, %v9582_v12  ;;  %v9585_v55 = vpop.f32.mrb[194].mxu0  ;;  %v15020_v19 = vld [vmem:[%s15928_s4 + $0x140] sm:$0xff]  }
 0x4bc   : > { %v9586_v54 = vpop.f32.mrb[195].mxu0  ;;  %v15005_v37 = vadd.f32 %v10784_v10, %v9717_v18  ;;  %10462 = vmatprep.subr.bf16.mxu0 %v15020_v19 }
 0x4bd   : > { %v10793_v11 = vadd.f32 %v9584_v62, %v14838_v63  ;;  %v9587_v45 = vadd.f32 %v9586_v54, %v9585_v55 }
 0x4be   : > { %v9718_v41 = vpop.f32.mrb[224].mxu1 }
 0x4bf   : > { %v9719_v15 = vpop.f32.mrb[225].mxu1  ;;  %v10799_v51 = vadd.f32 %v9587_v45, %v14840_v5 }
 0x4c0   : > { %v9720_v47 = vadd.f32 %v9719_v15, %v9718_v41  ;;  %v9721_v6 = vpop.f32.mrb[226].mxu1 }
 0x4c1   : > { %v9722_v52 = vpop.f32.mrb[227].mxu1  ;;  %v9588_v43 = vpop.f32.mrb[196].mxu0 }
 0x4c2   : > { %v9723_v26 = vadd.f32 %v9722_v52, %v9721_v6  ;;  %v9589_v58 = vpop.f32.mrb[197].mxu0  ;;  %v15009_v24 = vadd.f32 %v10793_v11, %v9720_v47 }
 0x4c3   : > { %v9590_v61 = vadd.f32 %v9589_v58, %v9588_v43  ;;  %v9591_v32 = vpop.f32.mrb[198].mxu0 }
 0x4c4   : > { %v9592_v34 = vpop.f32.mrb[199].mxu0  ;;  %v15011_v25 = vadd.f32 %v10799_v51, %v9723_v26 }
 0x4c5   : > { %v10790_v63 = vadd.f32 %v9590_v61, %v14849_v7  ;;  %v9593_v44 = vadd.f32 %v9592_v34, %v9591_v32 }
 0x4c6   : > { %v9724_v46 = vpop.f32.mrb[228].mxu1 }
 0x4c7   : > { %v9725_v4 = vpop.f32.mrb[229].mxu1  ;;  %v10796_v5 = vadd.f32 %v9593_v44, %v14852_v59 }
 0x4c8   : > { %v9726_v22 = vadd.f32 %v9725_v4, %v9724_v46  ;;  %v9727_v10 = vpop.f32.mrb[230].mxu1 }
 0x4c9   : > { %v9728_v53 = vpop.f32.mrb[231].mxu1  ;;  %v9594_v38 = vpop.f32.mrb[200].mxu0 }
 0x4ca   : > { %v9729_v33 = vadd.f32 %v9728_v53, %v9727_v10  ;;  %v9595_v12 = vpop.f32.mrb[201].mxu0  ;;  %v15015_v18 = vadd.f32 %v10790_v63, %v9726_v22 }
 0x4cb   : > { %v9596_v62 = vadd.f32 %v9595_v12, %v9594_v38  ;;  %v9597_v7 = vpop.f32.mrb[202].mxu0  ;;  %v15040_v12 = vld [vmem:[%s15929_s5 + $0x1] ss:$0 sm:$0xff] }
 0x4cc   : > { %v9598_v55 = vpop.f32.mrb[203].mxu0  ;;  %v15022_v54 = vadd.f32 %v10796_v5, %v9729_v33 }
 0x4cd   : > { %v10805_v59 = vadd.f32 %v9596_v62, %v14854_v49  ;;  %v9599_v11 = vadd.f32 %v9598_v55, %v9597_v7 }
 0x4ce   : > { %v9730_v45 = vpop.f32.mrb[232].mxu1 }
 0x4cf   : > { %v9731_v41 = vpop.f32.mrb[233].mxu1  ;;  %v10811_v15 = vadd.f32 %v9599_v11, %v14856_v2 }
 0x4d0   : > { %v9732_v51 = vadd.f32 %v9731_v41, %v9730_v45  ;;  %v9733_v47 = vpop.f32.mrb[234].mxu1 }
 0x4d1   : > { %v9734_v6 = vpop.f32.mrb[235].mxu1  ;;  %v9600_v52 = vpop.f32.mrb[204].mxu0 }
 0x4d2   : > { %v9735_v43 = vadd.f32 %v9734_v6, %v9733_v47  ;;  %v9601_v26 = vpop.f32.mrb[205].mxu0  ;;  %v15027_v58 = vadd.f32 %v10805_v59, %v9732_v51 }
 0x4d3   : > { %v9602_v61 = vadd.f32 %v9601_v26, %v9600_v52  ;;  %v9603_v32 = vpop.f32.mrb[206].mxu0 }
 0x4d4   : > { %v9604_v34 = vpop.f32.mrb[207].mxu0  ;;  %v15029_v63 = vadd.f32 %v10811_v15, %v9735_v43 }
 0x4d5   : > { %v10802_v49 = vadd.f32 %v9602_v61, %v14864_v8  ;;  %v9605_v44 = vadd.f32 %v9604_v34, %v9603_v32 }
 0x4d6   : > { %v9736_v46 = vpop.f32.mrb[236].mxu1 }
 0x4d7   : > { %v9737_v4 = vpop.f32.mrb[237].mxu1  ;;  %v10808_v2 = vadd.f32 %v9605_v44, %v14866_v27 }
 0x4d8   : > { %v9738_v5 = vadd.f32 %v9737_v4, %v9736_v46  ;;  %v9739_v22 = vpop.f32.mrb[238].mxu1 }
 0x4d9   : > { %v9740_v10 = vpop.f32.mrb[239].mxu1 }
 0x4da   : > { %v9741_v53 = vadd.f32 %v9740_v10, %v9739_v22  ;;  %v15033_v38 = vadd.f32 %v10802_v49, %v9738_v5 }
 0x4dc   : > { %v15035_v33 = vadd.f32 %v10808_v2, %v9741_v53 }
 0x4de   : > { %v10432_v62 = vpop.f32.mrb[144].mxu1 }
 0x4df   : > { %v10720_v8 = vadd.f32 %v14888_v39, %v10432_v62  ;;  %v5722_v7 = vpop.f32.mrb[145].mxu1 }
 0x4e0   : > { %v10723_v55 = vadd.f32 %v14873_v48, %v5722_v7  ;;  %v10433_v27 = vpop.f32.mrb[146].mxu1 }
 0x4e1   : > { %v5889_v59 = vadd.f32 %v10720_v8, %v15040_v12  ;;  %v10726_v11 = vadd.f32 %v14896_v1, %v10433_v27  ;;  %v5725_v45 = vpop.f32.mrb[147].mxu1 }
 0x4e2   : > { %v5887_v41 = vadd.f32 %v10723_v55, %v15040_v12  ;;  %v10729_v15 = vadd.f32 %v14878_v40, %v5725_v45 }
 0x4e3   : > { %v8742_v51 = vmul.f32 -1.442695, %v5889_v59  ;;  %v5890_v47 = vadd.f32 %v10726_v11, %v15040_v12 }
 0x4e4   : > { %v8740_v6 = vmul.f32 -1.442695, %v5887_v41  ;;  %v5888_v52 = vadd.f32 %v10729_v15, %v15040_v12 }
 0x4e5   : > { %11521 = vpow2.f32 %v8742_v51  ;;  %v8743_v39 = vmul.f32 -1.442695, %v5890_v47 }
 0x4e6   : > { %11523 = vpow2.f32 %v8740_v6  ;;  %v8741_v48 = vmul.f32 -1.442695, %v5888_v52  ;;  %v10436_v43 = vpop.f32.mrb[148].mxu1 }
 0x4e7   : > { %11525 = vpow2.f32 %v8743_v39  ;;  %v10732_v26 = vadd.f32 %v14924_v30, %v10436_v43  ;;  %v5738_v1 = vpop.f32.mrb[149].mxu1 }
 0x4e8   : > { %11527 = vpow2.f32 %v8741_v48  ;;  %v10735_v61 = vadd.f32 %v14906_v23, %v5738_v1  ;;  %v10437_v32 = vpop.f32.mrb[150].mxu1 }
 0x4e9   : > { %v5893_v40 = vadd.f32 %v10732_v26, %v15040_v12  ;;  %v10738_v34 = vadd.f32 %v14926_v60, %v10437_v32  ;;  %v5741_v49 = vpop.f32.mrb[151].mxu1 }
 0x4ea   : > { %v5891_v44 = vadd.f32 %v10735_v61, %v15040_v12  ;;  %v10741_v46 = vadd.f32 %v14914_v57, %v5741_v49 }
 0x4eb   : > { %v8746_v4 = vmul.f32 -1.442695, %v5893_v40  ;;  %v5894_v2 = vadd.f32 %v10738_v34, %v15040_v12 }
 0x4ec   : > { %v8744_v5 = vmul.f32 -1.442695, %v5891_v44  ;;  %v5892_v30 = vadd.f32 %v10741_v46, %v15040_v12 }
 0x4ed   : > { %11529 = vpow2.f32 %v8746_v4  ;;  %v8747_v22 = vmul.f32 -1.442695, %v5894_v2 }
 0x4ee   : > { %11531 = vpow2.f32 %v8744_v5  ;;  %v8745_v23 = vmul.f32 -1.442695, %v5892_v30  ;;  %v10440_v10 = vpop.f32.mrb[152].mxu1 }
 0x4ef   : > { %v11522_v53 = vpop.eup %11521  ;;  %11533 = vpow2.f32 %v8747_v22  ;;  %v10744_v60 = vadd.f32 %v14954_v56, %v10440_v10  ;;  %v5754_v62 = vpop.f32.mrb[153].mxu1 }
 0x4f0   : > { %v11524_v8 = vpop.eup %11523  ;;  %v6017_v7 = vadd.f32 1.0, %v11522_v53  ;;  %11535 = vpow2.f32 %v8745_v23  ;;  %v10747_v57 = vadd.f32 %v14936_v28, %v5754_v62  ;;  %v10441_v55 = vpop.f32.mrb[154].mxu1 }
 0x4f1   : > { %v11526_v27 = vpop.eup %11525  ;;  %v6015_v59 = vadd.f32 1.0, %v11524_v8  ;;  %v5897_v11 = vadd.f32 %v10744_v60, %v15040_v12  ;;  %v10750_v45 = vadd.f32 %v14962_v14, %v10441_v55  ;;  %v5757_v41 = vpop.f32.mrb[155].mxu1 }
 0x4f2   : > { %v11528_v15 = vpop.eup %11527  ;;  %11537 = vrcp.f32 %v6017_v7  ;;  %v6018_v51 = vadd.f32 1.0, %v11526_v27  ;;  %v5895_v47 = vadd.f32 %v10747_v57, %v15040_v12  ;;  %v10753_v56 = vadd.f32 %v14944_v16, %v5757_v41 }
 0x4f3   : > { %11539 = vrcp.f32 %v6015_v59  ;;  %v6016_v6 = vadd.f32 1.0, %v11528_v15  ;;  %v8750_v52 = vmul.f32 -1.442695, %v5897_v11  ;;  %v5898_v28 = vadd.f32 %v10750_v45, %v15040_v12 }
 0x4f4   : > { %11541 = vrcp.f32 %v6018_v51  ;;  %v8748_v39 = vmul.f32 -1.442695, %v5895_v47  ;;  %v5896_v48 = vadd.f32 %v10753_v56, %v15040_v12 }
 0x4f5   : > { %11543 = vrcp.f32 %v6016_v6  ;;  %v8751_v43 = vmul.f32 -1.442695, %v5898_v28 }
 0x4f6   : > { %11545 = vpow2.f32 %v8750_v52  ;;  %v8749_v14 = vmul.f32 -1.442695, %v5896_v48  ;;  %v10444_v26 = vpop.f32.mrb[156].mxu1 }
 0x4f7   : > { %v11530_v1 = vpop.eup %11529  ;;  %11547 = vpow2.f32 %v8748_v39  ;;  %v10756_v61 = vadd.f32 %v14979_v42, %v10444_v26  ;;  %v5770_v32 = vpop.f32.mrb[157].mxu1 }
 0x4f8   : > { %v11532_v16 = vpop.eup %11531  ;;  %v6021_v40 = vadd.f32 1.0, %v11530_v1  ;;  %11549 = vpow2.f32 %v8751_v43  ;;  %v10759_v34 = vadd.f32 %v14970_v17, %v5770_v32  ;;  %v10445_v49 = vpop.f32.mrb[158].mxu1 }
 0x4f9   : > { %v11534_v44 = vpop.eup %11533  ;;  %v6019_v46 = vadd.f32 1.0, %v11532_v16  ;;  %11551 = vpow2.f32 %v8749_v14  ;;  %v5901_v4 = vadd.f32 %v10756_v61, %v15040_v12  ;;  %v10762_v2 = vadd.f32 %v14981_v21, %v10445_v49  ;;  %v5773_v5 = vpop.f32.mrb[159].mxu1 }
 0x4fa   : > { %v11536_v30 = vpop.eup %11535  ;;  %11553 = vrcp.f32 %v6021_v40  ;;  %v6022_v22 = vadd.f32 1.0, %v11534_v44  ;;  %v5899_v42 = vadd.f32 %v10759_v34, %v15040_v12  ;;  %v10765_v23 = vadd.f32 %v14975_v35, %v5773_v5 }
 0x4fb   : > { %11555 = vrcp.f32 %v6019_v46  ;;  %v6020_v10 = vadd.f32 1.0, %v11536_v30  ;;  %v8754_v53 = vmul.f32 -1.442695, %v5901_v4  ;;  %v5902_v17 = vadd.f32 %v10762_v2, %v15040_v12  ;;  %v6274_v30 = vld [vmem:[#allocation4 + $0x30] sm:$0xff] }
 0x4fc   : > { %v11538_v60 = vpop.eup %11537  ;;  %11557 = vrcp.f32 %v6022_v22  ;;  %v8752_v62 = vmul.f32 -1.442695, %v5899_v42  ;;  %v5900_v8 = vadd.f32 %v10765_v23, %v15040_v12  ;;  %v6370_v22 = vld [vmem:[#allocation4 + $0x40] sm:$0xff] }
 0x4fd   : > { %v11540_v7 = vpop.eup %11539  ;;  %11559 = vrcp.f32 %v6020_v10  ;;  %v8755_v21 = vmul.f32 -1.442695, %v5902_v17 }
 0x4fe   : > { %v11542_v57 = vpop.eup %11541  ;;  %11561 = vpow2.f32 %v8754_v53  ;;  %v8753_v55 = vmul.f32 -1.442695, %v5900_v8  ;;  %v10448_v27 = vpop.f32.mrb[160].mxu1  ;;  %v6271_v8 = vld [vmem:[#allocation4 + $0x18] sm:$0xff] }
 0x4ff   : > { %v11544_v59 = vpop.eup %11543  ;;  %v6112_v11 = vpack.c.bf16 %v11542_v57, %v11538_v60  ;;  %11563 = vpow2.f32 %v8752_v62  ;;  %v10768_v35 = vadd.f32 %v14991_v13, %v10448_v27  ;;  %v5786_v45 = vpop.f32.mrb[161].mxu1 }
 0x500   : > { %v11546_v41 = vpop.eup %11545  ;;  %v6111_v15 = vpack.c.bf16 %v11544_v59, %v11540_v7  ;;  %11565 = vpow2.f32 %v8755_v21  ;;  %v10771_v51 = vadd.f32 %v14985_v0, %v5786_v45  ;;  %v10449_v47 = vpop.f32.mrb[162].mxu1  ;;  %v6367_v7 = vld [vmem:[#allocation4 + $0x28] sm:$0xff] }
 0x501   : > { %v11548_v56 = vpop.eup %11547  ;;  %6128 = vst.msk [vmem:[#allocation4 + $0x38] sm:$0xff] %vm594_vm0, %v6112_v11  ;;  %v6151_v6 = vshrl.u32 %v6112_v11, 16  ;;  %v6154_v52 = vshll.u32 %v6112_v11, 16  ;;  %v6025_v28 = vadd.f32 1.0, %v11546_v41  ;;  %11567 = vpow2.f32 %v8753_v55  ;;  %v15077_v39 = vpop.f32.mrb[163].mxu1 }
 0x502   : > { %v11550_v48 = vpop.eup %11549  ;;  %6127 = vst.msk [vmem:[#allocation4 + $0x20] sm:$0xff] %vm594_vm0, %v6111_v15  ;;  %v6144_v13 = vshrl.u32 %v6111_v15, 16  ;;  %v6147_v43 = vshll.u32 %v6111_v15, 16  ;;  %v6023_v14 = vadd.f32 1.0, %v11548_v56  ;;  %v5905_v26 = vadd.f32 %v10768_v35, %v15040_v12 }
 0x503   : > { %v11552_v1 = vpop.eup %11551  ;;  %v6153_v0 = vrot.slane %v6151_v6, 7  ;;  %v6321_v61 = vrot.slane %v6154_v52, 1  ;;  %11569 = vrcp.f32 %v6025_v28  ;;  %v6026_v32 = vadd.f32 1.0, %v11550_v48  ;;  %v11354_v48 = vld [vmem:[%s15928_s4 + $0x148] sm:$0xff]  }
 0x504   : > { %v11554_v16 = vpop.eup %11553  ;;  %v6146_v40 = vrot.slane %v6144_v13, 7  ;;  %v6319_v34 = vrot.slane %v6147_v43, 1  ;;  %11571 = vrcp.f32 %v6023_v14  ;;  %v6024_v49 = vadd.f32 1.0, %v11552_v1 }
 0x505   : > { %v11556_v44 = vpop.eup %11555  ;;  %v6156_v46 = vor.u32 %v6154_v52, %v6153_v0  ;;  %v6322_v4 = vor.u32 %v6321_v61, %v6151_v6  ;;  %11573 = vrcp.f32 %v6026_v32  ;;  %v8758_v2 = vmul.f32 -1.442695, %v5905_v26 }
 0x506   : > { %v11558_v5 = vpop.eup %11557  ;;  %v6149_v42 = vor.u32 %v6147_v43, %v6146_v40  ;;  %v6320_v23 = vor.u32 %v6319_v34, %v6144_v13  ;;  %11575 = vrcp.f32 %v6024_v49  ;;  %v5903_v10 = vadd.f32 %v10771_v51, %v15040_v12  ;;  %v15082_v53 = vpop.f32.mrb[164].mxu1 }
 0x507   : > { %v11560_v17 = vpop.eup %11559  ;;  %v6275_v60 = vsel %vm12406_vm3, %v6156_v46, %v6274_v30  ;;  %v6371_v62 = vsel %vm12740_vm6, %v6322_v4, %v6370_v22  ;;  %v6114_v21 = vpack.c.bf16 %v11558_v5, %v11554_v16  ;;  %11577 = vpow2.f32 %v8758_v2  ;;  %v15088_v57 = vpop.f32.mrb[165].mxu1  ;;  %v11355_v4 = vld [vmem:[%s15928_s4 + $0x150] sm:$0xff]   ;;  %v6280_v5 = vld [vmem:[#allocation4 + $0x60] sm:$0xff] }
 0x508   : > { %v11562_v55 = vpop.eup %11561  ;;  %6276 = vst [vmem:[#allocation4 + $0x30] sm:$0xff] %v6275_v60  ;;  %6372 = vst [vmem:[#allocation4 + $0x40] sm:$0xff] %v6371_v62  ;;  %v6272_v27 = vsel %vm12406_vm3, %v6149_v42, %v6271_v8  ;;  %v6368_v59 = vsel %vm12740_vm6, %v6320_v23, %v6367_v7  ;;  %v6113_v11 = vpack.c.bf16 %v11560_v17, %v11556_v44  ;;  %v8756_v35 = vmul.f32 -1.442695, %v5903_v10  ;;  %v15094_v45 = vpop.f32.mrb[166].mxu1  ;;  %v6376_v30 = vld [vmem:[#allocation4 + $0x70] sm:$0xff] }
 0x509   : > { %v11564_v41 = vpop.eup %11563  ;;  %6273 = vst [vmem:[#allocation4 + $0x18] sm:$0xff] %v6272_v27  ;;  %6369 = vst [vmem:[#allocation4 + $0x28] sm:$0xff] %v6368_v59  ;;  %v6165_v15 = vshrl.u32 %v6114_v21, 16  ;;  %v6168_v51 = vshll.u32 %v6114_v21, 16  ;;  %v6029_v56 = vadd.f32 1.0, %v11562_v55  ;;  %v10774_v6 = vadd.f32 %v14993_v3, %v10449_v47  ;;  %v15098_v52 = vpop.f32.mrb[167].mxu1 }
 0x50a   : > { %6130 = vst.msk [vmem:[#allocation4 + $0x68] sm:$0xff] %vm594_vm0, %v6114_v21  ;;  %v6514_v28 = vld [vmem:[#allocation4 + $0x20] sm:$0xff]  ;;  %v11566_v13 = vpop.eup %11565  ;;  %6129 = vst.msk [vmem:[#allocation4 + $0x50] sm:$0xff] %vm594_vm0, %v6113_v11  ;;  %v6158_v43 = vshrl.u32 %v6113_v11, 16  ;;  %v6161_v14 = vshll.u32 %v6113_v11, 16  ;;  %v6027_v26 = vadd.f32 1.0, %v11564_v41  ;;  %11579 = vpow2.f32 %v8756_v35 }
 0x50b   : > { %6786 = vmatprep.mubr.bf16.mxu0 %v6514_v28  ;;  %7260 = vmatprep.mubr.bf16.mxu1 %v6514_v28  ;;  %v11568_v1 = vpop.eup %11567  ;;  %v6167_v0 = vrot.slane %v6165_v15, 7  ;;  %v6325_v61 = vrot.slane %v6168_v51, 1  ;;  %11581 = vrcp.f32 %v6029_v56  ;;  %v6030_v3 = vadd.f32 1.0, %v11566_v13  ;;  %v6517_v47 = vld [vmem:[#allocation4 + $0x38] sm:$0xff]  ;;  %v6277_v62 = vld [vmem:[#allocation4 + $0x48] sm:$0xff] }
 0x50c   : > { %6787 = vmatmul.mubr.bf16.vlgmr.msra.gmra.mrb[208].mxu0 %v6272_v27  ;;  %7261 = vmatmul.mubr.bf16.gmra.mrb[244].mxu1 %v6272_v27  ;;  %v6160_v32 = vrot.slane %v6158_v43, 7  ;;  %v6323_v16 = vrot.slane %v6161_v14, 1  ;;  %11583 = vrcp.f32 %v6027_v26  ;;  %v6028_v40 = vadd.f32 1.0, %v11568_v1  ;;  %v6373_v8 = vld [vmem:[#allocation4 + $0x58] sm:$0xff] }
 0x50d   : > { %10463 = vmatpush3.bf16.msra.mxu0 %v15020_v19  ;;  %6794 = vmatprep.mubr.bf16.mxu0 %v6517_v47  ;;  %v11570_v34 = vpop.eup %11569  ;;  %v6170_v49 = vor.u32 %v6168_v51, %v6167_v0  ;;  %v6326_v44 = vor.u32 %v6325_v61, %v6165_v15  ;;  %11585 = vrcp.f32 %v6030_v3  ;;  %v5906_v46 = vadd.f32 %v10774_v6, %v15040_v12  ;;  %v11356_v56 = vld [vmem:[%s15928_s4 + $0x158] sm:$0xff]  }
 0x50e   : > { %7268 = vmatprep.mubr.bf16.mxu1 %v6517_v47  ;;  %10464 = vmatprep.subr.bf16.mxu0 %v11354_v48  ;;  %v11572_v2 = vpop.eup %11571  ;;  %v6163_v22 = vor.u32 %v6161_v14, %v6160_v32  ;;  %v6324_v42 = vor.u32 %v6323_v16, %v6158_v43  ;;  %11587 = vrcp.f32 %v6028_v40  ;;  %v10777_v19 = vadd.f32 %v14987_v31, %v15077_v39  ;;  %v15111_v23 = vpop.f32.mrb[168].mxu1 }
 0x50f   : > { %v11574_v10 = vpop.eup %11573  ;;  %v15115_v17 = vsel %vm12406_vm3, %v6170_v49, %v6280_v5  ;;  %v6377_v60 = vsel %vm12740_vm6, %v6326_v44, %v6376_v30  ;;  %v8759_v7 = vmul.f32 -1.442695, %v5906_v46  ;;  %v10780_v21 = vadd.f32 %v15003_v29, %v15082_v53  ;;  %v15121_v55 = vpop.f32.mrb[169].mxu1  ;;  %v6516_v43 = vld [vmem:[#allocation4 + $0x30] sm:$0xff]  ;;  %v11357_v5 = vld [vmem:[%s15928_s4 + $0x160] sm:$0xff]  }
 0x510   : > { %v11576_v27 = vpop.eup %11575  ;;  %6282 = vst [vmem:[#allocation4 + $0x60] sm:$0xff] %v15115_v17  ;;  %6378 = vst [vmem:[#allocation4 + $0x70] sm:$0xff] %v6377_v60  ;;  %v15126_v31 = vsel %vm12406_vm3, %v6163_v22, %v6277_v62  ;;  %v6374_v39 = vsel %vm12740_vm6, %v6324_v42, %v6373_v8  ;;  %v6116_v59 = vpack.c.bf16 %v11574_v10, %v11570_v34  ;;  %v15131_v35 = vpop.f32.mrb[170].mxu1  ;;  %v6382_v30 = vld [vmem:[#allocation4 + $0xa0] sm:$0xff] }
 0x511   : > { %v5904_v11 = vadd.f32 %v10777_v19, %v15040_v12  ;;  %10465 = vmatpush3.bf16.msra.mxu0 %v11354_v48  ;;  %v11578_v29 = vpop.eup %11577  ;;  %6279 = vst [vmem:[#allocation4 + $0x48] sm:$0xff] %v15126_v31  ;;  %6375 = vst [vmem:[#allocation4 + $0x58] sm:$0xff] %v6374_v39  ;;  %v6115_v53 = vpack.c.bf16 %v11576_v27, %v11572_v2  ;;  %11589 = vpow2.f32 %v8759_v7  ;;  %v15137_v51 = vpop.f32.mrb[171].mxu1  ;;  %v6283_v7 = vld [vmem:[#allocation4 + $0x78] sm:$0xff] }
 0x512   : > { %v5909_v41 = vadd.f32 %v10780_v21, %v15040_v12  ;;  %v10783_v15 = vadd.f32 %v14997_v50, %v15088_v57  ;;  %10466 = vmatprep.subr.bf16.mxu0 %v11355_v4  ;;  %6132 = vst.msk [vmem:[#allocation4 + $0x98] sm:$0xff] %vm594_vm0, %v6116_v59  ;;  %v6179_v6 = vshrl.u32 %v6116_v59, 16  ;;  %v6182_v28 = vshll.u32 %v6116_v59, 16  ;;  %v6520_v57 = vld [vmem:[#allocation4 + $0x50] sm:$0xff]  ;;  %v6379_v21 = vld [vmem:[#allocation4 + $0x88] sm:$0xff] }
 0x513   : > { %v6033_v48 = vadd.f32 1.0, %v11578_v29  ;;  %v8757_v13 = vmul.f32 -1.442695, %v5904_v11  ;;  %6131 = vst.msk [vmem:[#allocation4 + $0x80] sm:$0xff] %vm594_vm0, %v6115_v53  ;;  %v6172_v14 = vshrl.u32 %v6115_v53, 16  ;;  %v6175_v26 = vshll.u32 %v6115_v53, 16 }
 0x514   : > { %v8762_v1 = vmul.f32 -1.442695, %v5909_v41  ;;  %v5907_v50 = vadd.f32 %v10783_v15, %v15040_v12  ;;  %6795 = vmatmul.mubr.bf16.gmra.mrb[212].mxu0 %v6516_v43  ;;  %7269 = vmatmul.mubr.bf16.gmra.mrb[248].mxu1 %v6516_v43  ;;  %v11580_v0 = vpop.eup %11579  ;;  %v6181_v61 = vrot.slane %v6179_v6, 7  ;;  %v6329_v3 = vrot.slane %v6182_v28, 1 }
 0x515   : > { %11591 = vrcp.f32 %v6033_v48  ;;  %v10786_v47 = vadd.f32 %v15005_v37, %v15094_v45  ;;  %6802 = vmatprep.mubr.bf16.mxu0 %v6520_v57  ;;  %7276 = vmatprep.mubr.bf16.mxu1 %v6520_v57  ;;  %v11582_v32 = vpop.eup %11581  ;;  %v6174_v16 = vrot.slane %v6172_v14, 7  ;;  %v6327_v40 = vrot.slane %v6175_v26, 1  ;;  %v6286_v45 = vld [vmem:[#allocation4 + $0x90] sm:$0xff] }
 0x516   : > { %11593 = vpow2.f32 %v8757_v13  ;;  %10467 = vmatpush3.bf16.msra.mxu0 %v11355_v4  ;;  %v11584_v34 = vpop.eup %11583  ;;  %v6184_v49 = vor.u32 %v6182_v28, %v6181_v61  ;;  %v6330_v44 = vor.u32 %v6329_v3, %v6179_v6  ;;  %v8760_v46 = vmul.f32 -1.442695, %v5907_v50  ;;  %v15147_v2 = vpop.f32.mrb[172].mxu1  ;;  %v11358_v13 = vld [vmem:[%s15928_s4 + $0x168] sm:$0xff]  }
 0x517   : > { %11595 = vpow2.f32 %v8762_v1  ;;  %10468 = vmatprep.subr.bf16.mxu0 %v11356_v56  ;;  %v11586_v37 = vpop.eup %11585  ;;  %v6177_v22 = vor.u32 %v6175_v26, %v6174_v16  ;;  %v6328_v42 = vor.u32 %v6327_v40, %v6172_v14  ;;  %v15152_v19 = vadd.f32 1.0, %v11580_v0  ;;  %v15155_v10 = vpop.f32.mrb[173].mxu1  ;;  %v6292_v16 = vld [vmem:[#allocation4 + $0xc0] sm:$0xff]  ;;  %v6388_v40 = vld [vmem:[#allocation4 + $0xd0] sm:$0xff] }
 0x518   : > { %v5910_v4 = vadd.f32 %v10786_v47, %v15040_v12  ;;  %v11588_v60 = vpop.eup %11587  ;;  %v15159_v62 = vsel %vm12406_vm3, %v6184_v49, %v6286_v45  ;;  %v6383_v8 = vsel %vm12740_vm6, %v6330_v44, %v6382_v30  ;;  %v6118_v27 = vpack.c.bf16 %v11586_v37, %v11582_v32  ;;  %v15163_v39 = vpop.f32.mrb[174].mxu1  ;;  %v11359_v47 = vld [vmem:[%s15928_s4 + $0x170] sm:$0xff]   ;;  %v6289_v45 = vld [vmem:[#allocation4 + $0xa8] sm:$0xff]  ;;  %v6385_v30 = vld [vmem:[#allocation4 + $0xb8] sm:$0xff] }
 0x519   : > { %11597 = vpow2.f32 %v8760_v46  ;;  %6288 = vst [vmem:[#allocation4 + $0x90] sm:$0xff] %v15159_v62  ;;  %6384 = vst [vmem:[#allocation4 + $0xa0] sm:$0xff] %v6383_v8  ;;  %v15168_v59 = vsel %vm12406_vm3, %v6177_v22, %v6283_v7  ;;  %v6380_v11 = vsel %vm12740_vm6, %v6328_v42, %v6379_v21  ;;  %v6117_v29 = vpack.c.bf16 %v11588_v60, %v11584_v34  ;;  %v15172_v41 = vpop.f32.mrb[175].mxu1 }
 0x51a   : > { %v8763_v53 = vmul.f32 -1.442695, %v5910_v4  ;;  %10469 = vmatpush3.bf16.msra.mxu0 %v11356_v56  ;;  %6285 = vst [vmem:[#allocation4 + $0x78] sm:$0xff] %v15168_v59  ;;  %6381 = vst [vmem:[#allocation4 + $0x88] sm:$0xff] %v6380_v11  ;;  %v6193_v15 = vshrl.u32 %v6118_v27, 16  ;;  %v6196_v6 = vshll.u32 %v6118_v27, 16  ;;  %v10789_v28 = vadd.f32 %v14999_v36, %v15098_v52 }
 0x51b   : > { %6134 = vst.msk [vmem:[#allocation4 + $0xc8] sm:$0xff] %vm594_vm0, %v6118_v27  ;;  %v10792_v48 = vadd.f32 %v15015_v18, %v15111_v23  ;;  %10470 = vmatprep.subr.bf16.mxu0 %v11357_v5  ;;  %v11590_v43 = vpop.eup %11589  ;;  %6133 = vst.msk [vmem:[#allocation4 + $0xb0] sm:$0xff] %vm594_vm0, %v6117_v29  ;;  %v6186_v56 = vshrl.u32 %v6117_v29, 16  ;;  %v6189_v14 = vshll.u32 %v6117_v29, 16  ;;  %v10795_v26 = vadd.f32 %v15009_v24, %v15121_v55  ;;  %v15188_v36 = vld [vmem:[#allocation4 + $0x68] sm:$0xff] }
 0x51c   : > { %11599 = vpow2.f32 %v8763_v53  ;;  %6803 = vmatmul.mubr.bf16.gmra.mrb[216].mxu0 %v15126_v31  ;;  %7277 = vmatmul.mubr.bf16.gmra.mrb[252].mxu1 %v15126_v31  ;;  %v6195_v18 = vrot.slane %v6193_v15, 7  ;;  %v6333_v52 = vrot.slane %v6196_v6, 1  ;;  %v6034_v23 = vadd.f32 1.0, %v11590_v43 }
 0x51d   : > { %v5908_v1 = vadd.f32 %v10789_v28, %v15040_v12  ;;  %6810 = vmatprep.mubr.bf16.mxu0 %v15188_v36  ;;  %7284 = vmatprep.mubr.bf16.mxu1 %v15188_v36  ;;  %v6188_v50 = vrot.slane %v6186_v56, 7  ;;  %v6331_v57 = vrot.slane %v6189_v14, 1  ;;  %v5913_v0 = vadd.f32 %v10792_v48, %v15040_v12 }
 0x51e   : > { %v5911_v24 = vadd.f32 %v10795_v26, %v15040_v12  ;;  %10471 = vmatpush3.bf16.msra.mxu0 %v11357_v5  ;;  %v6198_v31 = vor.u32 %v6196_v6, %v6195_v18  ;;  %v6334_v61 = vor.u32 %v6333_v52, %v6193_v15  ;;  %11601 = vrcp.f32 %v6034_v23  ;;  %v15258_v52 = vld [vmem:[#allocation4 + $0x98] sm:$0xff] }
 0x51f   : > { %v15195_v55 = vpop.eup %11591  ;;  %v8761_v3 = vmul.f32 -1.442695, %v5908_v1  ;;  %10472 = vmatprep.subr.bf16.mxu0 %v11358_v13  ;;  %v6191_v34 = vor.u32 %v6189_v14, %v6188_v50  ;;  %v6332_v49 = vor.u32 %v6331_v57, %v6186_v56  ;;  %v8766_v44 = vmul.f32 -1.442695, %v5913_v0 }
 0x520   : > { %v11594_v32 = vpop.eup %11593  ;;  %v15202_v5 = vsel %vm12406_vm3, %v6198_v31, %v6292_v16  ;;  %v15206_v37 = vsel %vm12740_vm6, %v6334_v61, %v6388_v40  ;;  %v8764_v60 = vmul.f32 -1.442695, %v5911_v24  ;;  %v10798_v7 = vadd.f32 %v15022_v54, %v15131_v35 }
 0x521   : > { %v11596_v46 = vpop.eup %11595  ;;  %v6032_v22 = vadd.f32 1.0, %v11594_v32  ;;  %11603 = vpow2.f32 %v8761_v3  ;;  %6294 = vst [vmem:[#allocation4 + $0xc0] sm:$0xff] %v15202_v5  ;;  %6390 = vst [vmem:[#allocation4 + $0xd0] sm:$0xff] %v15206_v37  ;;  %v15212_v42 = vsel %vm12406_vm3, %v6191_v34, %v6289_v45  ;;  %v15216_v4 = vsel %vm12740_vm6, %v6332_v49, %v6385_v30  ;;  %v6394_v32 = vld [vmem:[#allocation4 + $0x100] sm:$0xff] }
 0x522   : > { %11605 = vrcp.f32 %v15152_v19  ;;  %10473 = vmatpush3.bf16.msra.mxu0 %v11358_v13  ;;  %6291 = vst [vmem:[#allocation4 + $0xa8] sm:$0xff] %v15212_v42  ;;  %6387 = vst [vmem:[#allocation4 + $0xb8] sm:$0xff] %v15216_v4  ;;  %v10801_v21 = vadd.f32 %v15011_v25, %v15137_v51  ;;  %v10804_v27 = vadd.f32 %v15033_v38, %v15147_v2  ;;  %v11360_v19 = vld [vmem:[%s15928_s4 + $0x178] sm:$0xff]   ;;  %v6037_v11 = vadd.f32 1.0, %v11596_v46  ;;  %v15236_v25 = vld [vmem:[#allocation4 + $0x80] sm:$0xff] }
 0x523   : > { %v11598_v8 = vpop.eup %11597  ;;  %11607 = vrcp.f32 %v6032_v22  ;;  %10474 = vmatprep.subr.bf16.mxu0 %v11359_v47  ;;  %v10807_v29 = vadd.f32 %v15027_v58, %v15155_v10  ;;  %v10810_v53 = vadd.f32 %v15035_v33, %v15163_v39  ;;  %v5914_v54 = vadd.f32 %v10798_v7, %v15040_v12  ;;  %v15249_v39 = vld [vmem:[%s15928_s4 + $0x80] sm:$0xff]  }
 0x524   : > { %11609 = vpow2.f32 %v8766_v44  ;;  %6811 = vmatmul.mubr.bf16.gmra.mrb[220].mxu0 %v15115_v17  ;;  %7285 = vmatmul.mubr.bf16.gmra.mrb[0].mxu1 %v15115_v17  ;;  %v5912_v38 = vadd.f32 %v10801_v21, %v15040_v12  ;;  %v5917_v35 = vadd.f32 %v10804_v27, %v15040_v12  ;;  %v10813_v33 = vadd.f32 %v15029_v63, %v15172_v41  ;;  %v15275_v21 = vld [vmem:[#allocation4 + $0xb0] sm:$0xff] }
 0x525   : > { %6818 = vmatprep.mubr.bf16.mxu0 %v15236_v25  ;;  %7292 = vmatprep.mubr.bf16.mxu1 %v15236_v25  ;;  %11611 = vpow2.f32 %v8764_v60  ;;  %v8767_v17 = vmul.f32 -1.442695, %v5914_v54  ;;  %v5915_v10 = vadd.f32 %v10807_v29, %v15040_v12  ;;  %v6035_v28 = vadd.f32 1.0, %v11598_v8 }
 0x526   : > { %v11600_v58 = vpop.eup %11599  ;;  %10475 = vmatpush3.bf16.msra.mxu0 %v11359_v47  ;;  %v8765_v2 = vmul.f32 -1.442695, %v5912_v38  ;;  %11613 = vrcp.f32 %v6037_v11  ;;  %v8770_v15 = vmul.f32 -1.442695, %v5917_v35  ;;  %v5918_v48 = vadd.f32 %v10810_v53, %v15040_v12  ;;  %v6298_v47 = vld [vmem:[#allocation4 + $0xf0] sm:$0xff]  ;;  %v6391_v11 = vld [vmem:[#allocation4 + $0xe8] sm:$0xff] }
 0x527   : > { %v6038_v51 = vadd.f32 1.0, %v11600_v58  ;;  %10476 = vmatprep.subr.bf16.mxu0 %v11360_v19  ;;  %v8768_v13 = vmul.f32 -1.442695, %v5915_v10  ;;  %v5916_v43 = vadd.f32 %v10813_v33, %v15040_v12 }
 0x528   : > { %v11602_v6 = vpop.eup %11601  ;;  %v8771_v1 = vmul.f32 -1.442695, %v5918_v48 }
 0x529   : > { %11615 = vrcp.f32 %v6038_v51  ;;  %v6120_v63 = vpack.c.bf16 %v11602_v6, %v15195_v55  ;;  %v8769_v24 = vmul.f32 -1.442695, %v5916_v43 }
 0x52a   : > { %11617 = vpow2.f32 %v8767_v17  ;;  %10477 = vmatpush3.bf16.msra.mxu0 %v11360_v19  ;;  %v6295_v19 = vld [vmem:[#allocation4 + $0xd8] sm:$0xff] }
 0x52b   : > { %v11604_v41 = vpop.eup %11603  ;;  %11619 = vpow2.f32 %v8765_v2  ;;  %10510 = vmatprep.subr.bf16.mxu0 %v15249_v39  ;;  %6136 = vst.msk [vmem:[#allocation4 + $0xf8] sm:$0xff] %vm594_vm0, %v6120_v63  ;;  %v6207_v14 = vshrl.u32 %v6120_v63, 16  ;;  %v6210_v26 = vshll.u32 %v6120_v63, 16 }
 0x52c   : > { %v11606_v56 = vpop.eup %11605  ;;  %v6036_v18 = vadd.f32 1.0, %v11604_v41  ;;  %11621 = vpow2.f32 %v8770_v15  ;;  %6819 = vmatmul.mubr.bf16.gmra.mrb[224].mxu0 %v15168_v59  ;;  %7293 = vmatmul.mubr.bf16.gmra.mrb[4].mxu1 %v15168_v59  ;;  %v6304_v41 = vld [vmem:[#allocation4 + $0x120] sm:$0xff] }
 0x52d   : > { %v11608_v23 = vpop.eup %11607  ;;  %11623 = vrcp.f32 %v6035_v28  ;;  %6826 = vmatprep.mubr.bf16.mxu0 %v15258_v52  ;;  %7300 = vmatprep.mubr.bf16.mxu1 %v15258_v52  ;;  %v6209_v50 = vrot.slane %v6207_v14, 7  ;;  %v6337_v57 = vrot.slane %v6210_v26, 1 }
 0x52e   : > { %v11610_v12 = vpop.eup %11609  ;;  %v6119_v0 = vpack.c.bf16 %v11608_v23, %v11606_v56  ;;  %11625 = vrcp.f32 %v6036_v18 }
 0x52f   : > { %11627 = vpow2.f32 %v8768_v13  ;;  %v11612_v55 = vpop.eup %11611  ;;  %v6212_v31 = vor.u32 %v6210_v26, %v6209_v50  ;;  %v6338_v61 = vor.u32 %v6337_v57, %v6207_v14  ;;  %v6041_v16 = vadd.f32 1.0, %v11610_v12  ;;  %v6400_v13 = vld [vmem:[#allocation4 + $0x130] sm:$0xff] }
 0x530   : > { %6135 = vst.msk [vmem:[#allocation4 + $0xe0] sm:$0xff] %vm594_vm0, %v6119_v0  ;;  %v6200_v59 = vshrl.u32 %v6119_v0, 16  ;;  %v6203_v3 = vshll.u32 %v6119_v0, 16  ;;  %11629 = vpow2.f32 %v8771_v1  ;;  %v11614_v40 = vpop.eup %11613  ;;  %v6039_v30 = vadd.f32 1.0, %v11612_v55  ;;  %v15301_v1 = vld [vmem:[#allocation4 + $0xc8] sm:$0xff] }
 0x531   : > { %v15265_v34 = vsel %vm12406_vm3, %v6212_v31, %v6298_v47  ;;  %v15269_v49 = vsel %vm12740_vm6, %v6338_v61, %v6394_v32  ;;  %11631 = vpow2.f32 %v8769_v24  ;;  %v6397_v61 = vld [vmem:[#allocation4 + $0x118] sm:$0xff] }
 0x532   : > { %v6202_v44 = vrot.slane %v6200_v59, 7  ;;  %v6335_v46 = vrot.slane %v6203_v3, 1  ;;  %6300 = vst [vmem:[#allocation4 + $0xf0] sm:$0xff] %v15265_v34  ;;  %6396 = vst [vmem:[#allocation4 + $0x100] sm:$0xff] %v15269_v49  ;;  %11633 = vrcp.f32 %v6041_v16 }
 0x533   : > { %v11616_v45 = vpop.eup %11615 }
 0x534   : > { %v11618_v22 = vpop.eup %11617  ;;  %v6205_v60 = vor.u32 %v6203_v3, %v6202_v44  ;;  %v6336_v8 = vor.u32 %v6335_v46, %v6200_v59  ;;  %v6122_v7 = vpack.c.bf16 %v11616_v45, %v11614_v40  ;;  %6827 = vmatmul.mubr.bf16.gmra.mrb[228].mxu0 %v15159_v62  ;;  %7301 = vmatmul.mubr.bf16.gmra.mrb[8].mxu1 %v15159_v62 }
 0x535   : > { %v11620_v27 = vpop.eup %11619  ;;  %v6042_v29 = vadd.f32 1.0, %v11618_v22  ;;  %6834 = vmatprep.mubr.bf16.mxu0 %v15275_v21  ;;  %7308 = vmatprep.mubr.bf16.mxu1 %v15275_v21 }
 0x536   : > { %v11622_v53 = vpop.eup %11621  ;;  %v15281_v54 = vsel %vm12406_vm3, %v6205_v60, %v6295_v19  ;;  %v15285_v38 = vsel %vm12740_vm6, %v6336_v8, %v6391_v11  ;;  %6138 = vst.msk [vmem:[#allocation4 + $0x128] sm:$0xff] %vm594_vm0, %v6122_v7  ;;  %v6221_v62 = vshrl.u32 %v6122_v7, 16  ;;  %v6224_v35 = vshll.u32 %v6122_v7, 16 }
 0x537   : > { %v11624_v58 = vpop.eup %11623  ;;  %6297 = vst [vmem:[#allocation4 + $0xd8] sm:$0xff] %v15281_v54  ;;  %6393 = vst [vmem:[#allocation4 + $0xe8] sm:$0xff] %v15285_v38  ;;  %11635 = vrcp.f32 %v6042_v29  ;;  %v6040_v33 = vadd.f32 1.0, %v11620_v27  ;;  %v6045_v6 = vadd.f32 1.0, %v11622_v53 }
 0x538   : > { %v11626_v51 = vpop.eup %11625  ;;  %v6223_v17 = vrot.slane %v6221_v62, 7  ;;  %v6341_v2 = vrot.slane %v6224_v35, 1  ;;  %11637 = vrcp.f32 %v6039_v30  ;;  %v15320_v30 = vld [vmem:[#allocation4 + $0xe0] sm:$0xff] }
 0x539   : > { %v11628_v10 = vpop.eup %11627  ;;  %v6121_v15 = vpack.c.bf16 %v11626_v51, %v11624_v58  ;;  %11639 = vrcp.f32 %v6040_v33 }
 0x53a   : > { %v6226_v28 = vor.u32 %v6224_v35, %v6223_v17  ;;  %v6342_v48 = vor.u32 %v6341_v2, %v6221_v62  ;;  %v11630_v63 = vpop.eup %11629  ;;  %v6043_v18 = vadd.f32 1.0, %v11628_v10  ;;  %11641 = vrcp.f32 %v6045_v6  ;;  %v6310_v35 = vld [vmem:[#allocation4 + $0x150] sm:$0xff]  ;;  %v6307_v6 = vld [vmem:[#allocation4 + $0x138] sm:$0xff] }
 0x53b   : > { %6137 = vst.msk [vmem:[#allocation4 + $0x110] sm:$0xff] %vm594_vm0, %v6121_v15  ;;  %v6214_v43 = vshrl.u32 %v6121_v15, 16  ;;  %v6217_v56 = vshll.u32 %v6121_v15, 16  ;;  %v6046_v23 = vadd.f32 1.0, %v11630_v63  ;;  %v11632_v57 = vpop.eup %11631 }
 0x53c   : > { %v15293_v14 = vsel %vm12406_vm3, %v6226_v28, %v6304_v41  ;;  %v15297_v26 = vsel %vm12740_vm6, %v6342_v48, %v6400_v13  ;;  %6835 = vmatmul.mubr.bf16.gmra.mrb[232].mxu0 %v15212_v42  ;;  %7309 = vmatmul.mubr.bf16.gmra.mrb[12].mxu1 %v15212_v42  ;;  %v11634_v0 = vpop.eup %11633  ;;  %v6044_v31 = vadd.f32 1.0, %v11632_v57  ;;  %v6301_v42 = vld [vmem:[#allocation4 + $0x108] sm:$0xff] }
 0x53d   : > { %6306 = vst [vmem:[#allocation4 + $0x120] sm:$0xff] %v15293_v14  ;;  %6402 = vst [vmem:[#allocation4 + $0x130] sm:$0xff] %v15297_v26  ;;  %v6216_v12 = vrot.slane %v6214_v43, 7  ;;  %v6339_v50 = vrot.slane %v6217_v56, 1  ;;  %6842 = vmatprep.mubr.bf16.mxu0 %v15301_v1  ;;  %7316 = vmatprep.mubr.bf16.mxu1 %v15301_v1  ;;  %11643 = vrcp.f32 %v6046_v23  ;;  %v6403_v28 = vld [vmem:[#allocation4 + $0x148] sm:$0xff] }
 0x53e   : > { %11645 = vrcp.f32 %v6043_v18  ;;  %v15372_v9 = vld [vmem:[#allocation4 + $0x128] sm:$0xff] }
 0x53f   : > { %v6219_v24 = vor.u32 %v6217_v56, %v6216_v12  ;;  %v6340_v55 = vor.u32 %v6339_v50, %v6214_v43  ;;  %11647 = vrcp.f32 %v6044_v31  ;;  %v15344_v56 = vld [vmem:[#allocation4 + $0xf8] sm:$0xff] }
 0x541   : > { %v11636_v59 = vpop.eup %11635  ;;  %v15309_v3 = vsel %vm12406_vm3, %v6219_v24, %v6301_v42  ;;  %v15313_v47 = vsel %vm12740_vm6, %v6340_v55, %v6397_v61  ;;  %v6316_v24 = vld [vmem:[#allocation4 + $0x180] sm:$0xff]  ;;  %v6412_v55 = vld [vmem:[#allocation4 + $0x190] sm:$0xff] }
 0x542   : > { %v11638_v32 = vpop.eup %11637  ;;  %6303 = vst [vmem:[#allocation4 + $0x108] sm:$0xff] %v15309_v3  ;;  %6399 = vst [vmem:[#allocation4 + $0x118] sm:$0xff] %v15313_v47  ;;  %v6124_v16 = vpack.c.bf16 %v11636_v59, %v11634_v0 }
 0x543   : > { %v11640_v40 = vpop.eup %11639 }
 0x544   : > { %6140 = vst.msk [vmem:[#allocation4 + $0x158] sm:$0xff] %vm594_vm0, %v6124_v16  ;;  %v6235_v44 = vshrl.u32 %v6124_v16, 16  ;;  %v6238_v46 = vshll.u32 %v6124_v16, 16  ;;  %v6123_v45 = vpack.c.bf16 %v11640_v40, %v11638_v32  ;;  %6843 = vmatmul.mubr.bf16.gmra.mrb[236].mxu0 %v15202_v5  ;;  %7317 = vmatmul.mubr.bf16.gmra.mrb[16].mxu1 %v15202_v5  ;;  %v11642_v27 = vpop.eup %11641  ;;  %v6406_v5 = vld [vmem:[#allocation4 + $0x160] sm:$0xff]  ;;  %v6313_v16 = vld [vmem:[#allocation4 + $0x168] sm:$0xff]  ;;  %v6409_v40 = vld [vmem:[#allocation4 + $0x178] sm:$0xff] }
 0x545   : > { %6850 = vmatprep.mubr.bf16.mxu0 %v15320_v30  ;;  %7324 = vmatprep.mubr.bf16.mxu1 %v15320_v30 }
 0x546   : > { %v6237_v22 = vrot.slane %v6235_v44, 7  ;;  %v6345_v60 = vrot.slane %v6238_v46, 1  ;;  %6139 = vst.msk [vmem:[#allocation4 + $0x140] sm:$0xff] %vm594_vm0, %v6123_v45  ;;  %v6228_v8 = vshrl.u32 %v6123_v45, 16  ;;  %v6231_v7 = vshll.u32 %v6123_v45, 16  ;;  %v15365_v45 = vld [vmem:[#allocation4 + $0x110] sm:$0xff] }
 0x547   : > { %v11644_v19 = vpop.eup %11643 }
 0x548   : > { %v6240_v11 = vor.u32 %v6238_v46, %v6237_v22  ;;  %v6346_v29 = vor.u32 %v6345_v60, %v6235_v44  ;;  %v6230_v53 = vrot.slane %v6228_v8, 7  ;;  %v6343_v62 = vrot.slane %v6231_v7, 1  ;;  %v11646_v33 = vpop.eup %11645 }
 0x549   : > { %v6126_v58 = vpack.c.bf16 %v11644_v19, %v11642_v27  ;;  %v11648_v15 = vpop.eup %11647 }
 0x54a   : > { %v15327_v51 = vsel %vm12406_vm3, %v6240_v11, %v6310_v35  ;;  %v15331_v17 = vsel %vm12740_vm6, %v6346_v29, %v6406_v5  ;;  %v6233_v2 = vor.u32 %v6231_v7, %v6230_v53  ;;  %v6344_v10 = vor.u32 %v6343_v62, %v6228_v8  ;;  %v6515_v11 = vld [vmem:[#allocation4 + $0x28] sm:$0xff]  ;;  %v15402_v53 = vld [vmem:[#allocation4 + $0x40] sm:$0xff]  ;;  %v15405_v62 = vld [vmem:[#allocation4 + $0x58] sm:$0xff] }
 0x54b   : > { %6312 = vst [vmem:[#allocation4 + $0x150] sm:$0xff] %v15327_v51  ;;  %6408 = vst [vmem:[#allocation4 + $0x160] sm:$0xff] %v15331_v17  ;;  %v6249_v48 = vshrl.u32 %v6126_v58, 16  ;;  %v6252_v63 = vshll.u32 %v6126_v58, 16  ;;  %v6125_v43 = vpack.c.bf16 %v11648_v15, %v11646_v33  ;;  %v15386_v27 = vld [vmem:[#allocation4 + $0x158] sm:$0xff]  ;;  %v11362_v29 = vld [vmem:[%s15928_s4 + $0x88] sm:$0xff]  }
 0x54c   : > { %6142 = vst.msk [vmem:[#allocation4 + $0x188] sm:$0xff] %vm594_vm0, %v6126_v58  ;;  %v6308_v41 = vsel %vm12406_vm3, %v6233_v2, %v6307_v6  ;;  %v15340_v13 = vsel %vm12740_vm6, %v6344_v10, %v6403_v28  ;;  %6851 = vmatmul.mubr.bf16.gmra.mrb[240].mxu0 %v15281_v54  ;;  %7325 = vmatmul.mubr.bf16.gmra.mrb[20].mxu1 %v15281_v54  ;;  %v11363_v35 = vld [vmem:[%s15928_s4 + $0x90] sm:$0xff]   ;;  %v11364_v5 = vld [vmem:[%s15928_s4 + $0x98] sm:$0xff]   ;;  %v15418_v33 = vld [vmem:[#allocation4 + $0x88] sm:$0xff] }
 0x54d   : > { %6309 = vst [vmem:[#allocation4 + $0x138] sm:$0xff] %v6308_v41  ;;  %6405 = vst [vmem:[#allocation4 + $0x148] sm:$0xff] %v15340_v13  ;;  %v6251_v18 = vrot.slane %v6249_v48, 7  ;;  %v6349_v23 = vrot.slane %v6252_v63, 1  ;;  %6858 = vmatprep.mubr.bf16.mxu0 %v15344_v56  ;;  %7332 = vmatprep.mubr.bf16.mxu1 %v15344_v56  ;;  %v6242_v12 = vshrl.u32 %v6125_v43, 16  ;;  %v6245_v50 = vshll.u32 %v6125_v43, 16 }
 0x54e   : > { %6141 = vst.msk [vmem:[#allocation4 + $0x170] sm:$0xff] %vm594_vm0, %v6125_v43  ;;  %v15378_v20 = vld [vmem:[#allocation4 + $0x140] sm:$0xff]  ;;  %v15415_v58 = vld [vmem:[#allocation4 + $0x70] sm:$0xff]  ;;  %v11368_v15 = vld [vmem:[%s15928_s4 + $0xb8] sm:$0xff]  }
 0x54f   : > { %v6254_v57 = vor.u32 %v6252_v63, %v6251_v18  ;;  %v6350_v0 = vor.u32 %v6349_v23, %v6249_v48  ;;  %v6244_v54 = vrot.slane %v6242_v12, 7  ;;  %v6347_v31 = vrot.slane %v6245_v50, 1  ;;  %v15427_v2 = vld [vmem:[#allocation4 + $0xa0] sm:$0xff]  ;;  %v11367_v10 = vld [vmem:[%s15928_s4 + $0xb0] sm:$0xff]   ;;  %v11372_v6 = vld [vmem:[%s15928_s4 + $0x188] sm:$0xff]  }
 0x550   : > { %v11373_v28 = vld [vmem:[%s15928_s4 + $0x1d0] sm:$0xff]   ;;  %v11375_v63 = vld [vmem:[%s15928_s4 + $0x1d8] sm:$0xff]   ;;  %v11377_v43 = vld [vmem:[%s15928_s4 + $0x1e0] sm:$0xff]  }
 0x551   : > { %v6317_v42 = vsel %vm12406_vm3, %v6254_v57, %v6316_v24  ;;  %v15354_v61 = vsel %vm12740_vm6, %v6350_v0, %v6412_v55  ;;  %v6247_v59 = vor.u32 %v6245_v50, %v6244_v54  ;;  %v6348_v32 = vor.u32 %v6347_v31, %v6242_v12  ;;  %v11374_v48 = vld [vmem:[%s15928_s4 + $0x190] sm:$0xff]   ;;  %v11378_v18 = vld [vmem:[%s15928_s4 + $0x1a0] sm:$0xff]   ;;  %v11379_v23 = vld [vmem:[%s15928_s4 + $0x1e8] sm:$0xff]  }
 0x552   : > { %6318 = vst [vmem:[#allocation4 + $0x180] sm:$0xff] %v6317_v42  ;;  %6414 = vst [vmem:[#allocation4 + $0x190] sm:$0xff] %v15354_v61  ;;  %v11380_v12 = vld [vmem:[%s15928_s4 + $0x1a8] sm:$0xff]   ;;  %v11381_v50 = vld [vmem:[%s15928_s4 + $0x1f0] sm:$0xff]  }
 0x553   : > { %v6314_v44 = vsel %vm12406_vm3, %v6247_v59, %v6313_v16  ;;  %v15361_v46 = vsel %vm12740_vm6, %v6348_v32, %v6409_v40  ;;  %v15396_v19 = vld [vmem:[#allocation4 + $0x188] sm:$0xff]  ;;  %v11382_v59 = vld [vmem:[%s15928_s4 + $0x1b0] sm:$0xff]   ;;  %v11383_v40 = vld [vmem:[%s15928_s4 + $0x1f8] sm:$0xff]  }
 0x554   : > { %6859 = vmatmul.mubr.bf16.gmra.mrb[244].mxu0 %v15265_v34  ;;  %7333 = vmatmul.mubr.bf16.gmra.mrb[24].mxu1 %v15265_v34  ;;  %6315 = vst [vmem:[#allocation4 + $0x168] sm:$0xff] %v6314_v44  ;;  %6411 = vst [vmem:[#allocation4 + $0x178] sm:$0xff] %v15361_v46 }
 0x555   : > { %6866 = vmatprep.mubr.bf16.mxu0 %v15365_v45  ;;  %7340 = vmatprep.mubr.bf16.mxu1 %v15365_v45 }
 0x557   : > { %v9918_v34 = vpop.f32.mrb[240].mxu1 }
 0x558   : > { %v9919_v22 = vpop.f32.mrb[241].mxu1 }
 0x559   : > { %v15382_v60 = vadd.f32 %v9919_v22, %v9918_v34 }
 0x55c   : > { %6867 = vmatmul.mubr.bf16.gmra.mrb[248].mxu0 %v15309_v3  ;;  %7341 = vmatmul.mubr.bf16.gmra.mrb[28].mxu1 %v15309_v3  ;;  %v9921_v3 = vpop.f32.mrb[242].mxu1 }
 0x55d   : > { %6874 = vmatprep.mubr.bf16.mxu0 %v15372_v9  ;;  %7348 = vmatprep.mubr.bf16.mxu1 %v15372_v9  ;;  %v9922_v8 = vpop.f32.mrb[243].mxu1 }
 0x55e   : > { %v15384_v7 = vadd.f32 %v9922_v8, %v9921_v3  ;;  %v15502_v3 = vld [vmem:[#allocation4 + $0xb8] sm:$0xff]  ;;  %v15505_v8 = vld [vmem:[#allocation4 + $0xd0] sm:$0xff] }
 0x564   : > { %6875 = vmatmul.mubr.bf16.gmra.mrb[252].mxu0 %v15293_v14  ;;  %7349 = vmatmul.mubr.bf16.gmra.mrb[32].mxu1 %v15293_v14  ;;  %v15392_v14 = vld [vmem:[#allocation4 + $0x170] sm:$0xff] }
 0x565   : > { %6882 = vmatprep.mubr.bf16.mxu0 %v15378_v20  ;;  %7356 = vmatprep.mubr.bf16.mxu1 %v15378_v20 }
 0x56c   : > { %6883 = vmatmul.mubr.bf16.gmra.mrb[0].mxu0 %v6308_v41  ;;  %7357 = vmatmul.mubr.bf16.gmra.mrb[36].mxu1 %v6308_v41  ;;  %v11376_v41 = vld [vmem:[%s15928_s4 + $0x198] sm:$0xff]  }
 0x56d   : > { %6890 = vmatprep.mubr.bf16.mxu0 %v15386_v27  ;;  %7364 = vmatprep.mubr.bf16.mxu1 %v15386_v27 }
 0x574   : > { %6891 = vmatmul.mubr.bf16.gmra.mrb[4].mxu0 %v15327_v51  ;;  %7365 = vmatmul.mubr.bf16.gmra.mrb[40].mxu1 %v15327_v51  ;;  %v11366_v51 = vld [vmem:[%s15928_s4 + $0xa8] sm:$0xff]  }
 0x575   : > { %6898 = vmatprep.mubr.bf16.mxu0 %v15392_v14  ;;  %7372 = vmatprep.mubr.bf16.mxu1 %v15392_v14 }
 0x57c   : > { %6899 = vmatmul.mubr.bf16.gmra.mrb[8].mxu0 %v6314_v44  ;;  %7373 = vmatmul.mubr.bf16.gmra.mrb[44].mxu1 %v6314_v44 }
 0x57d   : > { %6906 = vmatprep.mubr.bf16.mxu0 %v15396_v19 }
 0x584   : > { %6907 = vmatmul.mubr.bf16.gmra.mrb[12].mxu0 %v6317_v42 }
 0x585   : > { %10478 = vmatprep.mubr.bf16.mxu0 %v6515_v11 }
 0x58c   : > { %10479 = vmatmul.mubr.bf16.vlgmr.msra.gmra.mrb[16].mxu0 %v15402_v53 }
 0x58d   : > { %10511 = vmatpush3.bf16.msra.mxu0 %v15249_v39  ;;  %10482 = vmatprep.mubr.bf16.mxu0 %v15405_v62  ;;  %v11365_v39 = vld [vmem:[%s15928_s4 + $0xa0] sm:$0xff]  }
 0x58e   : > { %10512 = vmatprep.subr.bf16.mxu0 %v11362_v29 }
 0x591   : > { %10513 = vmatpush3.bf16.msra.mxu0 %v11362_v29  ;;  %v11384_v29 = vld [vmem:[%s15928_s4 + $0x1b8] sm:$0xff]  }
 0x592   : > { %10514 = vmatprep.subr.bf16.mxu0 %v11363_v35 }
 0x594   : > { %10483 = vmatmul.mubr.bf16.gmra.mrb[20].mxu0 %v15415_v58 }
 0x595   : > { %10486 = vmatprep.mubr.bf16.mxu0 %v15418_v33  ;;  %10515 = vmatpush3.bf16.msra.mxu0 %v11363_v35 }
 0x596   : > { %10516 = vmatprep.subr.bf16.mxu0 %v11364_v5 }
 0x599   : > { %10517 = vmatpush3.bf16.msra.mxu0 %v11364_v5 }
 0x59a   : > { %10518 = vmatprep.subr.bf16.mxu0 %v11365_v39 }
 0x59c   : > { %10487 = vmatmul.mubr.bf16.gmra.mrb[24].mxu0 %v15427_v2 }
 0x59d   : > { %10490 = vmatprep.mubr.bf16.mxu0 %v15216_v4  ;;  %10519 = vmatpush3.bf16.msra.mxu0 %v11365_v39  ;;  %v11369_v4 = vld [vmem:[%s15928_s4 + $0x1c0] sm:$0xff]  }
 0x59e   : > { %10520 = vmatprep.subr.bf16.mxu0 %v11366_v51 }
 0x5a1   : > { %10521 = vmatpush3.bf16.msra.mxu0 %v11366_v51 }
 0x5a2   : > { %10522 = vmatprep.subr.bf16.mxu0 %v11367_v10 }
 0x5a4   : > { %10491 = vmatmul.mubr.bf16.gmra.mrb[28].mxu0 %v15206_v37  ;;  %v15449_v37 = vld [vmem:[#allocation2] sm:$0xff] }
 0x5a5   : > { %10494 = vmatprep.mubr.bf16.mxu0 %v15285_v38  ;;  %10523 = vmatpush3.bf16.msra.mxu0 %v11367_v10  ;;  %v11371_v38 = vld [vmem:[%s15928_s4 + $0x1c8] sm:$0xff]  }
 0x5a6   : > { %10524 = vmatprep.subr.bf16.mxu0 %v11368_v15 }
 0x5a9   : > { %10525 = vmatpush3.bf16.msra.mxu0 %v11368_v15 }
 0x5aa   : > { %10038 = vmatprep.subr.bf16.mxu0 %v11369_v4 }
 0x5ac   : > { %10495 = vmatmul.mubr.bf16.gmra.mrb[32].mxu0 %v15269_v49  ;;  %v11370_v49 = vld [vmem:[%s15928_s4 + $0x180] sm:$0xff]  }
 0x5ad   : > { %10498 = vmatprep.mubr.bf16.mxu0 %v15313_v47 }
 0x5b4   : > { %10499 = vmatmul.mubr.bf16.gmra.mrb[36].mxu0 %v15297_v26 }
 0x5b5   : > { %10502 = vmatprep.mubr.bf16.mxu0 %v15340_v13 }
 0x5bc   : > { %10503 = vmatmul.mubr.bf16.gmra.mrb[40].mxu0 %v15331_v17 }
 0x5bd   : > { %10506 = vmatprep.mubr.bf16.mxu0 %v15361_v46 }
 0x5c4   : > { %10507 = vmatmul.mubr.bf16.gmra.mrb[44].mxu0 %v15354_v61 }
 0x5c5   : > { %10526 = vmatprep.mubr.bf16.mxu0 %v15449_v37 }
 0x5cc   : > { %10527 = vmatmul.mubr.bf16.vlgmr.msra.gmra.mrb[16].mxu0 %v6515_v11 }
 0x5cd   : > { %10039 = vmatpush3.bf16.msra.mxu0 %v11370_v49  ;;  %10530 = vmatprep.mubr.bf16.mxu0 %v15402_v53 }
 0x5ce   : > { %10040 = vmatprep.subr.bf16.mxu0 %v11371_v38 }
 0x5d1   : > { %10041 = vmatpush3.bf16.msra.mxu0 %v11372_v6 }
 0x5d2   : > { %10042 = vmatprep.subr.bf16.mxu0 %v11373_v28 }
 0x5d4   : > { %10531 = vmatmul.mubr.bf16.gmra.mrb[20].mxu0 %v15405_v62 }
 0x5d5   : > { %10534 = vmatprep.mubr.bf16.mxu0 %v15415_v58  ;;  %10043 = vmatpush3.bf16.msra.mxu0 %v11374_v48 }
 0x5d6   : > { %10044 = vmatprep.subr.bf16.mxu0 %v11375_v63  ;;  %v15522_v63 = vld [vmem:[#allocation4 + $0xe8] sm:$0xff] }
 0x5d9   : > { %10045 = vmatpush3.bf16.msra.mxu0 %v11376_v41  ;;  %v15525_v41 = vld [vmem:[#allocation4 + $0x100] sm:$0xff] }
 0x5da   : > { %10046 = vmatprep.subr.bf16.mxu0 %v11377_v43 }
 0x5dc   : > { %10535 = vmatmul.mubr.bf16.gmra.mrb[24].mxu0 %v15418_v33 }
 0x5dd   : > { %10538 = vmatprep.mubr.bf16.mxu0 %v15427_v2  ;;  %10047 = vmatpush3.bf16.msra.mxu0 %v11378_v18 }
 0x5de   : > { %10048 = vmatprep.subr.bf16.mxu0 %v11379_v23 }
 0x5df   : > { %v9782_v57 = vpop.f32.mrb[208].mxu0  ;;  %v9924_v0 = vpop.f32.mrb[244].mxu1 }
 0x5e0   : > { %v9783_v24 = vpop.f32.mrb[209].mxu0  ;;  %v9925_v55 = vpop.f32.mrb[245].mxu1 }
 0x5e1   : > { %v9784_v54 = vadd.f32 %v9783_v24, %v9782_v57  ;;  %v9926_v31 = vadd.f32 %v9925_v55, %v9924_v0  ;;  %v9785_v42 = vpop.f32.mrb[210].mxu0  ;;  %v9927_v61 = vpop.f32.mrb[246].mxu1  ;;  %10049 = vmatpush3.bf16.msra.mxu0 %v11380_v12 }
 0x5e2   : > { %v9786_v32 = vpop.f32.mrb[211].mxu0  ;;  %v9928_v16 = vpop.f32.mrb[247].mxu1  ;;  %10050 = vmatprep.subr.bf16.mxu0 %v11381_v50 }
 0x5e3   : > { %v15500_v44 = vadd.f32 %v15382_v60, %v9784_v54  ;;  %v9787_v34 = vadd.f32 %v9786_v32, %v9785_v42  ;;  %v9929_v22 = vadd.f32 %v9928_v16, %v9927_v61  ;;  %v15517_v60 = vld [vmem:[%s15928_s4 + $0x200] sm:$0xff]  }
 0x5e4   : > { %10539 = vmatmul.mubr.bf16.gmra.mrb[28].mxu0 %v15502_v3 }
 0x5e5   : > { %v15508_v11 = vadd.f32 %v15384_v7, %v9787_v34  ;;  %10542 = vmatprep.mubr.bf16.mxu0 %v15505_v8  ;;  %10051 = vmatpush3.bf16.msra.mxu0 %v11382_v59 }
 0x5e6   : > { %10052 = vmatprep.subr.bf16.mxu0 %v11383_v40 }
 0x5e7   : > { %v9788_v35 = vpop.f32.mrb[212].mxu0  ;;  %v9930_v5 = vpop.f32.mrb[248].mxu1 }
 0x5e8   : > { %v9789_v39 = vpop.f32.mrb[213].mxu0  ;;  %v9931_v51 = vpop.f32.mrb[249].mxu1 }
 0x5e9   : > { %v9790_v10 = vadd.f32 %v9789_v39, %v9788_v35  ;;  %v9932_v7 = vadd.f32 %v9931_v51, %v9930_v5  ;;  %v9791_v15 = vpop.f32.mrb[214].mxu0  ;;  %v9933_v4 = vpop.f32.mrb[250].mxu1  ;;  %10053 = vmatpush3.bf16.msra.mxu0 %v11384_v29 }
 0x5ea   : > { %v9792_v49 = vpop.f32.mrb[215].mxu0  ;;  %v9934_v38 = vpop.f32.mrb[251].mxu1  ;;  %10558 = vmatprep.subr.bf16.mxu0 %v15517_v60 }
 0x5eb   : > { %v15520_v6 = vadd.f32 %v9926_v31, %v9790_v10  ;;  %v9793_v28 = vadd.f32 %v9792_v49, %v9791_v15  ;;  %v9935_v48 = vadd.f32 %v9934_v38, %v9933_v4 }
 0x5ec   : > { %10543 = vmatmul.mubr.bf16.gmra.mrb[32].mxu0 %v15522_v63 }
 0x5ed   : > { %v15527_v43 = vadd.f32 %v9929_v22, %v9793_v28  ;;  %10546 = vmatprep.mubr.bf16.mxu0 %v15525_v41 }
 0x5ef   : > { %v9794_v18 = vpop.f32.mrb[216].mxu0  ;;  %v9936_v23 = vpop.f32.mrb[252].mxu1 }
 0x5f0   : > { %v9795_v12 = vpop.f32.mrb[217].mxu0  ;;  %v9937_v50 = vpop.f32.mrb[253].mxu1 }
 0x5f1   : > { %v9796_v57 = vadd.f32 %v9795_v12, %v9794_v18  ;;  %v9938_v0 = vadd.f32 %v9937_v50, %v9936_v23  ;;  %v9797_v24 = vpop.f32.mrb[218].mxu0  ;;  %v9939_v55 = vpop.f32.mrb[254].mxu1 }
 0x5f2   : > { %v9798_v54 = vpop.f32.mrb[219].mxu0  ;;  %v9940_v31 = vpop.f32.mrb[255].mxu1 }
 0x5f3   : > { %v15530_v42 = vadd.f32 %v9932_v7, %v9796_v57  ;;  %v9799_v61 = vadd.f32 %v9798_v54, %v9797_v24  ;;  %v9941_v59 = vadd.f32 %v9940_v31, %v9939_v55  ;;  %v11719_v54 = vld [vmem:[#allocation4 + $0x38] sm:$0xff] }
 0x5f4   : > { %10547 = vmatmul.mubr.bf16.gmra.mrb[36].mxu0 %v15313_v47 }
 0x5f5   : > { %v15533_v32 = vadd.f32 %v9935_v48, %v9799_v61  ;;  %10550 = vmatprep.mubr.bf16.mxu0 %v15297_v26 }
 0x5f7   : > { %v9800_v16 = vpop.f32.mrb[220].mxu0  ;;  %v9942_v40 = vpop.f32.mrb[0].mxu1 }
 0x5f8   : > { %v9801_v34 = vpop.f32.mrb[221].mxu0  ;;  %v9943_v22 = vpop.f32.mrb[1].mxu1 }
 0x5f9   : > { %v9802_v29 = vadd.f32 %v9801_v34, %v9800_v16  ;;  %v9944_v35 = vadd.f32 %v9943_v22, %v9942_v40  ;;  %v9803_v5 = vpop.f32.mrb[222].mxu0  ;;  %v9945_v39 = vpop.f32.mrb[2].mxu1 }
 0x5fa   : > { %v9804_v51 = vpop.f32.mrb[223].mxu0  ;;  %v9946_v10 = vpop.f32.mrb[3].mxu1 }
 0x5fb   : > { %v15536_v7 = vadd.f32 %v9938_v0, %v9802_v29  ;;  %v9805_v15 = vadd.f32 %v9804_v51, %v9803_v5  ;;  %v9947_v4 = vadd.f32 %v9946_v10, %v9945_v39  ;;  %v11720_v10 = vld [vmem:[#allocation4 + $0x30] sm:$0xff] }
 0x5fc   : > { %10551 = vmatmul.mubr.bf16.gmra.mrb[40].mxu0 %v15340_v13 }
 0x5fd   : > { %v15539_v47 = vadd.f32 %v9941_v59, %v9805_v15  ;;  %10554 = vmatprep.mubr.bf16.mxu0 %v15331_v17 }
 0x5ff   : > { %v9806_v26 = vpop.f32.mrb[224].mxu0  ;;  %v9948_v49 = vpop.f32.mrb[4].mxu1 }
 0x600   : > { %v9807_v38 = vpop.f32.mrb[225].mxu0  ;;  %v9949_v28 = vpop.f32.mrb[5].mxu1 }
 0x601   : > { %v9808_v48 = vadd.f32 %v9807_v38, %v9806_v26  ;;  %v9950_v18 = vadd.f32 %v9949_v28, %v9948_v49  ;;  %v9809_v23 = vpop.f32.mrb[226].mxu0  ;;  %v9951_v12 = vpop.f32.mrb[6].mxu1  ;;  %v11387_v26 = vld [vmem:[%s15928_s4 + $0x210] sm:$0xff]  }
 0x602   : > { %v9810_v50 = vpop.f32.mrb[227].mxu0  ;;  %v9952_v57 = vpop.f32.mrb[7].mxu1 }
 0x603   : > { %v15542_v0 = vadd.f32 %v9944_v35, %v9808_v48  ;;  %v9811_v24 = vadd.f32 %v9810_v50, %v9809_v23  ;;  %v9953_v55 = vadd.f32 %v9952_v57, %v9951_v12  ;;  %v11386_v35 = vld [vmem:[%s15928_s4 + $0x208] sm:$0xff]  }
 0x604   : > { %10555 = vmatmul.mubr.bf16.gmra.mrb[44].mxu0 %v15361_v46 }
 0x605   : > { %v15545_v13 = vadd.f32 %v9947_v4, %v9811_v24  ;;  %7816 = vmatprep.mubr.bf16.mxu0 %v11719_v54  ;;  %v11721_v4 = vld [vmem:[#allocation4 + $0x50] sm:$0xff] }
 0x607   : > { %v9812_v17 = vpop.f32.mrb[228].mxu0  ;;  %v9954_v31 = vpop.f32.mrb[8].mxu1 }
 0x608   : > { %v9813_v61 = vpop.f32.mrb[229].mxu0  ;;  %v9955_v59 = vpop.f32.mrb[9].mxu1 }
 0x609   : > { %v9814_v16 = vadd.f32 %v9813_v61, %v9812_v17  ;;  %v9956_v40 = vadd.f32 %v9955_v59, %v9954_v31  ;;  %v9815_v34 = vpop.f32.mrb[230].mxu0  ;;  %v9957_v22 = vpop.f32.mrb[10].mxu1  ;;  %v7546_v31 = vld [vmem:[#allocation4 + $0x48] sm:$0xff]  ;;  %v11389_v59 = vld [vmem:[%s15928_s4 + $0x220] sm:$0xff]  }
 0x60a   : > { %v9816_v29 = vpop.f32.mrb[231].mxu0  ;;  %v9958_v5 = vpop.f32.mrb[11].mxu1 }
 0x60b   : > { %v15550_v39 = vadd.f32 %v9950_v18, %v9814_v16  ;;  %v9817_v46 = vadd.f32 %v9816_v29, %v9815_v34  ;;  %v9959_v51 = vadd.f32 %v9958_v5, %v9957_v22 }
 0x60c   : > { %7817 = vmatmul.mubr.bf16.vlgmr.msra.gmra.mrb[48].mxu0 %v11720_v10 }
 0x60d   : > { %v15552_v15 = vadd.f32 %v9953_v55, %v9817_v46  ;;  %10559 = vmatpush3.bf16.msra.mxu0 %v15517_v60  ;;  %7824 = vmatprep.mubr.bf16.mxu0 %v11721_v4  ;;  %v11388_v60 = vld [vmem:[%s15928_s4 + $0x218] sm:$0xff]  }
 0x60e   : > { %10560 = vmatprep.subr.bf16.mxu0 %v11386_v35 }
 0x60f   : > { %v9818_v49 = vpop.f32.mrb[232].mxu0  ;;  %v9960_v38 = vpop.f32.mrb[12].mxu1 }
 0x610   : > { %v9819_v28 = vpop.f32.mrb[233].mxu0  ;;  %v9961_v48 = vpop.f32.mrb[13].mxu1 }
 0x611   : > { %v9820_v18 = vadd.f32 %v9819_v28, %v9818_v49  ;;  %v9962_v23 = vadd.f32 %v9961_v48, %v9960_v38  ;;  %v9821_v12 = vpop.f32.mrb[234].mxu0  ;;  %v9963_v50 = vpop.f32.mrb[14].mxu1  ;;  %10561 = vmatpush3.bf16.msra.mxu0 %v11386_v35  ;;  %v7549_v38 = vld [vmem:[#allocation4 + $0x60] sm:$0xff]  ;;  %v11391_v48 = vld [vmem:[%s15928_s4 + $0x230] sm:$0xff]  }
 0x612   : > { %v9822_v57 = vpop.f32.mrb[235].mxu0  ;;  %v9964_v24 = vpop.f32.mrb[15].mxu1  ;;  %10562 = vmatprep.subr.bf16.mxu0 %v11387_v26 }
 0x613   : > { %v15561_v55 = vadd.f32 %v9956_v40, %v9820_v18  ;;  %v9823_v54 = vadd.f32 %v9822_v57, %v9821_v12  ;;  %v9965_v17 = vadd.f32 %v9964_v24, %v9963_v50 }
 0x614   : > { %7825 = vmatmul.mubr.bf16.gmra.mrb[52].mxu0 %v7546_v31 }
 0x615   : > { %v15563_v61 = vadd.f32 %v9959_v51, %v9823_v54  ;;  %7832 = vmatprep.mubr.bf16.mxu0 %v15188_v36  ;;  %10563 = vmatpush3.bf16.msra.mxu0 %v11387_v26  ;;  %v11390_v36 = vld [vmem:[%s15928_s4 + $0x228] sm:$0xff]  }
 0x616   : > { %10564 = vmatprep.subr.bf16.mxu0 %v11388_v60 }
 0x617   : > { %v9824_v16 = vpop.f32.mrb[236].mxu0  ;;  %v9966_v34 = vpop.f32.mrb[16].mxu1 }
 0x618   : > { %v9825_v22 = vpop.f32.mrb[237].mxu0  ;;  %v9967_v29 = vpop.f32.mrb[17].mxu1 }
 0x619   : > { %v9826_v40 = vadd.f32 %v9825_v22, %v9824_v16  ;;  %v9968_v5 = vadd.f32 %v9967_v29, %v9966_v34  ;;  %v9827_v35 = vpop.f32.mrb[238].mxu0  ;;  %v9969_v46 = vpop.f32.mrb[18].mxu1  ;;  %10565 = vmatpush3.bf16.msra.mxu0 %v11388_v60  ;;  %v7552_v22 = vld [vmem:[#allocation4 + $0x78] sm:$0xff] }
 0x61a   : > { %v9828_v10 = vpop.f32.mrb[239].mxu0  ;;  %v9970_v51 = vpop.f32.mrb[19].mxu1  ;;  %10566 = vmatprep.subr.bf16.mxu0 %v11389_v59 }
 0x61b   : > { %v15572_v4 = vadd.f32 %v9962_v23, %v9826_v40  ;;  %v9829_v26 = vadd.f32 %v9828_v10, %v9827_v35  ;;  %v9971_v49 = vadd.f32 %v9970_v51, %v9969_v46 }
 0x61c   : > { %7833 = vmatmul.mubr.bf16.gmra.mrb[56].mxu0 %v7549_v38 }
 0x61d   : > { %v15574_v28 = vadd.f32 %v9965_v17, %v9829_v26  ;;  %7840 = vmatprep.mubr.bf16.mxu0 %v15236_v25  ;;  %10567 = vmatpush3.bf16.msra.mxu0 %v11389_v59  ;;  %v11392_v25 = vld [vmem:[%s15928_s4 + $0x238] sm:$0xff]  }
 0x61e   : > { %10568 = vmatprep.subr.bf16.mxu0 %v11390_v36 }
 0x61f   : > { %v9830_v18 = vpop.f32.mrb[240].mxu0  ;;  %v9972_v12 = vpop.f32.mrb[20].mxu1 }
 0x620   : > { %v9831_v50 = vpop.f32.mrb[241].mxu0  ;;  %v9973_v57 = vpop.f32.mrb[21].mxu1 }
 0x621   : > { %v9832_v23 = vadd.f32 %v9831_v50, %v9830_v18  ;;  %v9974_v24 = vadd.f32 %v9973_v57, %v9972_v12  ;;  %v9833_v60 = vpop.f32.mrb[242].mxu0  ;;  %v9975_v54 = vpop.f32.mrb[22].mxu1  ;;  %10569 = vmatpush3.bf16.msra.mxu0 %v11390_v36  ;;  %v7555_v57 = vld [vmem:[#allocation4 + $0x90] sm:$0xff] }
 0x622   : > { %v9834_v31 = vpop.f32.mrb[243].mxu0  ;;  %v9976_v17 = vpop.f32.mrb[23].mxu1  ;;  %10570 = vmatprep.subr.bf16.mxu0 %v11391_v48 }
 0x623   : > { %v15583_v59 = vadd.f32 %v9968_v5, %v9832_v23  ;;  %v9835_v16 = vadd.f32 %v9834_v31, %v9833_v60  ;;  %v9977_v34 = vadd.f32 %v9976_v17, %v9975_v54 }
 0x624   : > { %7841 = vmatmul.mubr.bf16.gmra.mrb[60].mxu0 %v7552_v22 }
 0x625   : > { %v15585_v29 = vadd.f32 %v9971_v49, %v9835_v16  ;;  %7848 = vmatprep.mubr.bf16.mxu0 %v15258_v52  ;;  %10571 = vmatpush3.bf16.msra.mxu0 %v11391_v48 }
 0x626   : > { %10572 = vmatprep.subr.bf16.mxu0 %v11392_v25 }
 0x627   : > { %v9836_v40 = vpop.f32.mrb[244].mxu0  ;;  %v9978_v35 = vpop.f32.mrb[24].mxu1 }
 0x628   : > { %v9837_v46 = vpop.f32.mrb[245].mxu0  ;;  %v9979_v10 = vpop.f32.mrb[25].mxu1 }
 0x629   : > { %v9838_v51 = vadd.f32 %v9837_v46, %v9836_v40  ;;  %v9980_v36 = vadd.f32 %v9979_v10, %v9978_v35  ;;  %v9839_v26 = vpop.f32.mrb[246].mxu0  ;;  %v9981_v38 = vpop.f32.mrb[26].mxu1  ;;  %10573 = vmatpush3.bf16.msra.mxu0 %v11392_v25  ;;  %v7558_v10 = vld [vmem:[#allocation4 + $0xa8] sm:$0xff] }
 0x62a   : > { %v9840_v5 = vpop.f32.mrb[247].mxu0  ;;  %v9982_v18 = vpop.f32.mrb[27].mxu1 }
 0x62b   : > { %v15588_v12 = vadd.f32 %v9974_v24, %v9838_v51  ;;  %v9841_v50 = vadd.f32 %v9840_v5, %v9839_v26  ;;  %v9983_v49 = vadd.f32 %v9982_v18, %v9981_v38 }
 0x62c   : > { %7849 = vmatmul.mubr.bf16.gmra.mrb[64].mxu0 %v7555_v57 }
 0x62d   : > { %v15590_v52 = vadd.f32 %v9977_v34, %v9841_v50  ;;  %7856 = vmatprep.mubr.bf16.mxu0 %v15275_v21 }
 0x62f   : > { %v9842_v48 = vpop.f32.mrb[248].mxu0  ;;  %v9984_v23 = vpop.f32.mrb[28].mxu1 }
 0x630   : > { %v9843_v60 = vpop.f32.mrb[249].mxu0  ;;  %v9985_v54 = vpop.f32.mrb[29].mxu1 }
 0x631   : > { %v9844_v31 = vadd.f32 %v9843_v60, %v9842_v48  ;;  %v9986_v17 = vadd.f32 %v9985_v54, %v9984_v23  ;;  %v9845_v16 = vpop.f32.mrb[250].mxu0  ;;  %v9987_v25 = vpop.f32.mrb[30].mxu1 }
 0x632   : > { %v9846_v22 = vpop.f32.mrb[251].mxu0  ;;  %v9988_v40 = vpop.f32.mrb[31].mxu1 }
 0x633   : > { %v15593_v24 = vadd.f32 %v9980_v36, %v9844_v31  ;;  %v9847_v35 = vadd.f32 %v9846_v22, %v9845_v16  ;;  %v9989_v46 = vadd.f32 %v9988_v40, %v9987_v25  ;;  %v7561_v31 = vld [vmem:[#allocation4 + $0xc0] sm:$0xff] }
 0x634   : > { %7857 = vmatmul.mubr.bf16.gmra.mrb[68].mxu0 %v7558_v10 }
 0x635   : > { %v15595_v34 = vadd.f32 %v9983_v49, %v9847_v35  ;;  %7864 = vmatprep.mubr.bf16.mxu0 %v15301_v1 }
 0x637   : > { %v9848_v21 = vpop.f32.mrb[252].mxu0  ;;  %v9990_v51 = vpop.f32.mrb[32].mxu1 }
 0x638   : > { %v9849_v26 = vpop.f32.mrb[253].mxu0  ;;  %v9991_v38 = vpop.f32.mrb[33].mxu1 }
 0x639   : > { %v9850_v5 = vadd.f32 %v9849_v26, %v9848_v21  ;;  %v9992_v18 = vadd.f32 %v9991_v38, %v9990_v51  ;;  %v9851_v50 = vpop.f32.mrb[254].mxu0  ;;  %v9993_v57 = vpop.f32.mrb[34].mxu1 }
 0x63a   : > { %v9852_v48 = vpop.f32.mrb[255].mxu0  ;;  %v9994_v23 = vpop.f32.mrb[35].mxu1 }
 0x63b   : > { %v15598_v36 = vadd.f32 %v9986_v17, %v9850_v5  ;;  %v9853_v60 = vadd.f32 %v9852_v48, %v9851_v50  ;;  %v9995_v54 = vadd.f32 %v9994_v23, %v9993_v57  ;;  %v7564_v50 = vld [vmem:[#allocation4 + $0xd8] sm:$0xff] }
 0x63c   : > { %7865 = vmatmul.mubr.bf16.gmra.mrb[72].mxu0 %v7561_v31 }
 0x63d   : > { %v15600_v49 = vadd.f32 %v9989_v46, %v9853_v60  ;;  %7872 = vmatprep.mubr.bf16.mxu0 %v15320_v30 }
 0x63f   : > { %v9854_v1 = vpop.f32.mrb[0].mxu0  ;;  %v9996_v16 = vpop.f32.mrb[36].mxu1 }
 0x640   : > { %v9855_v25 = vpop.f32.mrb[1].mxu0  ;;  %v9997_v22 = vpop.f32.mrb[37].mxu1 }
 0x641   : > { %v9856_v40 = vadd.f32 %v9855_v25, %v9854_v1  ;;  %v9998_v35 = vadd.f32 %v9997_v22, %v9996_v16  ;;  %v9857_v10 = vpop.f32.mrb[2].mxu0  ;;  %v9999_v21 = vpop.f32.mrb[38].mxu1 }
 0x642   : > { %v9858_v51 = vpop.f32.mrb[3].mxu0  ;;  %v10000_v26 = vpop.f32.mrb[39].mxu1 }
 0x643   : > { %v15603_v17 = vadd.f32 %v9992_v18, %v9856_v40  ;;  %v9859_v38 = vadd.f32 %v9858_v51, %v9857_v10  ;;  %v10001_v5 = vadd.f32 %v10000_v26, %v9999_v21  ;;  %v7567_v21 = vld [vmem:[#allocation4 + $0xf0] sm:$0xff] }
 0x644   : > { %7873 = vmatmul.mubr.bf16.gmra.mrb[76].mxu0 %v7564_v50 }
 0x645   : > { %v15605_v46 = vadd.f32 %v9995_v54, %v9859_v38  ;;  %7880 = vmatprep.mubr.bf16.mxu0 %v15344_v56 }
 0x647   : > { %16019 = vst [vmem:[#allocation11_spill] sm:$0xff] %v15605_v46  ;;  %v9860_v30 = vpop.f32.mrb[4].mxu0  ;;  %v10002_v57 = vpop.f32.mrb[40].mxu1 }
 0x648   : > { %v9861_v48 = vpop.f32.mrb[5].mxu0  ;;  %v10003_v23 = vpop.f32.mrb[41].mxu1 }
 0x649   : > { %v9862_v60 = vadd.f32 %v9861_v48, %v9860_v30  ;;  %v10004_v31 = vadd.f32 %v10003_v23, %v10002_v57  ;;  %v9863_v1 = vpop.f32.mrb[6].mxu0  ;;  %v10005_v16 = vpop.f32.mrb[42].mxu1 }
 0x64a   : > { %v9864_v25 = vpop.f32.mrb[7].mxu0  ;;  %v10006_v22 = vpop.f32.mrb[43].mxu1 }
 0x64b   : > { %v15608_v18 = vadd.f32 %v9998_v35, %v9862_v60  ;;  %v9865_v40 = vadd.f32 %v9864_v25, %v9863_v1  ;;  %v10007_v10 = vadd.f32 %v10006_v22, %v10005_v16  ;;  %v7570_v16 = vld [vmem:[#allocation4 + $0x108] sm:$0xff] }
 0x64c   : > { %7881 = vmatmul.mubr.bf16.gmra.mrb[80].mxu0 %v7567_v21 }
 0x64d   : > { %v15610_v54 = vadd.f32 %v10001_v5, %v9865_v40  ;;  %7888 = vmatprep.mubr.bf16.mxu0 %v15365_v45 }
 0x64f   : > { %v9866_v56 = vpop.f32.mrb[8].mxu0  ;;  %v10008_v51 = vpop.f32.mrb[44].mxu1 }
 0x650   : > { %v9867_v26 = vpop.f32.mrb[9].mxu0  ;;  %v10009_v38 = vpop.f32.mrb[45].mxu1 }
 0x651   : > { %v9868_v50 = vadd.f32 %v9867_v26, %v9866_v56  ;;  %v10010_v30 = vadd.f32 %v10009_v38, %v10008_v51  ;;  %v9869_v57 = vpop.f32.mrb[10].mxu0  ;;  %v10011_v48 = vpop.f32.mrb[46].mxu1  ;;  %v7573_v26 = vld [vmem:[#allocation4 + $0x120] sm:$0xff] }
 0x652   : > { %v9870_v23 = vpop.f32.mrb[11].mxu0  ;;  %v10012_v46 = vpop.f32.mrb[47].mxu1  ;;  %v7585_v38 = vld [vmem:[#allocation4 + $0x180] sm:$0xff] }
 0x653   : > { %v15613_v35 = vadd.f32 %v10004_v31, %v9868_v50  ;;  %v9871_v60 = vadd.f32 %v9870_v23, %v9869_v57  ;;  %v10013_v1 = vadd.f32 %v10012_v46, %v10011_v48  ;;  %v7576_v46 = vld [vmem:[#allocation4 + $0x138] sm:$0xff] }
 0x654   : > { %7889 = vmatmul.mubr.bf16.gmra.mrb[84].mxu0 %v7570_v16 }
 0x655   : > { %v15615_v5 = vadd.f32 %v10007_v10, %v9871_v60  ;;  %7896 = vmatprep.mubr.bf16.mxu0 %v15372_v9  ;;  %v7579_v10 = vld [vmem:[#allocation4 + $0x150] sm:$0xff]  ;;  %v7582_v9 = vld [vmem:[#allocation4 + $0x168] sm:$0xff] }
 0x657   : > { %v9872_v45 = vpop.f32.mrb[12].mxu0 }
 0x658   : > { %v9873_v25 = vpop.f32.mrb[13].mxu0 }
 0x659   : > { %v9874_v22 = vadd.f32 %v9873_v25, %v9872_v45  ;;  %v9875_v40 = vpop.f32.mrb[14].mxu0 }
 0x65a   : > { %v9876_v21 = vpop.f32.mrb[15].mxu0 }
 0x65b   : > { %v15618_v56 = vadd.f32 %v10010_v30, %v9874_v22  ;;  %v9877_v51 = vadd.f32 %v9876_v21, %v9875_v40 }
 0x65c   : > { %7897 = vmatmul.mubr.bf16.gmra.mrb[88].mxu0 %v7573_v26 }
 0x65d   : > { %v15620_v31 = vadd.f32 %v10013_v1, %v9877_v51  ;;  %7904 = vmatprep.mubr.bf16.mxu0 %v15378_v20  ;;  %v7572_v20 = vld [vmem:[#allocation4 + $0x118] sm:$0xff] }
 0x664   : > { %7905 = vmatmul.mubr.bf16.gmra.mrb[92].mxu0 %v7576_v46 }
 0x665   : > { %7912 = vmatprep.mubr.bf16.mxu0 %v15386_v27  ;;  %v7575_v27 = vld [vmem:[#allocation4 + $0x130] sm:$0xff] }
 0x66c   : > { %7913 = vmatmul.mubr.bf16.gmra.mrb[96].mxu0 %v7579_v10 }
 0x66d   : > { %7920 = vmatprep.mubr.bf16.mxu0 %v15392_v14  ;;  %v7578_v14 = vld [vmem:[#allocation4 + $0x148] sm:$0xff] }
 0x674   : > { %7921 = vmatmul.mubr.bf16.gmra.mrb[100].mxu0 %v7582_v9 }
 0x675   : > { %7928 = vmatprep.mubr.bf16.mxu0 %v15396_v19  ;;  %v7581_v19 = vld [vmem:[#allocation4 + $0x160] sm:$0xff] }
 0x67c   : > { %7929 = vmatmul.mubr.bf16.gmra.mrb[104].mxu0 %v7585_v38 }
 0x67d   : > { %7936 = vmatprep.mubr.bf16.mxu0 %v15449_v37 }
 0x684   : > { %7937 = vmatmul.mubr.bf16.gmra.mrb[108].mxu0 %v15449_v37 }
 0x685   : > { %10574 = vmatprep.mubr.bf16.mxu0 %v15402_v53  ;;  %v7584_v53 = vld [vmem:[#allocation4 + $0x178] sm:$0xff] }
 0x68c   : > { %10575 = vmatmul.mubr.bf16.vlgmr.msra.gmra.mrb[16].mxu0 %v15405_v62  ;;  %v7587_v62 = vld [vmem:[#allocation4 + $0x190] sm:$0xff] }
 0x68d   : > { %10578 = vmatprep.mubr.bf16.mxu0 %v15415_v58 }
 0x694   : > { %10579 = vmatmul.mubr.bf16.gmra.mrb[20].mxu0 %v15418_v33 }
 0x695   : > { %10582 = vmatprep.mubr.bf16.mxu0 %v15427_v2 }
 0x69c   : > { %10583 = vmatmul.mubr.bf16.gmra.mrb[24].mxu0 %v15502_v3 }
 0x69d   : > { %10586 = vmatprep.mubr.bf16.mxu0 %v15505_v8 }
 0x6a4   : > { %10587 = vmatmul.mubr.bf16.gmra.mrb[28].mxu0 %v15522_v63 }
 0x6a5   : > { %10590 = vmatprep.mubr.bf16.mxu0 %v15525_v41 }
 0x6ac   : > { %10591 = vmatmul.mubr.bf16.gmra.mrb[32].mxu0 %v7572_v20 }
 0x6ad   : > { %10594 = vmatprep.mubr.bf16.mxu0 %v7575_v27 }
 0x6b4   : > { %10595 = vmatmul.mubr.bf16.gmra.mrb[36].mxu0 %v7578_v14 }
 0x6b5   : > { %10598 = vmatprep.mubr.bf16.mxu0 %v7581_v19 }
 0x6bc   : > { %10599 = vmatmul.mubr.bf16.gmra.mrb[40].mxu0 %v7584_v53 }
 0x6bd   : > { %10602 = vmatprep.mubr.bf16.mxu0 %v7587_v62 }
 0x6c4   : > { %10603 = vmatmul.mubr.bf16.gmra.mrb[44].mxu0 %v15449_v37 }
 0x6df   : > { %v10054_v58 = vpop.f32.mrb[48].mxu0 }
 0x6e0   : > { %v10055_v33 = vpop.f32.mrb[49].mxu0 }
 0x6e1   : > { %v10056_v2 = vadd.f32 %v10055_v33, %v10054_v58  ;;  %v10057_v3 = vpop.f32.mrb[50].mxu0 }
 0x6e2   : > { %v10058_v8 = vpop.f32.mrb[51].mxu0 }
 0x6e3   : > { %v10059_v63 = vadd.f32 %v10058_v8, %v10057_v3  ;;  %v15639_v41 = vadd.f32 %v15500_v44, %v10056_v2 }
 0x6e5   : > { %v15642_v50 = vadd.f32 %v15508_v11, %v10059_v63 }
 0x6e7   : > { %v10060_v30 = vpop.f32.mrb[52].mxu0 }
 0x6e8   : > { %v10061_v57 = vpop.f32.mrb[53].mxu0 }
 0x6e9   : > { %v10062_v48 = vadd.f32 %v10061_v57, %v10060_v30  ;;  %v10063_v23 = vpop.f32.mrb[54].mxu0 }
 0x6ea   : > { %v10064_v60 = vpop.f32.mrb[55].mxu0 }
 0x6eb   : > { %v10065_v1 = vadd.f32 %v10064_v60, %v10063_v23  ;;  %v15645_v37 = vadd.f32 %v15520_v6, %v10062_v48 }
 0x6ed   : > { %v15648_v16 = vadd.f32 %v15527_v43, %v10065_v1 }
 0x6ef   : > { %v10066_v45 = vpop.f32.mrb[56].mxu0 }
 0x6f0   : > { %v10067_v25 = vpop.f32.mrb[57].mxu0 }
 0x6f1   : > { %v10068_v22 = vadd.f32 %v10067_v25, %v10066_v45  ;;  %v10069_v44 = vpop.f32.mrb[58].mxu0 }
 0x6f2   : > { %v10070_v40 = vpop.f32.mrb[59].mxu0 }
 0x6f3   : > { %v10071_v21 = vadd.f32 %v10070_v40, %v10069_v44  ;;  %v15651_v11 = vadd.f32 %v15530_v42, %v10068_v22 }
 0x6f5   : > { %v15654_v51 = vadd.f32 %v15533_v32, %v10071_v21 }
 0x6f7   : > { %v10072_v26 = vpop.f32.mrb[60].mxu0 }
 0x6f8   : > { %v10073_v46 = vpop.f32.mrb[61].mxu0 }
 0x6f9   : > { %v10074_v10 = vadd.f32 %v10073_v46, %v10072_v26  ;;  %v10075_v6 = vpop.f32.mrb[62].mxu0 }
 0x6fa   : > { %v10076_v9 = vpop.f32.mrb[63].mxu0 }
 0x6fb   : > { %v10077_v38 = vadd.f32 %v10076_v9, %v10075_v6  ;;  %v15657_v43 = vadd.f32 %v15536_v7, %v10074_v10 }
 0x6fd   : > { %v15660_v20 = vadd.f32 %v15539_v47, %v10077_v38 }
 0x6ff   : > { %v10078_v27 = vpop.f32.mrb[64].mxu0 }
 0x700   : > { %v10079_v14 = vpop.f32.mrb[65].mxu0 }
 0x701   : > { %v10080_v19 = vadd.f32 %v10079_v14, %v10078_v27  ;;  %v10081_v42 = vpop.f32.mrb[66].mxu0 }
 0x702   : > { %v10082_v53 = vpop.f32.mrb[67].mxu0 }
 0x703   : > { %v10083_v62 = vadd.f32 %v10082_v53, %v10081_v42  ;;  %v15663_v32 = vadd.f32 %v15542_v0, %v10080_v19 }
 0x705   : > { %v15666_v58 = vadd.f32 %v15545_v13, %v10083_v62 }
 0x707   : > { %v10084_v33 = vpop.f32.mrb[68].mxu0 }
 0x708   : > { %v10085_v2 = vpop.f32.mrb[69].mxu0 }
 0x709   : > { %v10086_v3 = vadd.f32 %v10085_v2, %v10084_v33  ;;  %v10087_v7 = vpop.f32.mrb[70].mxu0 }
 0x70a   : > { %v10088_v8 = vpop.f32.mrb[71].mxu0 }
 0x70b   : > { %v10089_v63 = vadd.f32 %v10088_v8, %v10087_v7  ;;  %v15669_v47 = vadd.f32 %v15550_v39, %v10086_v3 }
 0x70d   : > { %v15672_v30 = vadd.f32 %v15552_v15, %v10089_v63 }
 0x70f   : > { %v10090_v57 = vpop.f32.mrb[72].mxu0 }
 0x710   : > { %v10091_v48 = vpop.f32.mrb[73].mxu0 }
 0x711   : > { %v10092_v23 = vadd.f32 %v10091_v48, %v10090_v57  ;;  %v10093_v0 = vpop.f32.mrb[74].mxu0 }
 0x712   : > { %v10094_v60 = vpop.f32.mrb[75].mxu0 }
 0x713   : > { %v10095_v1 = vadd.f32 %v10094_v60, %v10093_v0  ;;  %v15675_v13 = vadd.f32 %v15561_v55, %v10092_v23 }
 0x715   : > { %v15678_v45 = vadd.f32 %v15563_v61, %v10095_v1 }
 0x717   : > { %v10096_v25 = vpop.f32.mrb[76].mxu0 }
 0x718   : > { %v10097_v22 = vpop.f32.mrb[77].mxu0 }
 0x719   : > { %v10098_v44 = vadd.f32 %v10097_v22, %v10096_v25  ;;  %v10099_v39 = vpop.f32.mrb[78].mxu0 }
 0x71a   : > { %v10100_v40 = vpop.f32.mrb[79].mxu0 }
 0x71b   : > { %v10101_v21 = vadd.f32 %v10100_v40, %v10099_v39  ;;  %v15681_v15 = vadd.f32 %v15572_v4, %v10098_v44 }
 0x71d   : > { %v15684_v26 = vadd.f32 %v15574_v28, %v10101_v21 }
 0x71f   : > { %v10102_v46 = vpop.f32.mrb[80].mxu0 }
 0x720   : > { %v10103_v10 = vpop.f32.mrb[81].mxu0 }
 0x721   : > { %v10104_v6 = vadd.f32 %v10103_v10, %v10102_v46  ;;  %v10105_v55 = vpop.f32.mrb[82].mxu0  ;;  %v16020_v46 = vld [vmem:[#allocation11_spill] sm:$0xff] }
 0x722   : > { %v10106_v9 = vpop.f32.mrb[83].mxu0 }
 0x723   : > { %v10107_v38 = vadd.f32 %v10106_v9, %v10105_v55  ;;  %v15687_v61 = vadd.f32 %v15583_v59, %v10104_v6 }
 0x725   : > { %v15690_v27 = vadd.f32 %v15585_v29, %v10107_v38 }
 0x727   : > { %v10108_v14 = vpop.f32.mrb[84].mxu0 }
 0x728   : > { %v10109_v19 = vpop.f32.mrb[85].mxu0 }
 0x729   : > { %v10110_v42 = vadd.f32 %v10109_v19, %v10108_v14  ;;  %v10111_v4 = vpop.f32.mrb[86].mxu0 }
 0x72a   : > { %v10112_v53 = vpop.f32.mrb[87].mxu0 }
 0x72b   : > { %v10113_v62 = vadd.f32 %v10112_v53, %v10111_v4  ;;  %v15693_v28 = vadd.f32 %v15588_v12, %v10110_v42 }
 0x72d   : > { %v15696_v33 = vadd.f32 %v15590_v52, %v10113_v62 }
 0x72f   : > { %v10114_v2 = vpop.f32.mrb[88].mxu0 }
 0x730   : > { %v10115_v3 = vpop.f32.mrb[89].mxu0 }
 0x731   : > { %v10116_v7 = vadd.f32 %v10115_v3, %v10114_v2  ;;  %v10117_v59 = vpop.f32.mrb[90].mxu0 }
 0x732   : > { %v10118_v8 = vpop.f32.mrb[91].mxu0 }
 0x733   : > { %v10119_v63 = vadd.f32 %v10118_v8, %v10117_v59  ;;  %v15699_v29 = vadd.f32 %v15593_v24, %v10116_v7 }
 0x735   : > { %v15702_v57 = vadd.f32 %v15595_v34, %v10119_v63 }
 0x737   : > { %v10120_v48 = vpop.f32.mrb[92].mxu0 }
 0x738   : > { %v10121_v23 = vpop.f32.mrb[93].mxu0 }
 0x739   : > { %v10122_v0 = vadd.f32 %v10121_v23, %v10120_v48  ;;  %v10123_v12 = vpop.f32.mrb[94].mxu0 }
 0x73a   : > { %v10124_v60 = vpop.f32.mrb[95].mxu0 }
 0x73b   : > { %v10125_v1 = vadd.f32 %v10124_v60, %v10123_v12  ;;  %v15705_v52 = vadd.f32 %v15598_v36, %v10122_v0 }
 0x73d   : > { %v15708_v25 = vadd.f32 %v15600_v49, %v10125_v1 }
 0x73f   : > { %v10126_v22 = vpop.f32.mrb[96].mxu0 }
 0x740   : > { %v10127_v44 = vpop.f32.mrb[97].mxu0 }
 0x741   : > { %v10128_v39 = vadd.f32 %v10127_v44, %v10126_v22  ;;  %v10129_v24 = vpop.f32.mrb[98].mxu0 }
 0x742   : > { %v10130_v40 = vpop.f32.mrb[99].mxu0 }
 0x743   : > { %v10131_v21 = vadd.f32 %v10130_v40, %v10129_v24  ;;  %v15711_v34 = vadd.f32 %v15603_v17, %v10128_v39 }
 0x745   : > { %v15714_v10 = vadd.f32 %v16020_v46, %v10131_v21 }
 0x747   : > { %v10132_v6 = vpop.f32.mrb[100].mxu0 }
 0x748   : > { %v10133_v55 = vpop.f32.mrb[101].mxu0 }
 0x749   : > { %v10134_v9 = vadd.f32 %v10133_v55, %v10132_v6  ;;  %v10135_v36 = vpop.f32.mrb[102].mxu0 }
 0x74a   : > { %v10136_v38 = vpop.f32.mrb[103].mxu0 }
 0x74b   : > { %v10137_v14 = vadd.f32 %v10136_v38, %v10135_v36  ;;  %v15717_v49 = vadd.f32 %v15608_v18, %v10134_v9 }
 0x74d   : > { %v15720_v19 = vadd.f32 %v15610_v54, %v10137_v14 }
 0x74f   : > { %v10138_v42 = vpop.f32.mrb[104].mxu0 }
 0x750   : > { %v10139_v4 = vpop.f32.mrb[105].mxu0 }
 0x751   : > { %v10140_v53 = vadd.f32 %v10139_v4, %v10138_v42  ;;  %v10141_v17 = vpop.f32.mrb[106].mxu0 }
 0x752   : > { %v10142_v62 = vpop.f32.mrb[107].mxu0 }
 0x753   : > { %v10143_v2 = vadd.f32 %v10142_v62, %v10141_v17  ;;  %v15723_v3 = vadd.f32 %v15613_v35, %v10140_v53  ;;  %v15737_v35 = vld [vmem:[%s15929_s5 + $0x2] ss:$0 sm:$0xff] }
 0x755   : > { %v15726_v7 = vadd.f32 %v15615_v5, %v10143_v2 }
 0x757   : > { %v10144_v59 = vpop.f32.mrb[108].mxu0 }
 0x758   : > { %v10145_v8 = vpop.f32.mrb[109].mxu0 }
 0x759   : > { %v10146_v63 = vadd.f32 %v10145_v8, %v10144_v59  ;;  %v10147_v18 = vpop.f32.mrb[110].mxu0 }
 0x75a   : > { %v10148_v48 = vpop.f32.mrb[111].mxu0 }
 0x75b   : > { %v10149_v23 = vadd.f32 %v10148_v48, %v10147_v18  ;;  %v15729_v54 = vadd.f32 %v15618_v56, %v10146_v63 }
 0x75d   : > { %v15732_v0 = vadd.f32 %v15620_v31, %v10149_v23 }
 0x75f   : > { %v10576_v5 = vpop.f32.mrb[16].mxu0 }
 0x760   : > { %v10816_v12 = vadd.f32 %v15645_v37, %v10576_v5  ;;  %v7979_v60 = vpop.f32.mrb[17].mxu0 }
 0x761   : > { %v10819_v1 = vadd.f32 %v15639_v41, %v7979_v60  ;;  %v10577_v22 = vpop.f32.mrb[18].mxu0 }
 0x762   : > { %v8146_v56 = vadd.f32 %v10816_v12, %v15737_v35  ;;  %v10822_v44 = vadd.f32 %v15648_v16, %v10577_v22  ;;  %v7982_v31 = vpop.f32.mrb[19].mxu0 }
 0x763   : > { %v8144_v39 = vadd.f32 %v10819_v1, %v15737_v35  ;;  %v10825_v24 = vadd.f32 %v15642_v50, %v7982_v31 }
 0x764   : > { %11649 = vtanh.f32 %v8146_v56  ;;  %v8147_v40 = vadd.f32 %v10822_v44, %v15737_v35 }
 0x765   : > { %11651 = vtanh.f32 %v8144_v39  ;;  %v8145_v37 = vadd.f32 %v10825_v24, %v15737_v35 }
 0x766   : > { %11653 = vtanh.f32 %v8147_v40 }
 0x767   : > { %11655 = vtanh.f32 %v8145_v37  ;;  %v10580_v41 = vpop.f32.mrb[20].mxu0 }
 0x768   : > { %v10828_v21 = vadd.f32 %v15657_v43, %v10580_v41  ;;  %v7995_v46 = vpop.f32.mrb[21].mxu0 }
 0x769   : > { %v10831_v16 = vadd.f32 %v15651_v11, %v7995_v46  ;;  %v10581_v6 = vpop.f32.mrb[22].mxu0 }
 0x76a   : > { %v8150_v50 = vadd.f32 %v10828_v21, %v15737_v35  ;;  %v10834_v55 = vadd.f32 %v15660_v20, %v10581_v6  ;;  %v7998_v9 = vpop.f32.mrb[23].mxu0 }
 0x76b   : > { %v8148_v36 = vadd.f32 %v10831_v16, %v15737_v35  ;;  %v10837_v38 = vadd.f32 %v15654_v51, %v7998_v9 }
 0x76c   : > { %11657 = vtanh.f32 %v8150_v50  ;;  %v8151_v14 = vadd.f32 %v10834_v55, %v15737_v35 }
 0x76d   : > { %11659 = vtanh.f32 %v8148_v36  ;;  %v8149_v43 = vadd.f32 %v10837_v38, %v15737_v35 }
 0x76e   : > { %v11650_v42 = vpop.eup %11649  ;;  %11661 = vtanh.f32 %v8151_v14 }
 0x76f   : > { %v11652_v4 = vpop.eup %11651  ;;  %8210 = vst.msk [vmem:[%s15758_s14 + $0x10] sm:$0xff] %vm594_vm0, %v11650_v42  ;;  %11663 = vtanh.f32 %v8149_v43  ;;  %v10584_v11 = vpop.f32.mrb[24].mxu0 }
 0x770   : > { %v11654_v51 = vpop.eup %11653  ;;  %8208 = vst.msk [vmem:[%s15758_s14] sm:$0xff] %vm594_vm0, %v11652_v4  ;;  %v10840_v20 = vadd.f32 %v15669_v47, %v10584_v11  ;;  %v8011_v53 = vpop.f32.mrb[25].mxu0 }
 0x771   : > { %v11656_v17 = vpop.eup %11655  ;;  %8211 = vst.msk [vmem:[%s15758_s14 + $0x18] sm:$0xff] %vm594_vm0, %v11654_v51  ;;  %v10843_v62 = vadd.f32 %v15663_v32, %v8011_v53  ;;  %v10585_v2 = vpop.f32.mrb[26].mxu0 }
 0x772   : > { %8209 = vst.msk [vmem:[%s15758_s14 + $0x8] sm:$0xff] %vm594_vm0, %v11656_v17  ;;  %v8154_v59 = vadd.f32 %v10840_v20, %v15737_v35  ;;  %v10846_v8 = vadd.f32 %v15672_v30, %v10585_v2  ;;  %v8014_v63 = vpop.f32.mrb[27].mxu0 }
 0x773   : > { %v8152_v18 = vadd.f32 %v10843_v62, %v15737_v35  ;;  %v10849_v47 = vadd.f32 %v15666_v58, %v8014_v63 }
 0x774   : > { %11665 = vtanh.f32 %v8154_v59  ;;  %v8155_v48 = vadd.f32 %v10846_v8, %v15737_v35 }
 0x775   : > { %11667 = vtanh.f32 %v8152_v18  ;;  %v8153_v32 = vadd.f32 %v10849_v47, %v15737_v35 }
 0x776   : > { %v11658_v23 = vpop.eup %11657  ;;  %11669 = vtanh.f32 %v8155_v48 }
 0x777   : > { %v11660_v5 = vpop.eup %11659  ;;  %8214 = vst.msk [vmem:[%s15758_s14 + $0x30] sm:$0xff] %vm594_vm0, %v11658_v23  ;;  %11671 = vtanh.f32 %v8153_v32  ;;  %v10588_v30 = vpop.f32.mrb[28].mxu0 }
 0x778   : > { %v11662_v12 = vpop.eup %11661  ;;  %8212 = vst.msk [vmem:[%s15758_s14 + $0x20] sm:$0xff] %vm594_vm0, %v11660_v5  ;;  %v10852_v58 = vadd.f32 %v15681_v15, %v10588_v30  ;;  %v8027_v60 = vpop.f32.mrb[29].mxu0 }
 0x779   : > { %v11664_v1 = vpop.eup %11663  ;;  %8215 = vst.msk [vmem:[%s15758_s14 + $0x38] sm:$0xff] %vm594_vm0, %v11662_v12  ;;  %v10855_v22 = vadd.f32 %v15675_v13, %v8027_v60  ;;  %v10589_v56 = vpop.f32.mrb[30].mxu0 }
 0x77a   : > { %8213 = vst.msk [vmem:[%s15758_s14 + $0x28] sm:$0xff] %vm594_vm0, %v11664_v1  ;;  %v8158_v44 = vadd.f32 %v10852_v58, %v15737_v35  ;;  %v10858_v31 = vadd.f32 %v15684_v26, %v10589_v56  ;;  %v8030_v39 = vpop.f32.mrb[31].mxu0 }
 0x77b   : > { %v8156_v24 = vadd.f32 %v10855_v22, %v15737_v35  ;;  %v10861_v15 = vadd.f32 %v15678_v45, %v8030_v39 }
 0x77c   : > { %11673 = vtanh.f32 %v8158_v44  ;;  %v8159_v40 = vadd.f32 %v10858_v31, %v15737_v35 }
 0x77d   : > { %11675 = vtanh.f32 %v8156_v24  ;;  %v8157_v13 = vadd.f32 %v10861_v15, %v15737_v35 }
 0x77e   : > { %v11666_v37 = vpop.eup %11665  ;;  %11677 = vtanh.f32 %v8159_v40 }
 0x77f   : > { %v11668_v41 = vpop.eup %11667  ;;  %8218 = vst.msk [vmem:[%s15758_s14 + $0x50] sm:$0xff] %vm594_vm0, %v11666_v37  ;;  %11679 = vtanh.f32 %v8157_v13  ;;  %v10592_v26 = vpop.f32.mrb[32].mxu0 }
 0x780   : > { %v11670_v21 = vpop.eup %11669  ;;  %8216 = vst.msk [vmem:[%s15758_s14 + $0x40] sm:$0xff] %vm594_vm0, %v11668_v41  ;;  %v10864_v45 = vadd.f32 %v15693_v28, %v10592_v26  ;;  %v8043_v46 = vpop.f32.mrb[33].mxu0 }
 0x781   : > { %v11672_v16 = vpop.eup %11671  ;;  %8219 = vst.msk [vmem:[%s15758_s14 + $0x58] sm:$0xff] %vm594_vm0, %v11670_v21  ;;  %v10867_v6 = vadd.f32 %v15687_v61, %v8043_v46  ;;  %v10593_v50 = vpop.f32.mrb[34].mxu0 }
 0x782   : > { %8217 = vst.msk [vmem:[%s15758_s14 + $0x48] sm:$0xff] %vm594_vm0, %v11672_v16  ;;  %v8162_v55 = vadd.f32 %v10864_v45, %v15737_v35  ;;  %v10870_v9 = vadd.f32 %v15696_v33, %v10593_v50  ;;  %v8046_v36 = vpop.f32.mrb[35].mxu0 }
 0x783   : > { %v8160_v38 = vadd.f32 %v10867_v6, %v15737_v35  ;;  %v10873_v28 = vadd.f32 %v15690_v27, %v8046_v36 }
 0x784   : > { %11681 = vtanh.f32 %v8162_v55  ;;  %v8163_v14 = vadd.f32 %v10870_v9, %v15737_v35 }
 0x785   : > { %11683 = vtanh.f32 %v8160_v38  ;;  %v8161_v61 = vadd.f32 %v10873_v28, %v15737_v35 }
 0x786   : > { %v11674_v43 = vpop.eup %11673  ;;  %11685 = vtanh.f32 %v8163_v14 }
 0x787   : > { %v11676_v42 = vpop.eup %11675  ;;  %8222 = vst.msk [vmem:[%s15758_s14 + $0x70] sm:$0xff] %vm594_vm0, %v11674_v43  ;;  %11687 = vtanh.f32 %v8161_v61  ;;  %v10596_v33 = vpop.f32.mrb[36].mxu0 }
 0x788   : > { %v11678_v4 = vpop.eup %11677  ;;  %8220 = vst.msk [vmem:[%s15758_s14 + $0x60] sm:$0xff] %vm594_vm0, %v11676_v42  ;;  %v10876_v27 = vadd.f32 %v15705_v52, %v10596_v33  ;;  %v8059_v11 = vpop.f32.mrb[37].mxu0 }
 0x789   : > { %v11680_v51 = vpop.eup %11679  ;;  %8223 = vst.msk [vmem:[%s15758_s14 + $0x78] sm:$0xff] %vm594_vm0, %v11678_v4  ;;  %v10879_v20 = vadd.f32 %v15699_v29, %v8059_v11  ;;  %v10597_v53 = vpop.f32.mrb[38].mxu0 }
 0x78a   : > { %8221 = vst.msk [vmem:[%s15758_s14 + $0x68] sm:$0xff] %vm594_vm0, %v11680_v51  ;;  %v8166_v17 = vadd.f32 %v10876_v27, %v15737_v35  ;;  %v10882_v62 = vadd.f32 %v15708_v25, %v10597_v53  ;;  %v8062_v2 = vpop.f32.mrb[39].mxu0 }
 0x78b   : > { %v8164_v59 = vadd.f32 %v10879_v20, %v15737_v35  ;;  %v10885_v52 = vadd.f32 %v15702_v57, %v8062_v2 }
 0x78c   : > { %11689 = vtanh.f32 %v8166_v17  ;;  %v8167_v8 = vadd.f32 %v10882_v62, %v15737_v35 }
 0x78d   : > { %11691 = vtanh.f32 %v8164_v59  ;;  %v8165_v29 = vadd.f32 %v10885_v52, %v15737_v35 }
 0x78e   : > { %v11682_v63 = vpop.eup %11681  ;;  %11693 = vtanh.f32 %v8167_v8 }
 0x78f   : > { %v11684_v18 = vpop.eup %11683  ;;  %8226 = vst.msk [vmem:[%s15758_s14 + $0x90] sm:$0xff] %vm594_vm0, %v11682_v63  ;;  %11695 = vtanh.f32 %v8165_v29  ;;  %v10600_v25 = vpop.f32.mrb[40].mxu0 }
 0x790   : > { %v11686_v47 = vpop.eup %11685  ;;  %8224 = vst.msk [vmem:[%s15758_s14 + $0x80] sm:$0xff] %vm594_vm0, %v11684_v18  ;;  %v10888_v57 = vadd.f32 %v15717_v49, %v10600_v25  ;;  %v8075_v48 = vpop.f32.mrb[41].mxu0 }
 0x791   : > { %v11688_v32 = vpop.eup %11687  ;;  %8227 = vst.msk [vmem:[%s15758_s14 + $0x98] sm:$0xff] %vm594_vm0, %v11686_v47  ;;  %v10891_v23 = vadd.f32 %v15711_v34, %v8075_v48  ;;  %v10601_v5 = vpop.f32.mrb[42].mxu0 }
 0x792   : > { %8225 = vst.msk [vmem:[%s15758_s14 + $0x88] sm:$0xff] %vm594_vm0, %v11688_v32  ;;  %v8170_v30 = vadd.f32 %v10888_v57, %v15737_v35  ;;  %v10894_v12 = vadd.f32 %v15720_v19, %v10601_v5  ;;  %v8078_v58 = vpop.f32.mrb[43].mxu0 }
 0x793   : > { %v8168_v60 = vadd.f32 %v10891_v23, %v15737_v35  ;;  %v10897_v49 = vadd.f32 %v15714_v10, %v8078_v58 }
 0x794   : > { %11697 = vtanh.f32 %v8170_v30  ;;  %v8171_v1 = vadd.f32 %v10894_v12, %v15737_v35 }
 0x795   : > { %11699 = vtanh.f32 %v8168_v60  ;;  %v8169_v34 = vadd.f32 %v10897_v49, %v15737_v35 }
 0x796   : > { %v11690_v22 = vpop.eup %11689  ;;  %11701 = vtanh.f32 %v8171_v1 }
 0x797   : > { %v11692_v56 = vpop.eup %11691  ;;  %8230 = vst.msk [vmem:[%s15758_s14 + $0xb0] sm:$0xff] %vm594_vm0, %v11690_v22  ;;  %11703 = vtanh.f32 %v8169_v34  ;;  %v10604_v19 = vpop.f32.mrb[44].mxu0 }
 0x798   : > { %v11694_v44 = vpop.eup %11693  ;;  %8228 = vst.msk [vmem:[%s15758_s14 + $0xa0] sm:$0xff] %vm594_vm0, %v11692_v56  ;;  %v10900_v10 = vadd.f32 %v15729_v54, %v10604_v19  ;;  %v8091_v31 = vpop.f32.mrb[45].mxu0 }
 0x799   : > { %v11696_v39 = vpop.eup %11695  ;;  %8231 = vst.msk [vmem:[%s15758_s14 + $0xb8] sm:$0xff] %vm594_vm0, %v11694_v44  ;;  %v10903_v24 = vadd.f32 %v15723_v3, %v8091_v31  ;;  %v10605_v15 = vpop.f32.mrb[46].mxu0 }
 0x79a   : > { %8229 = vst.msk [vmem:[%s15758_s14 + $0xa8] sm:$0xff] %vm594_vm0, %v11696_v39  ;;  %v8174_v40 = vadd.f32 %v10900_v10, %v15737_v35  ;;  %v10906_v13 = vadd.f32 %v15732_v0, %v10605_v15  ;;  %v8094_v37 = vpop.f32.mrb[47].mxu0 }
 0x79b   : > { %v8172_v54 = vadd.f32 %v10903_v24, %v15737_v35  ;;  %v10909_v41 = vadd.f32 %v15726_v7, %v8094_v37 }
 0x79c   : > { %11705 = vtanh.f32 %v8174_v40  ;;  %v8175_v3 = vadd.f32 %v10906_v13, %v15737_v35 }
 0x79d   : > { %11707 = vtanh.f32 %v8172_v54  ;;  %v8173_v26 = vadd.f32 %v10909_v41, %v15737_v35 }
 0x79e   : > { %v11698_v21 = vpop.eup %11697  ;;  %11709 = vtanh.f32 %v8175_v3 }
 0x79f   : > { %v11700_v45 = vpop.eup %11699  ;;  %8234 = vst.msk [vmem:[%s15758_s14 + $0xd0] sm:$0xff] %vm594_vm0, %v11698_v21  ;;  %11711 = vtanh.f32 %v8173_v26 }
 0x7a0   : > { %v11702_v0 = vpop.eup %11701  ;;  %8232 = vst.msk [vmem:[%s15758_s14 + $0xc0] sm:$0xff] %vm594_vm0, %v11700_v45 }
 0x7a1   : > { %v11704_v7 = vpop.eup %11703  ;;  %8235 = vst.msk [vmem:[%s15758_s14 + $0xd8] sm:$0xff] %vm594_vm0, %v11702_v0 }
 0x7a2   : > { %8233 = vst.msk [vmem:[%s15758_s14 + $0xc8] sm:$0xff] %vm594_vm0, %v11704_v7 }
 0x7a6   : > { %v11706_v35 = vpop.eup %11705 }
 0x7a7   : > { %v11708_v46 = vpop.eup %11707  ;;  %8238 = vst.msk [vmem:[%s15758_s14 + $0xf0] sm:$0xff] %vm594_vm0, %v11706_v35 }
 0x7a8   : > { %v11710_v16 = vpop.eup %11709  ;;  %8236 = vst.msk [vmem:[%s15758_s14 + $0xe0] sm:$0xff] %vm594_vm0, %v11708_v46 }
 0x7a9   : > { %v11712_v6 = vpop.eup %11711  ;;  %8239 = vst.msk [vmem:[%s15758_s14 + $0xf8] sm:$0xff] %vm594_vm0, %v11710_v16 }
 0x7aa   : > { %8237 = vst.msk [vmem:[%s15758_s14 + $0xe8] sm:$0xff] %vm594_vm0, %v11712_v6 }
 0x7ab   : > { %11735 = shalt.err (!%p11732_p3)
}
 0x7ac   : > { %s11736_s11 = scalar_lea.hbm %s15871_s19, 4096  ;;  %s11740_s29 = scalar_lea.hbm %s15930_s6, 8192 }
 0x7ad   : > { %p11737_p4 = scmp.ne.s32.totalorder %s15871_s19, %s11736_s11  ;;  %p11741_p9 = scmp.lt.u32.totalorder %s15871_s19, %s15930_s6 }
 0x7ae   : > { %p11742_p10 = scmp.lt.u32.totalorder %s11740_s29, %s11736_s11  ;;  %p11744_p12 = scmp.lt.u32.totalorder %s11736_s11, %s15871_s19 }
 0x7af   : > { %p11738_p7 = pnand %p11737_p4, %p11864_p5 }
 0x7b0   : > { %p11743_p11 = por %p11742_p10, %p11741_p9 }
 0x7b1   : > { %p11739_p8 = pneg %p11738_p7 }
 0x7b2   : > { %p11745_p13 = por %p11744_p12, %p11743_p11 }
 0x7b4   : > { %p11746_p0 = pnand %p11745_p13, %p11739_p8 }
 0x7b6   : > { %11749 = shalt.err (!%p11746_p0)
}
 0x7b7   : > { %s11789_s9 = smov 128   ;;  %s11790_s17 = smov 8  }
 0x7b8   : > { %11102 = dma.vmem_to_hbm [thread:$0]  (%p11864_p5), %s15873_s15, 4096, %s15871_s19, %s15883_s25, %s11789_s9, %s11789_s9, %s11790_s17  }
 0x7b9 PF: > { %p11108_p1 = scmp.ge.s32.totalorder %s11784_s24, 2  ;;  %s8269_s18 = sand.u32 1, %s11772_s21  }
 0x7ba   : > { %s8270_s20 = scalar_lea.sflag [#allocation6], %s8269_s18 }
 0x7bb   : > { %p11105_p2 = pnand %p11108_p1, %p11868_p6 }
 0x7bd   : > { %11767 = dma.done.wait (!%p11105_p2), %s8270_s20, 4096  }
 0x7be   : > { %11769 = vsyncadd (!%p11105_p2), %s8270_s20, 4294963200  ;;  %p16_p3 = scmp.ge.s32.totalorder %s11851_s27, 4   ;;  %s16021_s21 = smov %s11776_s22 }
 0x7bf   : > { %s16022_s22 = smov %s11780_s23  ;;  %s16023_s23 = smov %s11862_s30 }
 0x7c0   : > { %s16024_s24 = smov %s11851_s27  ;;  %18 = sbr.rel (!%p16_p3) target bundleno = 3 (0x3), region = 96 }
 0x7c7   :  { %8275 = vsyncpa [#allocation6], 1 }
 0x7c8   :  { %8277 = vsyncpa [#allocation6 + $0x1], 1 }

</bundles_post_ra>
